<compile_context>
chip_gen: v7x
topology: tpu7x:2x2x1
jax: 0.10.0
libtpu: 0.0.40
codegen_flags: <defaults>
</compile_context>

<pallas_src>
from functools import partial

import numpy as np
import jax
import jax.numpy as jnp
from jax.experimental import pallas as pl
from jax.experimental.pallas import tpu as pltpu


# --------------------------------------------------------------------------
# layout helpers
# --------------------------------------------------------------------------

def _round_up(x, m):
    return ((x + m - 1) // m) * m


def _pad_layout(H, W):
    """Per-image padded flat layout for the 7x7 depthwise conv.

    Image pixel (h, w) lives at lane `front + h*W + w`; `front` trailing-halo lanes
    follow.  `front` is a multiple of 128 (lane-aligned interior store) and >= 3*W+3,
    so every tap slice stays inside [0, P) and out-of-image rows read zeros.
    """
    HW = H * W
    front = _round_up(3 * W + 3, 128)
    return front, front + HW + front


def _dw_channel_layout(dims):
    """Reordered abc/dw channel layout: largest group first.

    Returns (grp_off, perm): grp_off[i] is the row offset of chain group i inside the
    reordered slab; perm[new_row] = original abc channel index.  Putting the largest
    (power-of-two) groups first makes the big gating slices start on sublane-tile
    boundaries without padding the dominant depthwise loop with dead rows.
    """
    order = len(dims)
    orig_off = np.cumsum([0] + list(dims))
    grp_off = [0] * order
    acc = 0
    for g in reversed(range(order)):
        grp_off[g] = acc
        acc += dims[g]
    perm = np.zeros(sum(dims), dtype=np.int32)
    for g in range(order):
        perm[grp_off[g]:grp_off[g] + dims[g]] = np.arange(orig_off[g], orig_off[g + 1])
    return grp_off, perm


def _full_spec(arr):
    """BlockSpec covering a whole (small, grid-invariant) array."""
    zeros = (0,) * arr.ndim

    def idx(g):
        return zeros

    return pl.BlockSpec(arr.shape, idx)


# --------------------------------------------------------------------------
# fused gnconv kernel
# --------------------------------------------------------------------------

def _make_gnconv_kernel(dims, H, W, batch_tile):
    HW = H * W
    order = len(dims)
    n_pw = order - 1
    sum_dims = sum(dims)
    d0 = dims[0]
    front, P_img = _pad_layout(H, W)
    grp_off, _ = _dw_channel_layout(dims)

    def kernel(*refs):
        x_ref, wf_ref, bf_ref, dww_ref, dwb_ref = refs[:5]
        pw_refs = refs[5:5 + 2 * n_pw]
        wout_ref = refs[5 + 2 * n_pw]
        bout_ref = refs[6 + 2 * n_pw]
        o_ref = refs[7 + 2 * n_pw]
        pad_buf = refs[8 + 2 * n_pw]           # (batch_tile, sum_dims, P_img) VMEM

        x = x_ref[...].astype(jnp.float32)     # (Cin, L)  -- batch*pixels on lanes

        # ---- merged proj_in (single MXU matmul); rows [0:sum_dims] = abc (reordered),
        #      rows [sum_dims:sum_dims+d0] = pwa ----
        fused = jnp.dot(wf_ref[...], x, preferred_element_type=jnp.float32) + bf_ref[...]
        abc = fused[0:sum_dims, :]
        pwa = fused[sum_dims:sum_dims + d0, :]

        # ---- 7x7 depthwise conv (scale folded into dw weights/bias at prep time) ----
        dww = dww_ref[...]                                     # (sum_dims, 49): ONE load
        wcol = [dww[:, t:t + 1] for t in range(49)]            # per-tap (C, 1) weights
        col = jax.lax.broadcasted_iota(jnp.int32, (1, HW), 1) % W
        cmask = [jnp.logical_and(col >= 3 - kw, col < W + 3 - kw).astype(jnp.float32)
                 for kw in range(7)]                           # in-kernel column masks

        dw_parts = []
        for n in range(batch_tile):                            # static unroll over images
            # zero ONLY the halos; the interior is fully overwritten below.
            pad_buf[n, :, 0:front] = jnp.zeros((sum_dims, front), jnp.float32)
            pad_buf[n, :, front + HW:P_img] = jnp.zeros(
                (sum_dims, P_img - front - HW), jnp.float32)
            pad_buf[n, :, front:front + HW] = abc[:, n * HW:(n + 1) * HW]

            acc = None
            for kw in range(7):
                inner = None                                   # sum over kh first ...
                for kh in range(7):
                    start = front + (kh - 3) * W + (kw - 3)    # static lane offset
                    term = pad_buf[n, :, start:start + HW] * wcol[kh * 7 + kw]
                    inner = term if inner is None else inner + term
                term = inner * cmask[kw]                       # ... mask applied once per kw
                acc = term if acc is None else acc + term
            dw_parts.append(acc)
        dw = dw_parts[0] if batch_tile == 1 else jnp.concatenate(dw_parts, axis=-1)
        dw = dw + dwb_ref[...]                                 # (sum_dims, L), stays in values

        # ---- gated pointwise chain + proj_out (dw groups are tile-friendly slices) ----
        y = pwa * dw[grp_off[0]:grp_off[0] + dims[0], :]
        for i in range(n_pw):
            w_i = pw_refs[2 * i][...]
            b_i = pw_refs[2 * i + 1][...]
            # TODO(synk): for K<=4 these dots could become VPU broadcast-FMAs if the
            # bundle dump ever shows vmatmul/vpop stalls (MXU is idle here anyway).
            y = jnp.dot(w_i, y, preferred_element_type=jnp.float32) + b_i
            y = y * dw[grp_off[i + 1]:grp_off[i + 1] + dims[i + 1], :]

        out = jnp.dot(wout_ref[...], y, preferred_element_type=jnp.float32) + bout_ref[...]
        o_ref[...] = out.astype(o_ref.dtype)

    return kernel


# --------------------------------------------------------------------------
# weight prep (one-time) + forward
# --------------------------------------------------------------------------

def prepare_gnconv_params(params, dims, scale=1.0):
    """One-time re-layout of torch-style weights for the fused kernel.

    * proj_in is merged into a single (sum_dims + dims[0], dim) matrix whose first
      sum_dims rows are the abc channels re-ordered largest-group-first (see
      _dw_channel_layout) and whose last dims[0] rows are pwa.
    * `scale` is folded into the depthwise weights / bias.
    """
    d0 = dims[0]
    sum_dims = sum(dims)
    _, perm = _dw_channel_layout(dims)

    pin_w = params["proj_in_w"]                        # (2*dim, dim)
    pin_b = params["proj_in_b"]                        # (2*dim,)
    abc_w = pin_w[d0:, :][perm]                        # reordered abc rows
    abc_b = pin_b[d0:][perm]
    wf = jnp.concatenate([abc_w, pin_w[:d0, :]], axis=0)            # (sum_dims + d0, dim)
    bf = jnp.concatenate([abc_b, pin_b[:d0]], axis=0).reshape(-1, 1)

    dw_w = params["dw_w_oihw"][:, 0].reshape(sum_dims, 49)[perm] * scale
    dw_b = params["dw_b"][perm].reshape(sum_dims, 1) * scale

    return {
        "wf": wf, "bf": bf,
        "dw_w": dw_w, "dw_b": dw_b,
        "pw_w": list(params["pw_w"]),                  # torch (Cout, Cin) used directly
        "pw_b": [b.reshape(-1, 1) for b in params["pw_b"]],
        "pout_w": params["proj_out_w"],
        "pout_b": params["proj_out_b"].reshape(-1, 1),
    }


def gnconv_forward(x_nchw, prep, dims, batch_tile=None):
    """Fused Pallas gnconv forward.  x_nchw: (N, dim, H, W) float32."""
    N, C, H, W = x_nchw.shape
    HW = H * W
    sum_dims = sum(dims)
    order = len(dims)
    _, P_img = _pad_layout(H, W)

    # Lane-dense layout assumption made explicit (unmasked 128-lane stores).
    assert HW % 128 == 0, "gnconv_forward: H*W must be a multiple of 128"

    if batch_tile is None:
        # Fold the whole batch into lanes: best on single-TC v5e/v6e (fewer grid steps,
        # wider matmuls).  On v7x pass batch_tile=N//2 so both TensorCores get a step.
        batch_tile = N
    assert N % batch_tile == 0
    L = batch_tile * HW
    steps = N // batch_tile

    # (N, C, H, W) -> (C, N*HW): one tiny XLA transpose so batch folds onto lanes.
    x2 = jnp.transpose(x_nchw.reshape(N, C, HW), (1, 0, 2)).reshape(C, N * HW)

    kernel = _make_gnconv_kernel(tuple(dims), H, W, batch_tile)

    inputs = [x2, prep["wf"], prep["bf"], prep["dw_w"], prep["dw_b"]]
    in_specs = [pl.BlockSpec((C, L), lambda g: (0, g)),
                _full_spec(prep["wf"]), _full_spec(prep["bf"]),
                _full_spec(prep["dw_w"]), _full_spec(prep["dw_b"])]
    for i in range(order - 1):
        inputs += [prep["pw_w"][i], prep["pw_b"][i]]
        in_specs += [_full_spec(prep["pw_w"][i]), _full_spec(prep["pw_b"][i])]
    inputs += [prep["pout_w"], prep["pout_b"]]
    in_specs += [_full_spec(prep["pout_w"]), _full_spec(prep["pout_b"])]

    out2 = pl.pallas_call(
        kernel,
        out_shape=jax.ShapeDtypeStruct((C, N * HW), x_nchw.dtype),
        grid=(steps,),
        in_specs=in_specs,
        out_specs=pl.BlockSpec((C, L), lambda g: (0, g)),
        scratch_shapes=[pltpu.VMEM((batch_tile, sum_dims, P_img), jnp.float32)],
        compiler_params=pltpu.CompilerParams(
            dimension_semantics=("parallel",),
            vmem_limit_bytes=32 * 1024 * 1024),
        # TODO(synk): at production C/HW add a row-tiled grid axis with a 3-row halo
        # and re-budget the scratch against v7x's 64 MiB physical VMEM.
    )(*inputs)

    return jnp.transpose(out2.reshape(C, N, HW), (1, 0, 2)).reshape(N, C, H, W)


# --------------------------------------------------------------------------
# pure-JAX reference
# --------------------------------------------------------------------------

def gnconv_reference(x, params, dims, scale=1.0):
    dn = ("NCHW", "OIHW", "NCHW")

    def conv1x1(x, w, b):
        y = jax.lax.conv_general_dilated(x, w[:, :, None, None], (1, 1), "VALID",
                                         dimension_numbers=dn)
        return y + b[None, :, None, None]

    def dwc(x, w_oihw, b):
        y = jax.lax.conv_general_dilated(x, w_oihw, (1, 1), ((3, 3), (3, 3)),
                                         dimension_numbers=dn,
                                         feature_group_count=x.shape[1])
        return y + b[None, :, None, None]

    fused = conv1x1(x, params["proj_in_w"], params["proj_in_b"])
    pwa, abc = fused[:, :dims[0]], fused[:, dims[0]:]
    dw_abc = dwc(abc, params["dw_w_oihw"], params["dw_b"]) * scale
    offs = [0]
    for d in dims:
        offs.append(offs[-1] + d)
    dw_list = [dw_abc[:, offs[i]:offs[i + 1]] for i in range(len(dims))]
    y = pwa * dw_list[0]
    for i in range(len(dims) - 1):
        y = conv1x1(y, params["pw_w"][i], params["pw_b"][i]) * dw_list[i + 1]
    return conv1x1(y, params["proj_out_w"], params["proj_out_b"])


# --------------------------------------------------------------------------
# main
# --------------------------------------------------------------------------

if __name__ == "__main__":
    key = jax.random.PRNGKey(0)

    # gnconv(dim=8, order=3) -> dims = [2, 4, 8], sum(dims) = 14
    dim, order, scale = 8, 3, 1.0
    dims = [dim // 2 ** i for i in range(order)]
    dims.reverse()
    sum_dims = sum(dims)

    N, H, W = 2, 16, 16
    ks = jax.random.split(key, 16)

    def unif(k, shape, fan_in):
        bound = 1.0 / jnp.sqrt(fan_in)
        return jax.random.uniform(k, shape, jnp.float32, -bound, bound)

    dw_w_oihw = unif(ks[2], (sum_dims, 1, 7, 7), 49)          # depthwise weight (OIHW, I=1)
    params = {
        "proj_in_w": unif(ks[0], (2 * dim, dim), dim),        # Conv2d(dim, 2*dim, 1)
        "proj_in_b": unif(ks[1], (2 * dim,), dim),
        "dw_w_oihw": dw_w_oihw,
        "dw_b": unif(ks[3], (sum_dims,), 49),
        "proj_out_w": unif(ks[4], (dim, dim), dim),           # Conv2d(dim, dim, 1)
        "proj_out_b": unif(ks[5], (dim,), dim),
        "pw_w": [unif(ks[6 + 2 * i], (dims[i + 1], dims[i]), dims[i])
                 for i in range(order - 1)],
        "pw_b": [unif(ks[7 + 2 * i], (dims[i + 1],), dims[i])
                 for i in range(order - 1)],
    }

    x = jax.random.normal(ks[12], (N, dim, H, W), jnp.float32)  # NCHW, like PyTorch

    prep = prepare_gnconv_params(params, dims, scale)            # one-time weight re-layout
    fwd = jax.jit(partial(gnconv_forward, dims=tuple(dims)))

    out = fwd(x, prep)
    out = jax.block_until_ready(out)

    ref = gnconv_reference(x, params, dims, scale)
    assert out.shape == (N, dim, H, W)
    assert jnp.max(jnp.abs(out - ref)) < 1e-4, "Pallas gnconv mismatch vs reference"

    print("KERNEL_OK")
</pallas_src>

<mosaic_0001>
module attributes {stable_mosaic.version = 11 : i64} {
  func.func @kernel(%arg0: i32, %arg1: memref<8x512xf32, #tpu.memory_space<vmem>>, %arg2: memref<16x8xf32, #tpu.memory_space<vmem>>, %arg3: memref<16x1xf32, #tpu.memory_space<vmem>>, %arg4: memref<14x49xf32, #tpu.memory_space<vmem>>, %arg5: memref<14x1xf32, #tpu.memory_space<vmem>>, %arg6: memref<4x2xf32, #tpu.memory_space<vmem>>, %arg7: memref<4x1xf32, #tpu.memory_space<vmem>>, %arg8: memref<8x4xf32, #tpu.memory_space<vmem>>, %arg9: memref<8x1xf32, #tpu.memory_space<vmem>>, %arg10: memref<8x8xf32, #tpu.memory_space<vmem>>, %arg11: memref<8x1xf32, #tpu.memory_space<vmem>>, %arg12: memref<8x512xf32, #tpu.memory_space<vmem>>, %arg13: memref<2x14x512xf32, #tpu.memory_space<vmem>>) attributes {dimension_semantics = [#tpu.dimension_semantics<parallel>], iteration_bounds = array<i64: 1>, scalar_prefetch = 0 : i64, scratch_operands = 1 : i64, tpu.core_type = #tpu.core_type<tc>, window_params = [{transform_indices = @transform_0, window_bounds = array<i64: 8, 512>}, {pipeline_mode = #tpu.pipeline_mode<synchronous>, transform_indices = @transform_1, window_bounds = array<i64: 16, 8>}, {pipeline_mode = #tpu.pipeline_mode<synchronous>, transform_indices = @transform_2, window_bounds = array<i64: 16, 1>}, {pipeline_mode = #tpu.pipeline_mode<synchronous>, transform_indices = @transform_3, window_bounds = array<i64: 14, 49>}, {pipeline_mode = #tpu.pipeline_mode<synchronous>, transform_indices = @transform_4, window_bounds = array<i64: 14, 1>}, {pipeline_mode = #tpu.pipeline_mode<synchronous>, transform_indices = @transform_5, window_bounds = array<i64: 4, 2>}, {pipeline_mode = #tpu.pipeline_mode<synchronous>, transform_indices = @transform_6, window_bounds = array<i64: 4, 1>}, {pipeline_mode = #tpu.pipeline_mode<synchronous>, transform_indices = @transform_7, window_bounds = array<i64: 8, 4>}, {pipeline_mode = #tpu.pipeline_mode<synchronous>, transform_indices = @transform_8, window_bounds = array<i64: 8, 1>}, {pipeline_mode = #tpu.pipeline_mode<synchronous>, transform_indices = @transform_9, window_bounds = array<i64: 8, 8>}, {pipeline_mode = #tpu.pipeline_mode<synchronous>, transform_indices = @transform_10, window_bounds = array<i64: 8, 1>}, {transform_indices = @transform_11, window_bounds = array<i64: 8, 512>}]} {
    %c0 = arith.constant 0 : index
    %c0_0 = arith.constant 0 : index
    %0 = vector.load %arg1[%c0, %c0_0] : memref<8x512xf32, #tpu.memory_space<vmem>>, vector<8x512xf32>
    %c0_1 = arith.constant 0 : index
    %c0_2 = arith.constant 0 : index
    %1 = vector.load %arg2[%c0_1, %c0_2] : memref<16x8xf32, #tpu.memory_space<vmem>>, vector<16x8xf32>
    %cst = arith.constant dense<0.000000e+00> : vector<16x512xf32>
    %2 = tpu.matmul %1, %0, %cst {dimension_numbers = #tpu.dot_dimension_numbers<[1], [0], [0], [1], [0, 0, 1, 1], [], []>} : vector<16x8xf32>, vector<8x512xf32>, vector<16x512xf32> -> vector<16x512xf32>
    %c0_3 = arith.constant 0 : index
    %c0_4 = arith.constant 0 : index
    %3 = vector.load %arg3[%c0_3, %c0_4] : memref<16x1xf32, #tpu.memory_space<vmem>>, vector<16x1xf32>
    %4 = vector.broadcast %3 : vector<16x1xf32> to vector<16x512xf32>
    %5 = arith.addf %2, %4 : vector<16x512xf32>
    %6 = vector.extract_strided_slice %5 {offsets = [0, 0], sizes = [14, 512], strides = [1, 1]} : vector<16x512xf32> to vector<14x512xf32>
    %7 = vector.extract_strided_slice %5 {offsets = [14, 0], sizes = [2, 512], strides = [1, 1]} : vector<16x512xf32> to vector<2x512xf32>
    %c0_5 = arith.constant 0 : index
    %c0_6 = arith.constant 0 : index
    %8 = vector.load %arg4[%c0_5, %c0_6] : memref<14x49xf32, #tpu.memory_space<vmem>>, vector<14x49xf32>
    %9 = vector.extract_strided_slice %8 {offsets = [0, 0], sizes = [14, 1], strides = [1, 1]} : vector<14x49xf32> to vector<14x1xf32>
    %10 = vector.extract_strided_slice %8 {offsets = [0, 1], sizes = [14, 1], strides = [1, 1]} : vector<14x49xf32> to vector<14x1xf32>
    %11 = vector.extract_strided_slice %8 {offsets = [0, 2], sizes = [14, 1], strides = [1, 1]} : vector<14x49xf32> to vector<14x1xf32>
    %12 = vector.extract_strided_slice %8 {offsets = [0, 3], sizes = [14, 1], strides = [1, 1]} : vector<14x49xf32> to vector<14x1xf32>
    %13 = vector.extract_strided_slice %8 {offsets = [0, 4], sizes = [14, 1], strides = [1, 1]} : vector<14x49xf32> to vector<14x1xf32>
    %14 = vector.extract_strided_slice %8 {offsets = [0, 5], sizes = [14, 1], strides = [1, 1]} : vector<14x49xf32> to vector<14x1xf32>
    %15 = vector.extract_strided_slice %8 {offsets = [0, 6], sizes = [14, 1], strides = [1, 1]} : vector<14x49xf32> to vector<14x1xf32>
    %16 = vector.extract_strided_slice %8 {offsets = [0, 7], sizes = [14, 1], strides = [1, 1]} : vector<14x49xf32> to vector<14x1xf32>
    %17 = vector.extract_strided_slice %8 {offsets = [0, 8], sizes = [14, 1], strides = [1, 1]} : vector<14x49xf32> to vector<14x1xf32>
    %18 = vector.extract_strided_slice %8 {offsets = [0, 9], sizes = [14, 1], strides = [1, 1]} : vector<14x49xf32> to vector<14x1xf32>
    %19 = vector.extract_strided_slice %8 {offsets = [0, 10], sizes = [14, 1], strides = [1, 1]} : vector<14x49xf32> to vector<14x1xf32>
    %20 = vector.extract_strided_slice %8 {offsets = [0, 11], sizes = [14, 1], strides = [1, 1]} : vector<14x49xf32> to vector<14x1xf32>
    %21 = vector.extract_strided_slice %8 {offsets = [0, 12], sizes = [14, 1], strides = [1, 1]} : vector<14x49xf32> to vector<14x1xf32>
    %22 = vector.extract_strided_slice %8 {offsets = [0, 13], sizes = [14, 1], strides = [1, 1]} : vector<14x49xf32> to vector<14x1xf32>
    %23 = vector.extract_strided_slice %8 {offsets = [0, 14], sizes = [14, 1], strides = [1, 1]} : vector<14x49xf32> to vector<14x1xf32>
    %24 = vector.extract_strided_slice %8 {offsets = [0, 15], sizes = [14, 1], strides = [1, 1]} : vector<14x49xf32> to vector<14x1xf32>
    %25 = vector.extract_strided_slice %8 {offsets = [0, 16], sizes = [14, 1], strides = [1, 1]} : vector<14x49xf32> to vector<14x1xf32>
    %26 = vector.extract_strided_slice %8 {offsets = [0, 17], sizes = [14, 1], strides = [1, 1]} : vector<14x49xf32> to vector<14x1xf32>
    %27 = vector.extract_strided_slice %8 {offsets = [0, 18], sizes = [14, 1], strides = [1, 1]} : vector<14x49xf32> to vector<14x1xf32>
    %28 = vector.extract_strided_slice %8 {offsets = [0, 19], sizes = [14, 1], strides = [1, 1]} : vector<14x49xf32> to vector<14x1xf32>
    %29 = vector.extract_strided_slice %8 {offsets = [0, 20], sizes = [14, 1], strides = [1, 1]} : vector<14x49xf32> to vector<14x1xf32>
    %30 = vector.extract_strided_slice %8 {offsets = [0, 21], sizes = [14, 1], strides = [1, 1]} : vector<14x49xf32> to vector<14x1xf32>
    %31 = vector.extract_strided_slice %8 {offsets = [0, 22], sizes = [14, 1], strides = [1, 1]} : vector<14x49xf32> to vector<14x1xf32>
    %32 = vector.extract_strided_slice %8 {offsets = [0, 23], sizes = [14, 1], strides = [1, 1]} : vector<14x49xf32> to vector<14x1xf32>
    %33 = vector.extract_strided_slice %8 {offsets = [0, 24], sizes = [14, 1], strides = [1, 1]} : vector<14x49xf32> to vector<14x1xf32>
    %34 = vector.extract_strided_slice %8 {offsets = [0, 25], sizes = [14, 1], strides = [1, 1]} : vector<14x49xf32> to vector<14x1xf32>
    %35 = vector.extract_strided_slice %8 {offsets = [0, 26], sizes = [14, 1], strides = [1, 1]} : vector<14x49xf32> to vector<14x1xf32>
    %36 = vector.extract_strided_slice %8 {offsets = [0, 27], sizes = [14, 1], strides = [1, 1]} : vector<14x49xf32> to vector<14x1xf32>
    %37 = vector.extract_strided_slice %8 {offsets = [0, 28], sizes = [14, 1], strides = [1, 1]} : vector<14x49xf32> to vector<14x1xf32>
    %38 = vector.extract_strided_slice %8 {offsets = [0, 29], sizes = [14, 1], strides = [1, 1]} : vector<14x49xf32> to vector<14x1xf32>
    %39 = vector.extract_strided_slice %8 {offsets = [0, 30], sizes = [14, 1], strides = [1, 1]} : vector<14x49xf32> to vector<14x1xf32>
    %40 = vector.extract_strided_slice %8 {offsets = [0, 31], sizes = [14, 1], strides = [1, 1]} : vector<14x49xf32> to vector<14x1xf32>
    %41 = vector.extract_strided_slice %8 {offsets = [0, 32], sizes = [14, 1], strides = [1, 1]} : vector<14x49xf32> to vector<14x1xf32>
    %42 = vector.extract_strided_slice %8 {offsets = [0, 33], sizes = [14, 1], strides = [1, 1]} : vector<14x49xf32> to vector<14x1xf32>
    %43 = vector.extract_strided_slice %8 {offsets = [0, 34], sizes = [14, 1], strides = [1, 1]} : vector<14x49xf32> to vector<14x1xf32>
    %44 = vector.extract_strided_slice %8 {offsets = [0, 35], sizes = [14, 1], strides = [1, 1]} : vector<14x49xf32> to vector<14x1xf32>
    %45 = vector.extract_strided_slice %8 {offsets = [0, 36], sizes = [14, 1], strides = [1, 1]} : vector<14x49xf32> to vector<14x1xf32>
    %46 = vector.extract_strided_slice %8 {offsets = [0, 37], sizes = [14, 1], strides = [1, 1]} : vector<14x49xf32> to vector<14x1xf32>
    %47 = vector.extract_strided_slice %8 {offsets = [0, 38], sizes = [14, 1], strides = [1, 1]} : vector<14x49xf32> to vector<14x1xf32>
    %48 = vector.extract_strided_slice %8 {offsets = [0, 39], sizes = [14, 1], strides = [1, 1]} : vector<14x49xf32> to vector<14x1xf32>
    %49 = vector.extract_strided_slice %8 {offsets = [0, 40], sizes = [14, 1], strides = [1, 1]} : vector<14x49xf32> to vector<14x1xf32>
    %50 = vector.extract_strided_slice %8 {offsets = [0, 41], sizes = [14, 1], strides = [1, 1]} : vector<14x49xf32> to vector<14x1xf32>
    %51 = vector.extract_strided_slice %8 {offsets = [0, 42], sizes = [14, 1], strides = [1, 1]} : vector<14x49xf32> to vector<14x1xf32>
    %52 = vector.extract_strided_slice %8 {offsets = [0, 43], sizes = [14, 1], strides = [1, 1]} : vector<14x49xf32> to vector<14x1xf32>
    %53 = vector.extract_strided_slice %8 {offsets = [0, 44], sizes = [14, 1], strides = [1, 1]} : vector<14x49xf32> to vector<14x1xf32>
    %54 = vector.extract_strided_slice %8 {offsets = [0, 45], sizes = [14, 1], strides = [1, 1]} : vector<14x49xf32> to vector<14x1xf32>
    %55 = vector.extract_strided_slice %8 {offsets = [0, 46], sizes = [14, 1], strides = [1, 1]} : vector<14x49xf32> to vector<14x1xf32>
    %56 = vector.extract_strided_slice %8 {offsets = [0, 47], sizes = [14, 1], strides = [1, 1]} : vector<14x49xf32> to vector<14x1xf32>
    %57 = vector.extract_strided_slice %8 {offsets = [0, 48], sizes = [14, 1], strides = [1, 1]} : vector<14x49xf32> to vector<14x1xf32>
    %58 = tpu.iota {dimensions = array<i32: 1>} : vector<1x256xi32>
    %c16_i32 = arith.constant 16 : i32
    %c0_i32 = arith.constant 0 : i32
    %59 = arith.cmpi eq, %c16_i32, %c0_i32 : i32
    %c1_i32 = arith.constant 1 : i32
    %60 = arith.select %59, %c1_i32, %c16_i32 : i32
    %61 = vector.broadcast %60 : i32 to vector<1x256xi32>
    %62 = arith.remsi %58, %61 : vector<1x256xi32>
    %c0_i32_7 = arith.constant 0 : i32
    %63 = vector.broadcast %c0_i32_7 : i32 to vector<1x256xi32>
    %64 = arith.cmpi ne, %62, %63 : vector<1x256xi32>
    %c0_i32_8 = arith.constant 0 : i32
    %65 = vector.broadcast %c0_i32_8 : i32 to vector<1x256xi32>
    %66 = arith.cmpi slt, %62, %65 : vector<1x256xi32>
    %c0_i32_9 = arith.constant 0 : i32
    %67 = arith.cmpi slt, %60, %c0_i32_9 : i32
    %68 = vector.broadcast %67 : i1 to vector<1x256xi1>
    %69 = vector.broadcast %68 : vector<1x256xi1> to vector<1x256xi1>
    %70 = arith.xori %66, %69 : vector<1x256xi1>
    %71 = arith.andi %70, %64 : vector<1x256xi1>
    %72 = vector.broadcast %60 : i32 to vector<1x256xi32>
    %73 = arith.addi %62, %72 : vector<1x256xi32>
    %74 = arith.select %71, %73, %62 : vector<1x256xi1>, vector<1x256xi32>
    %c3_i32 = arith.constant 3 : i32
    %75 = vector.broadcast %c3_i32 : i32 to vector<1x256xi32>
    %76 = arith.cmpi sge, %74, %75 : vector<1x256xi32>
    %c19_i32 = arith.constant 19 : i32
    %77 = vector.broadcast %c19_i32 : i32 to vector<1x256xi32>
    %78 = arith.cmpi slt, %74, %77 : vector<1x256xi32>
    %79 = arith.andi %76, %78 : vector<1x256xi1>
    %80 = arith.extui %79 : vector<1x256xi1> to vector<1x256xi32>
    %81 = arith.sitofp %80 : vector<1x256xi32> to vector<1x256xf32>
    %c2_i32 = arith.constant 2 : i32
    %82 = vector.broadcast %c2_i32 : i32 to vector<1x256xi32>
    %83 = arith.cmpi sge, %74, %82 : vector<1x256xi32>
    %c18_i32 = arith.constant 18 : i32
    %84 = vector.broadcast %c18_i32 : i32 to vector<1x256xi32>
    %85 = arith.cmpi slt, %74, %84 : vector<1x256xi32>
    %86 = arith.andi %83, %85 : vector<1x256xi1>
    %87 = arith.extui %86 : vector<1x256xi1> to vector<1x256xi32>
    %88 = arith.sitofp %87 : vector<1x256xi32> to vector<1x256xf32>
    %c1_i32_10 = arith.constant 1 : i32
    %89 = vector.broadcast %c1_i32_10 : i32 to vector<1x256xi32>
    %90 = arith.cmpi sge, %74, %89 : vector<1x256xi32>
    %c17_i32 = arith.constant 17 : i32
    %91 = vector.broadcast %c17_i32 : i32 to vector<1x256xi32>
    %92 = arith.cmpi slt, %74, %91 : vector<1x256xi32>
    %93 = arith.andi %90, %92 : vector<1x256xi1>
    %94 = arith.extui %93 : vector<1x256xi1> to vector<1x256xi32>
    %95 = arith.sitofp %94 : vector<1x256xi32> to vector<1x256xf32>
    %c0_i32_11 = arith.constant 0 : i32
    %96 = vector.broadcast %c0_i32_11 : i32 to vector<1x256xi32>
    %97 = arith.cmpi sge, %74, %96 : vector<1x256xi32>
    %c16_i32_12 = arith.constant 16 : i32
    %98 = vector.broadcast %c16_i32_12 : i32 to vector<1x256xi32>
    %99 = arith.cmpi slt, %74, %98 : vector<1x256xi32>
    %100 = arith.andi %97, %99 : vector<1x256xi1>
    %101 = arith.extui %100 : vector<1x256xi1> to vector<1x256xi32>
    %102 = arith.sitofp %101 : vector<1x256xi32> to vector<1x256xf32>
    %c-1_i32 = arith.constant -1 : i32
    %103 = vector.broadcast %c-1_i32 : i32 to vector<1x256xi32>
    %104 = arith.cmpi sge, %74, %103 : vector<1x256xi32>
    %c15_i32 = arith.constant 15 : i32
    %105 = vector.broadcast %c15_i32 : i32 to vector<1x256xi32>
    %106 = arith.cmpi slt, %74, %105 : vector<1x256xi32>
    %107 = arith.andi %104, %106 : vector<1x256xi1>
    %108 = arith.extui %107 : vector<1x256xi1> to vector<1x256xi32>
    %109 = arith.sitofp %108 : vector<1x256xi32> to vector<1x256xf32>
    %c-2_i32 = arith.constant -2 : i32
    %110 = vector.broadcast %c-2_i32 : i32 to vector<1x256xi32>
    %111 = arith.cmpi sge, %74, %110 : vector<1x256xi32>
    %c14_i32 = arith.constant 14 : i32
    %112 = vector.broadcast %c14_i32 : i32 to vector<1x256xi32>
    %113 = arith.cmpi slt, %74, %112 : vector<1x256xi32>
    %114 = arith.andi %111, %113 : vector<1x256xi1>
    %115 = arith.extui %114 : vector<1x256xi1> to vector<1x256xi32>
    %116 = arith.sitofp %115 : vector<1x256xi32> to vector<1x256xf32>
    %c-3_i32 = arith.constant -3 : i32
    %117 = vector.broadcast %c-3_i32 : i32 to vector<1x256xi32>
    %118 = arith.cmpi sge, %74, %117 : vector<1x256xi32>
    %c13_i32 = arith.constant 13 : i32
    %119 = vector.broadcast %c13_i32 : i32 to vector<1x256xi32>
    %120 = arith.cmpi slt, %74, %119 : vector<1x256xi32>
    %121 = arith.andi %118, %120 : vector<1x256xi1>
    %122 = arith.extui %121 : vector<1x256xi1> to vector<1x256xi32>
    %123 = arith.sitofp %122 : vector<1x256xi32> to vector<1x256xf32>
    %cst_13 = arith.constant 0.000000e+00 : f32
    %124 = vector.broadcast %cst_13 : f32 to vector<14x128xf32>
    %c0_14 = arith.constant 0 : index
    %c0_15 = arith.constant 0 : index
    %c0_16 = arith.constant 0 : index
    %125 = vector.load %arg13[%c0_14, %c0_15, %c0_16] : memref<2x14x512xf32, #tpu.memory_space<vmem>>, vector<1x14x128xf32>
    %126 = vector.shape_cast %125 : vector<1x14x128xf32> to vector<14x128xf32>
    %127 = vector.shape_cast %124 : vector<14x128xf32> to vector<1x14x128xf32>
    tpu.vector_store %arg13[%c0_14, %c0_15, %c0_16], %127 {strides = array<i32>} : memref<2x14x512xf32, #tpu.memory_space<vmem>>, vector<1x14x128xf32>,
    %cst_17 = arith.constant 0.000000e+00 : f32
    %128 = vector.broadcast %cst_17 : f32 to vector<14x128xf32>
    %c0_18 = arith.constant 0 : index
    %c0_19 = arith.constant 0 : index
    %c384 = arith.constant 384 : index
    %129 = vector.load %arg13[%c0_18, %c0_19, %c384] : memref<2x14x512xf32, #tpu.memory_space<vmem>>, vector<1x14x128xf32>
    %130 = vector.shape_cast %129 : vector<1x14x128xf32> to vector<14x128xf32>
    %131 = vector.shape_cast %128 : vector<14x128xf32> to vector<1x14x128xf32>
    tpu.vector_store %arg13[%c0_18, %c0_19, %c384], %131 {strides = array<i32>} : memref<2x14x512xf32, #tpu.memory_space<vmem>>, vector<1x14x128xf32>,
    %132 = vector.extract_strided_slice %6 {offsets = [0, 0], sizes = [14, 256], strides = [1, 1]} : vector<14x512xf32> to vector<14x256xf32>
    %c0_20 = arith.constant 0 : index
    %c0_21 = arith.constant 0 : index
    %c128 = arith.constant 128 : index
    %133 = vector.load %arg13[%c0_20, %c0_21, %c128] : memref<2x14x512xf32, #tpu.memory_space<vmem>>, vector<1x14x256xf32>
    %134 = vector.shape_cast %133 : vector<1x14x256xf32> to vector<14x256xf32>
    %135 = vector.shape_cast %132 : vector<14x256xf32> to vector<1x14x256xf32>
    tpu.vector_store %arg13[%c0_20, %c0_21, %c128], %135 {strides = array<i32>} : memref<2x14x512xf32, #tpu.memory_space<vmem>>, vector<1x14x256xf32>,
    %c0_22 = arith.constant 0 : index
    %c0_23 = arith.constant 0 : index
    %c77 = arith.constant 77 : index
    %136 = vector.load %arg13[%c0_22, %c0_23, %c77] : memref<2x14x512xf32, #tpu.memory_space<vmem>>, vector<1x14x256xf32>
    %137 = vector.shape_cast %136 : vector<1x14x256xf32> to vector<14x256xf32>
    %138 = vector.broadcast %9 : vector<14x1xf32> to vector<14x256xf32>
    %139 = arith.mulf %137, %138 : vector<14x256xf32>
    %c0_24 = arith.constant 0 : index
    %c0_25 = arith.constant 0 : index
    %c93 = arith.constant 93 : index
    %140 = vector.load %arg13[%c0_24, %c0_25, %c93] : memref<2x14x512xf32, #tpu.memory_space<vmem>>, vector<1x14x256xf32>
    %141 = vector.shape_cast %140 : vector<1x14x256xf32> to vector<14x256xf32>
    %142 = vector.broadcast %16 : vector<14x1xf32> to vector<14x256xf32>
    %143 = arith.mulf %141, %142 : vector<14x256xf32>
    %144 = arith.addf %139, %143 : vector<14x256xf32>
    %c0_26 = arith.constant 0 : index
    %c0_27 = arith.constant 0 : index
    %c109 = arith.constant 109 : index
    %145 = vector.load %arg13[%c0_26, %c0_27, %c109] : memref<2x14x512xf32, #tpu.memory_space<vmem>>, vector<1x14x256xf32>
    %146 = vector.shape_cast %145 : vector<1x14x256xf32> to vector<14x256xf32>
    %147 = vector.broadcast %23 : vector<14x1xf32> to vector<14x256xf32>
    %148 = arith.mulf %146, %147 : vector<14x256xf32>
    %149 = arith.addf %144, %148 : vector<14x256xf32>
    %c0_28 = arith.constant 0 : index
    %c0_29 = arith.constant 0 : index
    %c125 = arith.constant 125 : index
    %150 = vector.load %arg13[%c0_28, %c0_29, %c125] : memref<2x14x512xf32, #tpu.memory_space<vmem>>, vector<1x14x256xf32>
    %151 = vector.shape_cast %150 : vector<1x14x256xf32> to vector<14x256xf32>
    %152 = vector.broadcast %30 : vector<14x1xf32> to vector<14x256xf32>
    %153 = arith.mulf %151, %152 : vector<14x256xf32>
    %154 = arith.addf %149, %153 : vector<14x256xf32>
    %c0_30 = arith.constant 0 : index
    %c0_31 = arith.constant 0 : index
    %c141 = arith.constant 141 : index
    %155 = vector.load %arg13[%c0_30, %c0_31, %c141] : memref<2x14x512xf32, #tpu.memory_space<vmem>>, vector<1x14x256xf32>
    %156 = vector.shape_cast %155 : vector<1x14x256xf32> to vector<14x256xf32>
    %157 = vector.broadcast %37 : vector<14x1xf32> to vector<14x256xf32>
    %158 = arith.mulf %156, %157 : vector<14x256xf32>
    %159 = arith.addf %154, %158 : vector<14x256xf32>
    %c0_32 = arith.constant 0 : index
    %c0_33 = arith.constant 0 : index
    %c157 = arith.constant 157 : index
    %160 = vector.load %arg13[%c0_32, %c0_33, %c157] : memref<2x14x512xf32, #tpu.memory_space<vmem>>, vector<1x14x256xf32>
    %161 = vector.shape_cast %160 : vector<1x14x256xf32> to vector<14x256xf32>
    %162 = vector.broadcast %44 : vector<14x1xf32> to vector<14x256xf32>
    %163 = arith.mulf %161, %162 : vector<14x256xf32>
    %164 = arith.addf %159, %163 : vector<14x256xf32>
    %c0_34 = arith.constant 0 : index
    %c0_35 = arith.constant 0 : index
    %c173 = arith.constant 173 : index
    %165 = vector.load %arg13[%c0_34, %c0_35, %c173] : memref<2x14x512xf32, #tpu.memory_space<vmem>>, vector<1x14x256xf32>
    %166 = vector.shape_cast %165 : vector<1x14x256xf32> to vector<14x256xf32>
    %167 = vector.broadcast %51 : vector<14x1xf32> to vector<14x256xf32>
    %168 = arith.mulf %166, %167 : vector<14x256xf32>
    %169 = arith.addf %164, %168 : vector<14x256xf32>
    %170 = vector.broadcast %81 : vector<1x256xf32> to vector<14x256xf32>
    %171 = arith.mulf %169, %170 : vector<14x256xf32>
    %c0_36 = arith.constant 0 : index
    %c0_37 = arith.constant 0 : index
    %c78 = arith.constant 78 : index
    %172 = vector.load %arg13[%c0_36, %c0_37, %c78] : memref<2x14x512xf32, #tpu.memory_space<vmem>>, vector<1x14x256xf32>
    %173 = vector.shape_cast %172 : vector<1x14x256xf32> to vector<14x256xf32>
    %174 = vector.broadcast %10 : vector<14x1xf32> to vector<14x256xf32>
    %175 = arith.mulf %173, %174 : vector<14x256xf32>
    %c0_38 = arith.constant 0 : index
    %c0_39 = arith.constant 0 : index
    %c94 = arith.constant 94 : index
    %176 = vector.load %arg13[%c0_38, %c0_39, %c94] : memref<2x14x512xf32, #tpu.memory_space<vmem>>, vector<1x14x256xf32>
    %177 = vector.shape_cast %176 : vector<1x14x256xf32> to vector<14x256xf32>
    %178 = vector.broadcast %17 : vector<14x1xf32> to vector<14x256xf32>
    %179 = arith.mulf %177, %178 : vector<14x256xf32>
    %180 = arith.addf %175, %179 : vector<14x256xf32>
    %c0_40 = arith.constant 0 : index
    %c0_41 = arith.constant 0 : index
    %c110 = arith.constant 110 : index
    %181 = vector.load %arg13[%c0_40, %c0_41, %c110] : memref<2x14x512xf32, #tpu.memory_space<vmem>>, vector<1x14x256xf32>
    %182 = vector.shape_cast %181 : vector<1x14x256xf32> to vector<14x256xf32>
    %183 = vector.broadcast %24 : vector<14x1xf32> to vector<14x256xf32>
    %184 = arith.mulf %182, %183 : vector<14x256xf32>
    %185 = arith.addf %180, %184 : vector<14x256xf32>
    %c0_42 = arith.constant 0 : index
    %c0_43 = arith.constant 0 : index
    %c126 = arith.constant 126 : index
    %186 = vector.load %arg13[%c0_42, %c0_43, %c126] : memref<2x14x512xf32, #tpu.memory_space<vmem>>, vector<1x14x256xf32>
    %187 = vector.shape_cast %186 : vector<1x14x256xf32> to vector<14x256xf32>
    %188 = vector.broadcast %31 : vector<14x1xf32> to vector<14x256xf32>
    %189 = arith.mulf %187, %188 : vector<14x256xf32>
    %190 = arith.addf %185, %189 : vector<14x256xf32>
    %c0_44 = arith.constant 0 : index
    %c0_45 = arith.constant 0 : index
    %c142 = arith.constant 142 : index
    %191 = vector.load %arg13[%c0_44, %c0_45, %c142] : memref<2x14x512xf32, #tpu.memory_space<vmem>>, vector<1x14x256xf32>
    %192 = vector.shape_cast %191 : vector<1x14x256xf32> to vector<14x256xf32>
    %193 = vector.broadcast %38 : vector<14x1xf32> to vector<14x256xf32>
    %194 = arith.mulf %192, %193 : vector<14x256xf32>
    %195 = arith.addf %190, %194 : vector<14x256xf32>
    %c0_46 = arith.constant 0 : index
    %c0_47 = arith.constant 0 : index
    %c158 = arith.constant 158 : index
    %196 = vector.load %arg13[%c0_46, %c0_47, %c158] : memref<2x14x512xf32, #tpu.memory_space<vmem>>, vector<1x14x256xf32>
    %197 = vector.shape_cast %196 : vector<1x14x256xf32> to vector<14x256xf32>
    %198 = vector.broadcast %45 : vector<14x1xf32> to vector<14x256xf32>
    %199 = arith.mulf %197, %198 : vector<14x256xf32>
    %200 = arith.addf %195, %199 : vector<14x256xf32>
    %c0_48 = arith.constant 0 : index
    %c0_49 = arith.constant 0 : index
    %c174 = arith.constant 174 : index
    %201 = vector.load %arg13[%c0_48, %c0_49, %c174] : memref<2x14x512xf32, #tpu.memory_space<vmem>>, vector<1x14x256xf32>
    %202 = vector.shape_cast %201 : vector<1x14x256xf32> to vector<14x256xf32>
    %203 = vector.broadcast %52 : vector<14x1xf32> to vector<14x256xf32>
    %204 = arith.mulf %202, %203 : vector<14x256xf32>
    %205 = arith.addf %200, %204 : vector<14x256xf32>
    %206 = vector.broadcast %88 : vector<1x256xf32> to vector<14x256xf32>
    %207 = arith.mulf %205, %206 : vector<14x256xf32>
    %208 = arith.addf %171, %207 : vector<14x256xf32>
    %c0_50 = arith.constant 0 : index
    %c0_51 = arith.constant 0 : index
    %c79 = arith.constant 79 : index
    %209 = vector.load %arg13[%c0_50, %c0_51, %c79] : memref<2x14x512xf32, #tpu.memory_space<vmem>>, vector<1x14x256xf32>
    %210 = vector.shape_cast %209 : vector<1x14x256xf32> to vector<14x256xf32>
    %211 = vector.broadcast %11 : vector<14x1xf32> to vector<14x256xf32>
    %212 = arith.mulf %210, %211 : vector<14x256xf32>
    %c0_52 = arith.constant 0 : index
    %c0_53 = arith.constant 0 : index
    %c95 = arith.constant 95 : index
    %213 = vector.load %arg13[%c0_52, %c0_53, %c95] : memref<2x14x512xf32, #tpu.memory_space<vmem>>, vector<1x14x256xf32>
    %214 = vector.shape_cast %213 : vector<1x14x256xf32> to vector<14x256xf32>
    %215 = vector.broadcast %18 : vector<14x1xf32> to vector<14x256xf32>
    %216 = arith.mulf %214, %215 : vector<14x256xf32>
    %217 = arith.addf %212, %216 : vector<14x256xf32>
    %c0_54 = arith.constant 0 : index
    %c0_55 = arith.constant 0 : index
    %c111 = arith.constant 111 : index
    %218 = vector.load %arg13[%c0_54, %c0_55, %c111] : memref<2x14x512xf32, #tpu.memory_space<vmem>>, vector<1x14x256xf32>
    %219 = vector.shape_cast %218 : vector<1x14x256xf32> to vector<14x256xf32>
    %220 = vector.broadcast %25 : vector<14x1xf32> to vector<14x256xf32>
    %221 = arith.mulf %219, %220 : vector<14x256xf32>
    %222 = arith.addf %217, %221 : vector<14x256xf32>
    %c0_56 = arith.constant 0 : index
    %c0_57 = arith.constant 0 : index
    %c127 = arith.constant 127 : index
    %223 = vector.load %arg13[%c0_56, %c0_57, %c127] : memref<2x14x512xf32, #tpu.memory_space<vmem>>, vector<1x14x256xf32>
    %224 = vector.shape_cast %223 : vector<1x14x256xf32> to vector<14x256xf32>
    %225 = vector.broadcast %32 : vector<14x1xf32> to vector<14x256xf32>
    %226 = arith.mulf %224, %225 : vector<14x256xf32>
    %227 = arith.addf %222, %226 : vector<14x256xf32>
    %c0_58 = arith.constant 0 : index
    %c0_59 = arith.constant 0 : index
    %c143 = arith.constant 143 : index
    %228 = vector.load %arg13[%c0_58, %c0_59, %c143] : memref<2x14x512xf32, #tpu.memory_space<vmem>>, vector<1x14x256xf32>
    %229 = vector.shape_cast %228 : vector<1x14x256xf32> to vector<14x256xf32>
    %230 = vector.broadcast %39 : vector<14x1xf32> to vector<14x256xf32>
    %231 = arith.mulf %229, %230 : vector<14x256xf32>
    %232 = arith.addf %227, %231 : vector<14x256xf32>
    %c0_60 = arith.constant 0 : index
    %c0_61 = arith.constant 0 : index
    %c159 = arith.constant 159 : index
    %233 = vector.load %arg13[%c0_60, %c0_61, %c159] : memref<2x14x512xf32, #tpu.memory_space<vmem>>, vector<1x14x256xf32>
    %234 = vector.shape_cast %233 : vector<1x14x256xf32> to vector<14x256xf32>
    %235 = vector.broadcast %46 : vector<14x1xf32> to vector<14x256xf32>
    %236 = arith.mulf %234, %235 : vector<14x256xf32>
    %237 = arith.addf %232, %236 : vector<14x256xf32>
    %c0_62 = arith.constant 0 : index
    %c0_63 = arith.constant 0 : index
    %c175 = arith.constant 175 : index
    %238 = vector.load %arg13[%c0_62, %c0_63, %c175] : memref<2x14x512xf32, #tpu.memory_space<vmem>>, vector<1x14x256xf32>
    %239 = vector.shape_cast %238 : vector<1x14x256xf32> to vector<14x256xf32>
    %240 = vector.broadcast %53 : vector<14x1xf32> to vector<14x256xf32>
    %241 = arith.mulf %239, %240 : vector<14x256xf32>
    %242 = arith.addf %237, %241 : vector<14x256xf32>
    %243 = vector.broadcast %95 : vector<1x256xf32> to vector<14x256xf32>
    %244 = arith.mulf %242, %243 : vector<14x256xf32>
    %245 = arith.addf %208, %244 : vector<14x256xf32>
    %c0_64 = arith.constant 0 : index
    %c0_65 = arith.constant 0 : index
    %c80 = arith.constant 80 : index
    %246 = vector.load %arg13[%c0_64, %c0_65, %c80] : memref<2x14x512xf32, #tpu.memory_space<vmem>>, vector<1x14x256xf32>
    %247 = vector.shape_cast %246 : vector<1x14x256xf32> to vector<14x256xf32>
    %248 = vector.broadcast %12 : vector<14x1xf32> to vector<14x256xf32>
    %249 = arith.mulf %247, %248 : vector<14x256xf32>
    %c0_66 = arith.constant 0 : index
    %c0_67 = arith.constant 0 : index
    %c96 = arith.constant 96 : index
    %250 = vector.load %arg13[%c0_66, %c0_67, %c96] : memref<2x14x512xf32, #tpu.memory_space<vmem>>, vector<1x14x256xf32>
    %251 = vector.shape_cast %250 : vector<1x14x256xf32> to vector<14x256xf32>
    %252 = vector.broadcast %19 : vector<14x1xf32> to vector<14x256xf32>
    %253 = arith.mulf %251, %252 : vector<14x256xf32>
    %254 = arith.addf %249, %253 : vector<14x256xf32>
    %c0_68 = arith.constant 0 : index
    %c0_69 = arith.constant 0 : index
    %c112 = arith.constant 112 : index
    %255 = vector.load %arg13[%c0_68, %c0_69, %c112] : memref<2x14x512xf32, #tpu.memory_space<vmem>>, vector<1x14x256xf32>
    %256 = vector.shape_cast %255 : vector<1x14x256xf32> to vector<14x256xf32>
    %257 = vector.broadcast %26 : vector<14x1xf32> to vector<14x256xf32>
    %258 = arith.mulf %256, %257 : vector<14x256xf32>
    %259 = arith.addf %254, %258 : vector<14x256xf32>
    %c0_70 = arith.constant 0 : index
    %c0_71 = arith.constant 0 : index
    %c128_72 = arith.constant 128 : index
    %260 = vector.load %arg13[%c0_70, %c0_71, %c128_72] : memref<2x14x512xf32, #tpu.memory_space<vmem>>, vector<1x14x256xf32>
    %261 = vector.shape_cast %260 : vector<1x14x256xf32> to vector<14x256xf32>
    %262 = vector.broadcast %33 : vector<14x1xf32> to vector<14x256xf32>
    %263 = arith.mulf %261, %262 : vector<14x256xf32>
    %264 = arith.addf %259, %263 : vector<14x256xf32>
    %c0_73 = arith.constant 0 : index
    %c0_74 = arith.constant 0 : index
    %c144 = arith.constant 144 : index
    %265 = vector.load %arg13[%c0_73, %c0_74, %c144] : memref<2x14x512xf32, #tpu.memory_space<vmem>>, vector<1x14x256xf32>
    %266 = vector.shape_cast %265 : vector<1x14x256xf32> to vector<14x256xf32>
    %267 = vector.broadcast %40 : vector<14x1xf32> to vector<14x256xf32>
    %268 = arith.mulf %266, %267 : vector<14x256xf32>
    %269 = arith.addf %264, %268 : vector<14x256xf32>
    %c0_75 = arith.constant 0 : index
    %c0_76 = arith.constant 0 : index
    %c160 = arith.constant 160 : index
    %270 = vector.load %arg13[%c0_75, %c0_76, %c160] : memref<2x14x512xf32, #tpu.memory_space<vmem>>, vector<1x14x256xf32>
    %271 = vector.shape_cast %270 : vector<1x14x256xf32> to vector<14x256xf32>
    %272 = vector.broadcast %47 : vector<14x1xf32> to vector<14x256xf32>
    %273 = arith.mulf %271, %272 : vector<14x256xf32>
    %274 = arith.addf %269, %273 : vector<14x256xf32>
    %c0_77 = arith.constant 0 : index
    %c0_78 = arith.constant 0 : index
    %c176 = arith.constant 176 : index
    %275 = vector.load %arg13[%c0_77, %c0_78, %c176] : memref<2x14x512xf32, #tpu.memory_space<vmem>>, vector<1x14x256xf32>
    %276 = vector.shape_cast %275 : vector<1x14x256xf32> to vector<14x256xf32>
    %277 = vector.broadcast %54 : vector<14x1xf32> to vector<14x256xf32>
    %278 = arith.mulf %276, %277 : vector<14x256xf32>
    %279 = arith.addf %274, %278 : vector<14x256xf32>
    %280 = vector.broadcast %102 : vector<1x256xf32> to vector<14x256xf32>
    %281 = arith.mulf %279, %280 : vector<14x256xf32>
    %282 = arith.addf %245, %281 : vector<14x256xf32>
    %c0_79 = arith.constant 0 : index
    %c0_80 = arith.constant 0 : index
    %c81 = arith.constant 81 : index
    %283 = vector.load %arg13[%c0_79, %c0_80, %c81] : memref<2x14x512xf32, #tpu.memory_space<vmem>>, vector<1x14x256xf32>
    %284 = vector.shape_cast %283 : vector<1x14x256xf32> to vector<14x256xf32>
    %285 = vector.broadcast %13 : vector<14x1xf32> to vector<14x256xf32>
    %286 = arith.mulf %284, %285 : vector<14x256xf32>
    %c0_81 = arith.constant 0 : index
    %c0_82 = arith.constant 0 : index
    %c97 = arith.constant 97 : index
    %287 = vector.load %arg13[%c0_81, %c0_82, %c97] : memref<2x14x512xf32, #tpu.memory_space<vmem>>, vector<1x14x256xf32>
    %288 = vector.shape_cast %287 : vector<1x14x256xf32> to vector<14x256xf32>
    %289 = vector.broadcast %20 : vector<14x1xf32> to vector<14x256xf32>
    %290 = arith.mulf %288, %289 : vector<14x256xf32>
    %291 = arith.addf %286, %290 : vector<14x256xf32>
    %c0_83 = arith.constant 0 : index
    %c0_84 = arith.constant 0 : index
    %c113 = arith.constant 113 : index
    %292 = vector.load %arg13[%c0_83, %c0_84, %c113] : memref<2x14x512xf32, #tpu.memory_space<vmem>>, vector<1x14x256xf32>
    %293 = vector.shape_cast %292 : vector<1x14x256xf32> to vector<14x256xf32>
    %294 = vector.broadcast %27 : vector<14x1xf32> to vector<14x256xf32>
    %295 = arith.mulf %293, %294 : vector<14x256xf32>
    %296 = arith.addf %291, %295 : vector<14x256xf32>
    %c0_85 = arith.constant 0 : index
    %c0_86 = arith.constant 0 : index
    %c129 = arith.constant 129 : index
    %297 = vector.load %arg13[%c0_85, %c0_86, %c129] : memref<2x14x512xf32, #tpu.memory_space<vmem>>, vector<1x14x256xf32>
    %298 = vector.shape_cast %297 : vector<1x14x256xf32> to vector<14x256xf32>
    %299 = vector.broadcast %34 : vector<14x1xf32> to vector<14x256xf32>
    %300 = arith.mulf %298, %299 : vector<14x256xf32>
    %301 = arith.addf %296, %300 : vector<14x256xf32>
    %c0_87 = arith.constant 0 : index
    %c0_88 = arith.constant 0 : index
    %c145 = arith.constant 145 : index
    %302 = vector.load %arg13[%c0_87, %c0_88, %c145] : memref<2x14x512xf32, #tpu.memory_space<vmem>>, vector<1x14x256xf32>
    %303 = vector.shape_cast %302 : vector<1x14x256xf32> to vector<14x256xf32>
    %304 = vector.broadcast %41 : vector<14x1xf32> to vector<14x256xf32>
    %305 = arith.mulf %303, %304 : vector<14x256xf32>
    %306 = arith.addf %301, %305 : vector<14x256xf32>
    %c0_89 = arith.constant 0 : index
    %c0_90 = arith.constant 0 : index
    %c161 = arith.constant 161 : index
    %307 = vector.load %arg13[%c0_89, %c0_90, %c161] : memref<2x14x512xf32, #tpu.memory_space<vmem>>, vector<1x14x256xf32>
    %308 = vector.shape_cast %307 : vector<1x14x256xf32> to vector<14x256xf32>
    %309 = vector.broadcast %48 : vector<14x1xf32> to vector<14x256xf32>
    %310 = arith.mulf %308, %309 : vector<14x256xf32>
    %311 = arith.addf %306, %310 : vector<14x256xf32>
    %c0_91 = arith.constant 0 : index
    %c0_92 = arith.constant 0 : index
    %c177 = arith.constant 177 : index
    %312 = vector.load %arg13[%c0_91, %c0_92, %c177] : memref<2x14x512xf32, #tpu.memory_space<vmem>>, vector<1x14x256xf32>
    %313 = vector.shape_cast %312 : vector<1x14x256xf32> to vector<14x256xf32>
    %314 = vector.broadcast %55 : vector<14x1xf32> to vector<14x256xf32>
    %315 = arith.mulf %313, %314 : vector<14x256xf32>
    %316 = arith.addf %311, %315 : vector<14x256xf32>
    %317 = vector.broadcast %109 : vector<1x256xf32> to vector<14x256xf32>
    %318 = arith.mulf %316, %317 : vector<14x256xf32>
    %319 = arith.addf %282, %318 : vector<14x256xf32>
    %c0_93 = arith.constant 0 : index
    %c0_94 = arith.constant 0 : index
    %c82 = arith.constant 82 : index
    %320 = vector.load %arg13[%c0_93, %c0_94, %c82] : memref<2x14x512xf32, #tpu.memory_space<vmem>>, vector<1x14x256xf32>
    %321 = vector.shape_cast %320 : vector<1x14x256xf32> to vector<14x256xf32>
    %322 = vector.broadcast %14 : vector<14x1xf32> to vector<14x256xf32>
    %323 = arith.mulf %321, %322 : vector<14x256xf32>
    %c0_95 = arith.constant 0 : index
    %c0_96 = arith.constant 0 : index
    %c98 = arith.constant 98 : index
    %324 = vector.load %arg13[%c0_95, %c0_96, %c98] : memref<2x14x512xf32, #tpu.memory_space<vmem>>, vector<1x14x256xf32>
    %325 = vector.shape_cast %324 : vector<1x14x256xf32> to vector<14x256xf32>
    %326 = vector.broadcast %21 : vector<14x1xf32> to vector<14x256xf32>
    %327 = arith.mulf %325, %326 : vector<14x256xf32>
    %328 = arith.addf %323, %327 : vector<14x256xf32>
    %c0_97 = arith.constant 0 : index
    %c0_98 = arith.constant 0 : index
    %c114 = arith.constant 114 : index
    %329 = vector.load %arg13[%c0_97, %c0_98, %c114] : memref<2x14x512xf32, #tpu.memory_space<vmem>>, vector<1x14x256xf32>
    %330 = vector.shape_cast %329 : vector<1x14x256xf32> to vector<14x256xf32>
    %331 = vector.broadcast %28 : vector<14x1xf32> to vector<14x256xf32>
    %332 = arith.mulf %330, %331 : vector<14x256xf32>
    %333 = arith.addf %328, %332 : vector<14x256xf32>
    %c0_99 = arith.constant 0 : index
    %c0_100 = arith.constant 0 : index
    %c130 = arith.constant 130 : index
    %334 = vector.load %arg13[%c0_99, %c0_100, %c130] : memref<2x14x512xf32, #tpu.memory_space<vmem>>, vector<1x14x256xf32>
    %335 = vector.shape_cast %334 : vector<1x14x256xf32> to vector<14x256xf32>
    %336 = vector.broadcast %35 : vector<14x1xf32> to vector<14x256xf32>
    %337 = arith.mulf %335, %336 : vector<14x256xf32>
    %338 = arith.addf %333, %337 : vector<14x256xf32>
    %c0_101 = arith.constant 0 : index
    %c0_102 = arith.constant 0 : index
    %c146 = arith.constant 146 : index
    %339 = vector.load %arg13[%c0_101, %c0_102, %c146] : memref<2x14x512xf32, #tpu.memory_space<vmem>>, vector<1x14x256xf32>
    %340 = vector.shape_cast %339 : vector<1x14x256xf32> to vector<14x256xf32>
    %341 = vector.broadcast %42 : vector<14x1xf32> to vector<14x256xf32>
    %342 = arith.mulf %340, %341 : vector<14x256xf32>
    %343 = arith.addf %338, %342 : vector<14x256xf32>
    %c0_103 = arith.constant 0 : index
    %c0_104 = arith.constant 0 : index
    %c162 = arith.constant 162 : index
    %344 = vector.load %arg13[%c0_103, %c0_104, %c162] : memref<2x14x512xf32, #tpu.memory_space<vmem>>, vector<1x14x256xf32>
    %345 = vector.shape_cast %344 : vector<1x14x256xf32> to vector<14x256xf32>
    %346 = vector.broadcast %49 : vector<14x1xf32> to vector<14x256xf32>
    %347 = arith.mulf %345, %346 : vector<14x256xf32>
    %348 = arith.addf %343, %347 : vector<14x256xf32>
    %c0_105 = arith.constant 0 : index
    %c0_106 = arith.constant 0 : index
    %c178 = arith.constant 178 : index
    %349 = vector.load %arg13[%c0_105, %c0_106, %c178] : memref<2x14x512xf32, #tpu.memory_space<vmem>>, vector<1x14x256xf32>
    %350 = vector.shape_cast %349 : vector<1x14x256xf32> to vector<14x256xf32>
    %351 = vector.broadcast %56 : vector<14x1xf32> to vector<14x256xf32>
    %352 = arith.mulf %350, %351 : vector<14x256xf32>
    %353 = arith.addf %348, %352 : vector<14x256xf32>
    %354 = vector.broadcast %116 : vector<1x256xf32> to vector<14x256xf32>
    %355 = arith.mulf %353, %354 : vector<14x256xf32>
    %356 = arith.addf %319, %355 : vector<14x256xf32>
    %c0_107 = arith.constant 0 : index
    %c0_108 = arith.constant 0 : index
    %c83 = arith.constant 83 : index
    %357 = vector.load %arg13[%c0_107, %c0_108, %c83] : memref<2x14x512xf32, #tpu.memory_space<vmem>>, vector<1x14x256xf32>
    %358 = vector.shape_cast %357 : vector<1x14x256xf32> to vector<14x256xf32>
    %359 = vector.broadcast %15 : vector<14x1xf32> to vector<14x256xf32>
    %360 = arith.mulf %358, %359 : vector<14x256xf32>
    %c0_109 = arith.constant 0 : index
    %c0_110 = arith.constant 0 : index
    %c99 = arith.constant 99 : index
    %361 = vector.load %arg13[%c0_109, %c0_110, %c99] : memref<2x14x512xf32, #tpu.memory_space<vmem>>, vector<1x14x256xf32>
    %362 = vector.shape_cast %361 : vector<1x14x256xf32> to vector<14x256xf32>
    %363 = vector.broadcast %22 : vector<14x1xf32> to vector<14x256xf32>
    %364 = arith.mulf %362, %363 : vector<14x256xf32>
    %365 = arith.addf %360, %364 : vector<14x256xf32>
    %c0_111 = arith.constant 0 : index
    %c0_112 = arith.constant 0 : index
    %c115 = arith.constant 115 : index
    %366 = vector.load %arg13[%c0_111, %c0_112, %c115] : memref<2x14x512xf32, #tpu.memory_space<vmem>>, vector<1x14x256xf32>
    %367 = vector.shape_cast %366 : vector<1x14x256xf32> to vector<14x256xf32>
    %368 = vector.broadcast %29 : vector<14x1xf32> to vector<14x256xf32>
    %369 = arith.mulf %367, %368 : vector<14x256xf32>
    %370 = arith.addf %365, %369 : vector<14x256xf32>
    %c0_113 = arith.constant 0 : index
    %c0_114 = arith.constant 0 : index
    %c131 = arith.constant 131 : index
    %371 = vector.load %arg13[%c0_113, %c0_114, %c131] : memref<2x14x512xf32, #tpu.memory_space<vmem>>, vector<1x14x256xf32>
    %372 = vector.shape_cast %371 : vector<1x14x256xf32> to vector<14x256xf32>
    %373 = vector.broadcast %36 : vector<14x1xf32> to vector<14x256xf32>
    %374 = arith.mulf %372, %373 : vector<14x256xf32>
    %375 = arith.addf %370, %374 : vector<14x256xf32>
    %c0_115 = arith.constant 0 : index
    %c0_116 = arith.constant 0 : index
    %c147 = arith.constant 147 : index
    %376 = vector.load %arg13[%c0_115, %c0_116, %c147] : memref<2x14x512xf32, #tpu.memory_space<vmem>>, vector<1x14x256xf32>
    %377 = vector.shape_cast %376 : vector<1x14x256xf32> to vector<14x256xf32>
    %378 = vector.broadcast %43 : vector<14x1xf32> to vector<14x256xf32>
    %379 = arith.mulf %377, %378 : vector<14x256xf32>
    %380 = arith.addf %375, %379 : vector<14x256xf32>
    %c0_117 = arith.constant 0 : index
    %c0_118 = arith.constant 0 : index
    %c163 = arith.constant 163 : index
    %381 = vector.load %arg13[%c0_117, %c0_118, %c163] : memref<2x14x512xf32, #tpu.memory_space<vmem>>, vector<1x14x256xf32>
    %382 = vector.shape_cast %381 : vector<1x14x256xf32> to vector<14x256xf32>
    %383 = vector.broadcast %50 : vector<14x1xf32> to vector<14x256xf32>
    %384 = arith.mulf %382, %383 : vector<14x256xf32>
    %385 = arith.addf %380, %384 : vector<14x256xf32>
    %c0_119 = arith.constant 0 : index
    %c0_120 = arith.constant 0 : index
    %c179 = arith.constant 179 : index
    %386 = vector.load %arg13[%c0_119, %c0_120, %c179] : memref<2x14x512xf32, #tpu.memory_space<vmem>>, vector<1x14x256xf32>
    %387 = vector.shape_cast %386 : vector<1x14x256xf32> to vector<14x256xf32>
    %388 = vector.broadcast %57 : vector<14x1xf32> to vector<14x256xf32>
    %389 = arith.mulf %387, %388 : vector<14x256xf32>
    %390 = arith.addf %385, %389 : vector<14x256xf32>
    %391 = vector.broadcast %123 : vector<1x256xf32> to vector<14x256xf32>
    %392 = arith.mulf %390, %391 : vector<14x256xf32>
    %393 = arith.addf %356, %392 : vector<14x256xf32>
    %cst_121 = arith.constant 0.000000e+00 : f32
    %394 = vector.broadcast %cst_121 : f32 to vector<14x128xf32>
    %c1 = arith.constant 1 : index
    %c0_122 = arith.constant 0 : index
    %c0_123 = arith.constant 0 : index
    %395 = vector.load %arg13[%c1, %c0_122, %c0_123] : memref<2x14x512xf32, #tpu.memory_space<vmem>>, vector<1x14x128xf32>
    %396 = vector.shape_cast %395 : vector<1x14x128xf32> to vector<14x128xf32>
    %397 = vector.shape_cast %394 : vector<14x128xf32> to vector<1x14x128xf32>
    tpu.vector_store %arg13[%c1, %c0_122, %c0_123], %397 {strides = array<i32>} : memref<2x14x512xf32, #tpu.memory_space<vmem>>, vector<1x14x128xf32>,
    %cst_124 = arith.constant 0.000000e+00 : f32
    %398 = vector.broadcast %cst_124 : f32 to vector<14x128xf32>
    %c1_125 = arith.constant 1 : index
    %c0_126 = arith.constant 0 : index
    %c384_127 = arith.constant 384 : index
    %399 = vector.load %arg13[%c1_125, %c0_126, %c384_127] : memref<2x14x512xf32, #tpu.memory_space<vmem>>, vector<1x14x128xf32>
    %400 = vector.shape_cast %399 : vector<1x14x128xf32> to vector<14x128xf32>
    %401 = vector.shape_cast %398 : vector<14x128xf32> to vector<1x14x128xf32>
    tpu.vector_store %arg13[%c1_125, %c0_126, %c384_127], %401 {strides = array<i32>} : memref<2x14x512xf32, #tpu.memory_space<vmem>>, vector<1x14x128xf32>,
    %402 = vector.extract_strided_slice %6 {offsets = [0, 256], sizes = [14, 256], strides = [1, 1]} : vector<14x512xf32> to vector<14x256xf32>
    %c1_128 = arith.constant 1 : index
    %c0_129 = arith.constant 0 : index
    %c128_130 = arith.constant 128 : index
    %403 = vector.load %arg13[%c1_128, %c0_129, %c128_130] : memref<2x14x512xf32, #tpu.memory_space<vmem>>, vector<1x14x256xf32>
    %404 = vector.shape_cast %403 : vector<1x14x256xf32> to vector<14x256xf32>
    %405 = vector.shape_cast %402 : vector<14x256xf32> to vector<1x14x256xf32>
    tpu.vector_store %arg13[%c1_128, %c0_129, %c128_130], %405 {strides = array<i32>} : memref<2x14x512xf32, #tpu.memory_space<vmem>>, vector<1x14x256xf32>,
    %c1_131 = arith.constant 1 : index
    %c0_132 = arith.constant 0 : index
    %c77_133 = arith.constant 77 : index
    %406 = vector.load %arg13[%c1_131, %c0_132, %c77_133] : memref<2x14x512xf32, #tpu.memory_space<vmem>>, vector<1x14x256xf32>
    %407 = vector.shape_cast %406 : vector<1x14x256xf32> to vector<14x256xf32>
    %408 = vector.broadcast %9 : vector<14x1xf32> to vector<14x256xf32>
    %409 = arith.mulf %407, %408 : vector<14x256xf32>
    %c1_134 = arith.constant 1 : index
    %c0_135 = arith.constant 0 : index
    %c93_136 = arith.constant 93 : index
    %410 = vector.load %arg13[%c1_134, %c0_135, %c93_136] : memref<2x14x512xf32, #tpu.memory_space<vmem>>, vector<1x14x256xf32>
    %411 = vector.shape_cast %410 : vector<1x14x256xf32> to vector<14x256xf32>
    %412 = vector.broadcast %16 : vector<14x1xf32> to vector<14x256xf32>
    %413 = arith.mulf %411, %412 : vector<14x256xf32>
    %414 = arith.addf %409, %413 : vector<14x256xf32>
    %c1_137 = arith.constant 1 : index
    %c0_138 = arith.constant 0 : index
    %c109_139 = arith.constant 109 : index
    %415 = vector.load %arg13[%c1_137, %c0_138, %c109_139] : memref<2x14x512xf32, #tpu.memory_space<vmem>>, vector<1x14x256xf32>
    %416 = vector.shape_cast %415 : vector<1x14x256xf32> to vector<14x256xf32>
    %417 = vector.broadcast %23 : vector<14x1xf32> to vector<14x256xf32>
    %418 = arith.mulf %416, %417 : vector<14x256xf32>
    %419 = arith.addf %414, %418 : vector<14x256xf32>
    %c1_140 = arith.constant 1 : index
    %c0_141 = arith.constant 0 : index
    %c125_142 = arith.constant 125 : index
    %420 = vector.load %arg13[%c1_140, %c0_141, %c125_142] : memref<2x14x512xf32, #tpu.memory_space<vmem>>, vector<1x14x256xf32>
    %421 = vector.shape_cast %420 : vector<1x14x256xf32> to vector<14x256xf32>
    %422 = vector.broadcast %30 : vector<14x1xf32> to vector<14x256xf32>
    %423 = arith.mulf %421, %422 : vector<14x256xf32>
    %424 = arith.addf %419, %423 : vector<14x256xf32>
    %c1_143 = arith.constant 1 : index
    %c0_144 = arith.constant 0 : index
    %c141_145 = arith.constant 141 : index
    %425 = vector.load %arg13[%c1_143, %c0_144, %c141_145] : memref<2x14x512xf32, #tpu.memory_space<vmem>>, vector<1x14x256xf32>
    %426 = vector.shape_cast %425 : vector<1x14x256xf32> to vector<14x256xf32>
    %427 = vector.broadcast %37 : vector<14x1xf32> to vector<14x256xf32>
    %428 = arith.mulf %426, %427 : vector<14x256xf32>
    %429 = arith.addf %424, %428 : vector<14x256xf32>
    %c1_146 = arith.constant 1 : index
    %c0_147 = arith.constant 0 : index
    %c157_148 = arith.constant 157 : index
    %430 = vector.load %arg13[%c1_146, %c0_147, %c157_148] : memref<2x14x512xf32, #tpu.memory_space<vmem>>, vector<1x14x256xf32>
    %431 = vector.shape_cast %430 : vector<1x14x256xf32> to vector<14x256xf32>
    %432 = vector.broadcast %44 : vector<14x1xf32> to vector<14x256xf32>
    %433 = arith.mulf %431, %432 : vector<14x256xf32>
    %434 = arith.addf %429, %433 : vector<14x256xf32>
    %c1_149 = arith.constant 1 : index
    %c0_150 = arith.constant 0 : index
    %c173_151 = arith.constant 173 : index
    %435 = vector.load %arg13[%c1_149, %c0_150, %c173_151] : memref<2x14x512xf32, #tpu.memory_space<vmem>>, vector<1x14x256xf32>
    %436 = vector.shape_cast %435 : vector<1x14x256xf32> to vector<14x256xf32>
    %437 = vector.broadcast %51 : vector<14x1xf32> to vector<14x256xf32>
    %438 = arith.mulf %436, %437 : vector<14x256xf32>
    %439 = arith.addf %434, %438 : vector<14x256xf32>
    %440 = vector.broadcast %81 : vector<1x256xf32> to vector<14x256xf32>
    %441 = arith.mulf %439, %440 : vector<14x256xf32>
    %c1_152 = arith.constant 1 : index
    %c0_153 = arith.constant 0 : index
    %c78_154 = arith.constant 78 : index
    %442 = vector.load %arg13[%c1_152, %c0_153, %c78_154] : memref<2x14x512xf32, #tpu.memory_space<vmem>>, vector<1x14x256xf32>
    %443 = vector.shape_cast %442 : vector<1x14x256xf32> to vector<14x256xf32>
    %444 = vector.broadcast %10 : vector<14x1xf32> to vector<14x256xf32>
    %445 = arith.mulf %443, %444 : vector<14x256xf32>
    %c1_155 = arith.constant 1 : index
    %c0_156 = arith.constant 0 : index
    %c94_157 = arith.constant 94 : index
    %446 = vector.load %arg13[%c1_155, %c0_156, %c94_157] : memref<2x14x512xf32, #tpu.memory_space<vmem>>, vector<1x14x256xf32>
    %447 = vector.shape_cast %446 : vector<1x14x256xf32> to vector<14x256xf32>
    %448 = vector.broadcast %17 : vector<14x1xf32> to vector<14x256xf32>
    %449 = arith.mulf %447, %448 : vector<14x256xf32>
    %450 = arith.addf %445, %449 : vector<14x256xf32>
    %c1_158 = arith.constant 1 : index
    %c0_159 = arith.constant 0 : index
    %c110_160 = arith.constant 110 : index
    %451 = vector.load %arg13[%c1_158, %c0_159, %c110_160] : memref<2x14x512xf32, #tpu.memory_space<vmem>>, vector<1x14x256xf32>
    %452 = vector.shape_cast %451 : vector<1x14x256xf32> to vector<14x256xf32>
    %453 = vector.broadcast %24 : vector<14x1xf32> to vector<14x256xf32>
    %454 = arith.mulf %452, %453 : vector<14x256xf32>
    %455 = arith.addf %450, %454 : vector<14x256xf32>
    %c1_161 = arith.constant 1 : index
    %c0_162 = arith.constant 0 : index
    %c126_163 = arith.constant 126 : index
    %456 = vector.load %arg13[%c1_161, %c0_162, %c126_163] : memref<2x14x512xf32, #tpu.memory_space<vmem>>, vector<1x14x256xf32>
    %457 = vector.shape_cast %456 : vector<1x14x256xf32> to vector<14x256xf32>
    %458 = vector.broadcast %31 : vector<14x1xf32> to vector<14x256xf32>
    %459 = arith.mulf %457, %458 : vector<14x256xf32>
    %460 = arith.addf %455, %459 : vector<14x256xf32>
    %c1_164 = arith.constant 1 : index
    %c0_165 = arith.constant 0 : index
    %c142_166 = arith.constant 142 : index
    %461 = vector.load %arg13[%c1_164, %c0_165, %c142_166] : memref<2x14x512xf32, #tpu.memory_space<vmem>>, vector<1x14x256xf32>
    %462 = vector.shape_cast %461 : vector<1x14x256xf32> to vector<14x256xf32>
    %463 = vector.broadcast %38 : vector<14x1xf32> to vector<14x256xf32>
    %464 = arith.mulf %462, %463 : vector<14x256xf32>
    %465 = arith.addf %460, %464 : vector<14x256xf32>
    %c1_167 = arith.constant 1 : index
    %c0_168 = arith.constant 0 : index
    %c158_169 = arith.constant 158 : index
    %466 = vector.load %arg13[%c1_167, %c0_168, %c158_169] : memref<2x14x512xf32, #tpu.memory_space<vmem>>, vector<1x14x256xf32>
    %467 = vector.shape_cast %466 : vector<1x14x256xf32> to vector<14x256xf32>
    %468 = vector.broadcast %45 : vector<14x1xf32> to vector<14x256xf32>
    %469 = arith.mulf %467, %468 : vector<14x256xf32>
    %470 = arith.addf %465, %469 : vector<14x256xf32>
    %c1_170 = arith.constant 1 : index
    %c0_171 = arith.constant 0 : index
    %c174_172 = arith.constant 174 : index
    %471 = vector.load %arg13[%c1_170, %c0_171, %c174_172] : memref<2x14x512xf32, #tpu.memory_space<vmem>>, vector<1x14x256xf32>
    %472 = vector.shape_cast %471 : vector<1x14x256xf32> to vector<14x256xf32>
    %473 = vector.broadcast %52 : vector<14x1xf32> to vector<14x256xf32>
    %474 = arith.mulf %472, %473 : vector<14x256xf32>
    %475 = arith.addf %470, %474 : vector<14x256xf32>
    %476 = vector.broadcast %88 : vector<1x256xf32> to vector<14x256xf32>
    %477 = arith.mulf %475, %476 : vector<14x256xf32>
    %478 = arith.addf %441, %477 : vector<14x256xf32>
    %c1_173 = arith.constant 1 : index
    %c0_174 = arith.constant 0 : index
    %c79_175 = arith.constant 79 : index
    %479 = vector.load %arg13[%c1_173, %c0_174, %c79_175] : memref<2x14x512xf32, #tpu.memory_space<vmem>>, vector<1x14x256xf32>
    %480 = vector.shape_cast %479 : vector<1x14x256xf32> to vector<14x256xf32>
    %481 = vector.broadcast %11 : vector<14x1xf32> to vector<14x256xf32>
    %482 = arith.mulf %480, %481 : vector<14x256xf32>
    %c1_176 = arith.constant 1 : index
    %c0_177 = arith.constant 0 : index
    %c95_178 = arith.constant 95 : index
    %483 = vector.load %arg13[%c1_176, %c0_177, %c95_178] : memref<2x14x512xf32, #tpu.memory_space<vmem>>, vector<1x14x256xf32>
    %484 = vector.shape_cast %483 : vector<1x14x256xf32> to vector<14x256xf32>
    %485 = vector.broadcast %18 : vector<14x1xf32> to vector<14x256xf32>
    %486 = arith.mulf %484, %485 : vector<14x256xf32>
    %487 = arith.addf %482, %486 : vector<14x256xf32>
    %c1_179 = arith.constant 1 : index
    %c0_180 = arith.constant 0 : index
    %c111_181 = arith.constant 111 : index
    %488 = vector.load %arg13[%c1_179, %c0_180, %c111_181] : memref<2x14x512xf32, #tpu.memory_space<vmem>>, vector<1x14x256xf32>
    %489 = vector.shape_cast %488 : vector<1x14x256xf32> to vector<14x256xf32>
    %490 = vector.broadcast %25 : vector<14x1xf32> to vector<14x256xf32>
    %491 = arith.mulf %489, %490 : vector<14x256xf32>
    %492 = arith.addf %487, %491 : vector<14x256xf32>
    %c1_182 = arith.constant 1 : index
    %c0_183 = arith.constant 0 : index
    %c127_184 = arith.constant 127 : index
    %493 = vector.load %arg13[%c1_182, %c0_183, %c127_184] : memref<2x14x512xf32, #tpu.memory_space<vmem>>, vector<1x14x256xf32>
    %494 = vector.shape_cast %493 : vector<1x14x256xf32> to vector<14x256xf32>
    %495 = vector.broadcast %32 : vector<14x1xf32> to vector<14x256xf32>
    %496 = arith.mulf %494, %495 : vector<14x256xf32>
    %497 = arith.addf %492, %496 : vector<14x256xf32>
    %c1_185 = arith.constant 1 : index
    %c0_186 = arith.constant 0 : index
    %c143_187 = arith.constant 143 : index
    %498 = vector.load %arg13[%c1_185, %c0_186, %c143_187] : memref<2x14x512xf32, #tpu.memory_space<vmem>>, vector<1x14x256xf32>
    %499 = vector.shape_cast %498 : vector<1x14x256xf32> to vector<14x256xf32>
    %500 = vector.broadcast %39 : vector<14x1xf32> to vector<14x256xf32>
    %501 = arith.mulf %499, %500 : vector<14x256xf32>
    %502 = arith.addf %497, %501 : vector<14x256xf32>
    %c1_188 = arith.constant 1 : index
    %c0_189 = arith.constant 0 : index
    %c159_190 = arith.constant 159 : index
    %503 = vector.load %arg13[%c1_188, %c0_189, %c159_190] : memref<2x14x512xf32, #tpu.memory_space<vmem>>, vector<1x14x256xf32>
    %504 = vector.shape_cast %503 : vector<1x14x256xf32> to vector<14x256xf32>
    %505 = vector.broadcast %46 : vector<14x1xf32> to vector<14x256xf32>
    %506 = arith.mulf %504, %505 : vector<14x256xf32>
    %507 = arith.addf %502, %506 : vector<14x256xf32>
    %c1_191 = arith.constant 1 : index
    %c0_192 = arith.constant 0 : index
    %c175_193 = arith.constant 175 : index
    %508 = vector.load %arg13[%c1_191, %c0_192, %c175_193] : memref<2x14x512xf32, #tpu.memory_space<vmem>>, vector<1x14x256xf32>
    %509 = vector.shape_cast %508 : vector<1x14x256xf32> to vector<14x256xf32>
    %510 = vector.broadcast %53 : vector<14x1xf32> to vector<14x256xf32>
    %511 = arith.mulf %509, %510 : vector<14x256xf32>
    %512 = arith.addf %507, %511 : vector<14x256xf32>
    %513 = vector.broadcast %95 : vector<1x256xf32> to vector<14x256xf32>
    %514 = arith.mulf %512, %513 : vector<14x256xf32>
    %515 = arith.addf %478, %514 : vector<14x256xf32>
    %c1_194 = arith.constant 1 : index
    %c0_195 = arith.constant 0 : index
    %c80_196 = arith.constant 80 : index
    %516 = vector.load %arg13[%c1_194, %c0_195, %c80_196] : memref<2x14x512xf32, #tpu.memory_space<vmem>>, vector<1x14x256xf32>
    %517 = vector.shape_cast %516 : vector<1x14x256xf32> to vector<14x256xf32>
    %518 = vector.broadcast %12 : vector<14x1xf32> to vector<14x256xf32>
    %519 = arith.mulf %517, %518 : vector<14x256xf32>
    %c1_197 = arith.constant 1 : index
    %c0_198 = arith.constant 0 : index
    %c96_199 = arith.constant 96 : index
    %520 = vector.load %arg13[%c1_197, %c0_198, %c96_199] : memref<2x14x512xf32, #tpu.memory_space<vmem>>, vector<1x14x256xf32>
    %521 = vector.shape_cast %520 : vector<1x14x256xf32> to vector<14x256xf32>
    %522 = vector.broadcast %19 : vector<14x1xf32> to vector<14x256xf32>
    %523 = arith.mulf %521, %522 : vector<14x256xf32>
    %524 = arith.addf %519, %523 : vector<14x256xf32>
    %c1_200 = arith.constant 1 : index
    %c0_201 = arith.constant 0 : index
    %c112_202 = arith.constant 112 : index
    %525 = vector.load %arg13[%c1_200, %c0_201, %c112_202] : memref<2x14x512xf32, #tpu.memory_space<vmem>>, vector<1x14x256xf32>
    %526 = vector.shape_cast %525 : vector<1x14x256xf32> to vector<14x256xf32>
    %527 = vector.broadcast %26 : vector<14x1xf32> to vector<14x256xf32>
    %528 = arith.mulf %526, %527 : vector<14x256xf32>
    %529 = arith.addf %524, %528 : vector<14x256xf32>
    %c1_203 = arith.constant 1 : index
    %c0_204 = arith.constant 0 : index
    %c128_205 = arith.constant 128 : index
    %530 = vector.load %arg13[%c1_203, %c0_204, %c128_205] : memref<2x14x512xf32, #tpu.memory_space<vmem>>, vector<1x14x256xf32>
    %531 = vector.shape_cast %530 : vector<1x14x256xf32> to vector<14x256xf32>
    %532 = vector.broadcast %33 : vector<14x1xf32> to vector<14x256xf32>
    %533 = arith.mulf %531, %532 : vector<14x256xf32>
    %534 = arith.addf %529, %533 : vector<14x256xf32>
    %c1_206 = arith.constant 1 : index
    %c0_207 = arith.constant 0 : index
    %c144_208 = arith.constant 144 : index
    %535 = vector.load %arg13[%c1_206, %c0_207, %c144_208] : memref<2x14x512xf32, #tpu.memory_space<vmem>>, vector<1x14x256xf32>
    %536 = vector.shape_cast %535 : vector<1x14x256xf32> to vector<14x256xf32>
    %537 = vector.broadcast %40 : vector<14x1xf32> to vector<14x256xf32>
    %538 = arith.mulf %536, %537 : vector<14x256xf32>
    %539 = arith.addf %534, %538 : vector<14x256xf32>
    %c1_209 = arith.constant 1 : index
    %c0_210 = arith.constant 0 : index
    %c160_211 = arith.constant 160 : index
    %540 = vector.load %arg13[%c1_209, %c0_210, %c160_211] : memref<2x14x512xf32, #tpu.memory_space<vmem>>, vector<1x14x256xf32>
    %541 = vector.shape_cast %540 : vector<1x14x256xf32> to vector<14x256xf32>
    %542 = vector.broadcast %47 : vector<14x1xf32> to vector<14x256xf32>
    %543 = arith.mulf %541, %542 : vector<14x256xf32>
    %544 = arith.addf %539, %543 : vector<14x256xf32>
    %c1_212 = arith.constant 1 : index
    %c0_213 = arith.constant 0 : index
    %c176_214 = arith.constant 176 : index
    %545 = vector.load %arg13[%c1_212, %c0_213, %c176_214] : memref<2x14x512xf32, #tpu.memory_space<vmem>>, vector<1x14x256xf32>
    %546 = vector.shape_cast %545 : vector<1x14x256xf32> to vector<14x256xf32>
    %547 = vector.broadcast %54 : vector<14x1xf32> to vector<14x256xf32>
    %548 = arith.mulf %546, %547 : vector<14x256xf32>
    %549 = arith.addf %544, %548 : vector<14x256xf32>
    %550 = vector.broadcast %102 : vector<1x256xf32> to vector<14x256xf32>
    %551 = arith.mulf %549, %550 : vector<14x256xf32>
    %552 = arith.addf %515, %551 : vector<14x256xf32>
    %c1_215 = arith.constant 1 : index
    %c0_216 = arith.constant 0 : index
    %c81_217 = arith.constant 81 : index
    %553 = vector.load %arg13[%c1_215, %c0_216, %c81_217] : memref<2x14x512xf32, #tpu.memory_space<vmem>>, vector<1x14x256xf32>
    %554 = vector.shape_cast %553 : vector<1x14x256xf32> to vector<14x256xf32>
    %555 = vector.broadcast %13 : vector<14x1xf32> to vector<14x256xf32>
    %556 = arith.mulf %554, %555 : vector<14x256xf32>
    %c1_218 = arith.constant 1 : index
    %c0_219 = arith.constant 0 : index
    %c97_220 = arith.constant 97 : index
    %557 = vector.load %arg13[%c1_218, %c0_219, %c97_220] : memref<2x14x512xf32, #tpu.memory_space<vmem>>, vector<1x14x256xf32>
    %558 = vector.shape_cast %557 : vector<1x14x256xf32> to vector<14x256xf32>
    %559 = vector.broadcast %20 : vector<14x1xf32> to vector<14x256xf32>
    %560 = arith.mulf %558, %559 : vector<14x256xf32>
    %561 = arith.addf %556, %560 : vector<14x256xf32>
    %c1_221 = arith.constant 1 : index
    %c0_222 = arith.constant 0 : index
    %c113_223 = arith.constant 113 : index
    %562 = vector.load %arg13[%c1_221, %c0_222, %c113_223] : memref<2x14x512xf32, #tpu.memory_space<vmem>>, vector<1x14x256xf32>
    %563 = vector.shape_cast %562 : vector<1x14x256xf32> to vector<14x256xf32>
    %564 = vector.broadcast %27 : vector<14x1xf32> to vector<14x256xf32>
    %565 = arith.mulf %563, %564 : vector<14x256xf32>
    %566 = arith.addf %561, %565 : vector<14x256xf32>
    %c1_224 = arith.constant 1 : index
    %c0_225 = arith.constant 0 : index
    %c129_226 = arith.constant 129 : index
    %567 = vector.load %arg13[%c1_224, %c0_225, %c129_226] : memref<2x14x512xf32, #tpu.memory_space<vmem>>, vector<1x14x256xf32>
    %568 = vector.shape_cast %567 : vector<1x14x256xf32> to vector<14x256xf32>
    %569 = vector.broadcast %34 : vector<14x1xf32> to vector<14x256xf32>
    %570 = arith.mulf %568, %569 : vector<14x256xf32>
    %571 = arith.addf %566, %570 : vector<14x256xf32>
    %c1_227 = arith.constant 1 : index
    %c0_228 = arith.constant 0 : index
    %c145_229 = arith.constant 145 : index
    %572 = vector.load %arg13[%c1_227, %c0_228, %c145_229] : memref<2x14x512xf32, #tpu.memory_space<vmem>>, vector<1x14x256xf32>
    %573 = vector.shape_cast %572 : vector<1x14x256xf32> to vector<14x256xf32>
    %574 = vector.broadcast %41 : vector<14x1xf32> to vector<14x256xf32>
    %575 = arith.mulf %573, %574 : vector<14x256xf32>
    %576 = arith.addf %571, %575 : vector<14x256xf32>
    %c1_230 = arith.constant 1 : index
    %c0_231 = arith.constant 0 : index
    %c161_232 = arith.constant 161 : index
    %577 = vector.load %arg13[%c1_230, %c0_231, %c161_232] : memref<2x14x512xf32, #tpu.memory_space<vmem>>, vector<1x14x256xf32>
    %578 = vector.shape_cast %577 : vector<1x14x256xf32> to vector<14x256xf32>
    %579 = vector.broadcast %48 : vector<14x1xf32> to vector<14x256xf32>
    %580 = arith.mulf %578, %579 : vector<14x256xf32>
    %581 = arith.addf %576, %580 : vector<14x256xf32>
    %c1_233 = arith.constant 1 : index
    %c0_234 = arith.constant 0 : index
    %c177_235 = arith.constant 177 : index
    %582 = vector.load %arg13[%c1_233, %c0_234, %c177_235] : memref<2x14x512xf32, #tpu.memory_space<vmem>>, vector<1x14x256xf32>
    %583 = vector.shape_cast %582 : vector<1x14x256xf32> to vector<14x256xf32>
    %584 = vector.broadcast %55 : vector<14x1xf32> to vector<14x256xf32>
    %585 = arith.mulf %583, %584 : vector<14x256xf32>
    %586 = arith.addf %581, %585 : vector<14x256xf32>
    %587 = vector.broadcast %109 : vector<1x256xf32> to vector<14x256xf32>
    %588 = arith.mulf %586, %587 : vector<14x256xf32>
    %589 = arith.addf %552, %588 : vector<14x256xf32>
    %c1_236 = arith.constant 1 : index
    %c0_237 = arith.constant 0 : index
    %c82_238 = arith.constant 82 : index
    %590 = vector.load %arg13[%c1_236, %c0_237, %c82_238] : memref<2x14x512xf32, #tpu.memory_space<vmem>>, vector<1x14x256xf32>
    %591 = vector.shape_cast %590 : vector<1x14x256xf32> to vector<14x256xf32>
    %592 = vector.broadcast %14 : vector<14x1xf32> to vector<14x256xf32>
    %593 = arith.mulf %591, %592 : vector<14x256xf32>
    %c1_239 = arith.constant 1 : index
    %c0_240 = arith.constant 0 : index
    %c98_241 = arith.constant 98 : index
    %594 = vector.load %arg13[%c1_239, %c0_240, %c98_241] : memref<2x14x512xf32, #tpu.memory_space<vmem>>, vector<1x14x256xf32>
    %595 = vector.shape_cast %594 : vector<1x14x256xf32> to vector<14x256xf32>
    %596 = vector.broadcast %21 : vector<14x1xf32> to vector<14x256xf32>
    %597 = arith.mulf %595, %596 : vector<14x256xf32>
    %598 = arith.addf %593, %597 : vector<14x256xf32>
    %c1_242 = arith.constant 1 : index
    %c0_243 = arith.constant 0 : index
    %c114_244 = arith.constant 114 : index
    %599 = vector.load %arg13[%c1_242, %c0_243, %c114_244] : memref<2x14x512xf32, #tpu.memory_space<vmem>>, vector<1x14x256xf32>
    %600 = vector.shape_cast %599 : vector<1x14x256xf32> to vector<14x256xf32>
    %601 = vector.broadcast %28 : vector<14x1xf32> to vector<14x256xf32>
    %602 = arith.mulf %600, %601 : vector<14x256xf32>
    %603 = arith.addf %598, %602 : vector<14x256xf32>
    %c1_245 = arith.constant 1 : index
    %c0_246 = arith.constant 0 : index
    %c130_247 = arith.constant 130 : index
    %604 = vector.load %arg13[%c1_245, %c0_246, %c130_247] : memref<2x14x512xf32, #tpu.memory_space<vmem>>, vector<1x14x256xf32>
    %605 = vector.shape_cast %604 : vector<1x14x256xf32> to vector<14x256xf32>
    %606 = vector.broadcast %35 : vector<14x1xf32> to vector<14x256xf32>
    %607 = arith.mulf %605, %606 : vector<14x256xf32>
    %608 = arith.addf %603, %607 : vector<14x256xf32>
    %c1_248 = arith.constant 1 : index
    %c0_249 = arith.constant 0 : index
    %c146_250 = arith.constant 146 : index
    %609 = vector.load %arg13[%c1_248, %c0_249, %c146_250] : memref<2x14x512xf32, #tpu.memory_space<vmem>>, vector<1x14x256xf32>
    %610 = vector.shape_cast %609 : vector<1x14x256xf32> to vector<14x256xf32>
    %611 = vector.broadcast %42 : vector<14x1xf32> to vector<14x256xf32>
    %612 = arith.mulf %610, %611 : vector<14x256xf32>
    %613 = arith.addf %608, %612 : vector<14x256xf32>
    %c1_251 = arith.constant 1 : index
    %c0_252 = arith.constant 0 : index
    %c162_253 = arith.constant 162 : index
    %614 = vector.load %arg13[%c1_251, %c0_252, %c162_253] : memref<2x14x512xf32, #tpu.memory_space<vmem>>, vector<1x14x256xf32>
    %615 = vector.shape_cast %614 : vector<1x14x256xf32> to vector<14x256xf32>
    %616 = vector.broadcast %49 : vector<14x1xf32> to vector<14x256xf32>
    %617 = arith.mulf %615, %616 : vector<14x256xf32>
    %618 = arith.addf %613, %617 : vector<14x256xf32>
    %c1_254 = arith.constant 1 : index
    %c0_255 = arith.constant 0 : index
    %c178_256 = arith.constant 178 : index
    %619 = vector.load %arg13[%c1_254, %c0_255, %c178_256] : memref<2x14x512xf32, #tpu.memory_space<vmem>>, vector<1x14x256xf32>
    %620 = vector.shape_cast %619 : vector<1x14x256xf32> to vector<14x256xf32>
    %621 = vector.broadcast %56 : vector<14x1xf32> to vector<14x256xf32>
    %622 = arith.mulf %620, %621 : vector<14x256xf32>
    %623 = arith.addf %618, %622 : vector<14x256xf32>
    %624 = vector.broadcast %116 : vector<1x256xf32> to vector<14x256xf32>
    %625 = arith.mulf %623, %624 : vector<14x256xf32>
    %626 = arith.addf %589, %625 : vector<14x256xf32>
    %c1_257 = arith.constant 1 : index
    %c0_258 = arith.constant 0 : index
    %c83_259 = arith.constant 83 : index
    %627 = vector.load %arg13[%c1_257, %c0_258, %c83_259] : memref<2x14x512xf32, #tpu.memory_space<vmem>>, vector<1x14x256xf32>
    %628 = vector.shape_cast %627 : vector<1x14x256xf32> to vector<14x256xf32>
    %629 = vector.broadcast %15 : vector<14x1xf32> to vector<14x256xf32>
    %630 = arith.mulf %628, %629 : vector<14x256xf32>
    %c1_260 = arith.constant 1 : index
    %c0_261 = arith.constant 0 : index
    %c99_262 = arith.constant 99 : index
    %631 = vector.load %arg13[%c1_260, %c0_261, %c99_262] : memref<2x14x512xf32, #tpu.memory_space<vmem>>, vector<1x14x256xf32>
    %632 = vector.shape_cast %631 : vector<1x14x256xf32> to vector<14x256xf32>
    %633 = vector.broadcast %22 : vector<14x1xf32> to vector<14x256xf32>
    %634 = arith.mulf %632, %633 : vector<14x256xf32>
    %635 = arith.addf %630, %634 : vector<14x256xf32>
    %c1_263 = arith.constant 1 : index
    %c0_264 = arith.constant 0 : index
    %c115_265 = arith.constant 115 : index
    %636 = vector.load %arg13[%c1_263, %c0_264, %c115_265] : memref<2x14x512xf32, #tpu.memory_space<vmem>>, vector<1x14x256xf32>
    %637 = vector.shape_cast %636 : vector<1x14x256xf32> to vector<14x256xf32>
    %638 = vector.broadcast %29 : vector<14x1xf32> to vector<14x256xf32>
    %639 = arith.mulf %637, %638 : vector<14x256xf32>
    %640 = arith.addf %635, %639 : vector<14x256xf32>
    %c1_266 = arith.constant 1 : index
    %c0_267 = arith.constant 0 : index
    %c131_268 = arith.constant 131 : index
    %641 = vector.load %arg13[%c1_266, %c0_267, %c131_268] : memref<2x14x512xf32, #tpu.memory_space<vmem>>, vector<1x14x256xf32>
    %642 = vector.shape_cast %641 : vector<1x14x256xf32> to vector<14x256xf32>
    %643 = vector.broadcast %36 : vector<14x1xf32> to vector<14x256xf32>
    %644 = arith.mulf %642, %643 : vector<14x256xf32>
    %645 = arith.addf %640, %644 : vector<14x256xf32>
    %c1_269 = arith.constant 1 : index
    %c0_270 = arith.constant 0 : index
    %c147_271 = arith.constant 147 : index
    %646 = vector.load %arg13[%c1_269, %c0_270, %c147_271] : memref<2x14x512xf32, #tpu.memory_space<vmem>>, vector<1x14x256xf32>
    %647 = vector.shape_cast %646 : vector<1x14x256xf32> to vector<14x256xf32>
    %648 = vector.broadcast %43 : vector<14x1xf32> to vector<14x256xf32>
    %649 = arith.mulf %647, %648 : vector<14x256xf32>
    %650 = arith.addf %645, %649 : vector<14x256xf32>
    %c1_272 = arith.constant 1 : index
    %c0_273 = arith.constant 0 : index
    %c163_274 = arith.constant 163 : index
    %651 = vector.load %arg13[%c1_272, %c0_273, %c163_274] : memref<2x14x512xf32, #tpu.memory_space<vmem>>, vector<1x14x256xf32>
    %652 = vector.shape_cast %651 : vector<1x14x256xf32> to vector<14x256xf32>
    %653 = vector.broadcast %50 : vector<14x1xf32> to vector<14x256xf32>
    %654 = arith.mulf %652, %653 : vector<14x256xf32>
    %655 = arith.addf %650, %654 : vector<14x256xf32>
    %c1_275 = arith.constant 1 : index
    %c0_276 = arith.constant 0 : index
    %c179_277 = arith.constant 179 : index
    %656 = vector.load %arg13[%c1_275, %c0_276, %c179_277] : memref<2x14x512xf32, #tpu.memory_space<vmem>>, vector<1x14x256xf32>
    %657 = vector.shape_cast %656 : vector<1x14x256xf32> to vector<14x256xf32>
    %658 = vector.broadcast %57 : vector<14x1xf32> to vector<14x256xf32>
    %659 = arith.mulf %657, %658 : vector<14x256xf32>
    %660 = arith.addf %655, %659 : vector<14x256xf32>
    %661 = vector.broadcast %123 : vector<1x256xf32> to vector<14x256xf32>
    %662 = arith.mulf %660, %661 : vector<14x256xf32>
    %663 = arith.addf %626, %662 : vector<14x256xf32>
    %664 = tpu.concatenate %393, %663 in 1 : vector<14x256xf32>, vector<14x256xf32> -> vector<14x512xf32>
    %c0_278 = arith.constant 0 : index
    %c0_279 = arith.constant 0 : index
    %665 = vector.load %arg5[%c0_278, %c0_279] : memref<14x1xf32, #tpu.memory_space<vmem>>, vector<14x1xf32>
    %666 = vector.broadcast %665 : vector<14x1xf32> to vector<14x512xf32>
    %667 = arith.addf %664, %666 : vector<14x512xf32>
    %668 = vector.extract_strided_slice %667 {offsets = [12, 0], sizes = [2, 512], strides = [1, 1]} : vector<14x512xf32> to vector<2x512xf32>
    %669 = arith.mulf %7, %668 : vector<2x512xf32>
    %c0_280 = arith.constant 0 : index
    %c0_281 = arith.constant 0 : index
    %670 = vector.load %arg6[%c0_280, %c0_281] : memref<4x2xf32, #tpu.memory_space<vmem>>, vector<4x2xf32>
    %c0_282 = arith.constant 0 : index
    %c0_283 = arith.constant 0 : index
    %671 = vector.load %arg7[%c0_282, %c0_283] : memref<4x1xf32, #tpu.memory_space<vmem>>, vector<4x1xf32>
    %cst_284 = arith.constant dense<0.000000e+00> : vector<4x512xf32>
    %672 = tpu.matmul %670, %669, %cst_284 {dimension_numbers = #tpu.dot_dimension_numbers<[1], [0], [0], [1], [0, 0, 1, 1], [], []>} : vector<4x2xf32>, vector<2x512xf32>, vector<4x512xf32> -> vector<4x512xf32>
    %673 = vector.broadcast %671 : vector<4x1xf32> to vector<4x512xf32>
    %674 = arith.addf %672, %673 : vector<4x512xf32>
    %675 = vector.extract_strided_slice %667 {offsets = [8, 0], sizes = [4, 512], strides = [1, 1]} : vector<14x512xf32> to vector<4x512xf32>
    %676 = arith.mulf %674, %675 : vector<4x512xf32>
    %c0_285 = arith.constant 0 : index
    %c0_286 = arith.constant 0 : index
    %677 = vector.load %arg8[%c0_285, %c0_286] : memref<8x4xf32, #tpu.memory_space<vmem>>, vector<8x4xf32>
    %c0_287 = arith.constant 0 : index
    %c0_288 = arith.constant 0 : index
    %678 = vector.load %arg9[%c0_287, %c0_288] : memref<8x1xf32, #tpu.memory_space<vmem>>, vector<8x1xf32>
    %cst_289 = arith.constant dense<0.000000e+00> : vector<8x512xf32>
    %679 = tpu.matmul %677, %676, %cst_289 {dimension_numbers = #tpu.dot_dimension_numbers<[1], [0], [0], [1], [0, 0, 1, 1], [], []>} : vector<8x4xf32>, vector<4x512xf32>, vector<8x512xf32> -> vector<8x512xf32>
    %680 = vector.broadcast %678 : vector<8x1xf32> to vector<8x512xf32>
    %681 = arith.addf %679, %680 : vector<8x512xf32>
    %682 = vector.extract_strided_slice %667 {offsets = [0, 0], sizes = [8, 512], strides = [1, 1]} : vector<14x512xf32> to vector<8x512xf32>
    %683 = arith.mulf %681, %682 : vector<8x512xf32>
    %c0_290 = arith.constant 0 : index
    %c0_291 = arith.constant 0 : index
    %684 = vector.load %arg10[%c0_290, %c0_291] : memref<8x8xf32, #tpu.memory_space<vmem>>, vector<8x8xf32>
    %cst_292 = arith.constant dense<0.000000e+00> : vector<8x512xf32>
    %685 = tpu.matmul %684, %683, %cst_292 {dimension_numbers = #tpu.dot_dimension_numbers<[1], [0], [0], [1], [0, 0, 1, 1], [], []>} : vector<8x8xf32>, vector<8x512xf32>, vector<8x512xf32> -> vector<8x512xf32>
    %c0_293 = arith.constant 0 : index
    %c0_294 = arith.constant 0 : index
    %686 = vector.load %arg11[%c0_293, %c0_294] : memref<8x1xf32, #tpu.memory_space<vmem>>, vector<8x1xf32>
    %687 = vector.broadcast %686 : vector<8x1xf32> to vector<8x512xf32>
    %688 = arith.addf %685, %687 : vector<8x512xf32>
    %c0_295 = arith.constant 0 : index
    %c0_296 = arith.constant 0 : index
    %689 = vector.load %arg12[%c0_295, %c0_296] : memref<8x512xf32, #tpu.memory_space<vmem>>, vector<8x512xf32>
    tpu.vector_store %arg12[%c0_295, %c0_296], %688 {strides = array<i32>} : memref<8x512xf32, #tpu.memory_space<vmem>>, vector<8x512xf32>,
    return
  }
  func.func @transform_0(%arg0: i32) -> (i32, i32) {
    %c0_i32 = arith.constant 0 : i32
    %c0_i32_0 = arith.constant 0 : i32
    return %c0_i32, %arg0 : i32, i32
  }
  func.func @transform_1(%arg0: i32) -> (i32, i32) {
    %c0_i32 = arith.constant 0 : i32
    %c0_i32_0 = arith.constant 0 : i32
    %c0_i32_1 = arith.constant 0 : i32
    return %c0_i32, %c0_i32_0 : i32, i32
  }
  func.func @transform_2(%arg0: i32) -> (i32, i32) {
    %c0_i32 = arith.constant 0 : i32
    %c0_i32_0 = arith.constant 0 : i32
    %c0_i32_1 = arith.constant 0 : i32
    return %c0_i32, %c0_i32_0 : i32, i32
  }
  func.func @transform_3(%arg0: i32) -> (i32, i32) {
    %c0_i32 = arith.constant 0 : i32
    %c0_i32_0 = arith.constant 0 : i32
    %c0_i32_1 = arith.constant 0 : i32
    return %c0_i32, %c0_i32_0 : i32, i32
  }
  func.func @transform_4(%arg0: i32) -> (i32, i32) {
    %c0_i32 = arith.constant 0 : i32
    %c0_i32_0 = arith.constant 0 : i32
    %c0_i32_1 = arith.constant 0 : i32
    return %c0_i32, %c0_i32_0 : i32, i32
  }
  func.func @transform_5(%arg0: i32) -> (i32, i32) {
    %c0_i32 = arith.constant 0 : i32
    %c0_i32_0 = arith.constant 0 : i32
    %c0_i32_1 = arith.constant 0 : i32
    return %c0_i32, %c0_i32_0 : i32, i32
  }
  func.func @transform_6(%arg0: i32) -> (i32, i32) {
    %c0_i32 = arith.constant 0 : i32
    %c0_i32_0 = arith.constant 0 : i32
    %c0_i32_1 = arith.constant 0 : i32
    return %c0_i32, %c0_i32_0 : i32, i32
  }
  func.func @transform_7(%arg0: i32) -> (i32, i32) {
    %c0_i32 = arith.constant 0 : i32
    %c0_i32_0 = arith.constant 0 : i32
    %c0_i32_1 = arith.constant 0 : i32
    return %c0_i32, %c0_i32_0 : i32, i32
  }
  func.func @transform_8(%arg0: i32) -> (i32, i32) {
    %c0_i32 = arith.constant 0 : i32
    %c0_i32_0 = arith.constant 0 : i32
    %c0_i32_1 = arith.constant 0 : i32
    return %c0_i32, %c0_i32_0 : i32, i32
  }
  func.func @transform_9(%arg0: i32) -> (i32, i32) {
    %c0_i32 = arith.constant 0 : i32
    %c0_i32_0 = arith.constant 0 : i32
    %c0_i32_1 = arith.constant 0 : i32
    return %c0_i32, %c0_i32_0 : i32, i32
  }
  func.func @transform_10(%arg0: i32) -> (i32, i32) {
    %c0_i32 = arith.constant 0 : i32
    %c0_i32_0 = arith.constant 0 : i32
    %c0_i32_1 = arith.constant 0 : i32
    return %c0_i32, %c0_i32_0 : i32, i32
  }
  func.func @transform_11(%arg0: i32) -> (i32, i32) {
    %c0_i32 = arith.constant 0 : i32
    %c0_i32_0 = arith.constant 0 : i32
    return %c0_i32, %arg0 : i32, i32
  }
}

</mosaic_0001>

<bundles_post_ra>
// kernel: gnconv_forward.1
= control target key start
LH: loop header
LB: loop body
LE: loop exit
PB: predicated region body
PF: predicated region fallthrough
CT: control target
= control target key end

     0   :  { %v10490_v0 = vmov 0   ;;  %v5619_v4 = vmov 0.0   ;;  %vm56_vm0 = vcmask 64512   ;;  %v5620_v12 = vmov 7   ;;  %s5635_s17 = smov 96   ;;  %s5636_s18 = smov 80   ;;  %s10478_s3 = inlined_call_operand.vmem [shape: f32[14,49], index: 3, kind: input, shape index: {}]   ;;  %s10479_s0 = inlined_call_operand.vmem [shape: f32[8,512], index: 0, kind: input, shape index: {}]   ;;  %s10480_s2 = inlined_call_operand.vmem [shape: f32[16,1], index: 2, kind: input, shape index: {}]   ;;  %s10481_s1 = inlined_call_operand.vmem [shape: f32[16,8], index: 1, kind: input, shape index: {}]   ;;  %s10482_s4 = inlined_call_operand.vmem [shape: f32[14,1], index: 4, kind: input, shape index: {}]   ;;  %s10483_s6 = inlined_call_operand.vmem [shape: f32[4,1], index: 6, kind: input, shape index: {}]   ;;  %s10484_s5 = inlined_call_operand.vmem [shape: f32[4,2], index: 5, kind: input, shape index: {}]   ;;  %s10485_s7 = inlined_call_operand.vmem [shape: f32[8,4], index: 7, kind: input, shape index: {}]   ;;  %s10486_s8 = inlined_call_operand.vmem [shape: f32[8,1], index: 8, kind: input, shape index: {}]   ;;  %s10487_s10 = inlined_call_operand.vmem [shape: f32[8,1], index: 10, kind: input, shape index: {}]   ;;  %s10488_s9 = inlined_call_operand.vmem [shape: f32[8,8], index: 9, kind: input, shape index: {}]   ;;  %s10489_s11 = inlined_call_operand.vmem [shape: f32[8,512], index: 11, kind: output, shape index: {}]  }
   0x1   :  { %5445 = vset.pattern.permute.xlu1 %v10490_v0  ;;  %5444 = vset.pattern.permute.xlu0 %v10490_v0  ;;  %v5753_v1 = vld [vmem:[%s10478_s3] sm:$0xff]  ;;  %v39_v2 = vld [vmem:[%s10479_s0 + $0x8] sm:$0xff]  ;;  %v41_v3 = vld [vmem:[%s10479_s0 + $0x18] sm:$0xff]  ;;  %316 = vst [vmem:[#allocation2] sm:$0xff] %v5619_v4  ;;  %v5621_v13 = vmov 14   ;;  %v219_v14 = vlaneseq  ;;  %v5622_v16 = vmov 21  }
   0x2   :  { %317 = vst [vmem:[#allocation2 + $0x20] sm:$0x3f] %v5619_v4  ;;  %319 = vst [vmem:[#allocation2 + $0x38] sm:$0x3f] %v5619_v4  ;;  %332 = vperm.xlu1 %5445, %v5753_v1   ;;  %63 = vmatprep.subr.mxu0 %v39_v2  ;;  %v44_v5 = vld [vmem:[%s10480_s2] sm:$0xff]  ;;  %v40_v7 = vld [vmem:[%s10479_s0 + $0x10] sm:$0xff] }
   0x3   :  { %2778 = vst [vmem:[#allocation2 + $0x60] sm:$0x3f] %v5619_v4  ;;  %2780 = vst [vmem:[#allocation2 + $0x78] sm:$0x3f] %v5619_v4  ;;  %v38_v6 = vld [vmem:[%s10479_s0] sm:$0xff]  ;;  %140 = vmatprep.subr.mxu1 %v41_v3  ;;  %127 = vmatprep.mubr.f32.mxu0 %v5619_v4  ;;  %v45_v10 = vld [vmem:[%s10480_s2 + $0x8] sm:$0xff] }
   0x4   :  { %v42_v8 = vld [vmem:[%s10481_s1] sm:$0xff]  ;;  %204 = vmatprep.mubr.f32.mxu1 %v5619_v4  ;;  %48 = vperm.xlu0 %5444, %v44_v5   ;;  %v5784_v9 = vld [vmem:[%s10478_s3 + $0x8] sm:$0x3f]  ;;  %v220_v15 = vand.u32 127, %v219_v14  ;;  %v5623_v18 = vmov 28   ;;  %v5624_v21 = vmov 35  }
   0x5   :  { %64 = vmatpush1.msra.mxu0 %v38_v6  ;;  %141 = vmatpush1.msra.mxu1 %v40_v7  ;;  %v43_v11 = vld [vmem:[%s10481_s1 + $0x8] sm:$0xff]  ;;  %v5625_v24 = vmov 42   ;;  %v5626_v26 = vmov 1   ;;  %s5627_s1 = smov 77   ;;  %v5628_v27 = vmov 8   ;;  %v5629_v28 = vmov 15  }
   0x6   :  { %5344 = vmatmul.mubr.msk.f32.vlgmr.msra.gmra.mrb[0].mxu0 %vm56_vm0, %v42_v8  ;;  %5346 = vmatmul.mubr.msk.f32.vlgmr.msra.gmra.mrb[0].mxu1 %vm56_vm0, %v42_v8  ;;  %v221_v17 = vadd.s32 128, %v220_v15  ;;  %v5809_v19 = vand.u32 15, %v220_v15  ;;  %v5630_v29 = vmov 22   ;;  %v5631_v30 = vmov 29   ;;  %s5634_s2 = smov 112   ;;  %s5637_s19 = smov 64  }
   0x7   :  { %337 = vperm.xlu1 %5445, %v5784_v9   ;;  %133 = vmatprep.mubr.f32.mxu0 %v5619_v4  ;;  %v5632_v31 = vmov 36   ;;  %v5633_v32 = vmov 43   ;;  %s5638_s20 = smov 48   ;;  %s5639_s21 = smov 32   ;;  %vm378_vm5 = vcmask 916480   ;;  %vm427_vm6 = vcmask 785408  }
   0x8   :  { %53 = vperm.xlu0 %5444, %v45_v10   ;;  %210 = vmatprep.mubr.f32.mxu1 %v5619_v4  ;;  %v5811_v20 = vand.u32 15, %v221_v17  ;;  %vm246_vm1 = vcmp.ge.s32.totalorder %v5809_v19, 3  ;;  %vm256_vm3 = vcmp.ge.s32.totalorder %v5809_v19, 2  ;;  %s5641_s22 = smov 78   ;;  %vm476_vm7 = vcmask 654336   ;;  %s5648_s27 = smov 79  }
   0x9   :  { %v5348_v22 = vsel %vm246_vm1, 1.0, %v5619_v4  ;;  %v5843_v38 = vld [vmem:[#allocation2 + $0x20] sm:$0x3f]  ;;  %v5872_v52 = vld [vmem:[#allocation2 + $0x38] sm:$0x3f]  ;;  %vm531_vm8 = vcmask 523264  }
   0xa   :  { %5345 = vmatmul.mubr.msk.f32.gmra.mrb[2].mxu0 %vm56_vm0, %v43_v11  ;;  %5347 = vmatmul.mubr.msk.f32.gmra.mrb[2].mxu1 %vm56_vm0, %v43_v11  ;;  %vm247_vm2 = vcmp.ge.s32.totalorder %v5811_v20, 3  ;;  %vm257_vm4 = vcmp.ge.s32.totalorder %v5811_v20, 2  ;;  %vm266_vm9 = vcmp.ge.s32.totalorder %v5809_v19, 1  ;;  %vm267_vm10 = vcmp.ge.s32.totalorder %v5811_v20, 1  ;;  %s5649_s28 = smov 127   ;;  %s5651_s29 = smov 126  }
   0xb   :  { %5447 = vset.pattern.permute.xlu1 %v5620_v12  ;;  %5003 = vmatprep.mubr.f32.mxu1 %v5619_v4  ;;  %v5349_v23 = vsel %vm247_vm2, 1.0, %v5619_v4  ;;  %vm580_vm11 = vcmask 392192   ;;  %vm629_vm12 = vcmask 261120   ;;  %vm971_vm13 = vcmask 637952   ;;  %s5660_s30 = smov 125   ;;  %s5680_s15 = smov 81  }
   0xc   :  { %351 = vperm.xlu1 %5447, %v5784_v9   ;;  %5446 = vset.pattern.permute.xlu0 %v5620_v12  ;;  %v5458_v25 = vpack.i.bf16 %v5349_v23, %v5348_v22  ;;  %vm1325_vm14 = vcmask 646144   ;;  %vm288_vm15 = vcmp.lt.s32.totalorder %v5809_v19, 15  ;;  %vm289_vm1 = vcmp.lt.s32.totalorder %v5811_v20, 15  ;;  %s5682_s16 = smov 124   ;;  %s5685_s23 = smov 123  }
   0xd   :  { %347 = vperm.xlu0 %5446, %v5753_v1   ;;  %4932 = vmatprep.mubr.f32.mxu0 %v5619_v4  ;;  %vm308_vm2 = vcmp.lt.s32.totalorder %v5809_v19, 13  ;;  %s5686_s24 = smov 122  }
  0x10   :  { %5448 = vset.pattern.permute.xlu1 %v5621_v13 }
  0x11   :  { %396 = vperm.xlu1 %5448, %v5753_v1   ;;  %5449 = vset.pattern.permute.xlu0 %v5621_v13 }
  0x12   :  { %400 = vperm.xlu0 %5449, %v5784_v9  }
  0x15   :  { %5451 = vset.pattern.permute.xlu1 %v5622_v16 }
  0x16   :  { %449 = vperm.xlu1 %5451, %v5784_v9   ;;  %5450 = vset.pattern.permute.xlu0 %v5622_v16 }
  0x17   :  { %445 = vperm.xlu0 %5450, %v5753_v1  }
  0x1a   :  { %5452 = vset.pattern.permute.xlu1 %v5623_v18 }
  0x1b   :  { %500 = vperm.xlu1 %5452, %v5753_v1   ;;  %5453 = vset.pattern.permute.xlu0 %v5623_v18 }
  0x1c   :  { %504 = vperm.xlu0 %5453, %v5784_v9  }
  0x1f   :  { %5455 = vset.pattern.permute.xlu1 %v5624_v21 }
  0x20   :  { %553 = vperm.xlu1 %5455, %v5784_v9   ;;  %5454 = vset.pattern.permute.xlu0 %v5624_v21 }
  0x21   :  { %549 = vperm.xlu0 %5454, %v5753_v1  }
  0x24   :  { %5456 = vset.pattern.permute.xlu1 %v5625_v24 }
  0x25   :  { %598 = vperm.xlu1 %5456, %v5753_v1   ;;  %5457 = vset.pattern.permute.xlu0 %v5625_v24 }
  0x26   :  { %602 = vperm.xlu0 %5457, %v5784_v9  }
  0x29   :  { %5463 = vset.pattern.permute.xlu1 %v5626_v26 }
  0x2a   :  { %664 = vperm.xlu1 %5463, %v5753_v1   ;;  %5459 = vrot.lane.b32.xlu0 %v5458_v25, %s5627_s1  ;;  %s5683_s1 = smov 83  }
  0x2b   :  { %5464 = vset.pattern.permute.xlu0 %v5626_v26 }
  0x2e   :  { %5465 = vset.pattern.permute.xlu1 %v5628_v27  ;;  %668 = vperm.xlu0 %5464, %v5784_v9  }
  0x2f   :  { %678 = vperm.xlu1 %5465, %v5753_v1  }
  0x32   :  { %5466 = vset.pattern.permute.xlu0 %v5629_v28 }
  0x33   :  { %682 = vperm.xlu1 %5465, %v5784_v9   ;;  %726 = vperm.xlu0 %5466, %v5753_v1  }
  0x37   :  { %5467 = vset.pattern.permute.xlu1 %v5629_v28  ;;  %5469 = vset.pattern.permute.xlu0 %v5630_v29 }
  0x38   :  { %730 = vperm.xlu1 %5467, %v5784_v9   ;;  %778 = vperm.xlu0 %5469, %v5784_v9  }
  0x3c   :  { %5468 = vset.pattern.permute.xlu1 %v5630_v29  ;;  %5470 = vset.pattern.permute.xlu0 %v5631_v30 }
  0x3d   :  { %774 = vperm.xlu1 %5468, %v5753_v1   ;;  %822 = vperm.xlu0 %5470, %v5753_v1  }
  0x41   :  { %5471 = vset.pattern.permute.xlu1 %v5631_v30  ;;  %5473 = vset.pattern.permute.xlu0 %v5632_v31 }
  0x42   :  { %826 = vperm.xlu1 %5471, %v5784_v9   ;;  %874 = vperm.xlu0 %5473, %v5784_v9  }
  0x46   :  { %5472 = vset.pattern.permute.xlu1 %v5632_v31  ;;  %5474 = vset.pattern.permute.xlu0 %v5633_v32 }
  0x47   :  { %870 = vperm.xlu1 %5472, %v5753_v1  }
  0x4b   :  { %5475 = vset.pattern.permute.xlu1 %v5633_v32 }
  0x81   :  { %v5833_v33 = vpop.permute.xlu1 %332 }
  0x82   :  { %10836 = vst [vmem:[#allocation3_spill] sm:$0xff] %v5833_v33 }
  0x83   :  { %v5835_v34 = vpop.permute.xlu0 %48 }
  0x86   :  { %v5837_v35 = vpop.permute.xlu1 %337 }
  0x87   :  { %10837 = vst [vmem:[#allocation4_spill] sm:$0xff] %v5837_v35  ;;  %v5839_v36 = vpop.permute.xlu0 %53 }
  0x8b   :  { %v5841_v37 = vpop.permute.xlu1 %351 }
  0x8c   :  { %10838 = vst [vmem:[#allocation5_spill] sm:$0xff] %v5841_v37  ;;  %v5845_v39 = vpop.permute.xlu0 %347  ;;  %v357_v40 = vmul.f32 %v5841_v37, %v5843_v38 }
  0x8d   :  { %10839 = vst [vmem:[#allocation6_spill] sm:$0xff] %v5845_v39  ;;  %v354_v41 = vmul.f32 0.0, %v5845_v39 }
  0x8e   :  { %372 = vrot.lane.b32.xlu0 %v357_v40, %s5634_s2 }
  0x8f   :  { %366 = vrot.lane.b32.xlu1 %v354_v41, %s5634_s2 }
  0x90   :  { %v5852_v42 = vpop.permute.xlu1 %396 }
  0x91   :  { %10840 = vst [vmem:[#allocation7_spill] sm:$0xff] %v5852_v42  ;;  %v403_v43 = vmul.f32 0.0, %v5852_v42  ;;  %v5855_v44 = vpop.permute.xlu0 %400 }
  0x92   :  { %10841 = vst [vmem:[#allocation8_spill] sm:$0xff] %v5855_v44  ;;  %v406_v45 = vmul.f32 %v5855_v44, %v5843_v38 }
  0x93   :  { %415 = vrot.lane.b32.xlu1 %v403_v43, %s5635_s17 }
  0x95   :  { %v5860_v46 = vpop.permute.xlu1 %449 }
  0x96   :  { %10842 = vst [vmem:[#allocation9_spill] sm:$0xff] %v5860_v46  ;;  %v455_v47 = vmul.f32 %v5860_v46, %v5843_v38  ;;  %v5864_v48 = vpop.permute.xlu0 %445 }
  0x97   :  { %10843 = vst [vmem:[#allocation10_spill] sm:$0xff] %v5864_v48  ;;  %421 = vrot.lane.b32.xlu1 %v406_v45, %s5635_s17  ;;  %v452_v49 = vmul.f32 0.0, %v5864_v48 }
  0x98   :  { %470 = vrot.lane.b32.xlu0 %v455_v47, %s5636_s18 }
  0x9a   :  { %v5869_v50 = vpop.permute.xlu1 %500 }
  0x9b   :  { %10844 = vst [vmem:[#allocation11_spill] sm:$0xff] %v5869_v50  ;;  %v509_v51 = vmul.f32 0.0, %v5869_v50  ;;  %v5874_v53 = vpop.permute.xlu0 %504  ;;  %464 = vrot.lane.b32.xlu1 %v452_v49, %s5636_s18 }
  0x9c   :  { %10845 = vst [vmem:[#allocation12_spill] sm:$0xff] %v5874_v53  ;;  %v512_v54 = vmul.f32 %v5874_v53, %v5872_v52 }
  0x9d   :  { %523 = vrot.lane.b32.xlu0 %v509_v51, %s5637_s19 }
  0x9f   :  { %v5880_v55 = vpop.permute.xlu1 %553  ;;  %529 = vrot.lane.b32.xlu1 %v512_v54, %s5637_s19 }
  0xa0   :  { %10846 = vst [vmem:[#allocation13_spill] sm:$0xff] %v5880_v55  ;;  %v561_v56 = vmul.f32 %v5880_v55, %v5872_v52  ;;  %v5885_v57 = vpop.permute.xlu0 %549 }
  0xa1   :  { %10847 = vst [vmem:[#allocation14_spill] sm:$0xff] %v5885_v57  ;;  %v558_v58 = vmul.f32 0.0, %v5885_v57 }
  0xa2   :  { %578 = vrot.lane.b32.xlu0 %v561_v56, %s5638_s20 }
  0xa3   :  { %572 = vrot.lane.b32.xlu1 %v558_v58, %s5638_s20 }
  0xa4   :  { %v5890_v59 = vpop.permute.xlu1 %598 }
  0xa5   :  { %10848 = vst [vmem:[#allocation15_spill] sm:$0xff] %v5890_v59  ;;  %v607_v60 = vmul.f32 0.0, %v5890_v59  ;;  %v5893_v61 = vpop.permute.xlu0 %602 }
  0xa6   :  { %10849 = vst [vmem:[#allocation16_spill] sm:$0xff] %v5893_v61  ;;  %v610_v62 = vmul.f32 %v5893_v61, %v5872_v52 }
  0xa7   :  { %621 = vrot.lane.b32.xlu0 %v607_v60, %s5639_s21 }
  0xa8   :  { %627 = vrot.lane.b32.xlu1 %v610_v62, %s5639_s21 }
  0xa9   :  { %v5899_v63 = vpop.permute.xlu1 %664  ;;  %v5901_v2 = vpop.permute.xlu0 %5459 }
  0xaa   :  { %10850 = vst [vmem:[#allocation17_spill] sm:$0xff] %v5899_v63  ;;  %10851 = vst [vmem:[#allocation18_spill] sm:$0xff] %v5901_v2 }
  0xad   :  { %v5903_v3 = vpop.permute.xlu0 %668 }
  0xae   :  { %10852 = vst [vmem:[#allocation19_spill] sm:$0xff] %v5903_v3  ;;  %v5905_v5 = vpop.permute.xlu1 %678 }
  0xaf   :  { %10853 = vst [vmem:[#allocation20_spill] sm:$0xff] %v5905_v5  ;;  %v685_v6 = vmul.f32 0.0, %v5905_v5 }
  0xb1   :  { %697 = vrot.lane.b32.xlu0 %v685_v6, %s5634_s2 }
  0xb2   :  { %v5909_v7 = vpop.permute.xlu1 %682  ;;  %v5911_v8 = vpop.permute.xlu0 %726 }
  0xb3   :  { %10854 = vst [vmem:[#allocation21_spill] sm:$0xff] %v5909_v7  ;;  %10855 = vst [vmem:[#allocation22_spill] sm:$0xff] %v5911_v8  ;;  %v688_v10 = vmul.f32 %v5909_v7, %v5843_v38  ;;  %v733_v11 = vmul.f32 0.0, %v5911_v8 }
  0xb5   :  { %703 = vrot.lane.b32.xlu1 %v688_v10, %s5634_s2 }
  0xb7   :  { %v5917_v12 = vpop.permute.xlu1 %730  ;;  %v5923_v14 = vpop.permute.xlu0 %778 }
  0xb8   :  { %10856 = vst [vmem:[#allocation23_spill] sm:$0xff] %v5917_v12  ;;  %v736_v13 = vmul.f32 %v5917_v12, %v5843_v38  ;;  %10857 = vst [vmem:[#allocation24_spill] sm:$0xff] %v5923_v14  ;;  %v784_v17 = vmul.f32 %v5923_v14, %v5843_v38 }
  0xb9   :  { %745 = vrot.lane.b32.xlu1 %v733_v11, %s5635_s17 }
  0xba   :  { %751 = vrot.lane.b32.xlu0 %v736_v13, %s5635_s17 }
  0xbc   :  { %v5925_v15 = vpop.permute.xlu1 %774  ;;  %v5931_v18 = vpop.permute.xlu0 %822 }
  0xbd   :  { %10858 = vst [vmem:[#allocation25_spill] sm:$0xff] %v5925_v15  ;;  %v781_v16 = vmul.f32 0.0, %v5925_v15  ;;  %10859 = vst [vmem:[#allocation26_spill] sm:$0xff] %v5931_v18  ;;  %v831_v23 = vmul.f32 0.0, %v5931_v18 }
  0xbf   :  { %793 = vrot.lane.b32.xlu1 %v781_v16, %s5636_s18 }
  0xc1   :  { %v5933_v21 = vpop.permute.xlu1 %826  ;;  %v5945_v26 = vpop.permute.xlu0 %874 }
  0xc2   :  { %10860 = vst [vmem:[#allocation27_spill] sm:$0xff] %v5933_v21  ;;  %v834_v22 = vmul.f32 %v5933_v21, %v5872_v52  ;;  %10862 = vst [vmem:[#allocation29_spill] sm:$0xff] %v5945_v26  ;;  %v882_v27 = vmul.f32 %v5945_v26, %v5872_v52 }
  0xc3   :  { %799 = vrot.lane.b32.xlu1 %v784_v17, %s5636_s18  ;;  %v5640_v17 = vmov 2  }
  0xc4   :  { %851 = vrot.lane.b32.xlu0 %v834_v22, %s5637_s19 }
  0xc6   :  { %v5940_v24 = vpop.permute.xlu1 %870 }
  0xc7   :  { %10861 = vst [vmem:[#allocation28_spill] sm:$0xff] %v5940_v24  ;;  %845 = vrot.lane.b32.xlu1 %v831_v23, %s5637_s19  ;;  %v879_v25 = vmul.f32 0.0, %v5940_v24 }
  0xc9   :  { %893 = vrot.lane.b32.xlu0 %v879_v25, %s5638_s20 }
  0xcb   :  { %922 = vperm.xlu1 %5475, %v5784_v9  }
  0xcd   :  { %918 = vperm.xlu0 %5474, %v5753_v1  }
  0xcf   :  { %899 = vrot.lane.b32.xlu1 %v882_v27, %s5638_s20 }
  0xd0   :  { %5482 = vset.pattern.permute.xlu1 %v5640_v17 }
  0xd1   :  { %5481 = vset.pattern.permute.xlu0 %v5640_v17 }
  0xd9   :  { %v129_v28 = vpop.f32.mrb[0].mxu0  ;;  %v206_v29 = vpop.f32.mrb[0].mxu1 }
  0xda   :  { %v5953_v30 = vadd.f32 %v129_v28, %v5835_v34  ;;  %v207_v31 = vadd.f32 %v206_v29, %v5835_v34  ;;  %v131_v32 = vpop.f32.mrb[1].mxu0  ;;  %v208_v40 = vpop.f32.mrb[1].mxu1 }
  0xdb   :  { %v5957_v41 = vadd.f32 %v131_v32, %v5835_v34  ;;  %v209_v43 = vadd.f32 %v208_v40, %v5835_v34 }
  0xdc   :  { %320 = vst [vmem:[#allocation2 + $0x8] sm:$0xff] %v5953_v30  ;;  %2781 = vst [vmem:[#allocation2 + $0x48] sm:$0xff] %v207_v31 }
  0xdd   :  { %321 = vst [vmem:[#allocation2 + $0x10] sm:$0xff] %v5957_v41  ;;  %2782 = vst [vmem:[#allocation2 + $0x50] sm:$0xff] %v209_v43  ;;  %v135_v45 = vpop.f32.mrb[2].mxu0  ;;  %v212_v47 = vpop.f32.mrb[2].mxu1 }
  0xde   :  { %v5963_v49 = vadd.f32 %v135_v45, %v5839_v36  ;;  %v5966_v51 = vadd.f32 %v212_v47, %v5839_v36  ;;  %v137_v54 = vpop.f32.mrb[3].mxu0  ;;  %v214_v56 = vpop.f32.mrb[3].mxu1 }
  0xdf   :  { %v5969_v58 = vadd.f32 %v137_v54, %v5839_v36  ;;  %v5972_v34 = vadd.f32 %v214_v56, %v5839_v36 }
  0xe0   :  { %10863 = vst [vmem:[#allocation30_spill] sm:$0xff] %v5963_v49  ;;  %10864 = vst [vmem:[#allocation31_spill] sm:$0xff] %v5966_v51 }
  0xe1   :  { %10865 = vst [vmem:[#allocation32_spill] sm:$0xff] %v5969_v58  ;;  %10866 = vst [vmem:[#allocation33_spill] sm:$0xff] %v5972_v34 }
  0xe2   :  { %322 = vst [vmem:[#allocation2 + $0x28] sm:$0x3f] %v5963_v49  ;;  %2783 = vst [vmem:[#allocation2 + $0x68] sm:$0x3f] %v5966_v51 }
  0xe3   :  { %323 = vst [vmem:[#allocation2 + $0x30] sm:$0x3f] %v5969_v58  ;;  %2784 = vst [vmem:[#allocation2 + $0x70] sm:$0x3f] %v5972_v34 }
  0xea   :  { %v6134_v33 = vld [vmem:[#allocation2 + $0x30] sm:$0x3f] }
 0x100   :  { %v5988_v36 = vpop.permute.xlu0 %372 }
 0x101   :  { %v5978_v60 = vpop.permute.xlu1 %366  ;;  %10872 = vst [vmem:[#allocation39_spill] sm:$0xff] %v5988_v36 }
 0x102   :  { %10867 = vst [vmem:[#allocation34_spill] sm:$0xff] %v5978_v60 }
 0x105   :  { %v5980_v62 = vpop.permute.xlu1 %415 }
 0x106   :  { %10868 = vst [vmem:[#allocation35_spill] sm:$0xff] %v5980_v62  ;;  %v355_v62 = vmul.f32 %v5845_v39, %v5953_v30 }
 0x109   :  { %v5982_v6 = vpop.permute.xlu1 %421 }
 0x10a   :  { %10869 = vst [vmem:[#allocation36_spill] sm:$0xff] %v5982_v6  ;;  %v5990_v13 = vpop.permute.xlu0 %470 }
 0x10b   :  { %10873 = vst [vmem:[#allocation40_spill] sm:$0xff] %v5990_v13 }
 0x10d   :  { %v5984_v10 = vpop.permute.xlu1 %464 }
 0x10e   :  { %10870 = vst [vmem:[#allocation37_spill] sm:$0xff] %v5984_v10  ;;  %v5350_v10 = vsel %vm256_vm3, 1.0, %v5619_v4  ;;  %vm309_vm3 = vcmp.lt.s32.totalorder %v5811_v20, 13 }
 0x10f   :  { %v5994_v22 = vpop.permute.xlu0 %523 }
 0x110   :  { %10875 = vst [vmem:[#allocation42_spill] sm:$0xff] %v5994_v22  ;;  %v453_v22 = vmul.f32 %v5864_v48, %v5953_v30 }
 0x111   :  { %v5986_v11 = vpop.permute.xlu1 %529 }
 0x112   :  { %10871 = vst [vmem:[#allocation38_spill] sm:$0xff] %v5986_v11 }
 0x114   :  { %v5998_v25 = vpop.permute.xlu0 %578 }
 0x115   :  { %v5992_v16 = vpop.permute.xlu1 %572  ;;  %10877 = vst [vmem:[#allocation44_spill] sm:$0xff] %v5998_v25 }
 0x116   :  { %10874 = vst [vmem:[#allocation41_spill] sm:$0xff] %v5992_v16 }
 0x119   :  { %v6004_v29 = vpop.permute.xlu0 %621 }
 0x11a   :  { %v5996_v23 = vpop.permute.xlu1 %627  ;;  %10878 = vst [vmem:[#allocation45_spill] sm:$0xff] %v6004_v29  ;;  %v5351_v29 = vsel %vm257_vm4, 1.0, %v5619_v4  ;;  %v404_v4 = vmul.f32 %v5852_v42, %v5953_v30  ;;  %vm298_vm4 = vcmp.lt.s32.totalorder %v5809_v19, 14 }
 0x11b   :  { %10876 = vst [vmem:[#allocation43_spill] sm:$0xff] %v5996_v23  ;;  %v5476_v60 = vpack.i.bf16 %v5351_v29, %v5350_v10  ;;  %v556_v10 = vmul.f32 %v5885_v57, %v5953_v30  ;;  %v605_v29 = vmul.f32 %v5890_v59, %v5953_v30 }
 0x123   :  { %v6006_v31 = vpop.permute.xlu0 %697 }
 0x127   :  { %v6000_v27 = vpop.permute.xlu1 %703 }
 0x12b   :  { %v6002_v28 = vpop.permute.xlu1 %745 }
 0x12c   :  { %v6010_v40 = vpop.permute.xlu0 %751 }
 0x131   :  { %v6008_v32 = vpop.permute.xlu1 %793 }
 0x135   :  { %v6012_v43 = vpop.permute.xlu1 %799 }
 0x136   :  { %v6014_v45 = vpop.permute.xlu0 %851 }
 0x139   :  { %v6016_v47 = vpop.permute.xlu1 %845 }
 0x13b   :  { %v6018_v54 = vpop.permute.xlu0 %893 }
 0x14a   :  { %v6022_v56 = vpop.permute.xlu1 %922 }
 0x14b   :  { %10879 = vst [vmem:[#allocation46_spill] sm:$0xff] %v6022_v56  ;;  %v930_v17 = vmul.f32 %v6022_v56, %v5872_v52 }
 0x14c   :  { %v6026_v0 = vpop.permute.xlu0 %918 }
 0x14d   :  { %10880 = vst [vmem:[#allocation47_spill] sm:$0xff] %v6026_v0  ;;  %947 = vrot.lane.b32.xlu0 %v930_v17, %s5639_s21  ;;  %v927_v16 = vmul.f32 0.0, %v6026_v0  ;;  %v687_v17 = vmul.f32 %v5905_v5, %v5957_v41 }
 0x14f   :  { %941 = vrot.lane.b32.xlu1 %v927_v16, %s5639_s21  ;;  %v734_v16 = vmul.f32 %v5911_v8, %v5953_v30 }
 0x151   :  { %368 = vrot.lane.b32.xlu0 %v355_v62, %s5634_s2  ;;  %v507_v62 = vmul.f32 %v5869_v50, %v5953_v30 }
 0x153   :  { %5477 = vrot.lane.b32.xlu1 %v5476_v60, %s5641_s22  ;;  %v405_v60 = vmul.f32 %v5852_v42, %v5957_v41  ;;  %s5684_s22 = smov 82  }
 0x155   :  { %466 = vrot.lane.b32.xlu0 %v453_v22, %s5636_s18  ;;  %v557_v22 = vmul.f32 %v5885_v57, %v5957_v41 }
 0x157   :  { %417 = vrot.lane.b32.xlu1 %v404_v4, %s5635_s17  ;;  %v686_v4 = vmul.f32 %v5905_v5, %v5953_v30 }
 0x159   :  { %747 = vrot.lane.b32.xlu0 %v734_v16, %s5635_s17  ;;  %v783_v16 = vmul.f32 %v5925_v15, %v5957_v41 }
 0x15b   :  { %519 = vrot.lane.b32.xlu1 %v507_v62, %s5637_s19  ;;  %v782_v62 = vmul.f32 %v5925_v15, %v5953_v30 }
 0x15d   :  { %419 = vrot.lane.b32.xlu0 %v405_v60, %s5635_s17  ;;  %v830_v60 = vmul.f32 %v5931_v18, %v5957_v41 }
 0x15f   :  { %568 = vrot.lane.b32.xlu1 %v556_v10, %s5638_s20  ;;  %v829_v10 = vmul.f32 %v5931_v18, %v5953_v30 }
 0x161   :  { %570 = vrot.lane.b32.xlu0 %v557_v22, %s5638_s20  ;;  %v926_v22 = vmul.f32 %v6026_v0, %v5957_v41 }
 0x163   :  { %617 = vrot.lane.b32.xlu1 %v605_v29, %s5639_s21  ;;  %v6080_v29 = vld [vmem:[#allocation2 + $0x28] sm:$0x3f] }
 0x165   :  { %701 = vrot.lane.b32.xlu0 %v687_v17, %s5634_s2  ;;  %v877_v17 = vmul.f32 %v5940_v24, %v5953_v30 }
 0x167   :  { %699 = vrot.lane.b32.xlu1 %v686_v4, %s5634_s2  ;;  %v407_v4 = vmul.f32 %v5855_v44, %v6080_v29 }
 0x169   :  { %797 = vrot.lane.b32.xlu0 %v783_v16, %s5636_s18  ;;  %v6088_v16 = vld [vmem:[#allocation2 + $0x28] sm:$0x3f] }
 0x16b   :  { %795 = vrot.lane.b32.xlu1 %v782_v62, %s5636_s18  ;;  %v925_v62 = vmul.f32 %v6026_v0, %v5953_v30 }
 0x16d   :  { %843 = vrot.lane.b32.xlu0 %v830_v60, %s5637_s19  ;;  %v559_v60 = vmul.f32 %v5880_v55, %v6088_v16 }
 0x16f   :  { %841 = vrot.lane.b32.xlu1 %v829_v10, %s5637_s19  ;;  %v356_v10 = vmul.f32 %v5845_v39, %v5957_v41  ;;  %v5643_v39 = vmov 16  }
 0x171   :  { %939 = vrot.lane.b32.xlu0 %v926_v22, %s5639_s21  ;;  %v689_v22 = vmul.f32 %v5909_v7, %v6080_v29 }
 0x173   :  { %889 = vrot.lane.b32.xlu1 %v877_v17, %s5638_s20  ;;  %v454_v17 = vmul.f32 %v5864_v48, %v5957_v41 }
 0x175   :  { %423 = vrot.lane.b32.xlu0 %v407_v4, %s5635_s17  ;;  %v785_v4 = vmul.f32 %v5923_v14, %v6080_v29 }
 0x177   :  { %937 = vrot.lane.b32.xlu1 %v925_v62, %s5639_s21  ;;  %v508_v62 = vmul.f32 %v5869_v50, %v5957_v41 }
 0x179   :  { %574 = vrot.lane.b32.xlu0 %v559_v60, %s5638_s20  ;;  %v832_v60 = vmul.f32 %v5933_v21, %v6088_v16 }
 0x17b   :  { %370 = vrot.lane.b32.xlu1 %v356_v10, %s5634_s2  ;;  %v606_v10 = vmul.f32 %v5890_v59, %v5957_v41  ;;  %v833_v59 = vmul.f32 %v5933_v21, %v6134_v33 }
 0x17d   :  { %705 = vrot.lane.b32.xlu0 %v689_v22, %s5634_s2  ;;  %v928_v22 = vmul.f32 %v6022_v56, %v6088_v16 }
 0x17f   :  { %468 = vrot.lane.b32.xlu1 %v454_v17, %s5636_s18  ;;  %v6120_v17 = vld [vmem:[#allocation2 + $0x30] sm:$0x3f] }
 0x181   :  { %801 = vrot.lane.b32.xlu0 %v785_v4, %s5636_s18  ;;  %v735_v4 = vmul.f32 %v5911_v8, %v5957_v41 }
 0x183   :  { %521 = vrot.lane.b32.xlu1 %v508_v62, %s5637_s19  ;;  %v359_v62 = vmul.f32 %v5841_v37, %v6120_v17 }
 0x185   :  { %847 = vrot.lane.b32.xlu0 %v832_v60, %s5637_s19  ;;  %v878_v60 = vmul.f32 %v5940_v24, %v5957_v41 }
 0x187   :  { %619 = vrot.lane.b32.xlu1 %v606_v10, %s5639_s21  ;;  %v457_v10 = vmul.f32 %v5860_v46, %v6120_v17 }
 0x189   :  { %943 = vrot.lane.b32.xlu0 %v928_v22, %s5639_s21  ;;  %v358_v22 = vmul.f32 %v5841_v37, %v6080_v29 }
 0x18b   :  { %749 = vrot.lane.b32.xlu1 %v735_v4, %s5635_s17  ;;  %v511_v4 = vmul.f32 %v5874_v53, %v6134_v33 }
 0x18d   :  { %376 = vrot.lane.b32.xlu0 %v359_v62, %s5634_s2  ;;  %v456_v62 = vmul.f32 %v5860_v46, %v6080_v29 }
 0x18f   :  { %891 = vrot.lane.b32.xlu1 %v878_v60, %s5638_s20  ;;  %v609_v60 = vmul.f32 %v5893_v61, %v6134_v33 }
 0x191   :  { %474 = vrot.lane.b32.xlu0 %v457_v10, %s5636_s18  ;;  %v510_v10 = vmul.f32 %v5874_v53, %v6088_v16 }
 0x193   :  { %374 = vrot.lane.b32.xlu1 %v358_v22, %s5634_s2  ;;  %v738_v22 = vmul.f32 %v5917_v12, %v6120_v17 }
 0x195   :  { %527 = vrot.lane.b32.xlu0 %v511_v4, %s5637_s19  ;;  %v608_v4 = vmul.f32 %v5893_v61, %v6088_v16 }
 0x197   :  { %472 = vrot.lane.b32.xlu1 %v456_v62, %s5636_s18  ;;  %v881_v62 = vmul.f32 %v5945_v26, %v6134_v33 }
 0x199   :  { %625 = vrot.lane.b32.xlu0 %v609_v60, %s5639_s21  ;;  %v737_v60 = vmul.f32 %v5917_v12, %v6080_v29 }
 0x19b   :  { %525 = vrot.lane.b32.xlu1 %v510_v10, %s5637_s19  ;;  %v880_v10 = vmul.f32 %v5945_v26, %v6088_v16 }
 0x19d   :  { %755 = vrot.lane.b32.xlu0 %v738_v22, %s5635_s17  ;;  %v5642_v22 = vmov 9  }
 0x19f   :  { %623 = vrot.lane.b32.xlu1 %v608_v4, %s5639_s21  ;;  %v408_v4 = vmul.f32 %v5855_v44, %v6120_v17 }
 0x1a1   :  { %897 = vrot.lane.b32.xlu0 %v881_v62, %s5638_s20  ;;  %v560_v62 = vmul.f32 %v5880_v55, %v6134_v33 }
 0x1a3   :  { %753 = vrot.lane.b32.xlu1 %v737_v60, %s5635_s17  ;;  %v690_v60 = vmul.f32 %v5909_v7, %v6120_v17 }
 0x1a5   :  { %1018 = vperm.xlu0 %5481, %v5753_v1  }
 0x1a7   :  { %895 = vrot.lane.b32.xlu1 %v880_v10, %s5638_s20  ;;  %v786_v10 = vmul.f32 %v5923_v14, %v6120_v17 }
 0x1a9   :  { %5484 = vset.pattern.permute.xlu0 %v5642_v22 }
 0x1aa   :  { %1036 = vperm.xlu0 %5484, %v5784_v9  }
 0x1ab   :  { %425 = vrot.lane.b32.xlu1 %v408_v4, %s5635_s17  ;;  %v6184_v4 = vpop.permute.xlu1 %899 }
 0x1ac   :  { %10881 = vst [vmem:[#allocation48_spill] sm:$0xff] %v6184_v4 }
 0x1ae   :  { %5485 = vset.pattern.permute.xlu0 %v5643_v39 }
 0x1af   :  { %576 = vrot.lane.b32.xlu1 %v560_v62, %s5638_s20 }
 0x1b3   :  { %707 = vrot.lane.b32.xlu1 %v690_v60, %s5634_s2  ;;  %v929_v60 = vmul.f32 %v6022_v56, %v6134_v33 }
 0x1b7   :  { %803 = vrot.lane.b32.xlu1 %v786_v10, %s5636_s18 }
 0x1bb   :  { %849 = vrot.lane.b32.xlu1 %v833_v59, %s5637_s19 }
 0x1bf   :  { %1022 = vperm.xlu1 %5482, %v5784_v9   ;;  %v6187_v62 = vpop.permute.xlu0 %947 }
 0x1c0   :  { %10882 = vst [vmem:[#allocation49_spill] sm:$0xff] %v6187_v62 }
 0x1c1   :  { %v6189_v57 = vpop.permute.xlu1 %941 }
 0x1c3   :  { %945 = vrot.lane.b32.xlu1 %v929_v60, %s5639_s21  ;;  %v6196_v50 = vpop.permute.xlu0 %368 }
 0x1c4   :  { %5483 = vset.pattern.permute.xlu1 %v5642_v22  ;;  %10883 = vst [vmem:[#allocation50_spill] sm:$0xff] %v6196_v50 }
 0x1c5   :  { %v6194_v10 = vpop.permute.xlu1 %5477 }
 0x1c7   :  { %1032 = vperm.xlu1 %5483, %v5753_v1   ;;  %v6201_v48 = vpop.permute.xlu0 %466 }
 0x1c8   :  { %10885 = vst [vmem:[#allocation52_spill] sm:$0xff] %v6201_v48 }
 0x1c9   :  { %v6199_v59 = vpop.permute.xlu1 %417 }
 0x1ca   :  { %10884 = vst [vmem:[#allocation51_spill] sm:$0xff] %v6199_v59 }
 0x1cb   :  { %5486 = vset.pattern.permute.xlu1 %v5643_v39  ;;  %v6207_v24 = vpop.permute.xlu0 %747 }
 0x1cd   :  { %v6203_v42 = vpop.permute.xlu1 %519 }
 0x1ce   :  { %10886 = vst [vmem:[#allocation53_spill] sm:$0xff] %v6203_v42 }
 0x1cf   :  { %v6211_v60 = vpop.permute.xlu0 %419 }
 0x1d0   :  { %10889 = vst [vmem:[#allocation56_spill] sm:$0xff] %v6211_v60 }
 0x1d1   :  { %v6205_v0 = vpop.permute.xlu1 %568 }
 0x1d2   :  { %10887 = vst [vmem:[#allocation54_spill] sm:$0xff] %v6205_v0 }
 0x1d3   :  { %v6217_v59 = vpop.permute.xlu0 %570 }
 0x1d4   :  { %10890 = vst [vmem:[#allocation57_spill] sm:$0xff] %v6217_v59 }
 0x1d5   :  { %v6209_v22 = vpop.permute.xlu1 %617 }
 0x1d6   :  { %10888 = vst [vmem:[#allocation55_spill] sm:$0xff] %v6209_v22 }
 0x1d7   :  { %v6221_v42 = vpop.permute.xlu0 %701 }
 0x1d9   :  { %v6213_v50 = vpop.permute.xlu1 %699 }
 0x1db   :  { %v6227_v0 = vpop.permute.xlu0 %797 }
 0x1dd   :  { %v6215_v49 = vpop.permute.xlu1 %795 }
 0x1df   :  { %v6231_v22 = vpop.permute.xlu0 %843 }
 0x1e1   :  { %v6219_v48 = vpop.permute.xlu1 %841 }
 0x1e3   :  { %v6237_v18 = vpop.permute.xlu0 %939 }
 0x1e5   :  { %v6223_v51 = vpop.permute.xlu1 %889 }
 0x1e7   :  { %v6241_v15 = vpop.permute.xlu0 %423 }
 0x1e8   :  { %10895 = vst [vmem:[#allocation62_spill] sm:$0xff] %v6241_v15 }
 0x1e9   :  { %v6225_v39 = vpop.permute.xlu1 %937 }
 0x1eb   :  { %v6247_v2 = vpop.permute.xlu0 %574 }
 0x1ec   :  { %10896 = vst [vmem:[#allocation63_spill] sm:$0xff] %v6247_v2 }
 0x1ed   :  { %v6229_v34 = vpop.permute.xlu1 %370 }
 0x1ee   :  { %10891 = vst [vmem:[#allocation58_spill] sm:$0xff] %v6229_v34 }
 0x1ef   :  { %v6251_v34 = vpop.permute.xlu0 %705 }
 0x1f1   :  { %v6233_v60 = vpop.permute.xlu1 %468 }
 0x1f2   :  { %10892 = vst [vmem:[#allocation59_spill] sm:$0xff] %v6233_v60 }
 0x1f5   :  { %v6235_v58 = vpop.permute.xlu1 %521 }
 0x1f6   :  { %10893 = vst [vmem:[#allocation60_spill] sm:$0xff] %v6235_v58  ;;  %v6257_v58 = vpop.permute.xlu0 %801 }
 0x1f9   :  { %v6239_v59 = vpop.permute.xlu1 %619 }
 0x1fa   :  { %10894 = vst [vmem:[#allocation61_spill] sm:$0xff] %v6239_v59  ;;  %v6261_v59 = vpop.permute.xlu0 %847 }
 0x1fd   :  { %v6243_v8 = vpop.permute.xlu1 %749 }
 0x1fe   :  { %v6265_v6 = vpop.permute.xlu0 %943 }
 0x1ff   :  { %10901 = vst [vmem:[#allocation68_spill] sm:$0xff] %v6265_v6 }
 0x201   :  { %v6245_v5 = vpop.permute.xlu1 %891 }
 0x202   :  { %v6269_v2 = vpop.permute.xlu0 %376 }
 0x203   :  { %10902 = vst [vmem:[#allocation69_spill] sm:$0xff] %v6269_v2 }
 0x205   :  { %v6249_v23 = vpop.permute.xlu1 %374 }
 0x206   :  { %10897 = vst [vmem:[#allocation64_spill] sm:$0xff] %v6249_v23  ;;  %v6273_v23 = vpop.permute.xlu0 %474 }
 0x207   :  { %10904 = vst [vmem:[#allocation71_spill] sm:$0xff] %v6273_v23 }
 0x209   :  { %v6253_v25 = vpop.permute.xlu1 %472 }
 0x20a   :  { %10898 = vst [vmem:[#allocation65_spill] sm:$0xff] %v6253_v25 }
 0x20d   :  { %v6255_v60 = vpop.permute.xlu1 %525 }
 0x20e   :  { %10899 = vst [vmem:[#allocation66_spill] sm:$0xff] %v6255_v60  ;;  %v6277_v60 = vpop.permute.xlu0 %527 }
 0x20f   :  { %10906 = vst [vmem:[#allocation73_spill] sm:$0xff] %v6277_v60 }
 0x211   :  { %v6259_v13 = vpop.permute.xlu1 %623 }
 0x212   :  { %10900 = vst [vmem:[#allocation67_spill] sm:$0xff] %v6259_v13  ;;  %v6281_v13 = vpop.permute.xlu0 %625 }
 0x213   :  { %10907 = vst [vmem:[#allocation74_spill] sm:$0xff] %v6281_v13 }
 0x215   :  { %v6263_v11 = vpop.permute.xlu1 %753 }
 0x216   :  { %v6285_v55 = vpop.permute.xlu0 %755 }
 0x219   :  { %v6267_v15 = vpop.permute.xlu1 %895 }
 0x21a   :  { %v6289_v46 = vpop.permute.xlu0 %897 }
 0x21b   :  { %10908 = vst [vmem:[#allocation75_spill] sm:$0xff] %v6289_v46 }
 0x21d   :  { %v6271_v36 = vpop.permute.xlu1 %425 }
 0x21e   :  { %10903 = vst [vmem:[#allocation70_spill] sm:$0xff] %v6271_v36 }
 0x221   :  { %v6275_v25 = vpop.permute.xlu1 %576 }
 0x222   :  { %10905 = vst [vmem:[#allocation72_spill] sm:$0xff] %v6275_v25 }
 0x224   :  { %v6293_v36 = vpop.permute.xlu0 %1018 }
 0x225   :  { %v6279_v35 = vpop.permute.xlu1 %707  ;;  %10910 = vst [vmem:[#allocation77_spill] sm:$0xff] %v6293_v36 }
 0x229   :  { %v6283_v61 = vpop.permute.xlu1 %803  ;;  %v6302_v44 = vpop.permute.xlu0 %1036 }
 0x22a   :  { %10913 = vst [vmem:[#allocation80_spill] sm:$0xff] %v6302_v44  ;;  %v1043_v56 = vmul.f32 %v6302_v44, %v6080_v29  ;;  %v1042_v26 = vmul.f32 %v6302_v44, %v5843_v38 }
 0x22d   :  { %v6287_v53 = vpop.permute.xlu1 %849 }
 0x23e   :  { %v6291_v2 = vpop.permute.xlu1 %1022 }
 0x23f   :  { %10909 = vst [vmem:[#allocation76_spill] sm:$0xff] %v6291_v2 }
 0x242   :  { %v6295_v23 = vpop.permute.xlu1 %945 }
 0x243   :  { %10911 = vst [vmem:[#allocation78_spill] sm:$0xff] %v6295_v23 }
 0x246   :  { %v6297_v25 = vpop.permute.xlu1 %1032 }
 0x247   :  { %10912 = vst [vmem:[#allocation79_spill] sm:$0xff] %v6297_v25  ;;  %v1039_v60 = vmul.f32 0.0, %v6297_v25  ;;  %v1041_v13 = vmul.f32 %v6297_v25, %v5957_v41  ;;  %v1040_v37 = vmul.f32 %v6297_v25, %v5953_v30 }
 0x249   :  { %1051 = vrot.lane.b32.xlu1 %v1039_v60, %s5634_s2  ;;  %1055 = vrot.lane.b32.xlu0 %v1041_v13, %s5634_s2  ;;  %v1044_v13 = vmul.f32 %v6302_v44, %v6120_v17  ;;  %v5644_v60 = vmov 23  }
 0x24d   :  { %1053 = vrot.lane.b32.xlu1 %v1040_v37, %s5634_s2  ;;  %1059 = vrot.lane.b32.xlu0 %v1043_v56, %s5634_s2 }
 0x251   :  { %1080 = vperm.xlu0 %5485, %v5753_v1   ;;  %1057 = vrot.lane.b32.xlu1 %v1042_v26, %s5634_s2 }
 0x255   :  { %1061 = vrot.lane.b32.xlu1 %v1044_v13, %s5634_s2  ;;  %5488 = vset.pattern.permute.xlu0 %v5644_v60 }
 0x259   :  { %1084 = vperm.xlu1 %5486, %v5784_v9  }
 0x25d   :  { %5487 = vset.pattern.permute.xlu1 %v5644_v60 }
 0x2bb   :  { %v6320_v37 = vpop.permute.xlu1 %1051  ;;  %v6322_v56 = vpop.permute.xlu0 %1055 }
 0x2bf   :  { %v6324_v25 = vpop.permute.xlu1 %1053  ;;  %v6326_v21 = vpop.permute.xlu0 %1059 }
 0x2c0   :  { %10914 = vst [vmem:[#allocation81_spill] sm:$0xff] %v6326_v21 }
 0x2c3   :  { %v6328_v14 = vpop.permute.xlu1 %1057 }
 0x2c4   :  { %10915 = vst [vmem:[#allocation82_spill] sm:$0xff] %v6328_v14 }
 0x2c7   :  { %v6337_v60 = vpop.permute.xlu1 %1061 }
 0x2c8   :  { %10917 = vst [vmem:[#allocation84_spill] sm:$0xff] %v6337_v60 }
 0x2d0   :  { %v6330_v26 = vpop.permute.xlu0 %1080 }
 0x2d1   :  { %10916 = vst [vmem:[#allocation83_spill] sm:$0xff] %v6330_v26  ;;  %v1088_v13 = vmul.f32 %v6330_v26, %v5953_v30  ;;  %v1087_v44 = vmul.f32 0.0, %v6330_v26  ;;  %v1089_v12 = vmul.f32 %v6330_v26, %v5957_v41 }
 0x2d3   :  { %1101 = vrot.lane.b32.xlu0 %v1088_v13, %s5635_s17  ;;  %1099 = vrot.lane.b32.xlu1 %v1087_v44, %s5635_s17 }
 0x2d7   :  { %1103 = vrot.lane.b32.xlu1 %v1089_v12, %s5635_s17  ;;  %v5645_v12 = vmov 30  }
 0x2d8   :  { %v6342_v7 = vpop.permute.xlu1 %1084 }
 0x2d9   :  { %10918 = vst [vmem:[#allocation85_spill] sm:$0xff] %v6342_v7  ;;  %v1090_v62 = vmul.f32 %v6342_v7, %v5843_v38  ;;  %v1091_v14 = vmul.f32 %v6342_v7, %v6080_v29  ;;  %v1092_v44 = vmul.f32 %v6342_v7, %v6120_v17 }
 0x2db   :  { %1105 = vrot.lane.b32.xlu0 %v1090_v62, %s5635_s17  ;;  %1107 = vrot.lane.b32.xlu1 %v1091_v14, %s5635_s17 }
 0x2df   :  { %1109 = vrot.lane.b32.xlu0 %v1092_v44, %s5635_s17  ;;  %1128 = vperm.xlu1 %5487, %v5753_v1  }
 0x2e3   :  { %1132 = vperm.xlu0 %5488, %v5784_v9   ;;  %5490 = vset.pattern.permute.xlu1 %v5645_v12 }
 0x2e7   :  { %5489 = vset.pattern.permute.xlu0 %v5645_v12 }
 0x345   :  { %v6355_v13 = vpop.permute.xlu1 %1099  ;;  %v6357_v26 = vpop.permute.xlu0 %1101 }
 0x349   :  { %v6359_v21 = vpop.permute.xlu1 %1103 }
 0x34d   :  { %v6361_v62 = vpop.permute.xlu0 %1105  ;;  %v6363_v14 = vpop.permute.xlu1 %1107 }
 0x34e   :  { %10919 = vst [vmem:[#allocation86_spill] sm:$0xff] %v6361_v62  ;;  %10920 = vst [vmem:[#allocation87_spill] sm:$0xff] %v6363_v14 }
 0x351   :  { %v6365_v7 = vpop.permute.xlu0 %1109 }
 0x352   :  { %10921 = vst [vmem:[#allocation88_spill] sm:$0xff] %v6365_v7 }
 0x35e   :  { %v6367_v44 = vpop.permute.xlu1 %1128 }
 0x35f   :  { %10922 = vst [vmem:[#allocation89_spill] sm:$0xff] %v6367_v44  ;;  %v1137_v60 = vmul.f32 %v6367_v44, %v5957_v41  ;;  %v1135_v2 = vmul.f32 0.0, %v6367_v44  ;;  %v1136_v14 = vmul.f32 %v6367_v44, %v5953_v30 }
 0x361   :  { %1151 = vrot.lane.b32.xlu0 %v1137_v60, %s5636_s18  ;;  %1147 = vrot.lane.b32.xlu1 %v1135_v2, %s5636_s18  ;;  %v5646_v60 = vmov 37  }
 0x362   :  { %v6374_v12 = vpop.permute.xlu0 %1132 }
 0x363   :  { %10923 = vst [vmem:[#allocation90_spill] sm:$0xff] %v6374_v12  ;;  %v1139_v62 = vmul.f32 %v6374_v12, %v6080_v29  ;;  %v1138_v7 = vmul.f32 %v6374_v12, %v5843_v38  ;;  %v1140_v2 = vmul.f32 %v6374_v12, %v6120_v17 }
 0x365   :  { %1155 = vrot.lane.b32.xlu0 %v1139_v62, %s5636_s18  ;;  %1149 = vrot.lane.b32.xlu1 %v1136_v14, %s5636_s18 }
 0x369   :  { %1176 = vperm.xlu0 %5489, %v5753_v1   ;;  %1153 = vrot.lane.b32.xlu1 %v1138_v7, %s5636_s18 }
 0x36d   :  { %1157 = vrot.lane.b32.xlu1 %v1140_v2, %s5636_s18  ;;  %5492 = vset.pattern.permute.xlu0 %v5646_v60 }
 0x371   :  { %1180 = vperm.xlu1 %5490, %v5784_v9  }
 0x375   :  { %5491 = vset.pattern.permute.xlu1 %v5646_v60 }
 0x3d3   :  { %v6390_v62 = vpop.permute.xlu1 %1147  ;;  %v6392_v14 = vpop.permute.xlu0 %1151 }
 0x3d4   :  { %10924 = vst [vmem:[#allocation91_spill] sm:$0xff] %v6390_v62  ;;  %10925 = vst [vmem:[#allocation92_spill] sm:$0xff] %v6392_v14 }
 0x3d7   :  { %v6394_v44 = vpop.permute.xlu1 %1149  ;;  %v6396_v23 = vpop.permute.xlu0 %1155 }
 0x3d8   :  { %10926 = vst [vmem:[#allocation93_spill] sm:$0xff] %v6394_v44  ;;  %10927 = vst [vmem:[#allocation94_spill] sm:$0xff] %v6396_v23 }
 0x3db   :  { %v6398_v6 = vpop.permute.xlu1 %1153 }
 0x3dc   :  { %10928 = vst [vmem:[#allocation95_spill] sm:$0xff] %v6398_v6 }
 0x3df   :  { %v6408_v60 = vpop.permute.xlu1 %1157 }
 0x3e0   :  { %10930 = vst [vmem:[#allocation97_spill] sm:$0xff] %v6408_v60 }
 0x3e8   :  { %v6400_v7 = vpop.permute.xlu0 %1176 }
 0x3e9   :  { %10929 = vst [vmem:[#allocation96_spill] sm:$0xff] %v6400_v7  ;;  %v1184_v2 = vmul.f32 %v6400_v7, %v5957_v41  ;;  %v1183_v12 = vmul.f32 %v6400_v7, %v5953_v30  ;;  %v1185_v46 = vmul.f32 0.0, %v6400_v7 }
 0x3eb   :  { %1197 = vrot.lane.b32.xlu0 %v1184_v2, %s5637_s19  ;;  %1195 = vrot.lane.b32.xlu1 %v1183_v12, %s5637_s19 }
 0x3ef   :  { %1199 = vrot.lane.b32.xlu1 %v1185_v46, %s5637_s19  ;;  %v5647_v46 = vmov 44  }
 0x3f0   :  { %v6412_v23 = vpop.permute.xlu1 %1180 }
 0x3f1   :  { %10931 = vst [vmem:[#allocation98_spill] sm:$0xff] %v6412_v23  ;;  %v1187_v6 = vmul.f32 %v6412_v23, %v6134_v33  ;;  %v1186_v4 = vmul.f32 %v6412_v23, %v6088_v16  ;;  %v1188_v12 = vmul.f32 %v6412_v23, %v5872_v52 }
 0x3f3   :  { %1203 = vrot.lane.b32.xlu1 %v1187_v6, %s5637_s19  ;;  %1201 = vrot.lane.b32.xlu0 %v1186_v4, %s5637_s19 }
 0x3f7   :  { %1224 = vperm.xlu1 %5491, %v5753_v1   ;;  %1205 = vrot.lane.b32.xlu0 %v1188_v12, %s5637_s19  ;;  %v6439_v12 = vld [vmem:[#allocation2] sm:$0xff] }
 0x3fb   :  { %1228 = vperm.xlu0 %5492, %v5784_v9   ;;  %5494 = vset.pattern.permute.xlu1 %v5647_v46 }
 0x3ff   :  { %5493 = vset.pattern.permute.xlu0 %v5647_v46 }
 0x45d   :  { %v6425_v2 = vpop.permute.xlu1 %1195  ;;  %v6427_v7 = vpop.permute.xlu0 %1197 }
 0x45e   :  { %10932 = vst [vmem:[#allocation99_spill] sm:$0xff] %v6425_v2  ;;  %10933 = vst [vmem:[#allocation100_spill] sm:$0xff] %v6427_v7  ;;  %v673_v2 = vmul.f32 %v5899_v63, %v5957_v41 }
 0x460   :  { %v721_v62 = vadd.f32 %v6221_v42, %v673_v2 }
 0x461   :  { %v6429_v60 = vpop.permute.xlu1 %1199 }
 0x462   :  { %10934 = vst [vmem:[#allocation101_spill] sm:$0xff] %v6429_v60 }
 0x465   :  { %v6431_v6 = vpop.permute.xlu0 %1201  ;;  %v6433_v4 = vpop.permute.xlu1 %1203 }
 0x466   :  { %10935 = vst [vmem:[#allocation102_spill] sm:$0xff] %v6431_v6  ;;  %10936 = vst [vmem:[#allocation103_spill] sm:$0xff] %v6433_v4 }
 0x469   :  { %v6435_v23 = vpop.permute.xlu0 %1205 }
 0x46a   :  { %10937 = vst [vmem:[#allocation104_spill] sm:$0xff] %v6435_v23 }
 0x476   :  { %v6437_v1 = vpop.permute.xlu1 %1224 }
 0x477   :  { %10938 = vst [vmem:[#allocation105_spill] sm:$0xff] %v6437_v1  ;;  %v1233_v9 = vmul.f32 %v6439_v12, %v6437_v1  ;;  %v1231_v46 = vmul.f32 %v6437_v1, %v5953_v30  ;;  %v1232_v23 = vmul.f32 %v6437_v1, %v5957_v41 }
 0x479   :  { %1247 = vrot.lane.b32.xlu0 %v1233_v9, %s5638_s20  ;;  %1243 = vrot.lane.b32.xlu1 %v1231_v46, %s5638_s20  ;;  %v6460_v9 = vld [vmem:[%s10478_s3] sm:$0xff] }
 0x47a   :  { %v6447_v60 = vpop.permute.xlu0 %1228  ;;  %10940 = vst [vmem:[#allocation107_spill] sm:$0xff] %v6460_v9 }
 0x47b   :  { %10939 = vst [vmem:[#allocation106_spill] sm:$0xff] %v6447_v60  ;;  %v1235_v6 = vmul.f32 %v6447_v60, %v6134_v33  ;;  %v1234_v4 = vmul.f32 %v6447_v60, %v6088_v16  ;;  %v1236_v46 = vmul.f32 %v6447_v60, %v5872_v52  ;;  %v709_v60 = vsel %vm378_vm5, %v6006_v31, %v6213_v50 }
 0x47d   :  { %1251 = vrot.lane.b32.xlu0 %v1235_v6, %s5638_s20  ;;  %1245 = vrot.lane.b32.xlu1 %v1232_v23, %s5638_s20  ;;  %v6470_v23 = vld [vmem:[%s10478_s3 + $0x8] sm:$0x3f] }
 0x47e   :  { %10941 = vst [vmem:[#allocation108_spill] sm:$0xff] %v6470_v23 }
 0x481   :  { %1272 = vperm.xlu0 %5493, %v6460_v9   ;;  %1249 = vrot.lane.b32.xlu1 %v1234_v4, %s5638_s20  ;;  %v710_v4 = vsel %vm378_vm5, %v6213_v50, %v6221_v42  ;;  %v757_v50 = vsel %vm427_vm6, %v6002_v28, %v6207_v24  ;;  %v805_v42 = vsel %vm476_vm7, %v6008_v32, %v6215_v49 }
 0x485   :  { %1253 = vrot.lane.b32.xlu1 %v1236_v46, %s5638_s20  ;;  %v672_v46 = vmul.f32 %v5899_v63, %v5953_v30 }
 0x489   :  { %1276 = vperm.xlu1 %5494, %v6470_v23   ;;  %v671_v23 = vmul.f32 %v6439_v12, %v5899_v63 }
 0x4eb   :  { %v6473_v6 = vpop.permute.xlu1 %1243  ;;  %v6475_v1 = vpop.permute.xlu0 %1247 }
 0x4ec   :  { %10942 = vst [vmem:[#allocation109_spill] sm:$0xff] %v6473_v6  ;;  %10943 = vst [vmem:[#allocation110_spill] sm:$0xff] %v6475_v1  ;;  %v758_v1 = vsel %vm427_vm6, %v6207_v24, %v6243_v8  ;;  %v720_v6 = vadd.f32 %v710_v4, %v672_v46  ;;  %v806_v4 = vsel %vm476_vm7, %v6215_v49, %v6227_v0 }
 0x4ed   :  { %v769_v46 = vadd.f32 %v6243_v8, %v721_v62  ;;  %v853_v8 = vsel %vm531_vm8, %v6219_v48, %v6231_v22 }
 0x4ee   :  { %v768_v14 = vadd.f32 %v758_v1, %v720_v6 }
 0x4ef   :  { %v6480_v9 = vpop.permute.xlu1 %1245  ;;  %v6494_v7 = vpop.permute.xlu0 %1251  ;;  %v817_v62 = vadd.f32 %v6227_v0, %v769_v46  ;;  %v901_v0 = vsel %vm580_vm11, %v6223_v51, %v6245_v5 }
 0x4f0   :  { %10944 = vst [vmem:[#allocation111_spill] sm:$0xff] %v6480_v9  ;;  %v719_v9 = vadd.f32 %v709_v60, %v671_v23  ;;  %v816_v2 = vadd.f32 %v806_v4, %v768_v14 }
 0x4f2   :  { %v767_v31 = vadd.f32 %v757_v50, %v719_v9  ;;  %v864_v32 = vadd.f32 %v853_v8, %v816_v2  ;;  %v854_v9 = vsel %vm531_vm8, %v6231_v22, %v6016_v47  ;;  %v5352_v50 = vsel %vm266_vm9, 1.0, %v6439_v12 }
 0x4f3   :  { %v6497_v44 = vpop.permute.xlu1 %1249  ;;  %v865_v4 = vadd.f32 %v854_v9, %v817_v62  ;;  %vm299_vm9 = vcmp.lt.s32.totalorder %v5811_v20, 14 }
 0x4f4   :  { %v815_v28 = vadd.f32 %v805_v42, %v767_v31  ;;  %v5353_v31 = vsel %vm267_vm10, 1.0, %v6439_v12  ;;  %v912_v46 = vadd.f32 %v901_v0, %v864_v32  ;;  %vm2022_vm10 = vcmask 662528  }
 0x4f5   :  { %v5495_v2 = vpack.i.bf16 %v5353_v31, %v5352_v50  ;;  %v675_v50 = vmul.f32 %v5903_v3, %v6080_v29  ;;  %v676_v31 = vmul.f32 %v5903_v3, %v6120_v17 }
 0x4f6   :  { %v863_v23 = vadd.f32 %v6219_v48, %v815_v28  ;;  %v902_v48 = vsel %vm580_vm11, %v6245_v5, %v6018_v54 }
 0x4f7   :  { %v6521_v49 = vpop.permute.xlu1 %1253  ;;  %v913_v54 = vadd.f32 %v902_v48, %v865_v4  ;;  %v724_v4 = vadd.f32 %v6279_v35, %v676_v31 }
 0x4f8   :  { %v911_v22 = vadd.f32 %v6223_v51, %v863_v23  ;;  %v712_v23 = vsel %vm378_vm5, %v6251_v34, %v6279_v35  ;;  %v855_v35 = vsel %vm531_vm8, %v6261_v59, %v6287_v53 }
 0x4fa   :  { %v959_v5 = vadd.f32 %v6225_v39, %v911_v22 }
 0x500   :  { %v6506_v60 = vpop.permute.xlu0 %1272 }
 0x501   :  { %10945 = vst [vmem:[#allocation112_spill] sm:$0xff] %v6506_v60  ;;  %v1280_v1 = vmul.f32 %v6506_v60, %v5957_v41  ;;  %v1279_v24 = vmul.f32 %v6506_v60, %v5953_v30  ;;  %v1281_v14 = vmul.f32 %v6439_v12, %v6506_v60 }
 0x503   :  { %1293 = vrot.lane.b32.xlu0 %v1280_v1, %s5639_s21  ;;  %1291 = vrot.lane.b32.xlu1 %v1279_v24, %s5639_s21  ;;  %v6550_v1 = vunpack.i.h.bf16 %v6194_v10 }
 0x505   :  { %10946 = vst [vmem:[#allocation113_spill] sm:$0xff] %v6550_v1 }
 0x507   :  { %1295 = vrot.lane.b32.xlu1 %v1281_v14, %s5639_s21  ;;  %v759_v14 = vsel %vm427_vm6, %v6010_v40, %v6263_v11 }
 0x508   :  { %v6535_v6 = vpop.permute.xlu1 %1276 }
 0x509   :  { %v1283_v42 = vmul.f32 %v6535_v6, %v6134_v33  ;;  %v1282_v47 = vmul.f32 %v6535_v6, %v6088_v16  ;;  %v6553_v33 = vunpack.i.l.bf16 %v6194_v10  ;;  %v949_v16 = vsel %vm629_vm12, %v6225_v39, %v6237_v18 }
 0x50a   :  { %v960_v51 = vadd.f32 %v949_v16, %v912_v46  ;;  %v1284_v24 = vmul.f32 %v6535_v6, %v5872_v52  ;;  %v950_v10 = vsel %vm629_vm12, %v6237_v18, %v6189_v57  ;;  %v5650_v52 = vmov 3  }
 0x50b   :  { %1299 = vrot.lane.b32.xlu1 %v1283_v42, %s5639_s21  ;;  %1297 = vrot.lane.b32.xlu0 %v1282_v47, %s5639_s21  ;;  %10947 = vst [vmem:[#allocation114_spill] sm:$0xff] %v6553_v33  ;;  %v6567_v28 = vsel %vm971_vm13, %v6553_v33, %v6550_v1  ;;  %v976_v8 = vmul.f32 %v6553_v33, %v959_v5  ;;  %vm2730_vm13 = vcmask 678912  }
 0x50c   :  { %10948 = vst [vmem:[#allocation115_spill] sm:$0xff] %v6567_v28  ;;  %v961_v39 = vadd.f32 %v950_v10, %v913_v54  ;;  %v977_v62 = vmul.f32 %v6567_v28, %v960_v51  ;;  %5500 = vset.pattern.permute.xlu0 %v5650_v52  ;;  %5501 = vset.pattern.permute.xlu1 %v5650_v52  ;;  %v10949_v10 = vld [vmem:[#allocation93_spill] sm:$0xff]  ;;  %v10952_v52 = vld [vmem:[#allocation48_spill] sm:$0xff] }
 0x50d   :  { %v711_v57 = vsel %vm378_vm5, %v6000_v27, %v6251_v34  ;;  %v674_v18 = vmul.f32 %v5903_v3, %v5843_v38  ;;  %v723_v27 = vadd.f32 %v712_v23, %v675_v50  ;;  %v807_v38 = vsel %vm476_vm7, %v6012_v43, %v6257_v58 }
 0x50e   :  { %v978_v32 = vmul.f32 %v6550_v1, %v961_v39  ;;  %v760_v46 = vsel %vm427_vm6, %v6263_v11, %v6285_v55  ;;  %v772_v42 = vadd.f32 %v6285_v55, %v724_v4  ;;  %v808_v47 = vsel %vm476_vm7, %v6257_v58, %v6283_v61 }
 0x50f   :  { %5496 = vrot.lane.b32.xlu1 %v5495_v2, %s5648_s27  ;;  %1301 = vrot.lane.b32.xlu0 %v1284_v24, %s5639_s21  ;;  %v722_v9 = vadd.f32 %v711_v57, %v674_v18  ;;  %v771_v34 = vadd.f32 %v760_v46, %v723_v27  ;;  %v1063_v43 = vsel %vm378_vm5, %v6320_v37, %v6324_v25  ;;  %s5687_s27 = smov 51  }
 0x510   :  { %v1025_v11 = vmul.f32 %v6439_v12, %v6293_v36  ;;  %v1064_v55 = vsel %vm378_vm5, %v6324_v25, %v6322_v56  ;;  %v856_v58 = vsel %vm531_vm8, %v6287_v53, %v6014_v45  ;;  %v1026_v37 = vmul.f32 %v6293_v36, %v5953_v30  ;;  %v10950_v53 = vld [vmem:[#allocation91_spill] sm:$0xff] }
 0x511   :  { %v770_v0 = vadd.f32 %v759_v14, %v722_v9  ;;  %v819_v2 = vadd.f32 %v808_v47, %v771_v34  ;;  %v1111_v16 = vsel %vm427_vm6, %v6355_v13, %v6357_v26  ;;  %v1112_v54 = vsel %vm427_vm6, %v6357_v26, %v6359_v21  ;;  %v10954_v14 = vld [vmem:[#allocation100_spill] sm:$0xff]  ;;  %v10955_v9 = vld [vmem:[#allocation99_spill] sm:$0xff]  ;;  %v10957_v34 = vld [vmem:[#allocation78_spill] sm:$0xff] }
 0x512   :  { %v1073_v5 = vadd.f32 %v1063_v43, %v1025_v11  ;;  %v1074_v24 = vadd.f32 %v1064_v55, %v1026_v37  ;;  %v1159_v45 = vsel %vm476_vm7, %v10950_v53, %v10949_v10  ;;  %v1207_v23 = vsel %vm531_vm8, %v10955_v9, %v10954_v14  ;;  %v10958_v47 = vld [vmem:[#allocation111_spill] sm:$0xff]  ;;  %v10960_v11 = vld [vmem:[#allocation76_spill] sm:$0xff] }
 0x513   :  { %990 = vrot.lane.b32.xlu1 %v977_v62, %s5649_s28  ;;  %988 = vrot.lane.b32.xlu0 %v976_v8, %s5649_s28  ;;  %v818_v40 = vadd.f32 %v807_v38, %v770_v0  ;;  %v867_v51 = vadd.f32 %v855_v35, %v819_v2  ;;  %v10951_v62 = vld [vmem:[#allocation92_spill] sm:$0xff]  ;;  %v1027_v27 = vmul.f32 %v6293_v36, %v5957_v41  ;;  %v6653_v35 = vld [vmem:[#allocation2 + $0x20] sm:$0x3f] }
 0x514   :  { %v1121_v39 = vadd.f32 %v1111_v16, %v1073_v5  ;;  %v1122_v13 = vadd.f32 %v1112_v54, %v1074_v24  ;;  %v10956_v0 = vld [vmem:[#allocation68_spill] sm:$0xff]  ;;  %v1028_v41 = vmul.f32 %v6653_v35, %v10960_v11  ;;  %v1029_v55 = vmul.f32 %v10960_v11, %v6080_v29  ;;  %v10963_v24 = vld [vmem:[#allocation82_spill] sm:$0xff] }
 0x515   :  { %v866_v48 = vadd.f32 %v6261_v59, %v818_v40  ;;  %v820_v59 = vadd.f32 %v6283_v61, %v772_v42  ;;  %v1160_v61 = vsel %vm476_vm7, %v10949_v10, %v10951_v62  ;;  %v1030_v2 = vmul.f32 %v10960_v11, %v6120_v17  ;;  %v10961_v16 = vld [vmem:[#allocation84_spill] sm:$0xff] }
 0x516   :  { %v1169_v18 = vadd.f32 %v1159_v45, %v1121_v39  ;;  %v1170_v38 = vadd.f32 %v1160_v61, %v1122_v13  ;;  %v1075_v37 = vadd.f32 %v6322_v56, %v1027_v27 }
 0x517   :  { %992 = vrot.lane.b32.xlu0 %v978_v32, %s5649_s28  ;;  %v914_v25 = vadd.f32 %v6267_v15, %v866_v48  ;;  %v868_v8 = vadd.f32 %v856_v58, %v820_v59  ;;  %v10953_v32 = vld [vmem:[#allocation75_spill] sm:$0xff]  ;;  %v10959_v48 = vld [vmem:[#allocation109_spill] sm:$0xff] }
 0x518   :  { %v904_v26 = vsel %vm580_vm11, %v10953_v32, %v10952_v52  ;;  %v903_v57 = vsel %vm580_vm11, %v6267_v15, %v10953_v32  ;;  %v951_v15 = vsel %vm629_vm12, %v10956_v0, %v10957_v34  ;;  %v1217_v42 = vadd.f32 %v10955_v9, %v1169_v18  ;;  %v10962_v59 = vld [vmem:[#allocation81_spill] sm:$0xff]  ;;  %v10966_v52 = vld [vmem:[#allocation88_spill] sm:$0xff]  ;;  %v10967_v32 = vld [vmem:[#allocation87_spill] sm:$0xff] }
 0x519   :  { %v962_v50 = vadd.f32 %v10956_v0, %v914_v25  ;;  %v915_v31 = vadd.f32 %v903_v57, %v867_v51  ;;  %v916_v46 = vadd.f32 %v904_v26, %v868_v8  ;;  %v1255_v43 = vsel %vm580_vm11, %v10959_v48, %v10958_v47  ;;  %v10968_v57 = vld [vmem:[#allocation101_spill] sm:$0xff] }
 0x51a   :  { %v1218_v58 = vadd.f32 %v1207_v23, %v1170_v38  ;;  %v1066_v5 = vsel %vm378_vm5, %v10962_v59, %v10961_v16  ;;  %v1265_v54 = vadd.f32 %v10959_v48, %v1217_v42  ;;  %v1065_v10 = vsel %vm378_vm5, %v10963_v24, %v10962_v59  ;;  %v10969_v23 = vld [vmem:[#allocation86_spill] sm:$0xff]  ;;  %v10971_v38 = vld [vmem:[#allocation97_spill] sm:$0xff]  ;;  %v10975_v59 = vld [vmem:[#allocation95_spill] sm:$0xff] }
 0x51b   :  { %v963_v51 = vadd.f32 %v951_v15, %v915_v31  ;;  %v1123_v8 = vadd.f32 %v6359_v21, %v1075_v37  ;;  %v1077_v13 = vadd.f32 %v1066_v5, %v1029_v55  ;;  %v1114_v26 = vsel %vm427_vm6, %v10967_v32, %v10966_v52  ;;  %v10972_v15 = vld [vmem:[#allocation94_spill] sm:$0xff] }
 0x51c   :  { %v1266_v53 = vadd.f32 %v1255_v43, %v1218_v58  ;;  %v1208_v18 = vsel %vm531_vm8, %v10954_v14, %v10968_v57  ;;  %v1113_v0 = vsel %vm427_vm6, %v10969_v23, %v10967_v32  ;;  %v1076_v27 = vadd.f32 %v1065_v10, %v1028_v41  ;;  %v10973_v48 = vld [vmem:[#allocation110_spill] sm:$0xff]  ;;  %v10974_v58 = vld [vmem:[#allocation49_spill] sm:$0xff]  ;;  %v10978_v57 = vld [vmem:[#allocation104_spill] sm:$0xff] }
 0x51d   :  { %v1171_v21 = vadd.f32 %v10951_v62, %v1123_v8  ;;  %v1162_v42 = vsel %vm476_vm7, %v10972_v15, %v10971_v38  ;;  %v1256_v14 = vsel %vm580_vm11, %v10958_v47, %v10973_v48  ;;  %v952_v62 = vsel %vm629_vm12, %v10957_v34, %v10974_v58  ;;  %v10976_v47 = vld [vmem:[#allocation103_spill] sm:$0xff]  ;;  %v10977_v24 = vld [vmem:[#allocation102_spill] sm:$0xff] }
 0x51e   :  { %v1125_v37 = vadd.f32 %v1114_v26, %v1077_v13  ;;  %v1161_v41 = vsel %vm476_vm7, %v10975_v59, %v10972_v15  ;;  %v1209_v10 = vsel %vm531_vm8, %v10977_v24, %v10976_v47  ;;  %v980_v34 = vmul.f32 %v6567_v28, %v963_v51 }
 0x51f   :  { %v1219_v5 = vadd.f32 %v1208_v18, %v1171_v21  ;;  %v964_v13 = vadd.f32 %v952_v62, %v916_v46 }
 0x521   :  { %v1267_v8 = vadd.f32 %v1256_v14, %v1219_v5  ;;  %v10979_v14 = vld [vmem:[#allocation107_spill] sm:$0xff] }
 0x575   :  { %v1292_v22 = vpop.permute.xlu1 %1291  ;;  %v1294_v4 = vpop.permute.xlu0 %1293 }
 0x576   :  { %v1303_v25 = vsel %vm629_vm12, %v1292_v22, %v1294_v4  ;;  %v1313_v39 = vadd.f32 %v1292_v22, %v1265_v54  ;;  %v1078_v54 = vadd.f32 %v10961_v16, %v1030_v2  ;;  %v1257_v2 = vsel %vm580_vm11, %v6497_v44, %v6494_v7 }
 0x577   :  { %v1314_v9 = vadd.f32 %v1303_v25, %v1266_v53  ;;  %v1124_v25 = vadd.f32 %v1113_v0, %v1076_v27  ;;  %v981_v0 = vmul.f32 %v6550_v1, %v964_v13 }
 0x578   :  { %v1126_v32 = vadd.f32 %v10966_v52, %v1078_v54 }
 0x579   :  { %v1296_v30 = vpop.permute.xlu1 %1295  ;;  %v1172_v26 = vadd.f32 %v1161_v41, %v1124_v25 }
 0x57a   :  { %v1304_v53 = vsel %vm629_vm12, %v1294_v4, %v1296_v30  ;;  %v1210_v30 = vsel %vm531_vm8, %v10976_v47, %v10978_v57  ;;  %v1174_v51 = vadd.f32 %v10971_v38, %v1126_v32 }
 0x57b   :  { %v1315_v4 = vadd.f32 %v1304_v53, %v1267_v8 }
 0x57c   :  { %v1222_v21 = vadd.f32 %v1210_v30, %v1174_v51 }
 0x57d   :  { %v6644_v40 = vpop.permute.xlu1 %1299  ;;  %v1298_v43 = vpop.permute.xlu0 %1297 }
 0x57e   :  { %v1305_v46 = vsel %vm629_vm12, %v1298_v43, %v6644_v40 }
 0x581   :  { %v5497_v45 = vpop.permute.xlu1 %5496  ;;  %v1302_v52 = vpop.permute.xlu0 %1301 }
 0x582   :  { %v6671_v56 = vunpack.i.h.bf16 %v5497_v45  ;;  %v6673_v61 = vunpack.i.l.bf16 %v5497_v45  ;;  %v1173_v45 = vadd.f32 %v1162_v42, %v1125_v37  ;;  %v1306_v38 = vsel %vm629_vm12, %v6644_v40, %v1302_v52 }
 0x583   :  { %v5652_v40 = vmov 10  }
 0x584   :  { %10964 = vst [vmem:[#allocation93_spill] sm:$0xff] %v6671_v56  ;;  %10965 = vst [vmem:[#allocation91_spill] sm:$0xff] %v6673_v61  ;;  %v1330_v22 = vmul.f32 %v6673_v61, %v1313_v39  ;;  %v6688_v31 = vsel %vm1325_vm14, %v6673_v61, %v6671_v56  ;;  %v979_v39 = vmul.f32 %v6553_v33, %v962_v50  ;;  %vm2376_vm14 = vcmask 670720  }
 0x585   :  { %10970 = vst [vmem:[#allocation92_spill] sm:$0xff] %v6688_v31  ;;  %v1331_v55 = vmul.f32 %v6688_v31, %v1314_v9  ;;  %v1221_v16 = vadd.f32 %v1209_v10, %v1173_v45  ;;  %v1220_v50 = vadd.f32 %v10977_v24, %v1172_v26  ;;  %v1258_v9 = vsel %vm580_vm11, %v6494_v7, %v6521_v49  ;;  %v6745_v58 = vpop.permute.xlu1 %990  ;;  %v6747_v62 = vpop.permute.xlu0 %988 }
 0x586   :  { %1342 = vrot.lane.b32.xlu0 %v1330_v22, %s5651_s29  ;;  %v1332_v23 = vmul.f32 %v6671_v56, %v1315_v4  ;;  %v1270_v15 = vadd.f32 %v1258_v9, %v1222_v21  ;;  %10981 = vst [vmem:[#allocation48_spill] sm:$0xff] %v6745_v58  ;;  %10982 = vst [vmem:[#allocation75_spill] sm:$0xff] %v6747_v62  ;;  %v6897_v62 = vld [vmem:[#allocation2 + $0x38] sm:$0x3f] }
 0x587   :  { %1344 = vrot.lane.b32.xlu1 %v1331_v55, %s5651_s29  ;;  %v1269_v18 = vadd.f32 %v1257_v2, %v1221_v16  ;;  %v1268_v22 = vadd.f32 %v6497_v44, %v1220_v50  ;;  %v5653_v55 = vmov 17   ;;  %v6787_v16 = vld [vmem:[#allocation2 + $0x8] sm:$0xff] }
 0x588   :  { %v1318_v7 = vadd.f32 %v1306_v38, %v1270_v15  ;;  %v6826_v38 = vld [vmem:[#allocation2 + $0x28] sm:$0x3f] }
 0x589   :  { %v1317_v27 = vadd.f32 %v1305_v46, %v1269_v18  ;;  %v1316_v42 = vadd.f32 %v1298_v43, %v1268_v22  ;;  %v10980_v43 = vld [vmem:[#allocation108_spill] sm:$0xff]  ;;  %v6751_v59 = vpop.permute.xlu0 %992 }
 0x58a   :  { %996 = vrot.lane.b32.xlu0 %v980_v34, %s5649_s28  ;;  %v1335_v44 = vmul.f32 %v6671_v56, %v1318_v7  ;;  %10984 = vst [vmem:[#allocation99_spill] sm:$0xff] %v6751_v59  ;;  %v5655_v7 = vmov 31  }
 0x58b   :  { %994 = vrot.lane.b32.xlu1 %v979_v39, %s5649_s28  ;;  %v1334_v48 = vmul.f32 %v6688_v31, %v1317_v27  ;;  %v1333_v49 = vmul.f32 %v6673_v61, %v1316_v42  ;;  %v6775_v39 = vld [vmem:[#allocation2 + $0x10] sm:$0xff] }
 0x58e   :  { %1346 = vrot.lane.b32.xlu0 %v1332_v23, %s5651_s29 }
 0x58f   :  { %998 = vrot.lane.b32.xlu1 %v981_v0, %s5649_s28 }
 0x592   :  { %1350 = vrot.lane.b32.xlu0 %v1334_v48, %s5651_s29 }
 0x593   :  { %1348 = vrot.lane.b32.xlu1 %v1333_v49, %s5651_s29 }
 0x596   :  { %1372 = vperm.xlu0 %5500, %v10979_v14  }
 0x597   :  { %1352 = vrot.lane.b32.xlu1 %v1335_v44, %s5651_s29 }
 0x59a   :  { %5503 = vset.pattern.permute.xlu0 %v5652_v40 }
 0x59b   :  { %1390 = vperm.xlu0 %5503, %v10980_v43   ;;  %1376 = vperm.xlu1 %5501, %v10980_v43  }
 0x59f   :  { %5502 = vset.pattern.permute.xlu1 %v5652_v40  ;;  %5504 = vset.pattern.permute.xlu0 %v5653_v55 }
 0x5a0   :  { %1386 = vperm.xlu1 %5502, %v10979_v14  }
 0x5a4   :  { %5505 = vset.pattern.permute.xlu1 %v5653_v55 }
 0x5f8   :  { %v6755_v5 = vpop.permute.xlu0 %1342 }
 0x5f9   :  { %v6749_v37 = vpop.permute.xlu1 %1344  ;;  %10986 = vst [vmem:[#allocation78_spill] sm:$0xff] %v6755_v5 }
 0x5fa   :  { %10983 = vst [vmem:[#allocation100_spill] sm:$0xff] %v6749_v37 }
 0x5fc   :  { %v6759_v25 = vpop.permute.xlu0 %996 }
 0x5fd   :  { %v6753_v41 = vpop.permute.xlu1 %994  ;;  %10988 = vst [vmem:[#allocation109_spill] sm:$0xff] %v6759_v25 }
 0x5fe   :  { %10985 = vst [vmem:[#allocation68_spill] sm:$0xff] %v6753_v41 }
 0x600   :  { %v6763_v24 = vpop.permute.xlu0 %1346 }
 0x601   :  { %v6757_v54 = vpop.permute.xlu1 %998  ;;  %10990 = vst [vmem:[#allocation81_spill] sm:$0xff] %v6763_v24 }
 0x602   :  { %10987 = vst [vmem:[#allocation111_spill] sm:$0xff] %v6757_v54 }
 0x604   :  { %v6767_v53 = vpop.permute.xlu0 %1350 }
 0x605   :  { %v6761_v47 = vpop.permute.xlu1 %1348  ;;  %10992 = vst [vmem:[#allocation88_spill] sm:$0xff] %v6767_v53 }
 0x606   :  { %10989 = vst [vmem:[#allocation84_spill] sm:$0xff] %v6761_v47 }
 0x609   :  { %v6765_v10 = vpop.permute.xlu1 %1352 }
 0x60a   :  { %10991 = vst [vmem:[#allocation82_spill] sm:$0xff] %v6765_v10 }
 0x615   :  { %v6771_v45 = vpop.permute.xlu0 %1372 }
 0x616   :  { %10994 = vst [vmem:[#allocation101_spill] sm:$0xff] %v6771_v45 }
 0x61a   :  { %v6769_v34 = vpop.permute.xlu1 %1376  ;;  %v6781_v26 = vpop.permute.xlu0 %1390 }
 0x61b   :  { %10993 = vst [vmem:[#allocation87_spill] sm:$0xff] %v6769_v34  ;;  %v1397_v2 = vmul.f32 %v6781_v26, %v6080_v29  ;;  %v1396_v30 = vmul.f32 %v6653_v35, %v6781_v26  ;;  %v1398_v4 = vmul.f32 %v6781_v26, %v6120_v17  ;;  %v5654_v29 = vmov 24  }
 0x61c   :  { %v1382_v61 = vmul.f32 %v6653_v35, %v6769_v34 }
 0x61f   :  { %v6773_v8 = vpop.permute.xlu1 %1386 }
 0x620   :  { %10995 = vst [vmem:[#allocation86_spill] sm:$0xff] %v6773_v8  ;;  %v1395_v13 = vmul.f32 %v6775_v39, %v6773_v8  ;;  %v1393_v32 = vmul.f32 %v6439_v12, %v6773_v8  ;;  %v1394_v57 = vmul.f32 %v6787_v16, %v6773_v8 }
 0x622   :  { %1409 = vrot.lane.b32.xlu0 %v1395_v13, %s5634_s2  ;;  %1405 = vrot.lane.b32.xlu1 %v1393_v32, %s5634_s2 }
 0x626   :  { %1413 = vrot.lane.b32.xlu0 %v1397_v2, %s5634_s2  ;;  %1407 = vrot.lane.b32.xlu1 %v1394_v57, %s5634_s2 }
 0x62a   :  { %1434 = vperm.xlu0 %5504, %v10979_v14   ;;  %1411 = vrot.lane.b32.xlu1 %v1396_v30, %s5634_s2 }
 0x62e   :  { %1415 = vrot.lane.b32.xlu1 %v1398_v4, %s5634_s2  ;;  %5507 = vset.pattern.permute.xlu0 %v5654_v29 }
 0x632   :  { %1438 = vperm.xlu1 %5505, %v10980_v43  }
 0x636   :  { %5506 = vset.pattern.permute.xlu1 %v5654_v29  ;;  %v6864_v29 = vld [vmem:[#allocation2 + $0x30] sm:$0x3f] }
 0x637   :  { %v1384_v31 = vmul.f32 %v6864_v29, %v6769_v34 }
 0x694   :  { %v6801_v51 = vpop.permute.xlu1 %1405  ;;  %v6803_v50 = vpop.permute.xlu0 %1409 }
 0x698   :  { %v6805_v46 = vpop.permute.xlu1 %1407  ;;  %v6807_v52 = vpop.permute.xlu0 %1413 }
 0x69c   :  { %v6809_v18 = vpop.permute.xlu1 %1411 }
 0x6a0   :  { %v6819_v21 = vpop.permute.xlu1 %1415 }
 0x6a1   :  { %v1432_v1 = vadd.f32 %v6819_v21, %v1384_v31 }
 0x6a9   :  { %v6811_v9 = vpop.permute.xlu0 %1434 }
 0x6aa   :  { %10996 = vst [vmem:[#allocation97_spill] sm:$0xff] %v6811_v9  ;;  %v1442_v23 = vmul.f32 %v6787_v16, %v6811_v9  ;;  %v1441_v0 = vmul.f32 %v6439_v12, %v6811_v9  ;;  %v1443_v22 = vmul.f32 %v6775_v39, %v6811_v9 }
 0x6ac   :  { %1455 = vrot.lane.b32.xlu0 %v1442_v23, %s5635_s17  ;;  %1453 = vrot.lane.b32.xlu1 %v1441_v0, %s5635_s17  ;;  %v5656_v0 = vmov 38  }
 0x6b0   :  { %1457 = vrot.lane.b32.xlu1 %v1443_v22, %s5635_s17 }
 0x6b1   :  { %v6824_v27 = vpop.permute.xlu1 %1438 }
 0x6b2   :  { %v1445_v15 = vmul.f32 %v6826_v38, %v6824_v27  ;;  %v1444_v42 = vmul.f32 %v6653_v35, %v6824_v27  ;;  %v1446_v48 = vmul.f32 %v6824_v27, %v6120_v17 }
 0x6b4   :  { %1461 = vrot.lane.b32.xlu1 %v1445_v15, %s5635_s17  ;;  %1459 = vrot.lane.b32.xlu0 %v1444_v42, %s5635_s17 }
 0x6b8   :  { %1482 = vperm.xlu1 %5506, %v10979_v14   ;;  %1463 = vrot.lane.b32.xlu0 %v1446_v48, %s5635_s17 }
 0x6bc   :  { %1486 = vperm.xlu0 %5507, %v10980_v43   ;;  %5509 = vset.pattern.permute.xlu1 %v5655_v7 }
 0x6c0   :  { %5508 = vset.pattern.permute.xlu0 %v5655_v7 }
 0x71e   :  { %v6839_v49 = vpop.permute.xlu1 %1453  ;;  %v6841_v44 = vpop.permute.xlu0 %1455 }
 0x722   :  { %v6843_v40 = vpop.permute.xlu1 %1457 }
 0x723   :  { %v1466_v28 = vsel %vm427_vm6, %v6841_v44, %v6843_v40 }
 0x726   :  { %v6845_v55 = vpop.permute.xlu0 %1459  ;;  %v6847_v13 = vpop.permute.xlu1 %1461 }
 0x72a   :  { %v6849_v17 = vpop.permute.xlu0 %1463 }
 0x737   :  { %v6851_v32 = vpop.permute.xlu1 %1482 }
 0x738   :  { %10997 = vst [vmem:[#allocation94_spill] sm:$0xff] %v6851_v32  ;;  %v1489_v2 = vmul.f32 %v6787_v16, %v6851_v32  ;;  %v1490_v4 = vmul.f32 %v6775_v39, %v6851_v32 }
 0x73a   :  { %1497 = vrot.lane.b32.xlu1 %v1489_v2, %s5636_s18 }
 0x73b   :  { %v6856_v57 = vpop.permute.xlu0 %1486 }
 0x73c   :  { %v1491_v30 = vmul.f32 %v6826_v38, %v6856_v57  ;;  %v1492_v23 = vmul.f32 %v6864_v29, %v6856_v57 }
 0x73e   :  { %1501 = vrot.lane.b32.xlu0 %v1491_v30, %s5636_s18  ;;  %1499 = vrot.lane.b32.xlu1 %v1490_v4, %s5636_s18 }
 0x742   :  { %1520 = vperm.xlu0 %5508, %v10979_v14   ;;  %1503 = vrot.lane.b32.xlu1 %v1492_v23, %s5636_s18 }
 0x746   :  { %1524 = vperm.xlu1 %5509, %v10980_v43   ;;  %5511 = vset.pattern.permute.xlu0 %v5656_v0 }
 0x74a   :  { %5510 = vset.pattern.permute.xlu1 %v5656_v0  ;;  %v6891_v0 = vld [vmem:[#allocation2 + $0x28] sm:$0x3f] }
 0x7ac   :  { %v6871_v22 = vpop.permute.xlu1 %1497 }
 0x7b0   :  { %v6873_v15 = vpop.permute.xlu1 %1499  ;;  %v6875_v42 = vpop.permute.xlu0 %1501 }
 0x7b4   :  { %v6877_v48 = vpop.permute.xlu1 %1503 }
 0x7c1   :  { %v6879_v7 = vpop.permute.xlu0 %1520 }
 0x7c2   :  { %10998 = vst [vmem:[#allocation110_spill] sm:$0xff] %v6879_v7  ;;  %v1528_v2 = vmul.f32 %v6775_v39, %v6879_v7  ;;  %v1527_v30 = vmul.f32 %v6787_v16, %v6879_v7  ;;  %v1529_v23 = vmul.f32 %v6439_v12, %v6879_v7 }
 0x7c4   :  { %1541 = vrot.lane.b32.xlu0 %v1528_v2, %s5637_s19  ;;  %1539 = vrot.lane.b32.xlu1 %v1527_v30, %s5637_s19  ;;  %v6901_v30 = vld [vmem:[#allocation2 + $0x30] sm:$0x3f] }
 0x7c5   :  { %v6887_v4 = vpop.permute.xlu1 %1524 }
 0x7c6   :  { %v1530_v5 = vmul.f32 %v6891_v0, %v6887_v4  ;;  %v1532_v2 = vmul.f32 %v6897_v62, %v6887_v4  ;;  %v1531_v37 = vmul.f32 %v6901_v30, %v6887_v4 }
 0x7c8   :  { %1543 = vrot.lane.b32.xlu1 %v1529_v23, %s5637_s19  ;;  %1545 = vrot.lane.b32.xlu0 %v1530_v5, %s5637_s19  ;;  %v5657_v23 = vmov 45  }
 0x7cc   :  { %1547 = vrot.lane.b32.xlu1 %v1531_v37, %s5637_s19  ;;  %1549 = vrot.lane.b32.xlu0 %v1532_v2, %s5637_s19 }
 0x7d0   :  { %1568 = vperm.xlu1 %5510, %v10979_v14   ;;  %1572 = vperm.xlu0 %5511, %v10980_v43  }
 0x7d4   :  { %5512 = vset.pattern.permute.xlu0 %v5657_v23  ;;  %5513 = vset.pattern.permute.xlu1 %v5657_v23 }
 0x836   :  { %v6909_v5 = vpop.permute.xlu1 %1539  ;;  %v6911_v24 = vpop.permute.xlu0 %1541 }
 0x83a   :  { %v6913_v58 = vpop.permute.xlu1 %1543  ;;  %v6915_v59 = vpop.permute.xlu0 %1545 }
 0x83e   :  { %v6917_v36 = vpop.permute.xlu1 %1547  ;;  %v6919_v37 = vpop.permute.xlu0 %1549 }
 0x84f   :  { %v6921_v2 = vpop.permute.xlu1 %1568  ;;  %v6927_v60 = vpop.permute.xlu0 %1572 }
 0x850   :  { %10999 = vst [vmem:[#allocation49_spill] sm:$0xff] %v6921_v2  ;;  %v1577_v63 = vmul.f32 %v6439_v12, %v6921_v2  ;;  %v1575_v23 = vmul.f32 %v6787_v16, %v6921_v2  ;;  %v1579_v7 = vmul.f32 %v6901_v30, %v6927_v60  ;;  %v1576_v32 = vmul.f32 %v6775_v39, %v6921_v2 }
 0x851   :  { %v1578_v9 = vmul.f32 %v6891_v0, %v6927_v60 }
 0x852   :  { %1591 = vrot.lane.b32.xlu0 %v1577_v63, %s5638_s20  ;;  %1587 = vrot.lane.b32.xlu1 %v1575_v23, %s5638_s20  ;;  %v1580_v63 = vmul.f32 %v6897_v62, %v6927_v60 }
 0x856   :  { %1595 = vrot.lane.b32.xlu0 %v1579_v7, %s5638_s20  ;;  %1589 = vrot.lane.b32.xlu1 %v1576_v32, %s5638_s20 }
 0x85a   :  { %1616 = vperm.xlu0 %5512, %v10979_v14   ;;  %1593 = vrot.lane.b32.xlu1 %v1578_v9, %s5638_s20 }
 0x85e   :  { %1597 = vrot.lane.b32.xlu1 %v1580_v63, %s5638_s20 }
 0x862   :  { %1620 = vperm.xlu1 %5513, %v10980_v43  }
 0x8c4   :  { %v6945_v23 = vpop.permute.xlu1 %1587  ;;  %v6947_v2 = vpop.permute.xlu0 %1591 }
 0x8c8   :  { %v6949_v7 = vpop.permute.xlu1 %1589  ;;  %v6951_v32 = vpop.permute.xlu0 %1595 }
 0x8cc   :  { %v6953_v8 = vpop.permute.xlu1 %1593 }
 0x8d0   :  { %v6963_v41 = vpop.permute.xlu1 %1597 }
 0x8d9   :  { %v6955_v47 = vpop.permute.xlu0 %1616 }
 0x8da   :  { %11000 = vst [vmem:[#allocation95_spill] sm:$0xff] %v6955_v47  ;;  %v1624_v9 = vmul.f32 %v6775_v39, %v6955_v47  ;;  %v1623_v63 = vmul.f32 %v6787_v16, %v6955_v47  ;;  %v1625_v53 = vmul.f32 %v6439_v12, %v6955_v47  ;;  %v1417_v47 = vsel %vm378_vm5, %v6801_v51, %v6805_v46 }
 0x8db   :  { %v1419_v51 = vsel %vm378_vm5, %v6809_v18, %v6807_v52  ;;  %v1383_v18 = vmul.f32 %v6826_v38, %v6769_v34  ;;  %v1468_v34 = vsel %vm427_vm6, %v6847_v13, %v6849_v17 }
 0x8dc   :  { %1637 = vrot.lane.b32.xlu0 %v1624_v9, %s5639_s21  ;;  %1635 = vrot.lane.b32.xlu1 %v1623_v63, %s5639_s21  ;;  %v5658_v63 = vmov 1.0|1.0   ;;  %v1430_v11 = vadd.f32 %v1419_v51, %v1382_v61 }
 0x8e0   :  { %1639 = vrot.lane.b32.xlu1 %v1625_v53, %s5639_s21  ;;  %v5659_v53 = vmov 4  }
 0x8e1   :  { %v6968_v10 = vpop.permute.xlu1 %1620  ;;  %5519 = vset.pattern.permute.xlu0 %v5659_v53  ;;  %5520 = vset.pattern.permute.xlu1 %v5659_v53  ;;  %v1381_v53 = vmul.f32 %v6775_v39, %v6771_v45 }
 0x8e2   :  { %11001 = vst [vmem:[#allocation103_spill] sm:$0xff] %v6968_v10  ;;  %v1627_v25 = vmul.f32 %v6901_v30, %v6968_v10  ;;  %v1626_v54 = vmul.f32 %v6891_v0, %v6968_v10  ;;  %v1628_v9 = vmul.f32 %v6897_v62, %v6968_v10 }
 0x8e4   :  { %1643 = vrot.lane.b32.xlu1 %v1627_v25, %s5639_s21  ;;  %1641 = vrot.lane.b32.xlu0 %v1626_v54, %s5639_s21  ;;  %v1379_v25 = vmul.f32 %v6439_v12, %v6771_v45  ;;  %v1418_v54 = vsel %vm378_vm5, %v6805_v46, %v6803_v50 }
 0x8e6   :  { %v1427_v33 = vadd.f32 %v1417_v47, %v1379_v25 }
 0x8e8   :  { %5515 = vrot.lane.b32.xlu1 %v5658_v63, %s5636_s18  ;;  %1645 = vrot.lane.b32.xlu0 %v1628_v9, %s5639_s21  ;;  %v1380_v63 = vmul.f32 %v6787_v16, %v6771_v45  ;;  %v1465_v9 = vsel %vm427_vm6, %v6839_v49, %v6841_v44  ;;  %v1420_v49 = vsel %vm378_vm5, %v6807_v52, %v6819_v21 }
 0x8e9   :  { %v1475_v45 = vadd.f32 %v1465_v9, %v1427_v33  ;;  %v1467_v44 = vsel %vm427_vm6, %v6845_v55, %v6847_v13  ;;  %v1431_v3 = vadd.f32 %v1420_v49, %v1383_v18  ;;  %v1551_v55 = vsel %vm531_vm8, %v6909_v5, %v6911_v24 }
 0x8ea   :  { %v1428_v46 = vadd.f32 %v1418_v54, %v1380_v63  ;;  %v1505_v54 = vsel %vm476_vm7, %v6871_v22, %v6873_v15  ;;  %v1429_v63 = vadd.f32 %v6803_v50, %v1381_v53  ;;  %v1478_v10 = vadd.f32 %v1467_v44, %v1430_v11 }
 0x8eb   :  { %v1513_v33 = vadd.f32 %v6871_v22, %v1475_v45  ;;  %v1480_v50 = vadd.f32 %v6849_v17, %v1432_v1  ;;  %v1552_v45 = vsel %vm531_vm8, %v6911_v24, %v6913_v58  ;;  %v1479_v11 = vadd.f32 %v1468_v34, %v1431_v3 }
 0x8ec   :  { %v1476_v52 = vadd.f32 %v1466_v28, %v1428_v46  ;;  %v1477_v9 = vadd.f32 %v6843_v40, %v1429_v63  ;;  %v1506_v28 = vsel %vm476_vm7, %v6875_v42, %v6877_v48  ;;  %v1599_v40 = vsel %vm580_vm11, %v6945_v23, %v6949_v7 }
 0x8ed   :  { %v1561_v21 = vadd.f32 %v6909_v5, %v1513_v33  ;;  %v1516_v17 = vadd.f32 %v6875_v42, %v1478_v10  ;;  %v1518_v22 = vadd.f32 %v6877_v48, %v1480_v50  ;;  %v1517_v46 = vadd.f32 %v1506_v28, %v1479_v11 }
 0x8ee   :  { %v1514_v61 = vadd.f32 %v1505_v54, %v1476_v52  ;;  %v1515_v1 = vadd.f32 %v6873_v15, %v1477_v9  ;;  %v1600_v58 = vsel %vm580_vm11, %v6949_v7, %v6947_v2  ;;  %v1554_v3 = vsel %vm531_vm8, %v6917_v36, %v6919_v37 }
 0x8ef   :  { %v1609_v51 = vadd.f32 %v6945_v23, %v1561_v21  ;;  %v1564_v42 = vadd.f32 %v6915_v59, %v1516_v17  ;;  %v1553_v48 = vsel %vm531_vm8, %v6915_v59, %v6917_v36  ;;  %v1602_v37 = vsel %vm580_vm11, %v6951_v32, %v6963_v41 }
 0x8f0   :  { %v1562_v13 = vadd.f32 %v1551_v55, %v1514_v61  ;;  %v1563_v49 = vadd.f32 %v1552_v45, %v1515_v1  ;;  %v1566_v63 = vadd.f32 %v1554_v3, %v1518_v22  ;;  %v1601_v36 = vsel %vm580_vm11, %v6953_v8, %v6951_v32 }
 0x8f1   :  { %v1612_v59 = vadd.f32 %v6953_v8, %v1564_v42  ;;  %v5663_v42 = vmov 25  }
 0x8f2   :  { %v1610_v24 = vadd.f32 %v1599_v40, %v1562_v13  ;;  %v1611_v44 = vadd.f32 %v1600_v58, %v1563_v49  ;;  %v1614_v33 = vadd.f32 %v1602_v37, %v1566_v63 }
 0x94e   :  { %v1636_v56 = vpop.permute.xlu1 %1635  ;;  %v1638_v47 = vpop.permute.xlu0 %1637 }
 0x94f   :  { %v1647_v5 = vsel %vm629_vm12, %v1636_v56, %v1638_v47  ;;  %v1657_v34 = vadd.f32 %v1636_v56, %v1609_v51 }
 0x950   :  { %v1658_v23 = vadd.f32 %v1647_v5, %v1610_v24 }
 0x952   :  { %v1640_v25 = vpop.permute.xlu1 %1639 }
 0x953   :  { %v1648_v2 = vsel %vm629_vm12, %v1638_v47, %v1640_v25  ;;  %v1565_v25 = vadd.f32 %v1553_v48, %v1517_v46 }
 0x954   :  { %v1659_v52 = vadd.f32 %v1648_v2, %v1611_v44 }
 0x955   :  { %v1613_v50 = vadd.f32 %v1601_v36, %v1565_v25 }
 0x956   :  { %v1642_v53 = vpop.permute.xlu0 %1641  ;;  %v1644_v31 = vpop.permute.xlu1 %1643 }
 0x957   :  { %v1660_v55 = vadd.f32 %v1642_v53, %v1612_v59  ;;  %v1649_v9 = vsel %vm629_vm12, %v1642_v53, %v1644_v31  ;;  %v5661_v53 = vmov 11  }
 0x958   :  { %v1661_v28 = vadd.f32 %v1649_v9, %v1613_v50 }
 0x95a   :  { %v5516_v18 = vpop.permute.xlu1 %5515  ;;  %v1646_v7 = vpop.permute.xlu0 %1645 }
 0x95b   :  { %v7048_v10 = vunpack.i.h.bf16 %v5516_v18  ;;  %v7050_v15 = vunpack.i.l.bf16 %v5516_v18  ;;  %v1650_v41 = vsel %vm629_vm12, %v1644_v31, %v1646_v7  ;;  %v5662_v31 = vmov 18  }
 0x95c   :  { %v1662_v61 = vadd.f32 %v1650_v41, %v1614_v33  ;;  %v7165_v41 = vld [vmem:[%s10478_s3] sm:$0xff]  ;;  %v5664_v33 = vmov 32  }
 0x95d   :  { %11002 = vst [vmem:[#allocation102_spill] sm:$0xff] %v7048_v10  ;;  %11003 = vst [vmem:[#allocation104_spill] sm:$0xff] %v7050_v15  ;;  %v1673_v56 = vmul.f32 %v7050_v15, %v1657_v34  ;;  %v7064_v54 = vsel %vm476_vm7, %v7050_v15, %v7048_v10  ;;  %v1675_v32 = vmul.f32 %v7048_v10, %v1659_v52 }
 0x95e   :  { %11004 = vst [vmem:[#allocation107_spill] sm:$0xff] %v7064_v54  ;;  %v1674_v47 = vmul.f32 %v7064_v54, %v1658_v23  ;;  %v1676_v8 = vmul.f32 %v7050_v15, %v1660_v55  ;;  %v1677_v21 = vmul.f32 %v7064_v54, %v1661_v28  ;;  %v1678_v45 = vmul.f32 %v7048_v10, %v1662_v61  ;;  %v7438_v54 = vld [vmem:[#allocation2 + $0x20] sm:$0x3f] }
 0x95f   :  { %1685 = vrot.lane.b32.xlu0 %v1673_v56, %s5660_s30  ;;  %v7141_v56 = vld [vmem:[#allocation2] sm:$0xff] }
 0x960   :  { %1687 = vrot.lane.b32.xlu1 %v1674_v47, %s5660_s30 }
 0x963   :  { %1689 = vrot.lane.b32.xlu0 %v1675_v32, %s5660_s30 }
 0x964   :  { %1691 = vrot.lane.b32.xlu1 %v1676_v8, %s5660_s30 }
 0x967   :  { %1693 = vrot.lane.b32.xlu0 %v1677_v21, %s5660_s30 }
 0x968   :  { %1695 = vrot.lane.b32.xlu1 %v1678_v45, %s5660_s30 }
 0x96b   :  { %1715 = vperm.xlu0 %5519, %v10979_v14  }
 0x96c   :  { %1719 = vperm.xlu1 %5520, %v10980_v43  }
 0x96f   :  { %5522 = vset.pattern.permute.xlu0 %v5661_v53 }
 0x970   :  { %1733 = vperm.xlu0 %5522, %v10980_v43   ;;  %5521 = vset.pattern.permute.xlu1 %v5661_v53 }
 0x971   :  { %1729 = vperm.xlu1 %5521, %v10979_v14  }
 0x974   :  { %5523 = vset.pattern.permute.xlu0 %v5662_v31 }
 0x975   :  { %5524 = vset.pattern.permute.xlu1 %v5662_v31 }
 0x9d1   :  { %v7089_v11 = vpop.permute.xlu0 %1685 }
 0x9d2   :  { %v7087_v40 = vpop.permute.xlu1 %1687  ;;  %11006 = vst [vmem:[#allocation116_spill] sm:$0xff] %v7089_v11 }
 0x9d3   :  { %11005 = vst [vmem:[#allocation108_spill] sm:$0xff] %v7087_v40 }
 0x9d5   :  { %v7093_v13 = vpop.permute.xlu0 %1689 }
 0x9d6   :  { %v7091_v1 = vpop.permute.xlu1 %1691  ;;  %11008 = vst [vmem:[#allocation118_spill] sm:$0xff] %v7093_v13 }
 0x9d7   :  { %11007 = vst [vmem:[#allocation117_spill] sm:$0xff] %v7091_v1 }
 0x9d9   :  { %v7097_v22 = vpop.permute.xlu0 %1693 }
 0x9da   :  { %v7095_v17 = vpop.permute.xlu1 %1695  ;;  %11010 = vst [vmem:[#allocation120_spill] sm:$0xff] %v7097_v22 }
 0x9db   :  { %11009 = vst [vmem:[#allocation119_spill] sm:$0xff] %v7095_v17  ;;  %v11050_v17 = vld [vmem:[#allocation29_spill] sm:$0xff] }
 0x9ea   :  { %v7101_v5 = vpop.permute.xlu0 %1715 }
 0x9eb   :  { %v7099_v51 = vpop.permute.xlu1 %1719  ;;  %11011 = vst [vmem:[#allocation121_spill] sm:$0xff] %v7101_v5 }
 0x9ef   :  { %v7109_v24 = vpop.permute.xlu0 %1733 }
 0x9f0   :  { %v7103_v46 = vpop.permute.xlu1 %1729  ;;  %v1740_v18 = vmul.f32 %v6826_v38, %v7109_v24  ;;  %v1739_v34 = vmul.f32 %v6653_v35, %v7109_v24 }
 0x9f1   :  { %11012 = vst [vmem:[#allocation122_spill] sm:$0xff] %v7103_v46  ;;  %v1738_v49 = vmul.f32 %v6775_v39, %v7103_v46  ;;  %v1736_v58 = vmul.f32 %v6439_v12, %v7103_v46  ;;  %v1737_v3 = vmul.f32 %v6787_v16, %v7103_v46  ;;  %v1741_v12 = vmul.f32 %v6864_v29, %v7109_v24 }
 0x9f3   :  { %1752 = vrot.lane.b32.xlu0 %v1738_v49, %s5634_s2  ;;  %1748 = vrot.lane.b32.xlu1 %v1736_v58, %s5634_s2 }
 0x9f7   :  { %1756 = vrot.lane.b32.xlu0 %v1740_v18, %s5634_s2  ;;  %1750 = vrot.lane.b32.xlu1 %v1737_v3, %s5634_s2  ;;  %v5665_v3 = vmov 39  }
 0x9fb   :  { %1777 = vperm.xlu0 %5523, %v10979_v14   ;;  %1754 = vrot.lane.b32.xlu1 %v1739_v34, %s5634_s2 }
 0x9ff   :  { %1758 = vrot.lane.b32.xlu1 %v1741_v12, %s5634_s2  ;;  %5526 = vset.pattern.permute.xlu0 %v5663_v42 }
 0xa03   :  { %1781 = vperm.xlu1 %5524, %v10980_v43  }
 0xa07   :  { %5525 = vset.pattern.permute.xlu1 %v5663_v42 }
 0xa65   :  { %v7127_v48 = vpop.permute.xlu1 %1748  ;;  %v7129_v23 = vpop.permute.xlu0 %1752 }
 0xa66   :  { %11013 = vst [vmem:[#allocation123_spill] sm:$0xff] %v7129_v23  ;;  %v10681_v23 = vmov 6  }
 0xa69   :  { %v7131_v2 = vpop.permute.xlu1 %1750  ;;  %v7133_v7 = vpop.permute.xlu0 %1756 }
 0xa6a   :  { %11014 = vst [vmem:[#allocation124_spill] sm:$0xff] %v7131_v2 }
 0xa6d   :  { %v7135_v14 = vpop.permute.xlu1 %1754 }
 0xa6e   :  { %11015 = vst [vmem:[#allocation125_spill] sm:$0xff] %v7135_v14 }
 0xa71   :  { %v7147_v63 = vpop.permute.xlu1 %1758 }
 0xa7a   :  { %v7137_v44 = vpop.permute.xlu0 %1777 }
 0xa7b   :  { %11016 = vst [vmem:[#allocation126_spill] sm:$0xff] %v7137_v44  ;;  %v1785_v37 = vmul.f32 %v6787_v16, %v7137_v44  ;;  %v1784_v43 = vmul.f32 %v7141_v56, %v7137_v44  ;;  %v1786_v36 = vmul.f32 %v6775_v39, %v7137_v44  ;;  %v7382_v44 = vld [vmem:[#allocation2 + $0x78] sm:$0x3f] }
 0xa7d   :  { %1798 = vrot.lane.b32.xlu0 %v1785_v37, %s5635_s17  ;;  %1796 = vrot.lane.b32.xlu1 %v1784_v43, %s5635_s17 }
 0xa81   :  { %1800 = vrot.lane.b32.xlu1 %v1786_v36, %s5635_s17 }
 0xa82   :  { %v7152_v59 = vpop.permute.xlu1 %1781 }
 0xa83   :  { %v1788_v47 = vmul.f32 %v6826_v38, %v7152_v59  ;;  %v1787_v25 = vmul.f32 %v6653_v35, %v7152_v59  ;;  %v1789_v52 = vmul.f32 %v6864_v29, %v7152_v59  ;;  %v7172_v35 = vld [vmem:[%s10478_s3 + $0x8] sm:$0x3f] }
 0xa85   :  { %1804 = vrot.lane.b32.xlu1 %v1788_v47, %s5635_s17  ;;  %1802 = vrot.lane.b32.xlu0 %v1787_v25, %s5635_s17 }
 0xa89   :  { %1825 = vperm.xlu1 %5525, %v7165_v41   ;;  %1806 = vrot.lane.b32.xlu0 %v1789_v52, %s5635_s17 }
 0xa8d   :  { %1829 = vperm.xlu0 %5526, %v7172_v35   ;;  %5528 = vset.pattern.permute.xlu1 %v5664_v33 }
 0xa91   :  { %5527 = vset.pattern.permute.xlu0 %v5664_v33 }
 0xaef   :  { %v7175_v55 = vpop.permute.xlu1 %1796  ;;  %v7177_v9 = vpop.permute.xlu0 %1798 }
 0xaf0   :  { %11017 = vst [vmem:[#allocation127_spill] sm:$0xff] %v7177_v9 }
 0xaf3   :  { %v7179_v50 = vpop.permute.xlu1 %1800 }
 0xaf4   :  { %11018 = vst [vmem:[#allocation128_spill] sm:$0xff] %v7179_v50 }
 0xaf7   :  { %v7181_v32 = vpop.permute.xlu0 %1802  ;;  %v7183_v61 = vpop.permute.xlu1 %1804 }
 0xaf8   :  { %11019 = vst [vmem:[#allocation129_spill] sm:$0xff] %v7181_v32 }
 0xafb   :  { %v7185_v8 = vpop.permute.xlu0 %1806 }
 0xb08   :  { %v7187_v28 = vpop.permute.xlu1 %1825 }
 0xb09   :  { %11020 = vst [vmem:[#allocation130_spill] sm:$0xff] %v7187_v28  ;;  %v1834_v21 = vmul.f32 %v7141_v56, %v7187_v28  ;;  %v1832_v45 = vmul.f32 %v6787_v16, %v7187_v28  ;;  %v1833_v49 = vmul.f32 %v6775_v39, %v7187_v28  ;;  %v7376_v28 = vld [vmem:[#allocation2 + $0x68] sm:$0x3f] }
 0xb0a   :  { %v3943_v15 = vmul.f32 %v7376_v28, %v7152_v59 }
 0xb0b   :  { %1848 = vrot.lane.b32.xlu0 %v1834_v21, %s5636_s18  ;;  %1844 = vrot.lane.b32.xlu1 %v1832_v45, %s5636_s18 }
 0xb0c   :  { %v7195_v53 = vpop.permute.xlu0 %1829 }
 0xb0d   :  { %v1836_v31 = vmul.f32 %v6901_v30, %v7195_v53  ;;  %v1835_v58 = vmul.f32 %v6891_v0, %v7195_v53  ;;  %v1837_v18 = vmul.f32 %v6897_v62, %v7195_v53 }
 0xb0f   :  { %1852 = vrot.lane.b32.xlu0 %v1836_v31, %s5636_s18  ;;  %1846 = vrot.lane.b32.xlu1 %v1833_v49, %s5636_s18 }
 0xb13   :  { %1873 = vperm.xlu0 %5527, %v7165_v41   ;;  %1850 = vrot.lane.b32.xlu1 %v1835_v58, %s5636_s18  ;;  %v5666_v58 = vmov 46  }
 0xb17   :  { %1854 = vrot.lane.b32.xlu1 %v1837_v18, %s5636_s18  ;;  %5530 = vset.pattern.permute.xlu0 %v5665_v3 }
 0xb1b   :  { %1877 = vperm.xlu1 %5528, %v7172_v35  }
 0xb1f   :  { %5529 = vset.pattern.permute.xlu1 %v5665_v3 }
 0xb7d   :  { %v7211_v34 = vpop.permute.xlu1 %1844  ;;  %v7213_v12 = vpop.permute.xlu0 %1848 }
 0xb7e   :  { %11021 = vst [vmem:[#allocation131_spill] sm:$0xff] %v7211_v34  ;;  %11022 = vst [vmem:[#allocation132_spill] sm:$0xff] %v7213_v12 }
 0xb81   :  { %v7215_v42 = vpop.permute.xlu1 %1846  ;;  %v7217_v37 = vpop.permute.xlu0 %1852 }
 0xb82   :  { %11023 = vst [vmem:[#allocation133_spill] sm:$0xff] %v7215_v42 }
 0xb85   :  { %v7219_v43 = vpop.permute.xlu1 %1850 }
 0xb89   :  { %v7229_v52 = vpop.permute.xlu1 %1854 }
 0xb8a   :  { %11025 = vst [vmem:[#allocation135_spill] sm:$0xff] %v7229_v52 }
 0xb92   :  { %v7221_v36 = vpop.permute.xlu0 %1873 }
 0xb93   :  { %11024 = vst [vmem:[#allocation134_spill] sm:$0xff] %v7221_v36  ;;  %v1881_v47 = vmul.f32 %v6775_v39, %v7221_v36  ;;  %v1880_v25 = vmul.f32 %v6787_v16, %v7221_v36  ;;  %v1882_v33 = vmul.f32 %v7141_v56, %v7221_v36 }
 0xb95   :  { %1894 = vrot.lane.b32.xlu0 %v1881_v47, %s5637_s19  ;;  %1892 = vrot.lane.b32.xlu1 %v1880_v25, %s5637_s19 }
 0xb99   :  { %1896 = vrot.lane.b32.xlu1 %v1882_v33, %s5637_s19 }
 0xb9a   :  { %v7234_v21 = vpop.permute.xlu1 %1877 }
 0xb9b   :  { %v1884_v45 = vmul.f32 %v6901_v30, %v7234_v21  ;;  %v1883_v31 = vmul.f32 %v6891_v0, %v7234_v21  ;;  %v1885_v49 = vmul.f32 %v6897_v62, %v7234_v21 }
 0xb9d   :  { %1900 = vrot.lane.b32.xlu1 %v1884_v45, %s5637_s19  ;;  %1898 = vrot.lane.b32.xlu0 %v1883_v31, %s5637_s19 }
 0xba1   :  { %1921 = vperm.xlu1 %5529, %v7165_v41   ;;  %1902 = vrot.lane.b32.xlu0 %v1885_v49, %s5637_s19 }
 0xba5   :  { %1925 = vperm.xlu0 %5530, %v7172_v35   ;;  %5532 = vset.pattern.permute.xlu1 %v5666_v58 }
 0xba9   :  { %5531 = vset.pattern.permute.xlu0 %v5666_v58 }
 0xc07   :  { %v7247_v18 = vpop.permute.xlu1 %1892  ;;  %v7249_v3 = vpop.permute.xlu0 %1894 }
 0xc08   :  { %11026 = vst [vmem:[#allocation136_spill] sm:$0xff] %v7247_v18  ;;  %11027 = vst [vmem:[#allocation137_spill] sm:$0xff] %v7249_v3 }
 0xc0b   :  { %v7251_v47 = vpop.permute.xlu1 %1896 }
 0xc0c   :  { %11028 = vst [vmem:[#allocation138_spill] sm:$0xff] %v7251_v47 }
 0xc0f   :  { %v7253_v25 = vpop.permute.xlu0 %1898  ;;  %v7255_v33 = vpop.permute.xlu1 %1900 }
 0xc10   :  { %11029 = vst [vmem:[#allocation139_spill] sm:$0xff] %v7253_v25  ;;  %11030 = vst [vmem:[#allocation140_spill] sm:$0xff] %v7255_v33 }
 0xc13   :  { %v7257_v45 = vpop.permute.xlu0 %1902 }
 0xc14   :  { %11031 = vst [vmem:[#allocation141_spill] sm:$0xff] %v7257_v45 }
 0xc20   :  { %v7259_v31 = vpop.permute.xlu1 %1921 }
 0xc21   :  { %11032 = vst [vmem:[#allocation142_spill] sm:$0xff] %v7259_v31  ;;  %v1930_v49 = vmul.f32 %v7141_v56, %v7259_v31  ;;  %v1928_v58 = vmul.f32 %v6787_v16, %v7259_v31  ;;  %v1929_v13 = vmul.f32 %v6775_v39, %v7259_v31 }
 0xc23   :  { %1944 = vrot.lane.b32.xlu0 %v1930_v49, %s5638_s20  ;;  %1940 = vrot.lane.b32.xlu1 %v1928_v58, %s5638_s20  ;;  %v10664_v58 = vmov 19  }
 0xc24   :  { %v7267_v11 = vpop.permute.xlu0 %1925 }
 0xc25   :  { %v1932_v40 = vmul.f32 %v6901_v30, %v7267_v11  ;;  %v1931_v47 = vmul.f32 %v6891_v0, %v7267_v11  ;;  %v1933_v49 = vmul.f32 %v6897_v62, %v7267_v11 }
 0xc27   :  { %1948 = vrot.lane.b32.xlu0 %v1932_v40, %s5638_s20  ;;  %1942 = vrot.lane.b32.xlu1 %v1929_v13, %s5638_s20  ;;  %v10665_v40 = vmov 12  }
 0xc2b   :  { %1969 = vperm.xlu0 %5531, %v7165_v41   ;;  %1946 = vrot.lane.b32.xlu1 %v1931_v47, %s5638_s20 }
 0xc2f   :  { %1950 = vrot.lane.b32.xlu1 %v1933_v49, %s5638_s20  ;;  %5534 = vset.pattern.permute.xlu0 %v10664_v58 }
 0xc33   :  { %1973 = vperm.xlu1 %5532, %v7172_v35  }
 0xc37   :  { %5533 = vset.pattern.permute.xlu1 %v10665_v40 }
 0xc95   :  { %v7285_v13 = vpop.permute.xlu1 %1940  ;;  %v7287_v3 = vpop.permute.xlu0 %1944 }
 0xc96   :  { %11033 = vst [vmem:[#allocation143_spill] sm:$0xff] %v7285_v13  ;;  %11034 = vst [vmem:[#allocation144_spill] sm:$0xff] %v7287_v3 }
 0xc99   :  { %v7289_v41 = vpop.permute.xlu1 %1942  ;;  %v7291_v47 = vpop.permute.xlu0 %1948 }
 0xc9a   :  { %11035 = vst [vmem:[#allocation145_spill] sm:$0xff] %v7289_v41  ;;  %11036 = vst [vmem:[#allocation146_spill] sm:$0xff] %v7291_v47 }
 0xc9d   :  { %v7293_v12 = vpop.permute.xlu1 %1946 }
 0xc9e   :  { %11037 = vst [vmem:[#allocation147_spill] sm:$0xff] %v7293_v12 }
 0xca1   :  { %v7303_v40 = vpop.permute.xlu1 %1950 }
 0xca2   :  { %11039 = vst [vmem:[#allocation149_spill] sm:$0xff] %v7303_v40 }
 0xcaa   :  { %v7295_v42 = vpop.permute.xlu0 %1969 }
 0xcab   :  { %11038 = vst [vmem:[#allocation148_spill] sm:$0xff] %v7295_v42  ;;  %v1977_v49 = vmul.f32 %v6775_v39, %v7295_v42  ;;  %v1976_v58 = vmul.f32 %v6787_v16, %v7295_v42  ;;  %v1978_v3 = vmul.f32 %v7141_v56, %v7295_v42  ;;  %v5669_v39 = vmov 13   ;;  %v7360_v42 = vld [vmem:[#allocation2 + $0x60] sm:$0x3f] }
 0xcac   :  { %v10668_v16 = vmov 20  }
 0xcad   :  { %1990 = vrot.lane.b32.xlu0 %v1977_v49, %s5639_s21  ;;  %1988 = vrot.lane.b32.xlu1 %v1976_v58, %s5639_s21  ;;  %v10670_v58 = vmov 26   ;;  %v10673_v49 = vmov 27  }
 0xcb1   :  { %1992 = vrot.lane.b32.xlu1 %v1978_v3, %s5639_s21  ;;  %v10671_v3 = vmov 41  }
 0xcb2   :  { %v7308_v41 = vpop.permute.xlu1 %1973 }
 0xcb3   :  { %v1979_v50 = vmul.f32 %v6891_v0, %v7308_v41  ;;  %v10669_v0 = vmov 40  }
 0xcb5   :  { %2087 = vperm.xlu1 %5533, %v7172_v35   ;;  %1994 = vrot.lane.b32.xlu0 %v1979_v50, %s5639_s21  ;;  %v10676_v50 = vmov 33  }
 0xcb9   :  { %5535 = vset.pattern.permute.xlu1 %v5669_v39  ;;  %2135 = vperm.xlu0 %5534, %v7172_v35  }
 0xcba   :  { %2441 = vperm.xlu1 %5535, %v7172_v35  }
 0xcbd   :  { %5537 = vset.pattern.permute.xlu0 %v10668_v16  ;;  %v1981_v16 = vmul.f32 %v6897_v62, %v7308_v41  ;;  %v10675_v62 = vmov 48  }
 0xcbe   :  { %5536 = vset.pattern.permute.xlu1 %v10670_v58  ;;  %2489 = vperm.xlu0 %5537, %v7172_v35   ;;  %v10672_v58 = vmov 47  }
 0xcbf   :  { %2183 = vperm.xlu1 %5536, %v7172_v35  }
 0xcc2   :  { %5540 = vset.pattern.permute.xlu0 %v10669_v0  ;;  %v10674_v0 = vmov 34  }
 0xcc3   :  { %5538 = vset.pattern.permute.xlu1 %v10676_v50  ;;  %2279 = vperm.xlu0 %5540, %v7172_v35  }
 0xcc4   :  { %2231 = vperm.xlu1 %5538, %v7172_v35  }
 0xcc7   :  { %5543 = vset.pattern.permute.xlu0 %v10671_v3  ;;  %v1980_v3 = vmul.f32 %v6901_v30, %v7308_v41 }
 0xcc8   :  { %5539 = vset.pattern.permute.xlu1 %v10673_v49  ;;  %2633 = vperm.xlu0 %5543, %v7172_v35   ;;  %v10678_v49 = vmov 5  }
 0xcc9   :  { %2537 = vperm.xlu1 %5539, %v7172_v35  }
 0xccc   :  { %1998 = vrot.lane.b32.xlu0 %v1981_v16, %s5639_s21  ;;  %v5354_v16 = vsel %vm288_vm15, 1.0, %v7141_v56  ;;  %vm652_vm15 = vcmask 629760  }
 0xccd   :  { %5541 = vset.pattern.permute.xlu1 %v10674_v0  ;;  %5565 = vset.pattern.permute.xlu0 %v5669_v39  ;;  %v5355_v39 = vsel %vm289_vm1, 1.0, %v7141_v56  ;;  %v7345_v0 = vld [vmem:[#allocation2 + $0x70] sm:$0x3f]  ;;  %vm1000_vm1 = vcmask 1039360  }
 0xcce   :  { %2585 = vperm.xlu1 %5541, %v7172_v35  }
 0xcd2   :  { %5542 = vset.pattern.permute.xlu1 %v10672_v58  ;;  %v5545_v58 = vpack.i.bf16 %v5355_v39, %v5354_v16  ;;  %v11043_v39 = vld [vmem:[#allocation80_spill] sm:$0xff] }
 0xcd3   :  { %2327 = vperm.xlu1 %5542, %v7172_v35  }
 0xcd7   :  { %5544 = vset.pattern.permute.xlu1 %v10675_v62  ;;  %v11040_v62 = vld [vmem:[#allocation21_spill] sm:$0xff] }
 0xcd8   :  { %2681 = vperm.xlu1 %5544, %v7172_v35   ;;  %v3056_v50 = vmul.f32 %v7345_v0, %v11040_v62 }
 0xcdc   :  { %1996 = vrot.lane.b32.xlu1 %v1980_v3, %s5639_s21  ;;  %v11041_v3 = vld [vmem:[#allocation23_spill] sm:$0xff] }
 0xcdd   :  { %5550 = vset.pattern.permute.xlu1 %v10678_v49  ;;  %v3096_v16 = vmul.f32 %v7345_v0, %v11041_v3  ;;  %v3342_v49 = vmul.f32 %v7345_v0, %v11043_v39 }
 0xce0   :  { %5546 = vrot.lane.b32.xlu1 %v5545_v58, %s5680_s15  ;;  %v11042_v58 = vmov 0  }
 0xce4   :  { %2073 = vperm.xlu1 %5550, %v7172_v35  }
 0xce8   :  { %3073 = vrot.lane.b32.xlu1 %v3056_v50, %s5634_s2  ;;  %v3340_v50 = vmul.f32 %v7360_v42, %v11043_v39 }
 0xce9   :  { %5551 = vset.pattern.permute.xlu1 %v10681_v23 }
 0xcec   :  { %2427 = vperm.xlu1 %5551, %v7172_v35   ;;  %v11044_v35 = vld [vmem:[#allocation24_spill] sm:$0xff] }
 0xced   :  { %v3136_v23 = vmul.f32 %v7345_v0, %v11044_v35 }
 0xcf0   :  { %3113 = vrot.lane.b32.xlu1 %v3096_v16, %s5635_s17  ;;  %v11045_v16 = vld [vmem:[#allocation85_spill] sm:$0xff] }
 0xcf1   :  { %5562 = vset.pattern.permute.xlu1 %v11042_v58  ;;  %v3382_v31 = vmul.f32 %v7345_v0, %v11045_v16  ;;  %v3380_v36 = vmul.f32 %v7360_v42, %v11045_v16  ;;  %v3666_v58 = vmul.f32 %v7360_v42, %v6824_v27 }
 0xcf4   :  { %3359 = vrot.lane.b32.xlu1 %v3342_v49, %s5634_s2  ;;  %v3628_v49 = vmul.f32 %v7345_v0, %v6781_v26 }
 0xcf8   :  { %3355 = vrot.lane.b32.xlu1 %v3340_v50, %s5634_s2  ;;  %v11046_v50 = vld [vmem:[#allocation27_spill] sm:$0xff] }
 0xcfc   :  { %3153 = vrot.lane.b32.xlu1 %v3136_v23, %s5636_s18  ;;  %v3174_v23 = vmul.f32 %v7376_v28, %v11046_v50 }
 0xd00   :  { %3399 = vrot.lane.b32.xlu1 %v3382_v31, %s5635_s17  ;;  %v3176_v31 = vmul.f32 %v7382_v44, %v11046_v50 }
 0xd04   :  { %3645 = vrot.lane.b32.xlu1 %v3628_v49, %s5634_s2  ;;  %v11047_v49 = vld [vmem:[#allocation90_spill] sm:$0xff] }
 0xd05   :  { %v3422_v46 = vmul.f32 %v7345_v0, %v11047_v49 }
 0xd08   :  { %3395 = vrot.lane.b32.xlu1 %v3380_v36, %s5635_s17  ;;  %v3668_v36 = vmul.f32 %v7345_v0, %v6824_v27 }
 0xd0c   :  { %3189 = vrot.lane.b32.xlu1 %v3174_v23, %s5637_s19  ;;  %v3904_v23 = vmul.f32 %v7345_v0, %v7109_v24 }
 0xd10   :  { %3193 = vrot.lane.b32.xlu1 %v3176_v31, %s5637_s19 }
 0xd14   :  { %3439 = vrot.lane.b32.xlu1 %v3422_v46, %s5636_s18 }
 0xd18   :  { %3685 = vrot.lane.b32.xlu1 %v3668_v36, %s5635_s17 }
 0xd1c   :  { %3921 = vrot.lane.b32.xlu1 %v3904_v23, %s5634_s2  ;;  %v3214_v23 = vmul.f32 %v7376_v28, %v11050_v17 }
 0xd1f   :  { %v7399_v31 = vpop.permute.xlu1 %1988 }
 0xd20   :  { %3681 = vrot.lane.b32.xlu1 %v3666_v58, %s5635_s17  ;;  %11048 = vst [vmem:[#allocation21_spill] sm:$0xff] %v7399_v31  ;;  %v3216_v58 = vmul.f32 %v7382_v44, %v11050_v17 }
 0xd23   :  { %v7401_v1 = vpop.permute.xlu1 %1992 }
 0xd24   :  { %11049 = vst [vmem:[#allocation23_spill] sm:$0xff] %v7401_v1  ;;  %v11051_v1 = vld [vmem:[#allocation98_spill] sm:$0xff] }
 0xd25   :  { %v3461_v14 = vmul.f32 %v7345_v0, %v11051_v1 }
 0xd34   :  { %v7403_v46 = vpop.permute.xlu1 %2087 }
 0xd35   :  { %v2094_v22 = vmul.f32 %v6826_v38, %v7403_v46  ;;  %v4189_v40 = vmul.f32 %v7376_v28, %v7403_v46  ;;  %v4188_v10 = vmul.f32 %v7360_v42, %v7403_v46 }
 0xd37   :  { %2110 = vrot.lane.b32.xlu1 %v2094_v22, %s5634_s2  ;;  %v3705_v22 = vmul.f32 %v7376_v28, %v6856_v57 }
 0xd39   :  { %v7408_v36 = vpop.permute.xlu1 %2441 }
 0xd3b   :  { %3229 = vrot.lane.b32.xlu1 %v3214_v23, %s5638_s20 }
 0xd3e   :  { %v7415_v32 = vpop.permute.xlu1 %2183 }
 0xd3f   :  { %3233 = vrot.lane.b32.xlu1 %v3216_v58, %s5638_s20 }
 0xd43   :  { %3477 = vrot.lane.b32.xlu1 %v3461_v14, %s5637_s19  ;;  %v7421_v38 = vpop.permute.xlu1 %2231  ;;  %v7435_v14 = vpop.permute.xlu0 %1990 }
 0xd44   :  { %11052 = vst [vmem:[#allocation80_spill] sm:$0xff] %v7435_v14  ;;  %v1722_v14 = vmul.f32 %v7141_v56, %v7101_v5 }
 0xd47   :  { %3715 = vrot.lane.b32.xlu1 %v3705_v22, %s5636_s18  ;;  %v2093_v22 = vmul.f32 %v7438_v54, %v7403_v46  ;;  %v7442_v45 = vpop.permute.xlu0 %1994 }
 0xd48   :  { %v7426_v23 = vpop.permute.xlu1 %2537  ;;  %11053 = vst [vmem:[#allocation24_spill] sm:$0xff] %v7442_v45 }
 0xd4b   :  { %3959 = vrot.lane.b32.xlu1 %v3943_v15, %s5635_s17  ;;  %v1760_v15 = vsel %vm378_vm5, %v7127_v48, %v7131_v2  ;;  %v7457_v45 = vpop.permute.xlu0 %2135 }
 0xd4c   :  { %v1770_v12 = vadd.f32 %v1760_v15, %v1722_v14  ;;  %v2449_v14 = vmul.f32 %v6864_v29, %v7408_v36 }
 0xd4d   :  { %v7431_v58 = vpop.permute.xlu1 %2585 }
 0xd4e   :  { %v4594_v25 = vmul.f32 %v7376_v28, %v7431_v58 }
 0xd4f   :  { %4205 = vrot.lane.b32.xlu1 %v4189_v40, %s5634_s2  ;;  %v1808_v40 = vsel %vm427_vm6, %v7175_v55, %v7177_v9  ;;  %v2190_v9 = vmul.f32 %v6901_v30, %v7415_v32 }
 0xd50   :  { %v1818_v48 = vadd.f32 %v1808_v40, %v1770_v12 }
 0xd52   :  { %v7444_v52 = vpop.permute.xlu1 %2327  ;;  %v1866_v2 = vadd.f32 %v7211_v34, %v1818_v48  ;;  %v11057_v48 = vld [vmem:[#allocation46_spill] sm:$0xff] }
 0xd53   :  { %2108 = vrot.lane.b32.xlu1 %v2093_v22, %s5634_s2  ;;  %v2143_v22 = vmul.f32 %v6864_v29, %v7457_v45  ;;  %v11059_v29 = vld [vmem:[#allocation106_spill] sm:$0xff] }
 0xd54   :  { %v1914_v55 = vadd.f32 %v7247_v18, %v1866_v2  ;;  %v2447_v18 = vmul.f32 %v7438_v54, %v7408_v36 }
 0xd56   :  { %v1962_v15 = vadd.f32 %v7285_v13, %v1914_v55  ;;  %v3500_v55 = vmul.f32 %v7376_v28, %v11059_v29  ;;  %v3984_v13 = vmul.f32 %v7382_v44, %v7195_v53 }
 0xd57   :  { %4203 = vrot.lane.b32.xlu1 %v4188_v10, %s5634_s2  ;;  %v7460_v47 = vpop.permute.xlu1 %2681 }
 0xd58   :  { %v2010_v12 = vadd.f32 %v7399_v31, %v1962_v15  ;;  %v3737_v31 = vmul.f32 %v7345_v0, %v6887_v4 }
 0xd5b   :  { %2160 = vrot.lane.b32.xlu1 %v2143_v22, %s5635_s17  ;;  %v7466_v5 = vpop.permute.xlu1 %1996  ;;  %v3255_v22 = vmul.f32 %v7345_v0, %v11057_v48 }
 0xd5c   :  { %11054 = vst [vmem:[#allocation85_spill] sm:$0xff] %v7466_v5 }
 0xd5f   :  { %2466 = vrot.lane.b32.xlu1 %v2449_v14, %s5634_s2  ;;  %v7473_v10 = vpop.permute.xlu1 %5546  ;;  %v3055_v14 = vmul.f32 %v7376_v28, %v11040_v62 }
 0xd60   :  { %11055 = vst [vmem:[#allocation27_spill] sm:$0xff] %v7473_v10  ;;  %v7477_v40 = vunpack.i.l.bf16 %v7473_v10  ;;  %v4102_v10 = vmul.f32 %v7376_v28, %v7308_v41 }
 0xd62   :  { %11056 = vst [vmem:[#allocation90_spill] sm:$0xff] %v7477_v40  ;;  %v2027_v34 = vmul.f32 %v7477_v40, %v2010_v12  ;;  %v3502_v12 = vmul.f32 %v7382_v44, %v11059_v29  ;;  %v7652_v40 = vld [vmem:[#allocation2 + $0x38] sm:$0x3f] }
 0xd63   :  { %3271 = vrot.lane.b32.xlu1 %v3255_v22, %s5639_s21  ;;  %v7483_v2 = vpop.permute.xlu1 %2073  ;;  %v3054_v22 = vmul.f32 %v7360_v42, %v11040_v62  ;;  %v3982_v62 = vmul.f32 %v7376_v28, %v7195_v53 }
 0xd64   :  { %11058 = vst [vmem:[#allocation29_spill] sm:$0xff] %v7483_v2  ;;  %2039 = vrot.lane.b32.xlu0 %v2027_v34, %s5682_s16  ;;  %v3777_v2 = vmul.f32 %v7345_v0, %v6927_v60 }
 0xd67   :  { %3515 = vrot.lane.b32.xlu1 %v3500_v55, %s5638_s20  ;;  %v7491_v15 = vpop.permute.xlu1 %3073  ;;  %v3095_v55 = vmul.f32 %v7376_v28, %v11041_v3 }
 0xd68   :  { %3071 = vrot.lane.b32.xlu0 %v3055_v14, %s5634_s2 }
 0xd6b   :  { %3519 = vrot.lane.b32.xlu1 %v3502_v12, %s5638_s20  ;;  %v7499_v34 = vpop.permute.xlu1 %2427  ;;  %v3341_v12 = vmul.f32 %v7376_v28, %v11043_v39  ;;  %v4230_v39 = vmul.f32 %v7345_v0, %v7457_v45 }
 0xd6c   :  { %11060 = vst [vmem:[#allocation98_spill] sm:$0xff] %v7499_v34  ;;  %3069 = vrot.lane.b32.xlu0 %v3054_v22, %s5634_s2 }
 0xd6f   :  { %3753 = vrot.lane.b32.xlu1 %v3737_v31, %s5637_s19  ;;  %v7507_v14 = vpop.permute.xlu1 %3113  ;;  %v3094_v31 = vmul.f32 %v7360_v42, %v11041_v3  ;;  %v4476_v3 = vmul.f32 %v7345_v0, %v7408_v36 }
 0xd70   :  { %3111 = vrot.lane.b32.xlu0 %v3095_v55, %s5635_s17 }
 0xd73   :  { %3997 = vrot.lane.b32.xlu1 %v3982_v62, %s5636_s18  ;;  %v7515_v22 = vpop.permute.xlu1 %3359  ;;  %v3135_v62 = vmul.f32 %v7376_v28, %v11044_v35 }
 0xd74   :  { %3357 = vrot.lane.b32.xlu0 %v3341_v12, %s5634_s2 }
 0xd77   :  { %4001 = vrot.lane.b32.xlu1 %v3984_v13, %s5636_s18  ;;  %v7523_v55 = vpop.permute.xlu1 %3355  ;;  %v3381_v13 = vmul.f32 %v7376_v28, %v11045_v16  ;;  %v4474_v16 = vmul.f32 %v7360_v42, %v7408_v36 }
 0xd78   :  { %3109 = vrot.lane.b32.xlu0 %v3094_v31, %s5635_s17 }
 0xd7b   :  { %4247 = vrot.lane.b32.xlu1 %v4230_v39, %s5635_s17  ;;  %v7531_v12 = vpop.permute.xlu1 %3153  ;;  %v3627_v39 = vmul.f32 %v7376_v28, %v6781_v26 }
 0xd7c   :  { %3151 = vrot.lane.b32.xlu0 %v3135_v62, %s5636_s18 }
 0xd7f   :  { %4493 = vrot.lane.b32.xlu1 %v4476_v3, %s5634_s2  ;;  %v7539_v31 = vpop.permute.xlu1 %3399  ;;  %v3134_v3 = vmul.f32 %v7360_v42, %v11044_v35  ;;  %v7568_v35 = vld [vmem:[#allocation2 + $0x28] sm:$0x3f] }
 0xd80   :  { %3397 = vrot.lane.b32.xlu0 %v3381_v13, %s5635_s17 }
 0xd83   :  { %2462 = vrot.lane.b32.xlu1 %v2447_v18, %s5634_s2  ;;  %v7547_v62 = vpop.permute.xlu1 %3645  ;;  %v7560_v18 = vpop.permute.xlu0 %2489 }
 0xd84   :  { %3643 = vrot.lane.b32.xlu0 %v3627_v39, %s5634_s2  ;;  %v3626_v39 = vmul.f32 %v7360_v42, %v6781_v26  ;;  %v3540_v26 = vmul.f32 %v7376_v28, %v6535_v6 }
 0xd87   :  { %4489 = vrot.lane.b32.xlu1 %v4474_v16, %s5634_s2  ;;  %v7555_v13 = vpop.permute.xlu1 %3395  ;;  %v2496_v16 = vmul.f32 %v7568_v35, %v7560_v18 }
 0xd88   :  { %3149 = vrot.lane.b32.xlu0 %v3134_v3, %s5636_s18  ;;  %v3175_v3 = vmul.f32 %v7345_v0, %v11046_v50  ;;  %v3542_v50 = vmul.f32 %v7382_v44, %v6535_v6 }
 0xd8b   :  { %2206 = vrot.lane.b32.xlu1 %v2190_v9, %s5636_s18  ;;  %v7565_v34 = vpop.permute.xlu1 %3189  ;;  %v3421_v9 = vmul.f32 %v7376_v28, %v11047_v49 }
 0xd8c   :  { %11061 = vst [vmem:[#allocation46_spill] sm:$0xff] %v7565_v34  ;;  %3641 = vrot.lane.b32.xlu0 %v3626_v39, %s5634_s2 }
 0xd8f   :  { %2512 = vrot.lane.b32.xlu1 %v2496_v16, %s5635_s17  ;;  %v7575_v30 = vpop.permute.xlu1 %3193  ;;  %v3667_v16 = vmul.f32 %v7376_v28, %v6824_v27  ;;  %v3420_v27 = vmul.f32 %v7360_v42, %v11047_v49  ;;  %v4269_v49 = vmul.f32 %v7345_v0, %v7415_v32 }
 0xd90   :  { %3191 = vrot.lane.b32.xlu0 %v3175_v3, %s5637_s19 }
 0xd93   :  { %3555 = vrot.lane.b32.xlu1 %v3540_v26, %s5639_s21  ;;  %v7583_v39 = vpop.permute.xlu1 %3439  ;;  %v3903_v26 = vmul.f32 %v7376_v28, %v7109_v24 }
 0xd94   :  { %3437 = vrot.lane.b32.xlu0 %v3421_v9, %s5636_s18  ;;  %v4022_v9 = vmul.f32 %v7376_v28, %v7234_v21 }
 0xd97   :  { %3559 = vrot.lane.b32.xlu1 %v3542_v50, %s5639_s21  ;;  %v7592_v3 = vpop.permute.xlu1 %3685 }
 0xd98   :  { %3683 = vrot.lane.b32.xlu0 %v3667_v16, %s5635_s17  ;;  %v4024_v16 = vmul.f32 %v7382_v44, %v7234_v21 }
 0xd9b   :  { %3793 = vrot.lane.b32.xlu1 %v3777_v2, %s5638_s20  ;;  %v7604_v50 = vpop.permute.xlu1 %3921  ;;  %v3902_v2 = vmul.f32 %v7360_v42, %v7109_v24  ;;  %v4515_v24 = vmul.f32 %v7376_v28, %v7560_v18 }
 0xd9c   :  { %3919 = vrot.lane.b32.xlu0 %v3903_v26, %s5634_s2  ;;  %11062 = vst [vmem:[#allocation106_spill] sm:$0xff] %v7604_v50  ;;  %v7618_v50 = vld [vmem:[#allocation2 + $0x30] sm:$0x3f] }
 0xd9d   :  { %11064 = vst [vmem:[#allocation151_spill] sm:$0xff] %v7618_v50 }
 0xd9f   :  { %4037 = vrot.lane.b32.xlu1 %v4022_v9, %s5637_s19  ;;  %v7614_v26 = vpop.permute.xlu1 %3681  ;;  %v2095_v9 = vmul.f32 %v7618_v50, %v7403_v46 }
 0xda0   :  { %3435 = vrot.lane.b32.xlu0 %v3420_v27, %s5636_s18  ;;  %11063 = vst [vmem:[#allocation150_spill] sm:$0xff] %v7614_v26 }
 0xda3   :  { %4041 = vrot.lane.b32.xlu1 %v4024_v16, %s5637_s19  ;;  %v3215_v16 = vmul.f32 %v7345_v0, %v11050_v17 }
 0xda4   :  { %3917 = vrot.lane.b32.xlu0 %v3902_v2, %s5634_s2  ;;  %v2495_v2 = vmul.f32 %v7438_v54, %v7560_v18 }
 0xda7   :  { %4285 = vrot.lane.b32.xlu1 %v4269_v49, %s5636_s18  ;;  %v3460_v49 = vmul.f32 %v7376_v28, %v11051_v1 }
 0xda8   :  { %2112 = vrot.lane.b32.xlu0 %v2095_v9, %s5634_s2 }
 0xda9   :  { %v7624_v27 = vpop.permute.xlu1 %2110 }
 0xdaa   :  { %11065 = vst [vmem:[#allocation152_spill] sm:$0xff] %v7624_v27  ;;  %v7642_v27 = vld [vmem:[#allocation2 + $0x28] sm:$0x3f] }
 0xdab   :  { %4531 = vrot.lane.b32.xlu1 %v4515_v24, %s5635_s17  ;;  %v2237_v17 = vmul.f32 %v7642_v27, %v7421_v38  ;;  %v3462_v24 = vmul.f32 %v7382_v44, %v11051_v1  ;;  %v7662_v1 = vld [vmem:[#allocation2 + $0x30] sm:$0x3f] }
 0xdac   :  { %3231 = vrot.lane.b32.xlu0 %v3215_v16, %s5638_s20 }
 0xdad   :  { %v7634_v26 = vpop.permute.xlu1 %3229 }
 0xdae   :  { %11066 = vst [vmem:[#allocation153_spill] sm:$0xff] %v7634_v26 }
 0xdaf   :  { %2510 = vrot.lane.b32.xlu1 %v2495_v2, %s5635_s17  ;;  %v2239_v2 = vmul.f32 %v7652_v40, %v7421_v38 }
 0xdb0   :  { %3475 = vrot.lane.b32.xlu0 %v3460_v49, %s5637_s19  ;;  %v3706_v49 = vmul.f32 %v7345_v0, %v6856_v57  ;;  %v11069_v57 = vld [vmem:[#allocation103_spill] sm:$0xff] }
 0xdb1   :  { %v7640_v9 = vpop.permute.xlu1 %3233  ;;  %v3818_v34 = vmul.f32 %v7382_v44, %v11069_v57 }
 0xdb3   :  { %2252 = vrot.lane.b32.xlu1 %v2237_v17, %s5637_s19  ;;  %v2544_v17 = vmul.f32 %v7662_v1, %v7426_v23 }
 0xdb4   :  { %3479 = vrot.lane.b32.xlu0 %v3462_v24, %s5637_s19  ;;  %v3944_v24 = vmul.f32 %v7345_v0, %v7152_v59 }
 0xdb5   :  { %v7650_v16 = vpop.permute.xlu1 %3477 }
 0xdb7   :  { %2256 = vrot.lane.b32.xlu1 %v2239_v2, %s5637_s19  ;;  %v3816_v2 = vmul.f32 %v7376_v28, %v11069_v57 }
 0xdb8   :  { %3717 = vrot.lane.b32.xlu0 %v3706_v49, %s5636_s18  ;;  %v4190_v49 = vmul.f32 %v7345_v0, %v7403_v46  ;;  %v4063_v46 = vmul.f32 %v7345_v0, %v7267_v11 }
 0xdb9   :  { %v7660_v26 = vpop.permute.xlu1 %3715 }
 0xdba   :  { %11067 = vst [vmem:[#allocation154_spill] sm:$0xff] %v7660_v26 }
 0xdbb   :  { %2560 = vrot.lane.b32.xlu1 %v2544_v17, %s5636_s18  ;;  %v3942_v17 = vmul.f32 %v7360_v42, %v7152_v59  ;;  %v4308_v59 = vmul.f32 %v7376_v28, %v7421_v38 }
 0xdbc   :  { %3961 = vrot.lane.b32.xlu0 %v3944_v24, %s5635_s17 }
 0xdbd   :  { %v7670_v5 = vpop.permute.xlu1 %3959 }
 0xdbe   :  { %11068 = vst [vmem:[#allocation155_spill] sm:$0xff] %v7670_v5 }
 0xdbf   :  { %3831 = vrot.lane.b32.xlu1 %v3816_v2, %s5639_s21  ;;  %v2142_v2 = vmul.f32 %v7568_v35, %v7457_v45 }
 0xdc0   :  { %4207 = vrot.lane.b32.xlu0 %v4190_v49, %s5634_s2  ;;  %v7693_v49 = vpop.permute.xlu0 %2279 }
 0xdc1   :  { %v7678_v26 = vpop.permute.xlu1 %4205 }
 0xdc2   :  { %11070 = vst [vmem:[#allocation103_spill] sm:$0xff] %v7678_v26 }
 0xdc3   :  { %3835 = vrot.lane.b32.xlu1 %v3818_v34, %s5639_s21  ;;  %v2448_v34 = vmul.f32 %v7568_v35, %v7408_v36 }
 0xdc4   :  { %3957 = vrot.lane.b32.xlu0 %v3942_v17, %s5635_s17 }
 0xdc5   :  { %v7686_v24 = vpop.permute.xlu1 %2108 }
 0xdc6   :  { %11071 = vst [vmem:[#allocation156_spill] sm:$0xff] %v7686_v24  ;;  %v7708_v24 = vpop.permute.xlu0 %2633 }
 0xdc7   :  { %4079 = vrot.lane.b32.xlu1 %v4063_v46, %s5638_s20  ;;  %v4310_v46 = vmul.f32 %v7382_v44, %v7421_v38  ;;  %v4635_v19 = vmul.f32 %v7345_v0, %v7708_v24 }
 0xdc8   :  { %2158 = vrot.lane.b32.xlu0 %v2142_v2, %s5635_s17  ;;  %v3254_v2 = vmul.f32 %v7376_v28, %v11057_v48 }
 0xdc9   :  { %v7696_v26 = vpop.permute.xlu1 %4203 }
 0xdca   :  { %11072 = vst [vmem:[#allocation157_spill] sm:$0xff] %v7696_v26 }
 0xdcb   :  { %4323 = vrot.lane.b32.xlu1 %v4308_v59, %s5637_s19  ;;  %v4555_v59 = vmul.f32 %v7345_v0, %v7426_v23 }
 0xdcc   :  { %2464 = vrot.lane.b32.xlu0 %v2448_v34, %s5634_s2  ;;  %v7718_v34 = vpop.permute.xlu0 %1998 }
 0xdcd   :  { %v7704_v17 = vpop.permute.xlu1 %2160  ;;  %11075 = vst [vmem:[#allocation160_spill] sm:$0xff] %v7718_v34 }
 0xdce   :  { %11073 = vst [vmem:[#allocation158_spill] sm:$0xff] %v7704_v17  ;;  %v3256_v17 = vmul.f32 %v7382_v44, %v11057_v48  ;;  %v2287_v48 = vmul.f32 %v7652_v40, %v7693_v49 }
 0xdcf   :  { %4327 = vrot.lane.b32.xlu1 %v4310_v46, %s5637_s19  ;;  %v2285_v46 = vmul.f32 %v7642_v27, %v7693_v49 }
 0xdd0   :  { %3269 = vrot.lane.b32.xlu0 %v3254_v2, %s5639_s21 }
 0xdd1   :  { %v7714_v26 = vpop.permute.xlu1 %2466 }
 0xdd2   :  { %11074 = vst [vmem:[#allocation159_spill] sm:$0xff] %v7714_v26  ;;  %v3501_v26 = vmul.f32 %v7345_v0, %v11059_v29  ;;  %v2592_v29 = vmul.f32 %v7662_v1, %v7431_v58 }
 0xdd3   :  { %4571 = vrot.lane.b32.xlu1 %v4555_v59, %s5636_s18  ;;  %v3736_v59 = vmul.f32 %v7376_v28, %v6887_v4 }
 0xdd4   :  { %3273 = vrot.lane.b32.xlu0 %v3256_v17, %s5639_s21 }
 0xdd5   :  { %v7724_v5 = vpop.permute.xlu1 %3271 }
 0xdd6   :  { %v7728_v2 = vpop.permute.xlu0 %2039 }
 0xdd7   :  { %11076 = vst [vmem:[#allocation161_spill] sm:$0xff] %v7728_v2  ;;  %2300 = vrot.lane.b32.xlu1 %v2285_v46, %s5638_s20  ;;  %v3738_v2 = vmul.f32 %v7382_v44, %v6887_v4  ;;  %v4104_v4 = vmul.f32 %v7382_v44, %v7308_v41 }
 0xdd8   :  { %3517 = vrot.lane.b32.xlu0 %v3501_v26, %s5638_s20 }
 0xdd9   :  { %v7734_v34 = vpop.permute.xlu1 %3515 }
 0xdda   :  { %v7738_v17 = vpop.permute.xlu0 %3071 }
 0xddb   :  { %2304 = vrot.lane.b32.xlu1 %v2287_v48, %s5638_s20 }
 0xddc   :  { %3751 = vrot.lane.b32.xlu0 %v3736_v59, %s5637_s19  ;;  %v3983_v59 = vmul.f32 %v7345_v0, %v7195_v53  ;;  %v4349_v53 = vmul.f32 %v7345_v0, %v7693_v49 }
 0xddd   :  { %v7746_v46 = vpop.permute.xlu1 %3519 }
 0xdde   :  { %11077 = vst [vmem:[#allocation162_spill] sm:$0xff] %v7746_v46  ;;  %v7748_v26 = vpop.permute.xlu0 %3069 }
 0xddf   :  { %2608 = vrot.lane.b32.xlu1 %v2592_v29, %s5637_s19 }
 0xde0   :  { %3755 = vrot.lane.b32.xlu0 %v3738_v2, %s5637_s19  ;;  %v4229_v2 = vmul.f32 %v7376_v28, %v7457_v45 }
 0xde1   :  { %v7761_v46 = vpop.permute.xlu1 %3753 }
 0xde2   :  { %v7756_v48 = vpop.permute.xlu0 %3111 }
 0xde3   :  { %11078 = vst [vmem:[#allocation163_spill] sm:$0xff] %v7756_v48  ;;  %4117 = vrot.lane.b32.xlu1 %v4102_v10, %s5639_s21 }
 0xde4   :  { %3999 = vrot.lane.b32.xlu0 %v3983_v59, %s5636_s18  ;;  %v4475_v59 = vmul.f32 %v7376_v28, %v7408_v36  ;;  %v4596_v36 = vmul.f32 %v7382_v44, %v7431_v58 }
 0xde5   :  { %v7774_v10 = vpop.permute.xlu1 %3997 }
 0xde6   :  { %v7766_v29 = vpop.permute.xlu0 %3357  ;;  %11079 = vst [vmem:[#allocation164_spill] sm:$0xff] %v7774_v10 }
 0xde7   :  { %4121 = vrot.lane.b32.xlu1 %v4104_v4, %s5639_s21 }
 0xde8   :  { %4245 = vrot.lane.b32.xlu0 %v4229_v2, %s5635_s17  ;;  %v2141_v2 = vmul.f32 %v7438_v54, %v7457_v45  ;;  %v2334_v54 = vmul.f32 %v7662_v1, %v7444_v52 }
 0xde9   :  { %v7789_v10 = vpop.permute.xlu1 %4001 }
 0xdea   :  { %v7776_v48 = vpop.permute.xlu0 %3109  ;;  %11082 = vst [vmem:[#allocation167_spill] sm:$0xff] %v7789_v10 }
 0xdeb   :  { %11080 = vst [vmem:[#allocation165_spill] sm:$0xff] %v7776_v48  ;;  %4365 = vrot.lane.b32.xlu1 %v4349_v53, %s5638_s20 }
 0xdec   :  { %4491 = vrot.lane.b32.xlu0 %v4475_v59, %s5634_s2  ;;  %v4228_v59 = vmul.f32 %v7360_v42, %v7457_v45  ;;  %v2639_v45 = vmul.f32 %v7642_v27, %v7708_v24 }
 0xdee   :  { %v7784_v4 = vpop.permute.xlu0 %3151 }
 0xdef   :  { %11081 = vst [vmem:[#allocation166_spill] sm:$0xff] %v7784_v4  ;;  %4609 = vrot.lane.b32.xlu1 %v4594_v25, %s5637_s19  ;;  %v7802_v25 = vpop.permute.xlu1 %4247 }
 0xdf0   :  { %2156 = vrot.lane.b32.xlu0 %v2141_v2, %s5635_s17  ;;  %11083 = vst [vmem:[#allocation168_spill] sm:$0xff] %v7802_v25  ;;  %v2189_v2 = vmul.f32 %v7642_v27, %v7415_v32 }
 0xdf2   :  { %v7794_v53 = vpop.permute.xlu0 %3397 }
 0xdf3   :  { %4613 = vrot.lane.b32.xlu1 %v4596_v36, %s5637_s19  ;;  %v7817_v25 = vpop.permute.xlu1 %4493 }
 0xdf4   :  { %4243 = vrot.lane.b32.xlu0 %v4228_v59, %s5635_s17  ;;  %v2191_v59 = vmul.f32 %v7652_v40, %v7415_v32  ;;  %11086 = vst [vmem:[#allocation171_spill] sm:$0xff] %v7817_v25 }
 0xdf6   :  { %v7804_v10 = vpop.permute.xlu0 %3643 }
 0xdf7   :  { %11084 = vst [vmem:[#allocation169_spill] sm:$0xff] %v7804_v10  ;;  %2350 = vrot.lane.b32.xlu1 %v2334_v54, %s5639_s21  ;;  %v2641_v10 = vmul.f32 %v7652_v40, %v7708_v24 }
 0xdf8   :  { %2204 = vrot.lane.b32.xlu0 %v2189_v2, %s5636_s18  ;;  %v2497_v2 = vmul.f32 %v7618_v50, %v7560_v18  ;;  %v4634_v50 = vmul.f32 %v7376_v28, %v7708_v24 }
 0xdfa   :  { %v7812_v36 = vpop.permute.xlu0 %3149 }
 0xdfb   :  { %11085 = vst [vmem:[#allocation170_spill] sm:$0xff] %v7812_v36  ;;  %2654 = vrot.lane.b32.xlu1 %v2639_v45, %s5638_s20  ;;  %v4389_v36 = vmul.f32 %v7345_v0, %v7444_v52  ;;  %v7830_v45 = vpop.permute.xlu1 %2462 }
 0xdfc   :  { %2208 = vrot.lane.b32.xlu0 %v2191_v59, %s5636_s18  ;;  %11088 = vst [vmem:[#allocation173_spill] sm:$0xff] %v7830_v45  ;;  %v3541_v59 = vmul.f32 %v7345_v0, %v6535_v6  ;;  %v4636_v6 = vmul.f32 %v7382_v44, %v7708_v24 }
 0xdfe   :  { %v7822_v54 = vpop.permute.xlu0 %3641 }
 0xdff   :  { %11087 = vst [vmem:[#allocation172_spill] sm:$0xff] %v7822_v54  ;;  %2658 = vrot.lane.b32.xlu1 %v2641_v10, %s5638_s20  ;;  %v7845_v45 = vpop.permute.xlu1 %4489  ;;  %v2687_v54 = vmul.f32 %v7642_v27, %v7460_v47 }
 0xe00   :  { %2514 = vrot.lane.b32.xlu0 %v2497_v2, %s5635_s17  ;;  %v3776_v2 = vmul.f32 %v7376_v28, %v6927_v60  ;;  %11090 = vst [vmem:[#allocation175_spill] sm:$0xff] %v7845_v45 }
 0xe02   :  { %v7832_v25 = vpop.permute.xlu0 %3191 }
 0xe03   :  { %11089 = vst [vmem:[#allocation174_spill] sm:$0xff] %v7832_v25  ;;  %4405 = vrot.lane.b32.xlu1 %v4389_v36, %s5639_s21 }
 0xe04   :  { %3557 = vrot.lane.b32.xlu0 %v3541_v59, %s5639_s21  ;;  %v3778_v59 = vmul.f32 %v7382_v44, %v6927_v60  ;;  %v2689_v60 = vmul.f32 %v7652_v40, %v7460_v47 }
 0xe06   :  { %v7840_v10 = vpop.permute.xlu0 %3437 }
 0xe07   :  { %4649 = vrot.lane.b32.xlu1 %v4634_v50, %s5638_s20  ;;  %v7858_v50 = vpop.permute.xlu1 %2206 }
 0xe08   :  { %3791 = vrot.lane.b32.xlu0 %v3776_v2, %s5638_s20  ;;  %11092 = vst [vmem:[#allocation177_spill] sm:$0xff] %v7858_v50  ;;  %v4023_v2 = vmul.f32 %v7345_v0, %v7234_v21  ;;  %v5358_v21 = vsel %vm308_vm2, 1.0, %v7141_v56  ;;  %vm1354_vm2 = vcmask 1031168  }
 0xe0a   :  { %v7850_v36 = vpop.permute.xlu0 %3683 }
 0xe0b   :  { %11091 = vst [vmem:[#allocation176_spill] sm:$0xff] %v7850_v36  ;;  %4653 = vrot.lane.b32.xlu1 %v4636_v6, %s5638_s20  ;;  %v7875_v50 = vpop.permute.xlu1 %2512  ;;  %v4270_v36 = vmul.f32 %v7382_v44, %v7415_v32 }
 0xe0c   :  { %3795 = vrot.lane.b32.xlu0 %v3778_v59, %s5638_s20  ;;  %v4268_v59 = vmul.f32 %v7376_v28, %v7415_v32  ;;  %11094 = vst [vmem:[#allocation179_spill] sm:$0xff] %v7875_v50  ;;  %v11097_v50 = vld [vmem:[#allocation5_spill] sm:$0xff] }
 0xe0e   :  { %v7860_v45 = vpop.permute.xlu0 %3919 }
 0xe0f   :  { %11093 = vst [vmem:[#allocation178_spill] sm:$0xff] %v7860_v45  ;;  %2702 = vrot.lane.b32.xlu1 %v2687_v54, %s5639_s21  ;;  %v5359_v54 = vsel %vm309_vm3, 1.0, %v7141_v56  ;;  %v4516_v56 = vmul.f32 %v7345_v0, %v7560_v18  ;;  %vm1697_vm3 = vcmask 1022976  }
 0xe10   :  { %4039 = vrot.lane.b32.xlu0 %v4023_v2, %s5637_s19  ;;  %v4675_v2 = vmul.f32 %v7345_v0, %v7460_v47  ;;  %v5557_v4 = vpack.i.bf16 %v5359_v54, %v5358_v21  ;;  %v4514_v21 = vmul.f32 %v7360_v42, %v7560_v18  ;;  %v11099_v54 = vld [vmem:[#allocation8_spill] sm:$0xff] }
 0xe11   :  { %v2840_v18 = vmul.f32 %v7360_v42, %v11099_v54 }
 0xe12   :  { %v7870_v6 = vpop.permute.xlu0 %3435 }
 0xe13   :  { %2706 = vrot.lane.b32.xlu1 %v2689_v60, %s5639_s21  ;;  %v7888_v60 = vpop.permute.xlu1 %3555 }
 0xe14   :  { %4283 = vrot.lane.b32.xlu0 %v4268_v59, %s5636_s18 }
 0xe16   :  { %v7882_v45 = vpop.permute.xlu0 %3917 }
 0xe17   :  { %11095 = vst [vmem:[#allocation180_spill] sm:$0xff] %v7882_v45  ;;  %4691 = vrot.lane.b32.xlu1 %v4675_v2, %s5639_s21  ;;  %v2802_v45 = vmul.f32 %v7345_v0, %v11097_v50  ;;  %v2841_v2 = vmul.f32 %v7376_v28, %v11099_v54 }
 0xe18   :  { %4287 = vrot.lane.b32.xlu0 %v4270_v36, %s5636_s18  ;;  %v7902_v36 = vpop.permute.xlu1 %3559 }
 0xe19   :  { %11098 = vst [vmem:[#allocation5_spill] sm:$0xff] %v7902_v36  ;;  %v11102_v36 = vld [vmem:[#allocation9_spill] sm:$0xff] }
 0xe1a   :  { %v7890_v59 = vpop.permute.xlu0 %2112  ;;  %v2882_v48 = vmul.f32 %v7345_v0, %v11102_v36 }
 0xe1b   :  { %11096 = vst [vmem:[#allocation181_spill] sm:$0xff] %v7890_v59  ;;  %5558 = vrot.lane.b32.xlu1 %v5557_v4, %s5683_s1 }
 0xe1c   :  { %4533 = vrot.lane.b32.xlu0 %v4516_v56, %s5635_s17  ;;  %v2238_v56 = vmul.f32 %v7662_v1, %v7421_v38 }
 0xe1e   :  { %v7897_v32 = vpop.permute.xlu0 %3231 }
 0xe1f   :  { %2819 = vrot.lane.b32.xlu1 %v2802_v45, %s5634_s2  ;;  %v7915_v45 = vpop.permute.xlu1 %3793 }
 0xe20   :  { %4529 = vrot.lane.b32.xlu0 %v4514_v21, %s5635_s17  ;;  %11100 = vst [vmem:[#allocation8_spill] sm:$0xff] %v7915_v45  ;;  %v2543_v21 = vmul.f32 %v7642_v27, %v7426_v23 }
 0xe22   :  { %v7907_v4 = vpop.permute.xlu0 %3475 }
 0xe23   :  { %2857 = vrot.lane.b32.xlu1 %v2841_v2, %s5635_s17  ;;  %v7930_v45 = vpop.permute.xlu1 %4037 }
 0xe24   :  { %2254 = vrot.lane.b32.xlu0 %v2238_v56, %s5637_s19  ;;  %v2545_v56 = vmul.f32 %v7652_v40, %v7426_v23  ;;  %11104 = vst [vmem:[#allocation183_spill] sm:$0xff] %v7930_v45 }
 0xe26   :  { %v7917_v59 = vpop.permute.xlu0 %3479 }
 0xe27   :  { %11101 = vst [vmem:[#allocation182_spill] sm:$0xff] %v7917_v59  ;;  %2855 = vrot.lane.b32.xlu1 %v2840_v18, %s5635_s17  ;;  %v11105_v59 = vld [vmem:[#allocation12_spill] sm:$0xff] }
 0xe28   :  { %2558 = vrot.lane.b32.xlu0 %v2543_v21, %s5636_s18  ;;  %v2922_v33 = vmul.f32 %v7376_v28, %v11105_v59  ;;  %v3817_v21 = vmul.f32 %v7345_v0, %v11069_v57 }
 0xe2a   :  { %v7925_v2 = vpop.permute.xlu0 %3717 }
 0xe2b   :  { %11103 = vst [vmem:[#allocation9_spill] sm:$0xff] %v7925_v2  ;;  %2899 = vrot.lane.b32.xlu1 %v2882_v48, %s5636_s18  ;;  %v2924_v2 = vmul.f32 %v7382_v44, %v11105_v59  ;;  %v7943_v48 = vpop.permute.xlu1 %4041 }
 0xe2c   :  { %2562 = vrot.lane.b32.xlu0 %v2545_v56, %s5636_s18  ;;  %11107 = vst [vmem:[#allocation185_spill] sm:$0xff] %v7943_v48  ;;  %v4062_v56 = vmul.f32 %v7376_v28, %v7267_v11 }
 0xe2e   :  { %v7935_v18 = vpop.permute.xlu0 %3961 }
 0xe2f   :  { %11106 = vst [vmem:[#allocation184_spill] sm:$0xff] %v7935_v18  ;;  %2937 = vrot.lane.b32.xlu1 %v2922_v33, %s5637_s19  ;;  %v11109_v18 = vld [vmem:[#allocation13_spill] sm:$0xff]  ;;  %v7958_v48 = vpop.permute.xlu1 %4285 }
 0xe30   :  { %3833 = vrot.lane.b32.xlu0 %v3817_v21, %s5639_s21  ;;  %v2963_v57 = vmul.f32 %v7345_v0, %v11109_v18  ;;  %v4064_v21 = vmul.f32 %v7382_v44, %v7267_v11  ;;  %11111 = vst [vmem:[#allocation188_spill] sm:$0xff] %v7958_v48 }
 0xe32   :  { %v7945_v45 = vpop.permute.xlu0 %4207 }
 0xe33   :  { %11108 = vst [vmem:[#allocation186_spill] sm:$0xff] %v7945_v45  ;;  %2941 = vrot.lane.b32.xlu1 %v2924_v2, %s5637_s19  ;;  %v11112_v45 = vld [vmem:[#allocation16_spill] sm:$0xff] }
 0xe34   :  { %4077 = vrot.lane.b32.xlu0 %v4062_v56, %s5638_s20  ;;  %v3002_v59 = vmul.f32 %v7376_v28, %v11112_v45  ;;  %v4309_v56 = vmul.f32 %v7345_v0, %v7421_v38  ;;  %v3004_v11 = vmul.f32 %v7382_v44, %v11112_v45 }
 0xe36   :  { %v7953_v33 = vpop.permute.xlu0 %3957 }
 0xe37   :  { %11110 = vst [vmem:[#allocation187_spill] sm:$0xff] %v7953_v33  ;;  %2979 = vrot.lane.b32.xlu1 %v2963_v57, %s5638_s20  ;;  %v11114_v33 = vld [vmem:[#allocation19_spill] sm:$0xff] }
 0xe38   :  { %4081 = vrot.lane.b32.xlu0 %v4064_v21, %s5638_s20  ;;  %v3050_v18 = vmul.f32 %v7345_v0, %v11114_v33  ;;  %v7974_v21 = vpop.permute.xlu1 %4531 }
 0xe39   :  { %11115 = vst [vmem:[#allocation19_spill] sm:$0xff] %v7974_v21  ;;  %v4556_v21 = vmul.f32 %v7382_v44, %v7426_v23 }
 0xe3a   :  { %v7963_v2 = vpop.permute.xlu0 %2158  ;;  %v3090_v57 = vadd.f32 %v7491_v15, %v3050_v18 }
 0xe3b   :  { %11113 = vst [vmem:[#allocation189_spill] sm:$0xff] %v7963_v2  ;;  %3017 = vrot.lane.b32.xlu1 %v3002_v59, %s5639_s21  ;;  %v4554_v2 = vmul.f32 %v7376_v28, %v7426_v23  ;;  %v3198_v59 = vsel %vm531_vm8, %v7832_v25, %v7575_v30  ;;  %v2286_v30 = vmul.f32 %v7662_v1, %v7693_v49  ;;  %v11120_v25 = vld [vmem:[#allocation113_spill] sm:$0xff] }
 0xe3c   :  { %4325 = vrot.lane.b32.xlu0 %v4309_v56, %s5637_s19  ;;  %v3130_v38 = vadd.f32 %v7507_v14, %v3090_v57  ;;  %v7994_v45 = vpop.permute.xlu1 %2510 }
 0xe3d   :  { %11118 = vst [vmem:[#allocation192_spill] sm:$0xff] %v7994_v45  ;;  %v3404_v45 = vsel %vm427_vm6, %v7794_v53, %v7539_v31 }
 0xe3e   :  { %v7976_v48 = vpop.permute.xlu0 %2464  ;;  %v3170_v56 = vadd.f32 %v7531_v12, %v3130_v38 }
 0xe3f   :  { %11116 = vst [vmem:[#allocation190_spill] sm:$0xff] %v7976_v48  ;;  %3021 = vrot.lane.b32.xlu1 %v3004_v11, %s5639_s21  ;;  %v3238_v48 = vsel %vm580_vm11, %v7897_v32, %v7640_v9 }
 0xe40   :  { %4569 = vrot.lane.b32.xlu0 %v4554_v2, %s5636_s18  ;;  %v3210_v11 = vadd.f32 %v3198_v59, %v3170_v56  ;;  %v8002_v23 = vpop.permute.xlu1 %2252  ;;  %v2593_v56 = vmul.f32 %v7652_v40, %v7431_v58 }
 0xe41   :  { %11119 = vst [vmem:[#allocation193_spill] sm:$0xff] %v8002_v23 }
 0xe42   :  { %v7987_v18 = vpop.permute.xlu0 %3269  ;;  %v3250_v2 = vadd.f32 %v3238_v48, %v3210_v11 }
 0xe43   :  { %11117 = vst [vmem:[#allocation191_spill] sm:$0xff] %v7987_v18 }
 0xe44   :  { %4573 = vrot.lane.b32.xlu0 %v4556_v21, %s5636_s18  ;;  %v2591_v21 = vmul.f32 %v7642_v27, %v7431_v58  ;;  %v8015_v11 = vpop.permute.xlu1 %2256 }
 0xe45   :  { %11121 = vst [vmem:[#allocation194_spill] sm:$0xff] %v8015_v11 }
 0xe46   :  { %v3274_v57 = vpop.permute.xlu0 %3273 }
 0xe47   :  { %v3278_v38 = vsel %vm629_vm12, %v7724_v5, %v3274_v57 }
 0xe48   :  { %v3290_v18 = vadd.f32 %v3278_v38, %v3250_v2  ;;  %2302 = vrot.lane.b32.xlu0 %v2286_v30, %s5638_s20  ;;  %v8023_v57 = vpop.permute.xlu1 %2560  ;;  %v4348_v38 = vmul.f32 %v7376_v28, %v7693_v49 }
 0xe49   :  { %11122 = vst [vmem:[#allocation195_spill] sm:$0xff] %v8023_v57 }
 0xe4a   :  { %v3296_v9 = vmul.f32 %v11120_v25, %v3290_v18  ;;  %v8005_v59 = vpop.permute.xlu0 %3517  ;;  %v4103_v18 = vmul.f32 %v7345_v0, %v7308_v41 }
 0xe4c   :  { %2606 = vrot.lane.b32.xlu0 %v2591_v21, %s5637_s19  ;;  %3313 = vrot.lane.b32.xlu1 %v3296_v9, %s5649_s28  ;;  %v4350_v21 = vmul.f32 %v7382_v44, %v7693_v49 }
 0xe4e   :  { %v8011_v48 = vpop.permute.xlu0 %3751 }
 0xe50   :  { %2610 = vrot.lane.b32.xlu0 %v2593_v56, %s5637_s19  ;;  %v8034_v56 = vpop.permute.xlu1 %3831 }
 0xe52   :  { %v8018_v2 = vpop.permute.xlu0 %3755 }
 0xe54   :  { %4119 = vrot.lane.b32.xlu0 %v4103_v18, %s5639_s21  ;;  %v4595_v18 = vmul.f32 %v7345_v0, %v7431_v58  ;;  %v8042_v25 = vpop.permute.xlu1 %3835  ;;  %v3363_v58 = vsel %vm378_vm5, %v7523_v55, %v7766_v29 }
 0xe56   :  { %v8025_v30 = vpop.permute.xlu0 %3999 }
 0xe58   :  { %4363 = vrot.lane.b32.xlu0 %v4348_v38, %s5638_s20  ;;  %v2333_v38 = vmul.f32 %v7642_v27, %v7444_v52  ;;  %v8053_v11 = vpop.permute.xlu1 %4079  ;;  %v2640_v27 = vmul.f32 %v7662_v1, %v7708_v24 }
 0xe5a   :  { %v8030_v9 = vpop.permute.xlu0 %4245 }
 0xe5b   :  { %11123 = vst [vmem:[#allocation196_spill] sm:$0xff] %v8030_v9 }
 0xe5c   :  { %4367 = vrot.lane.b32.xlu0 %v4350_v21, %s5638_s20  ;;  %v2335_v21 = vmul.f32 %v7652_v40, %v7444_v52  ;;  %v3364_v40 = vsel %vm378_vm5, %v7766_v29, %v7515_v22 }
 0xe5e   :  { %v8037_v41 = vpop.permute.xlu0 %4491 }
 0xe5f   :  { %11124 = vst [vmem:[#allocation197_spill] sm:$0xff] %v8037_v41 }
 0xe60   :  { %4611 = vrot.lane.b32.xlu0 %v4595_v18, %s5637_s19  ;;  %v11127_v18 = vld [vmem:[#allocation76_spill] sm:$0xff] }
 0xe61   :  { %v3334_v23 = vmul.f32 %v7360_v42, %v11127_v18 }
 0xe62   :  { %v8044_v57 = vpop.permute.xlu0 %2156 }
 0xe63   :  { %11125 = vst [vmem:[#allocation198_spill] sm:$0xff] %v8044_v57  ;;  %v3374_v55 = vadd.f32 %v3363_v58, %v3334_v23  ;;  %v3444_v23 = vsel %vm476_vm7, %v7840_v10, %v7583_v39 }
 0xe64   :  { %2348 = vrot.lane.b32.xlu0 %v2333_v38, %s5639_s21  ;;  %v3403_v38 = vsel %vm427_vm6, %v7555_v13, %v7794_v53  ;;  %v4388_v13 = vmul.f32 %v7376_v28, %v7444_v52  ;;  %v3483_v53 = vsel %vm531_vm8, %v7907_v4, %v7650_v16 }
 0xe65   :  { %v3414_v29 = vadd.f32 %v3403_v38, %v3374_v55 }
 0xe66   :  { %v8049_v49 = vpop.permute.xlu0 %4243 }
 0xe67   :  { %11126 = vst [vmem:[#allocation199_spill] sm:$0xff] %v8049_v49  ;;  %v3443_v49 = vsel %vm476_vm7, %v7870_v6, %v7840_v10  ;;  %v4390_v6 = vmul.f32 %v7382_v44, %v7444_v52  ;;  %v3523_v10 = vsel %vm580_vm11, %v7734_v34, %v8005_v59 }
 0xe68   :  { %2352 = vrot.lane.b32.xlu0 %v2335_v21, %s5639_s21  ;;  %v3335_v21 = vmul.f32 %v7376_v28, %v11127_v18 }
 0xe6a   :  { %v8061_v41 = vpop.permute.xlu0 %2204  ;;  %v3375_v9 = vadd.f32 %v3364_v40, %v3335_v21 }
 0xe6b   :  { %11128 = vst [vmem:[#allocation76_spill] sm:$0xff] %v8061_v41  ;;  %v8080_v41 = vpop.permute.xlu1 %4323 }
 0xe6c   :  { %2656 = vrot.lane.b32.xlu0 %v2640_v27, %s5638_s20  ;;  %11129 = vst [vmem:[#allocation200_spill] sm:$0xff] %v8080_v41  ;;  %v3415_v58 = vadd.f32 %v3404_v45, %v3375_v9  ;;  %v3454_v27 = vadd.f32 %v3443_v49, %v3414_v29  ;;  %v5599_v49 = vld [vmem:[#allocation2] sm:$0xff] }
 0xe6d   :  { %v5356_v52 = vsel %vm298_vm4, 1.0, %v5599_v49  ;;  %v5357_v55 = vsel %vm299_vm9, 1.0, %v5599_v49  ;;  %v11154_v41 = vld [vmem:[#allocation163_spill] sm:$0xff]  ;;  %vm2051_vm4 = vcmask 1014784   ;;  %vm2405_vm9 = vcmask 1006592  }
 0xe6e   :  { %v8082_v57 = vpop.permute.xlu0 %2208  ;;  %v3455_v40 = vadd.f32 %v3444_v23, %v3415_v58  ;;  %v3494_v38 = vadd.f32 %v7907_v4, %v3454_v27  ;;  %v5552_v58 = vpack.i.bf16 %v5357_v55, %v5356_v52  ;;  %v4674_v52 = vmul.f32 %v7376_v28, %v7460_v47 }
 0xe6f   :  { %11130 = vst [vmem:[#allocation201_spill] sm:$0xff] %v8082_v57  ;;  %v8103_v9 = vpop.permute.xlu1 %4327  ;;  %v11170_v57 = vld [vmem:[#allocation102_spill] sm:$0xff] }
 0xe70   :  { %4403 = vrot.lane.b32.xlu0 %v4388_v13, %s5639_s21  ;;  %v3495_v45 = vadd.f32 %v3483_v53, %v3455_v40  ;;  %11132 = vst [vmem:[#allocation203_spill] sm:$0xff] %v8103_v9  ;;  %v3534_v4 = vadd.f32 %v7734_v34, %v3494_v38  ;;  %v2688_v38 = vmul.f32 %v7662_v1, %v7460_v47 }
 0xe71   :  { %v4676_v1 = vmul.f32 %v7382_v44, %v7460_v47  ;;  %v2842_v47 = vmul.f32 %v7345_v0, %v11099_v54  ;;  %v1726_v0 = vmul.f32 %v7568_v35, %v7099_v51  ;;  %v1811_v54 = vsel %vm427_vm6, %v7183_v61, %v7185_v8 }
 0xe72   :  { %v8096_v21 = vpop.permute.xlu0 %2514  ;;  %v3535_v29 = vadd.f32 %v3523_v10, %v3495_v45  ;;  %v3574_v27 = vadd.f32 %v7888_v60, %v3534_v4  ;;  %v11135_v10 = vld [vmem:[#allocation91_spill] sm:$0xff] }
 0xe73   :  { %11131 = vst [vmem:[#allocation202_spill] sm:$0xff] %v8096_v21  ;;  %v8116_v53 = vpop.permute.xlu1 %4571 }
 0xe74   :  { %4407 = vrot.lane.b32.xlu0 %v4390_v6, %s5639_s21  ;;  %11133 = vst [vmem:[#allocation204_spill] sm:$0xff] %v8116_v53  ;;  %v11134_v6 = vld [vmem:[#allocation92_spill] sm:$0xff]  ;;  %v3580_v45 = vmul.f32 %v11135_v10, %v3574_v27  ;;  %v2880_v10 = vmul.f32 %v7360_v42, %v11102_v36  ;;  %v8188_v53 = vld [vmem:[#allocation2 + $0x60] sm:$0x3f] }
 0xe75   :  { %11147 = vst [vmem:[#allocation214_spill] sm:$0xff] %v8188_v53  ;;  %v3048_v35 = vmul.f32 %v8188_v53, %v11114_v33 }
 0xe76   :  { %v8107_v13 = vpop.permute.xlu0 %3557 }
 0xe77   :  { %v3563_v20 = vsel %vm629_vm12, %v7888_v60, %v8107_v13  ;;  %v8125_v49 = vpop.permute.xlu1 %2300 }
 0xe78   :  { %v3575_v23 = vadd.f32 %v3563_v20, %v3535_v29  ;;  %4651 = vrot.lane.b32.xlu0 %v4635_v19, %s5638_s20  ;;  %11136 = vst [vmem:[#allocation205_spill] sm:$0xff] %v8125_v49  ;;  %v2801_v19 = vmul.f32 %v7376_v28, %v11097_v50  ;;  %v11167_v49 = vld [vmem:[#allocation85_spill] sm:$0xff] }
 0xe7a   :  { %v3581_v34 = vmul.f32 %v3575_v23, %v11134_v6  ;;  %v8119_v40 = vpop.permute.xlu0 %3791 }
 0xe7b   :  { %v8134_v55 = vpop.permute.xlu1 %2304 }
 0xe7c   :  { %5553 = vrot.lane.b32.xlu0 %v5552_v58, %s5684_s22  ;;  %3597 = vrot.lane.b32.xlu1 %v3581_v34, %s5651_s29  ;;  %11137 = vst [vmem:[#allocation206_spill] sm:$0xff] %v8134_v55  ;;  %v2800_v58 = vmul.f32 %v7360_v42, %v11097_v50  ;;  %v1763_v50 = vsel %vm378_vm5, %v7133_v7, %v7147_v63  ;;  %v11153_v55 = vld [vmem:[#allocation12_spill] sm:$0xff] }
 0xe7d   :  { %v1774_v6 = vadd.f32 %v1763_v50, %v1726_v0  ;;  %v3077_v42 = vsel %vm378_vm5, %v7748_v26, %v7738_v17  ;;  %v11148_v50 = vld [vmem:[#allocation140_spill] sm:$0xff]  ;;  %v11149_v0 = vld [vmem:[#allocation139_spill] sm:$0xff] }
 0xe7e   :  { %v3796_v24 = vpop.permute.xlu0 %3795 }
 0xe7f   :  { %v8145_v20 = vpop.permute.xlu1 %2608 }
 0xe80   :  { %2704 = vrot.lane.b32.xlu0 %v2688_v38, %s5639_s21  ;;  %3595 = vrot.lane.b32.xlu1 %v3580_v45, %s5651_s29  ;;  %11140 = vst [vmem:[#allocation209_spill] sm:$0xff] %v8145_v20  ;;  %v2881_v38 = vmul.f32 %v7376_v28, %v11102_v36  ;;  %v8167_v45 = vld [vmem:[#allocation2 + $0x70] sm:$0x3f]  ;;  %v1858_v20 = vsel %vm476_vm7, %v7219_v43, %v7217_v37 }
 0xe81   :  { %11144 = vst [vmem:[#allocation213_spill] sm:$0xff] %v8167_v45  ;;  %v3760_v36 = vsel %vm531_vm8, %v7761_v46, %v8018_v2  ;;  %v3118_v2 = vsel %vm427_vm6, %v11154_v41, %v7507_v14 }
 0xe82   :  { %v8129_v60 = vpop.permute.xlu0 %4039 }
 0xe83   :  { %v8153_v27 = vpop.permute.xlu1 %4117 }
 0xe84   :  { %4689 = vrot.lane.b32.xlu0 %v4674_v52, %s5639_s21  ;;  %v11145_v52 = vld [vmem:[#allocation87_spill] sm:$0xff] }
 0xe86   :  { %v8136_v4 = vpop.permute.xlu0 %4283 }
 0xe87   :  { %11138 = vst [vmem:[#allocation207_spill] sm:$0xff] %v8136_v4  ;;  %v11168_v4 = vld [vmem:[#allocation24_spill] sm:$0xff] }
 0xe88   :  { %4693 = vrot.lane.b32.xlu0 %v4676_v1, %s5639_s21  ;;  %v3622_v1 = vmul.f32 %v8167_v45, %v11145_v52 }
 0xe8a   :  { %v8141_v29 = vpop.permute.xlu0 %4287 }
 0xe8b   :  { %11139 = vst [vmem:[#allocation208_spill] sm:$0xff] %v8141_v29  ;;  %v8229_v29 = vld [vmem:[#allocation2 + $0x68] sm:$0x3f] }
 0xe8c   :  { %2817 = vrot.lane.b32.xlu0 %v2801_v19, %s5634_s2  ;;  %v8171_v19 = vpop.permute.xlu1 %4121  ;;  %11159 = vst [vmem:[#allocation12_spill] sm:$0xff] %v8229_v29 }
 0xe8e   :  { %v8148_v23 = vpop.permute.xlu0 %4533 }
 0xe8f   :  { %11141 = vst [vmem:[#allocation210_spill] sm:$0xff] %v8148_v23  ;;  %v11156_v23 = vld [vmem:[#allocation8_spill] sm:$0xff] }
 0xe90   :  { %2815 = vrot.lane.b32.xlu0 %v2800_v58, %s5634_s2  ;;  %v3662_v58 = vadd.f32 %v7547_v62, %v3622_v1  ;;  %v1822_v1 = vadd.f32 %v1811_v54, %v1774_v6  ;;  %v11150_v6 = vld [vmem:[#allocation9_spill] sm:$0xff]  ;;  %v8208_v9 = vpop.permute.xlu1 %4365 }
 0xe91   :  { %11151 = vst [vmem:[#allocation140_spill] sm:$0xff] %v8208_v9 }
 0xe92   :  { %v8155_v44 = vpop.permute.xlu0 %4529  ;;  %v1870_v26 = vadd.f32 %v1858_v20, %v1822_v1  ;;  %v11158_v1 = vld [vmem:[#allocation170_spill] sm:$0xff] }
 0xe93   :  { %11142 = vst [vmem:[#allocation211_spill] sm:$0xff] %v8155_v44  ;;  %v11155_v44 = vld [vmem:[#allocation165_spill] sm:$0xff] }
 0xe94   :  { %2859 = vrot.lane.b32.xlu0 %v2842_v47, %s5635_s17 }
 0xe96   :  { %v8160_v34 = vpop.permute.xlu0 %2254 }
 0xe97   :  { %11143 = vst [vmem:[#allocation212_spill] sm:$0xff] %v8160_v34  ;;  %v3117_v34 = vsel %vm427_vm6, %v11155_v44, %v11154_v41  ;;  %v11160_v41 = vld [vmem:[#allocation13_spill] sm:$0xff] }
 0xe98   :  { %2897 = vrot.lane.b32.xlu0 %v2881_v38, %s5636_s18  ;;  %v3702_v38 = vadd.f32 %v7592_v3, %v3662_v58  ;;  %v1906_v58 = vsel %vm531_vm8, %v11149_v0, %v11148_v50  ;;  %v2962_v44 = vmul.f32 %v8229_v29, %v11160_v41 }
 0xe9a   :  { %v8180_v47 = vpop.permute.xlu0 %2558  ;;  %v3732_v54 = vadd.f32 %v11150_v6, %v3702_v38  ;;  %v3088_v38 = vadd.f32 %v3077_v42, %v3048_v35 }
 0xe9b   :  { %11146 = vst [vmem:[#allocation87_spill] sm:$0xff] %v8180_v47  ;;  %v3078_v47 = vsel %vm378_vm5, %v7738_v17, %v7491_v15  ;;  %v2923_v17 = vmul.f32 %v8167_v45, %v11153_v55  ;;  %v11157_v55 = vld [vmem:[#allocation166_spill] sm:$0xff] }
 0xe9c   :  { %2895 = vrot.lane.b32.xlu0 %v2880_v10, %s5636_s18  ;;  %v3049_v10 = vmul.f32 %v7376_v28, %v11114_v33  ;;  %v3800_v28 = vsel %vm580_vm11, %v11156_v23, %v3796_v24  ;;  %v3772_v9 = vadd.f32 %v3760_v36, %v3732_v54  ;;  %v3158_v20 = vsel %vm476_vm7, %v11157_v55, %v7531_v12  ;;  %v11161_v24 = vld [vmem:[#allocation146_spill] sm:$0xff]  ;;  %v11163_v54 = vld [vmem:[#allocation27_spill] sm:$0xff] }
 0xe9d   :  { %v3157_v14 = vsel %vm476_vm7, %v11158_v1, %v11157_v55  ;;  %v3128_v36 = vadd.f32 %v3117_v34, %v3088_v38  ;;  %v8239_v12 = vunpack.i.h.bf16 %v11163_v54  ;;  %v3336_v54 = vmul.f32 %v8167_v45, %v11127_v18  ;;  %v11172_v18 = vld [vmem:[#allocation90_spill] sm:$0xff] }
 0xe9e   :  { %v8210_v15 = vpop.permute.xlu0 %2562  ;;  %v3089_v33 = vadd.f32 %v3078_v47, %v3049_v10  ;;  %v11162_v47 = vld [vmem:[#allocation147_spill] sm:$0xff] }
 0xe9f   :  { %11152 = vst [vmem:[#allocation9_spill] sm:$0xff] %v8210_v15  ;;  %v1918_v15 = vadd.f32 %v1906_v58, %v1870_v26  ;;  %v1954_v35 = vsel %vm580_vm11, %v11162_v47, %v11161_v24  ;;  %v3812_v58 = vadd.f32 %v3800_v28, %v3772_v9  ;;  %11164 = vst [vmem:[#allocation163_spill] sm:$0xff] %v8239_v12  ;;  %v11166_v26 = vld [vmem:[#allocation46_spill] sm:$0xff]  ;;  %v8250_v28 = vpop.permute.xlu1 %4609 }
 0xea0   :  { %2939 = vrot.lane.b32.xlu0 %v2923_v17, %s5637_s19  ;;  %v3129_v42 = vadd.f32 %v3118_v2, %v3089_v33  ;;  %v11165_v17 = vld [vmem:[#allocation174_spill] sm:$0xff]  ;;  %v2002_v2 = vsel %vm629_vm12, %v11168_v4, %v11167_v49  ;;  %v3168_v9 = vadd.f32 %v3157_v14, %v3128_v36  ;;  %v3376_v36 = vadd.f32 %v7515_v22, %v3336_v54 }
 0xea1   :  { %v3197_v55 = vsel %vm531_vm8, %v11166_v26, %v11165_v17  ;;  %v1966_v38 = vadd.f32 %v1954_v35, %v1918_v15  ;;  %v11169_v17 = vld [vmem:[#allocation153_spill] sm:$0xff]  ;;  %v11171_v15 = vld [vmem:[#allocation191_spill] sm:$0xff]  ;;  %v8269_v35 = vsel %vm2022_vm10, %v11172_v18, %v8239_v12  ;;  %v3621_v22 = vmul.f32 %v8229_v29, %v11145_v52 }
 0xea2   :  { %v8236_v10 = vpop.permute.xlu0 %3833  ;;  %v3169_v34 = vadd.f32 %v3158_v20, %v3129_v42  ;;  %v5603_v20 = vld [vmem:[#allocation2 + $0x78] sm:$0x3f]  ;;  %11173 = vst [vmem:[#allocation165_spill] sm:$0xff] %v8269_v35  ;;  %vm2759_vm10 = vcmask 998400  }
 0xea3   :  { %v3840_v1 = vsel %vm629_vm12, %v8236_v10, %v8042_v25  ;;  %v3237_v25 = vsel %vm580_vm11, %v11169_v17, %v7897_v32  ;;  %v2964_v14 = vmul.f32 %v5603_v20, %v11160_v41  ;;  %v2014_v42 = vadd.f32 %v2002_v2, %v1966_v38  ;;  %v8290_v54 = vpop.permute.xlu1 %4613 }
 0xea4   :  { %v3852_v33 = vadd.f32 %v3840_v1, %v3812_v58  ;;  %2977 = vrot.lane.b32.xlu0 %v2962_v44, %s5638_s20  ;;  %v3209_v21 = vadd.f32 %v3197_v55, %v3169_v34  ;;  %v3277_v44 = vsel %vm629_vm12, %v11171_v15, %v7724_v5  ;;  %v3208_v32 = vadd.f32 %v11166_v26, %v3168_v9  ;;  %v11174_v58 = vld [vmem:[#allocation169_spill] sm:$0xff]  ;;  %v11175_v55 = vld [vmem:[#allocation172_spill] sm:$0xff] }
 0xea5   :  { %v3649_v1 = vsel %vm378_vm5, %v11175_v55, %v11174_v58  ;;  %v3650_v5 = vsel %vm378_vm5, %v11174_v58, %v7547_v62  ;;  %v3620_v41 = vmul.f32 %v8188_v53, %v11145_v52  ;;  %v11176_v26 = vld [vmem:[#allocation16_spill] sm:$0xff]  ;;  %v3416_v9 = vadd.f32 %v7539_v31, %v3376_v36 }
 0xea6   :  { %v3858_v47 = vmul.f32 %v11170_v57, %v3852_v33  ;;  %v8259_v0 = vpop.permute.xlu0 %4077  ;;  %v3249_v34 = vadd.f32 %v3237_v25, %v3209_v21  ;;  %v3003_v2 = vmul.f32 %v8167_v45, %v11176_v26  ;;  %v11177_v21 = vld [vmem:[#allocation176_spill] sm:$0xff]  ;;  %v11178_v33 = vld [vmem:[#allocation150_spill] sm:$0xff]  ;;  %v2031_v20 = vmul.f32 %v8269_v35, %v2014_v42  ;;  %v11183_v26 = vld [vmem:[#allocation5_spill] sm:$0xff] }
 0xea7   :  { %v3689_v38 = vsel %vm427_vm6, %v11178_v33, %v11177_v21  ;;  %v3660_v62 = vadd.f32 %v3649_v1, %v3620_v41  ;;  %v3690_v52 = vsel %vm427_vm6, %v11177_v21, %v7592_v3  ;;  %v3456_v36 = vadd.f32 %v7583_v39, %v3416_v9  ;;  %v11180_v42 = vld [vmem:[#allocation154_spill] sm:$0xff]  ;;  %v8321_v21 = vpop.permute.xlu1 %2350 }
 0xea8   :  { %2981 = vrot.lane.b32.xlu0 %v2964_v14, %s5638_s20  ;;  %3875 = vrot.lane.b32.xlu1 %v3858_v47, %s5660_s30  ;;  %v3289_v47 = vadd.f32 %v3277_v44, %v3249_v34  ;;  %v11179_v14 = vld [vmem:[#allocation182_spill] sm:$0xff]  ;;  %v3661_v58 = vadd.f32 %v3650_v5, %v3621_v22  ;;  %v3248_v44 = vadd.f32 %v11169_v17, %v3208_v32  ;;  %v11182_v22 = vld [vmem:[#allocation115_spill] sm:$0xff] }
 0xea9   :  { %v3484_v31 = vsel %vm531_vm8, %v7650_v16, %v11179_v14  ;;  %v3700_v55 = vadd.f32 %v3689_v38, %v3660_v62  ;;  %v3720_v1 = vsel %vm476_vm7, %v11180_v42, %v11150_v6  ;;  %v11181_v34 = vld [vmem:[#allocation162_spill] sm:$0xff]  ;;  %v3759_v32 = vsel %vm531_vm8, %v8011_v48, %v7761_v46  ;;  %v11185_v62 = vld [vmem:[#allocation151_spill] sm:$0xff] }
 0xeaa   :  { %v8292_v25 = vpop.permute.xlu0 %4081  ;;  %v3524_v3 = vsel %vm580_vm11, %v8005_v59, %v11181_v34  ;;  %v3701_v41 = vadd.f32 %v3690_v52, %v3661_v58  ;;  %v3496_v16 = vadd.f32 %v3484_v31, %v3456_v36  ;;  %v3288_v39 = vadd.f32 %v11171_v15, %v3248_v44  ;;  %v11184_v15 = vld [vmem:[#allocation114_spill] sm:$0xff]  ;;  %v11186_v58 = vld [vmem:[#allocation93_spill] sm:$0xff] }
 0xeab   :  { %v3295_v5 = vmul.f32 %v3289_v47, %v11182_v22  ;;  %v3564_v6 = vsel %vm629_vm12, %v8107_v13, %v11183_v26  ;;  %v3799_v59 = vsel %vm580_vm11, %v8119_v40, %v11156_v23  ;;  %v3730_v38 = vadd.f32 %v11180_v42, %v3700_v55  ;;  %v8339_v36 = vpop.permute.xlu1 %2654  ;;  %v11222_v57 = vld [vmem:[#allocation158_spill] sm:$0xff]  ;;  %v11231_v22 = vld [vmem:[#allocation177_spill] sm:$0xff] }
 0xeac   :  { %3019 = vrot.lane.b32.xlu0 %v3003_v2, %s5639_s21  ;;  %2047 = vrot.lane.b32.xlu1 %v2031_v20, %s5682_s16  ;;  %v3731_v2 = vadd.f32 %v3720_v1, %v3701_v41  ;;  %v3536_v9 = vadd.f32 %v3524_v3, %v3496_v16  ;;  %v3294_v33 = vmul.f32 %v11184_v15, %v3288_v39  ;;  %v11188_v3 = vld [vmem:[#allocation178_spill] sm:$0xff]  ;;  %v11190_v39 = vld [vmem:[#allocation141_spill] sm:$0xff] }
 0xead   :  { %v3839_v13 = vsel %vm629_vm12, %v8034_v56, %v8236_v10  ;;  %v1727_v52 = vmul.f32 %v11185_v62, %v7099_v51  ;;  %v3770_v14 = vadd.f32 %v8011_v48, %v3730_v38  ;;  %v11187_v10 = vld [vmem:[#allocation135_spill] sm:$0xff]  ;;  %v11189_v48 = vld [vmem:[#allocation180_spill] sm:$0xff]  ;;  %v3897_v62 = vmul.f32 %v8229_v29, %v7099_v51 }
 0xeae   :  { %v8313_v17 = vpop.permute.xlu0 %4325  ;;  %v3771_v47 = vadd.f32 %v3759_v32, %v3731_v2  ;;  %v3576_v46 = vadd.f32 %v3564_v6, %v3536_v9  ;;  %v1859_v34 = vsel %vm476_vm7, %v7217_v37, %v11187_v10  ;;  %v3925_v41 = vsel %vm378_vm5, %v11189_v48, %v11188_v3  ;;  %v11192_v32 = vld [vmem:[#allocation187_spill] sm:$0xff] }
 0xeaf   :  { %v1775_v23 = vadd.f32 %v7147_v63, %v1727_v52  ;;  %v3810_v55 = vadd.f32 %v8119_v40, %v3770_v14  ;;  %v3896_v63 = vmul.f32 %v8188_v53, %v7099_v51  ;;  %v1907_v40 = vsel %vm531_vm8, %v11148_v50, %v11190_v39  ;;  %v11193_v9 = vld [vmem:[#allocation107_spill] sm:$0xff]  ;;  %v8375_v52 = vpop.permute.xlu1 %2658  ;;  %v11196_v14 = vld [vmem:[#allocation160_spill] sm:$0xff] }
 0xeb0   :  { %3311 = vrot.lane.b32.xlu0 %v3295_v5, %s5649_s28  ;;  %v3811_v31 = vadd.f32 %v3799_v59, %v3771_v47  ;;  %v3582_v44 = vmul.f32 %v11186_v58, %v3576_v46  ;;  %v11191_v5 = vld [vmem:[#allocation155_spill] sm:$0xff]  ;;  %v11195_v47 = vld [vmem:[#allocation106_spill] sm:$0xff] }
 0xeb1   :  { %v1823_v16 = vadd.f32 %v7185_v8, %v1775_v23  ;;  %v3965_v26 = vsel %vm427_vm6, %v11192_v32, %v11191_v5  ;;  %v3936_v6 = vadd.f32 %v3925_v41, %v3896_v63  ;;  %v3850_v2 = vadd.f32 %v8034_v56, %v3810_v55  ;;  %v8388_v48 = vld [vmem:[#allocation2 + $0x20] sm:$0x3f]  ;;  %v11200_v63 = vld [vmem:[#allocation164_spill] sm:$0xff] }
 0xeb2   :  { %v8329_v20 = vpop.permute.xlu0 %4569  ;;  %v3851_v42 = vadd.f32 %v3839_v13, %v3811_v31  ;;  %v3926_v50 = vsel %vm378_vm5, %v11188_v3, %v11195_v47  ;;  %v3898_v13 = vmul.f32 %v8167_v45, %v7099_v51  ;;  %v11197_v31 = vld [vmem:[#allocation184_spill] sm:$0xff]  ;;  %v1725_v41 = vmul.f32 %v8388_v48, %v7099_v51  ;;  %v11202_v51 = vld [vmem:[#allocation129_spill] sm:$0xff] }
 0xeb3   :  { %v1871_v37 = vadd.f32 %v1859_v34, %v1823_v16  ;;  %v3976_v56 = vadd.f32 %v3965_v26, %v3936_v6  ;;  %v3966_v23 = vsel %vm427_vm6, %v11191_v5, %v11197_v31  ;;  %v11198_v34 = vld [vmem:[#allocation104_spill] sm:$0xff]  ;;  %v11199_v16 = vld [vmem:[#allocation125_spill] sm:$0xff]  ;;  %v4005_v39 = vsel %vm476_vm7, %v11200_v63, %v8025_v30 }
 0xeb4   :  { %3309 = vrot.lane.b32.xlu0 %v3294_v33, %s5649_s28  ;;  %v3857_v59 = vmul.f32 %v3851_v42, %v11193_v9  ;;  %v11194_v33 = vld [vmem:[#allocation149_spill] sm:$0xff]  ;;  %v3938_v55 = vadd.f32 %v11195_v47, %v3898_v13  ;;  %v3937_v42 = vadd.f32 %v3926_v50, %v3897_v62  ;;  %v3856_v3 = vmul.f32 %v11198_v34, %v3850_v2  ;;  %v11203_v2 = vld [vmem:[#allocation183_spill] sm:$0xff] }
 0xeb5   :  { %v1955_v38 = vsel %vm580_vm11, %v11161_v24, %v11194_v33  ;;  %v1919_v46 = vadd.f32 %v1907_v40, %v1871_v37  ;;  %v2003_v24 = vsel %vm629_vm12, %v11167_v49, %v11196_v14  ;;  %v1762_v49 = vsel %vm378_vm5, %v11199_v16, %v7133_v7  ;;  %v11201_v40 = vld [vmem:[#allocation167_spill] sm:$0xff]  ;;  %v11204_v33 = vld [vmem:[#allocation185_spill] sm:$0xff] }
 0xeb6   :  { %v8343_v1 = vpop.permute.xlu0 %4573  ;;  %v4006_v5 = vsel %vm476_vm7, %v8025_v30, %v11201_v40  ;;  %v3977_v26 = vadd.f32 %v3966_v23, %v3937_v42  ;;  %v3978_v37 = vadd.f32 %v11197_v31, %v3938_v55  ;;  %v4016_v6 = vadd.f32 %v11200_v63, %v3976_v56  ;;  %v11206_v40 = vld [vmem:[#allocation147_spill] sm:$0xff] }
 0xeb7   :  { %v1810_v7 = vsel %vm427_vm6, %v11202_v51, %v7183_v61  ;;  %v4046_v30 = vsel %vm531_vm8, %v8129_v60, %v11204_v33  ;;  %v4085_v61 = vsel %vm580_vm11, %v8259_v0, %v8053_v11  ;;  %v4086_v56 = vsel %vm580_vm11, %v8053_v11, %v8292_v25  ;;  %v11205_v25 = vld [vmem:[#allocation139_spill] sm:$0xff] }
 0xeb8   :  { %3599 = vrot.lane.b32.xlu0 %v3582_v44, %s5651_s29  ;;  %v1967_v44 = vadd.f32 %v1955_v38, %v1919_v46  ;;  %v1773_v38 = vadd.f32 %v1762_v49, %v1725_v41  ;;  %v4017_v47 = vadd.f32 %v4005_v39, %v3977_v26  ;;  %v4018_v50 = vadd.f32 %v4006_v5, %v3978_v37  ;;  %v8413_v46 = vpop.permute.xlu1 %4405 }
 0xeb9   :  { %v4056_v31 = vadd.f32 %v11203_v2, %v4016_v6 }
 0xeba   :  { %v8363_v8 = vpop.permute.xlu0 %2302  ;;  %v2015_v32 = vadd.f32 %v2003_v24, %v1967_v44  ;;  %v1821_v14 = vadd.f32 %v1810_v7, %v1773_v38  ;;  %v11209_v38 = vld [vmem:[#allocation156_spill] sm:$0xff] }
 0xebb   :  { %v4096_v44 = vadd.f32 %v8259_v0, %v4056_v31  ;;  %v8472_v31 = vld [vmem:[#allocation2 + $0x30] sm:$0x3f] }
 0xebc   :  { %3873 = vrot.lane.b32.xlu0 %v3857_v59, %s5660_s30  ;;  %v4045_v59 = vsel %vm531_vm8, %v11203_v2, %v8129_v60  ;;  %v2032_v62 = vmul.f32 %v8239_v12, %v2015_v32  ;;  %v4058_v60 = vadd.f32 %v4046_v30, %v4018_v50  ;;  %v1869_v23 = vadd.f32 %v7219_v43, %v1821_v14  ;;  %v8433_v49 = vpop.permute.xlu1 %4649  ;;  %v11208_v30 = vld [vmem:[#allocation152_spill] sm:$0xff]  ;;  %v11210_v50 = vld [vmem:[#allocation189_spill] sm:$0xff] }
 0xebd   :  { %v4057_v24 = vadd.f32 %v4045_v59, %v4017_v47  ;;  %v4136_v43 = vadd.f32 %v8153_v27, %v4096_v44  ;;  %v2116_v47 = vsel %vm378_vm5, %v11209_v38, %v11208_v30 }
 0xebe   :  { %v8385_v10 = vpop.permute.xlu0 %2606  ;;  %v4098_v42 = vadd.f32 %v4086_v56, %v4058_v60  ;;  %v1917_v16 = vadd.f32 %v11205_v25, %v1869_v23 }
 0xebf   :  { %v4097_v55 = vadd.f32 %v4085_v61, %v4057_v24  ;;  %v4142_v51 = vmul.f32 %v11172_v18, %v4136_v43  ;;  %v8468_v24 = vld [vmem:[#allocation2 + $0x28] sm:$0x3f] }
 0xec0   :  { %3871 = vrot.lane.b32.xlu0 %v3856_v3, %s5660_s30  ;;  %v1965_v5 = vadd.f32 %v11206_v40, %v1917_v16  ;;  %v11215_v40 = vld [vmem:[#allocation181_spill] sm:$0xff] }
 0xec2   :  { %v8415_v13 = vpop.permute.xlu0 %2610  ;;  %v2013_v37 = vadd.f32 %v11168_v4, %v1965_v5  ;;  %v11207_v4 = vld [vmem:[#allocation29_spill] sm:$0xff]  ;;  %v2117_v5 = vsel %vm378_vm5, %v11208_v30, %v11215_v40 }
 0xec3   :  { %v2079_v59 = vmul.f32 %v8388_v48, %v11207_v4  ;;  %v4182_v14 = vmul.f32 %v8188_v53, %v11207_v4  ;;  %v2080_v60 = vmul.f32 %v8468_v24, %v11207_v4  ;;  %v2081_v23 = vmul.f32 %v8472_v31, %v11207_v4 }
 0xec4   :  { %2049 = vrot.lane.b32.xlu0 %v2032_v62, %s5682_s16  ;;  %v11211_v62 = vld [vmem:[#allocation198_spill] sm:$0xff]  ;;  %v4183_v16 = vmul.f32 %v8229_v29, %v11207_v4 }
 0xec5   :  { %v2164_v61 = vsel %vm427_vm6, %v11211_v62, %v11210_v50  ;;  %v2127_v56 = vadd.f32 %v2116_v47, %v2079_v59  ;;  %v2129_v43 = vadd.f32 %v11215_v40, %v2081_v23  ;;  %v11218_v47 = vld [vmem:[#allocation186_spill] sm:$0xff] }
 0xec6   :  { %v4120_v3 = vpop.permute.xlu0 %4119 }
 0xec7   :  { %v4125_v41 = vsel %vm629_vm12, %v8153_v27, %v4120_v3  ;;  %v4126_v11 = vsel %vm629_vm12, %v4120_v3, %v8171_v19  ;;  %v8444_v19 = vpop.permute.xlu1 %4653  ;;  %v2030_v27 = vmul.f32 %v11172_v18, %v2013_v37  ;;  %v11213_v3 = vld [vmem:[#allocation157_spill] sm:$0xff]  ;;  %v11221_v18 = vld [vmem:[#allocation171_spill] sm:$0xff]  ;;  %v2177_v34 = vadd.f32 %v11222_v57, %v2129_v43 }
 0xec8   :  { %v4137_v63 = vadd.f32 %v4125_v41, %v4097_v55  ;;  %v4138_v39 = vadd.f32 %v4126_v11, %v4098_v42  ;;  %v11212_v42 = vld [vmem:[#allocation103_spill] sm:$0xff]  ;;  %v11214_v11 = vld [vmem:[#allocation98_spill] sm:$0xff]  ;;  %v11230_v43 = vld [vmem:[#allocation193_spill] sm:$0xff] }
 0xec9   :  { %v4211_v41 = vsel %vm378_vm5, %v11213_v3, %v11212_v42  ;;  %v2435_v25 = vmul.f32 %v8472_v31, %v11214_v11  ;;  %v2434_v37 = vmul.f32 %v8468_v24, %v11214_v11  ;;  %v4468_v59 = vmul.f32 %v8188_v53, %v11214_v11  ;;  %v11220_v3 = vld [vmem:[#allocation159_spill] sm:$0xff] }
 0xeca   :  { %v4143_v0 = vmul.f32 %v4137_v63, %v8269_v35  ;;  %v4144_v32 = vmul.f32 %v8239_v12, %v4138_v39  ;;  %v8439_v26 = vpop.permute.xlu0 %4363  ;;  %v4184_v63 = vmul.f32 %v8167_v45, %v11207_v4  ;;  %v4470_v39 = vmul.f32 %v8167_v45, %v11214_v11 }
 0xecb   :  { %v8454_v2 = vpop.permute.xlu1 %2702  ;;  %v4222_v38 = vadd.f32 %v4211_v41, %v4182_v14  ;;  %v4469_v30 = vmul.f32 %v8229_v29, %v11214_v11  ;;  %v2483_v40 = vadd.f32 %v11220_v3, %v2435_v25  ;;  %v2128_v12 = vadd.f32 %v2117_v5, %v2080_v60  ;;  %v11225_v25 = vld [vmem:[#allocation179_spill] sm:$0xff]  ;;  %v11227_v5 = vld [vmem:[#allocation168_spill] sm:$0xff]  ;;  %v11232_v29 = vld [vmem:[#allocation201_spill] sm:$0xff] }
 0xecc   :  { %4161 = vrot.lane.b32.xlu0 %v4144_v32, %s5682_s16  ;;  %4159 = vrot.lane.b32.xlu1 %v4143_v0, %s5682_s16  ;;  %v2175_v0 = vadd.f32 %v2164_v61, %v2127_v56  ;;  %v2433_v32 = vmul.f32 %v8388_v48, %v11214_v11  ;;  %v4224_v62 = vadd.f32 %v11218_v47, %v4184_v63  ;;  %v11219_v61 = vld [vmem:[#allocation76_spill] sm:$0xff]  ;;  %v11224_v11 = vld [vmem:[#allocation199_spill] sm:$0xff] }
 0xecd   :  { %v4510_v35 = vadd.f32 %v11221_v18, %v4470_v39  ;;  %v2165_v14 = vsel %vm427_vm6, %v11210_v50, %v11222_v57  ;;  %v11223_v63 = vld [vmem:[#allocation196_spill] sm:$0xff] }
 0xece   :  { %v8446_v6 = vpop.permute.xlu0 %4367  ;;  %v2223_v56 = vadd.f32 %v11219_v61, %v2175_v0  ;;  %v4251_v0 = vsel %vm427_vm6, %v11224_v11, %v11223_v63  ;;  %v11226_v39 = vld [vmem:[#allocation192_spill] sm:$0xff]  ;;  %v4252_v50 = vsel %vm427_vm6, %v11223_v63, %v11227_v5  ;;  %v2212_v63 = vsel %vm476_vm7, %v11219_v61, %v11231_v22 }
 0xecf   :  { %v8476_v44 = vpop.permute.xlu1 %2706  ;;  %v2518_v60 = vsel %vm427_vm6, %v11226_v39, %v11225_v25  ;;  %v4264_v39 = vadd.f32 %v11227_v5, %v4224_v62  ;;  %v11234_v5 = vld [vmem:[#allocation188_spill] sm:$0xff] }
 0xed0   :  { %4157 = vrot.lane.b32.xlu0 %v4142_v51, %s5682_s16  ;;  %2045 = vrot.lane.b32.xlu1 %v2030_v27, %s5682_s16  ;;  %v11216_v51 = vld [vmem:[#allocation190_spill] sm:$0xff]  ;;  %v11217_v27 = vld [vmem:[#allocation173_spill] sm:$0xff]  ;;  %v2271_v58 = vadd.f32 %v11230_v43, %v2223_v56 }
 0xed1   :  { %v2470_v4 = vsel %vm378_vm5, %v11217_v27, %v11216_v51  ;;  %v4212_v27 = vsel %vm378_vm5, %v11212_v42, %v11218_v47  ;;  %v2471_v42 = vsel %vm378_vm5, %v11216_v51, %v11220_v3  ;;  %v2176_v51 = vadd.f32 %v2165_v14, %v2128_v12  ;;  %v11233_v56 = vld [vmem:[#allocation202_spill] sm:$0xff]  ;;  %v11235_v12 = vld [vmem:[#allocation207_spill] sm:$0xff] }
 0xed2   :  { %v8452_v7 = vpop.permute.xlu0 %4611  ;;  %v2481_v41 = vadd.f32 %v2470_v4, %v2433_v32  ;;  %v11228_v32 = vld [vmem:[#allocation197_spill] sm:$0xff]  ;;  %v11229_v4 = vld [vmem:[#allocation175_spill] sm:$0xff]  ;;  %v4223_v11 = vadd.f32 %v4212_v27, %v4183_v16  ;;  %v4262_v3 = vadd.f32 %v4251_v0, %v4222_v38  ;;  %v2213_v16 = vsel %vm476_vm7, %v11231_v22, %v11232_v29 }
 0xed3   :  { %v8522_v9 = vpop.permute.xlu1 %4691  ;;  %v4497_v47 = vsel %vm378_vm5, %v11229_v4, %v11228_v32  ;;  %v4498_v57 = vsel %vm378_vm5, %v11228_v32, %v11221_v18  ;;  %v2482_v27 = vadd.f32 %v2471_v42, %v2434_v37  ;;  %v2519_v62 = vsel %vm427_vm6, %v11225_v25, %v11233_v56  ;;  %v11236_v22 = vld [vmem:[#allocation205_spill] sm:$0xff]  ;;  %v11240_v42 = vld [vmem:[#allocation19_spill] sm:$0xff] }
 0xed4   :  { %v4263_v4 = vadd.f32 %v4252_v50, %v4223_v11  ;;  %v4508_v53 = vadd.f32 %v4497_v47, %v4468_v59  ;;  %v2529_v18 = vadd.f32 %v2518_v60, %v2481_v41  ;;  %v4509_v32 = vadd.f32 %v4498_v57, %v4469_v30  ;;  %v11237_v30 = vld [vmem:[#allocation208_spill] sm:$0xff]  ;;  %v11239_v60 = vld [vmem:[#allocation210_spill] sm:$0xff] }
 0xed5   :  { %v4291_v38 = vsel %vm476_vm7, %v11235_v12, %v11234_v5  ;;  %v4302_v14 = vadd.f32 %v11235_v12, %v4262_v3  ;;  %v2224_v61 = vadd.f32 %v2212_v63, %v2176_v51  ;;  %v2225_v0 = vadd.f32 %v2213_v16, %v2177_v34  ;;  %v11241_v11 = vld [vmem:[#allocation194_spill] sm:$0xff]  ;;  %v11244_v51 = vld [vmem:[#allocation211_spill] sm:$0xff]  ;;  %v11245_v16 = vld [vmem:[#allocation200_spill] sm:$0xff] }
 0xed6   :  { %v8458_v33 = vpop.permute.xlu0 %2348  ;;  %v2531_v45 = vadd.f32 %v11233_v56, %v2483_v40  ;;  %v8558_v37 = vadd.f32 %v11236_v22, %v2271_v58  ;;  %v4292_v41 = vsel %vm476_vm7, %v11234_v5, %v11237_v30  ;;  %v4538_v50 = vsel %vm427_vm6, %v11240_v42, %v11239_v60  ;;  %v11242_v40 = vld [vmem:[#allocation212_spill] sm:$0xff]  ;;  %v11247_v30 = vld [vmem:[#allocation203_spill] sm:$0xff] }
 0xed7   :  { %v5559_v29 = vpop.permute.xlu1 %5558  ;;  %v2530_v47 = vadd.f32 %v2519_v62, %v2482_v27  ;;  %v4303_v34 = vadd.f32 %v4291_v38, %v4263_v4  ;;  %v2261_v57 = vsel %vm531_vm8, %v11242_v40, %v11241_v11  ;;  %v4537_v3 = vsel %vm427_vm6, %v11244_v51, %v11240_v42  ;;  %v11246_v62 = vld [vmem:[#allocation206_spill] sm:$0xff]  ;;  %v11252_v51 = vld [vmem:[#allocation140_spill] sm:$0xff] }
 0xed8   :  { %v8563_v25 = vunpack.i.h.bf16 %v5559_v29  ;;  %v8571_v58 = vunpack.i.l.bf16 %v5559_v29  ;;  %v2260_v63 = vsel %vm531_vm8, %v11230_v43, %v11242_v40  ;;  %v4342_v56 = vadd.f32 %v11245_v16, %v4302_v14  ;;  %v11249_v14 = vld [vmem:[#allocation195_spill] sm:$0xff] }
 0xed9   :  { %v4304_v5 = vadd.f32 %v4292_v41, %v4264_v39  ;;  %v8580_v27 = vadd.f32 %v4538_v50, %v4509_v32  ;;  %v4550_v4 = vadd.f32 %v11239_v60, %v4510_v35  ;;  %v2309_v12 = vsel %vm580_vm11, %v8363_v8, %v11246_v62  ;;  %v11250_v41 = vld [vmem:[#allocation87_spill] sm:$0xff]  ;;  %v11255_v62 = vld [vmem:[#allocation204_spill] sm:$0xff] }
 0xeda   :  { %v8478_v55 = vpop.permute.xlu0 %2352  ;;  %11238 = vst [vmem:[#allocation8_spill] sm:$0xff] %v8563_v25  ;;  %11243 = vst [vmem:[#allocation166_spill] sm:$0xff] %v8571_v58  ;;  %v2273_v29 = vadd.f32 %v2261_v57, %v2225_v0  ;;  %v4332_v42 = vsel %vm531_vm8, %v8313_v17, %v11247_v30  ;;  %v2308_v43 = vsel %vm580_vm11, %v11236_v22, %v8363_v8 }
 0xedb   :  { %v8597_v39 = vsel %vm2730_vm13, %v8571_v58, %v8563_v25  ;;  %v4548_v35 = vadd.f32 %v4537_v3, %v4508_v53  ;;  %v2272_v32 = vadd.f32 %v2260_v63, %v2224_v61  ;;  %v2566_v60 = vsel %vm476_vm7, %v11250_v41, %v11249_v14  ;;  %v11251_v61 = vld [vmem:[#allocation9_spill] sm:$0xff] }
 0xedc   :  { %11248 = vst [vmem:[#allocation170_spill] sm:$0xff] %v8597_v39  ;;  %v2357_v0 = vsel %vm629_vm12, %v8321_v21, %v8478_v55  ;;  %v2577_v50 = vadd.f32 %v11250_v41, %v2529_v18  ;;  %v4331_v8 = vsel %vm531_vm8, %v11245_v16, %v8313_v17  ;;  %v2321_v22 = vadd.f32 %v2309_v12, %v2273_v29 }
 0xedd   :  { %v2356_v53 = vsel %vm629_vm12, %v8458_v33, %v8321_v21  ;;  %v2567_v11 = vsel %vm476_vm7, %v11249_v14, %v11251_v61  ;;  %v4344_v40 = vadd.f32 %v4332_v42, %v4304_v5  ;;  %v2320_v57 = vadd.f32 %v2308_v43, %v2272_v32  ;;  %v11257_v32 = vld [vmem:[#allocation209_spill] sm:$0xff] }
 0xede   :  { %v8508_v23 = vpop.permute.xlu0 %2656  ;;  %v4372_v55 = vsel %vm580_vm11, %v11252_v51, %v8446_v6  ;;  %v4371_v17 = vsel %vm580_vm11, %v8439_v26, %v11252_v51  ;;  %v2369_v3 = vadd.f32 %v2357_v0, %v2321_v22  ;;  %v4343_v21 = vadd.f32 %v4331_v8, %v4303_v34 }
 0xedf   :  { %v4578_v5 = vsel %vm476_vm7, %v11255_v62, %v8343_v1  ;;  %v2368_v12 = vadd.f32 %v2356_v53, %v2320_v57  ;;  %v4384_v6 = vadd.f32 %v4372_v55, %v4344_v40  ;;  %v2578_v34 = vadd.f32 %v2566_v60, %v2530_v47 }
 0xee0   :  { %v2615_v1 = vsel %vm531_vm8, %v11257_v32, %v8415_v13  ;;  %v4383_v14 = vadd.f32 %v4371_v17, %v4343_v21  ;;  %v2579_v0 = vadd.f32 %v2567_v11, %v2531_v45  ;;  %v2614_v8 = vsel %vm531_vm8, %v8385_v10, %v11257_v32 }
 0xee1   :  { %v4588_v47 = vadd.f32 %v8329_v20, %v4548_v35  ;;  %v4590_v13 = vadd.f32 %v4578_v5, %v4550_v4  ;;  %v2663_v60 = vsel %vm580_vm11, %v8508_v23, %v8375_v52  ;;  %v4382_v61 = vadd.f32 %v8439_v26, %v4342_v56 }
 0xee2   :  { %v8541_v15 = vpop.permute.xlu0 %4403  ;;  %v2627_v53 = vadd.f32 %v2615_v1, %v2579_v0  ;;  %v2662_v11 = vsel %vm580_vm11, %v8339_v36, %v8508_v23  ;;  %v2626_v57 = vadd.f32 %v2614_v8, %v2578_v34  ;;  %v4617_v26 = vsel %vm531_vm8, %v8250_v28, %v8452_v7  ;;  %v2820_v0 = vpop.permute.xlu1 %2819 }
 0xee3   :  { %v4411_v30 = vsel %vm629_vm12, %v8541_v15, %v8413_v46  ;;  %v4422_v23 = vadd.f32 %v8541_v15, %v4382_v61  ;;  %v4628_v5 = vadd.f32 %v8250_v28, %v4588_v47  ;;  %vm4769_vm13 = vcmask 416768  }
 0xee4   :  { %v4423_v45 = vadd.f32 %v4411_v30, %v4383_v14  ;;  %v2675_v56 = vadd.f32 %v2663_v60, %v2627_v53  ;;  %v2674_v55 = vadd.f32 %v2662_v11, %v2626_v57 }
 0xee6   :  { %v4408_v59 = vpop.permute.xlu0 %4407 }
 0xee7   :  { %v4412_v29 = vsel %vm629_vm12, %v8413_v46, %v4408_v59  ;;  %v4577_v46 = vsel %vm476_vm7, %v8329_v20, %v11255_v62  ;;  %v4618_v20 = vsel %vm531_vm8, %v8452_v7, %v8290_v54 }
 0xee8   :  { %v4424_v22 = vadd.f32 %v4412_v29, %v4384_v6  ;;  %v4589_v54 = vadd.f32 %v4577_v46, %v8580_v27  ;;  %v4630_v7 = vadd.f32 %v4618_v20, %v4590_v13  ;;  %v2625_v27 = vadd.f32 %v8385_v10, %v2577_v50 }
 0xee9   :  { %v11258_v46 = vmov 12  }
 0xeea   :  { %v8586_v38 = vpop.permute.xlu0 %4651  ;;  %v4629_v21 = vadd.f32 %v4617_v26, %v4589_v54  ;;  %v2673_v6 = vadd.f32 %v8339_v36, %v2625_v27 }
 0xeeb   :  { %v4657_v15 = vsel %vm580_vm11, %v8433_v49, %v8586_v38 }
 0xeec   :  { %v2721_v32 = vadd.f32 %v8454_v2, %v2673_v6 }
 0xeee   :  { %v5554_v18 = vpop.permute.xlu0 %5553 }
 0xeef   :  { %v8621_v63 = vunpack.i.h.bf16 %v5554_v18  ;;  %v8623_v16 = vunpack.i.l.bf16 %v5554_v18  ;;  %v4658_v18 = vsel %vm580_vm11, %v8586_v38, %v8444_v19  ;;  %v4669_v38 = vadd.f32 %v4657_v15, %v4629_v21  ;;  %v11262_v21 = vld [vmem:[#allocation39_spill] sm:$0xff] }
 0xef0   :  { %v4670_v19 = vadd.f32 %v4658_v18, %v4630_v7  ;;  %v11260_v18 = vld [vmem:[#allocation69_spill] sm:$0xff]  ;;  %v11261_v7 = vld [vmem:[#allocation64_spill] sm:$0xff] }
 0xef1   :  { %11253 = vst [vmem:[#allocation13_spill] sm:$0xff] %v8621_v63  ;;  %11254 = vst [vmem:[#allocation146_spill] sm:$0xff] %v8623_v16  ;;  %v2386_v42 = vmul.f32 %v8621_v63, %v2369_v3  ;;  %v8637_v43 = vsel %vm2376_vm14, %v8623_v16, %v8621_v63  ;;  %v4430_v40 = vmul.f32 %v8621_v63, %v4424_v22  ;;  %v2858_v22 = vpop.permute.xlu1 %2857  ;;  %vm4859_vm14 = vcmask 1041408  }
 0xef2   :  { %11256 = vst [vmem:[#allocation27_spill] sm:$0xff] %v8637_v43  ;;  %v2705_v41 = vpop.permute.xlu0 %2704  ;;  %v2385_v59 = vmul.f32 %v8637_v43, %v2368_v12  ;;  %v4429_v35 = vmul.f32 %v4423_v45, %v8637_v43  ;;  %v4428_v3 = vmul.f32 %v8623_v16, %v4422_v23  ;;  %v382_v15 = vsel %vm378_vm5, %v11261_v7, %v11260_v18 }
 0xef3   :  { %2403 = vrot.lane.b32.xlu0 %v2386_v42, %s5685_s23  ;;  %v2711_v52 = vsel %vm629_vm12, %v2705_v41, %v8476_v44  ;;  %v2710_v51 = vsel %vm629_vm12, %v8454_v2, %v2705_v41  ;;  %v2367_v44 = vadd.f32 %v8458_v33, %v8558_v37  ;;  %v4668_v42 = vadd.f32 %v8433_v49, %v4628_v5  ;;  %v4805_v2 = vld [vmem:[%s10482_s4 + $0x8] sm:$0x3f] }
 0xef4   :  { %2401 = vrot.lane.b32.xlu1 %v2385_v59, %s5685_s23  ;;  %v2723_v17 = vadd.f32 %v2711_v52, %v2675_v56  ;;  %v2722_v62 = vadd.f32 %v2710_v51, %v2674_v55  ;;  %v2738_v49 = vmul.f32 %v8571_v58, %v2721_v32 }
 0xef5   :  { %v2384_v37 = vmul.f32 %v8623_v16, %v2367_v44  ;;  %v2856_v13 = vpop.permute.xlu1 %2855  ;;  %v11259_v44 = vld [vmem:[#allocation4_spill] sm:$0xff] }
 0xef6   :  { %v4690_v4 = vpop.permute.xlu0 %4689  ;;  %v2740_v10 = vmul.f32 %v8563_v25, %v2723_v17  ;;  %v2739_v30 = vmul.f32 %v8597_v39, %v2722_v62  ;;  %v345_v55 = vmul.f32 %v8472_v31, %v11259_v44  ;;  %v344_v27 = vmul.f32 %v8468_v24, %v11259_v44 }
 0xef7   :  { %4447 = vrot.lane.b32.xlu0 %v4430_v40, %s5685_s23  ;;  %v4697_v12 = vsel %vm629_vm12, %v4690_v4, %v8522_v9  ;;  %v381_v62 = vsel %vm378_vm5, %v11262_v21, %v11261_v7  ;;  %v343_v31 = vmul.f32 %v8388_v48, %v11259_v44  ;;  %v11268_v48 = vld [vmem:[#allocation65_spill] sm:$0xff] }
 0xef8   :  { %4445 = vrot.lane.b32.xlu1 %v4429_v35, %s5685_s23  ;;  %v4709_v28 = vadd.f32 %v4697_v12, %v4669_v38  ;;  %v11271_v7 = vld [vmem:[#allocation73_spill] sm:$0xff] }
 0xef9   :  { %v2900_v45 = vpop.permute.xlu1 %2899 }
 0xefa   :  { %v4694_v33 = vpop.permute.xlu0 %4693  ;;  %v4715_v1 = vmul.f32 %v4709_v28, %v8597_v39 }
 0xefb   :  { %v4698_v29 = vsel %vm629_vm12, %v8522_v9, %v4694_v33  ;;  %4443 = vrot.lane.b32.xlu0 %v4428_v3, %s5685_s23  ;;  %v4708_v9 = vadd.f32 %v4690_v4, %v4668_v42  ;;  %v394_v3 = vadd.f32 %v11260_v18, %v345_v55  ;;  %v11263_v33 = vld [vmem:[#allocation70_spill] sm:$0xff]  ;;  %v11267_v42 = vld [vmem:[#allocation36_spill] sm:$0xff] }
 0xefc   :  { %2399 = vrot.lane.b32.xlu1 %v2384_v37, %s5685_s23  ;;  %v4710_v50 = vadd.f32 %v4698_v29, %v4670_v19  ;;  %v11264_v37 = vld [vmem:[#allocation62_spill] sm:$0xff]  ;;  %v393_v19 = vadd.f32 %v382_v15, %v344_v27 }
 0xefd   :  { %v4714_v36 = vmul.f32 %v8571_v58, %v4708_v9  ;;  %v8718_v61 = vpop.permute.xlu1 %2937  ;;  %v431_v5 = vsel %vm427_vm6, %v11264_v37, %v11263_v33  ;;  %v443_v12 = vadd.f32 %v11263_v33, %v394_v3  ;;  %v430_v9 = vsel %vm427_vm6, %v11267_v42, %v11264_v37  ;;  %v11270_v18 = vld [vmem:[#allocation38_spill] sm:$0xff]  ;;  %v11272_v3 = vld [vmem:[#allocation40_spill] sm:$0xff] }
 0xefe   :  { %v4716_v34 = vmul.f32 %v8563_v25, %v4710_v50  ;;  %v2818_v14 = vpop.permute.xlu0 %2817  ;;  %v442_v24 = vadd.f32 %v431_v5, %v393_v19  ;;  %v11265_v50 = vld [vmem:[#allocation213_spill] sm:$0xff]  ;;  %v535_v15 = vsel %vm531_vm8, %v11271_v7, %v11270_v18  ;;  %v479_v27 = vsel %vm476_vm7, %v11272_v3, %v11268_v48  ;;  %v11273_v37 = vld [vmem:[#allocation12_spill] sm:$0xff]  ;;  %v11274_v19 = vld [vmem:[#allocation66_spill] sm:$0xff] }
 0xeff   :  { %2757 = vrot.lane.b32.xlu0 %v2740_v10, %s5686_s24  ;;  %v392_v10 = vadd.f32 %v381_v62, %v343_v31  ;;  %v2796_v6 = vmul.f32 %v11265_v50, %v11259_v44  ;;  %v2824_v21 = vsel %vm378_vm5, %v2818_v14, %v2820_v0  ;;  %v2795_v5 = vmul.f32 %v11273_v37, %v11259_v44  ;;  %v11278_v18 = vld [vmem:[#allocation43_spill] sm:$0xff] }
 0xf00   :  { %2755 = vrot.lane.b32.xlu1 %v2739_v30, %s5686_s24  ;;  %v11266_v30 = vld [vmem:[#allocation71_spill] sm:$0xff] }
 0xf01   :  { %v2942_v40 = vpop.permute.xlu1 %2941  ;;  %v492_v28 = vadd.f32 %v11266_v30, %v443_v12  ;;  %v2836_v32 = vadd.f32 %v2820_v0, %v2796_v6  ;;  %v534_v12 = vsel %vm531_vm8, %v11274_v19, %v11271_v7  ;;  %v2835_v0 = vadd.f32 %v2824_v21, %v2795_v5  ;;  %v11279_v7 = vld [vmem:[#allocation74_spill] sm:$0xff]  ;;  %v11283_v5 = vld [vmem:[#allocation67_spill] sm:$0xff] }
 0xf02   :  { %v2816_v41 = vpop.permute.xlu0 %2815  ;;  %v11280_v21 = vld [vmem:[#allocation18_spill] sm:$0xff] }
 0xf03   :  { %4733 = vrot.lane.b32.xlu0 %v4716_v34, %s5686_s24  ;;  %v480_v34 = vsel %vm476_vm7, %v11268_v48, %v11266_v30 }
 0xf04   :  { %4731 = vrot.lane.b32.xlu1 %v4715_v1, %s5686_s24  ;;  %v2823_v1 = vsel %vm378_vm5, %v2816_v41, %v2818_v14  ;;  %v547_v41 = vadd.f32 %v535_v15, %v492_v28  ;;  %v633_v15 = vsel %vm629_vm12, %v11279_v7, %v11278_v18 }
 0xf05   :  { %v8722_v20 = vpop.permute.xlu1 %2979 }
 0xf06   :  { %v2860_v59 = vpop.permute.xlu0 %2859 }
 0xf07   :  { %4729 = vrot.lane.b32.xlu0 %v4714_v36, %s5686_s24  ;;  %v441_v36 = vadd.f32 %v430_v9, %v392_v10  ;;  %v2876_v62 = vadd.f32 %v2860_v59, %v2836_v32  ;;  %v11275_v10 = vld [vmem:[#allocation44_spill] sm:$0xff]  ;;  %v2864_v6 = vsel %vm427_vm6, %v2858_v22, %v2860_v59 }
 0xf08   :  { %2753 = vrot.lane.b32.xlu1 %v2738_v49, %s5686_s24  ;;  %v491_v49 = vadd.f32 %v480_v34, %v442_v24  ;;  %v11276_v24 = vld [vmem:[#allocation72_spill] sm:$0xff] }
 0xf09   :  { %v8726_v4 = vpop.permute.xlu1 %3017  ;;  %v584_v50 = vsel %vm580_vm11, %v11276_v24, %v11275_v10  ;;  %v490_v30 = vadd.f32 %v479_v27, %v441_v36  ;;  %v2916_v9 = vadd.f32 %v2900_v45, %v2876_v62 }
 0xf0a   :  { %v8712_v8 = vpop.permute.xlu0 %2897  ;;  %v546_v14 = vadd.f32 %v534_v12, %v491_v49  ;;  %v596_v59 = vadd.f32 %v584_v50, %v547_v41 }
 0xf0b   :  { %v2904_v48 = vsel %vm476_vm7, %v8712_v8, %v2900_v45 }
 0xf0c   :  { %4813 = vperm.xlu1 %5562, %v4805_v2   ;;  %v11269_v2 = vld [vmem:[#allocation214_spill] sm:$0xff]  ;;  %v645_v62 = vadd.f32 %v633_v15, %v596_v59 }
 0xf0d   :  { %v3022_v26 = vpop.permute.xlu1 %3021 }
 0xf0e   :  { %v2896_v47 = vpop.permute.xlu0 %2895 }
 0xf0f   :  { %v2903_v34 = vsel %vm476_vm7, %v2896_v47, %v8712_v8 }
 0xf10   :  { %5563 = vset.pattern.permute.xlu1 %v11258_v46  ;;  %v2794_v46 = vmul.f32 %v11269_v2, %v11259_v44  ;;  %v2863_v44 = vsel %vm427_vm6, %v2856_v13, %v2858_v22 }
 0xf11   :  { %v8730_v56 = vpop.permute.xlu1 %3313 }
 0xf12   :  { %v8714_v60 = vpop.permute.xlu0 %2939  ;;  %v2834_v31 = vadd.f32 %v2823_v1, %v2794_v46  ;;  %v2875_v1 = vadd.f32 %v2864_v6, %v2835_v0 }
 0xf13   :  { %v2946_v28 = vsel %vm531_vm8, %v8714_v60, %v2942_v40  ;;  %v11277_v40 = vld [vmem:[#allocation63_spill] sm:$0xff]  ;;  %v2945_v22 = vsel %vm531_vm8, %v8718_v61, %v8714_v60  ;;  %v8822_v60 = vunpack.i.h.bf16 %v11280_v21 }
 0xf14   :  { %v2874_v36 = vadd.f32 %v2863_v44, %v2834_v31  ;;  %v583_v2 = vsel %vm580_vm11, %v11277_v40, %v11276_v24  ;;  %v2958_v13 = vadd.f32 %v2946_v28, %v2916_v9  ;;  %v2915_v46 = vadd.f32 %v2904_v48, %v2875_v1  ;;  %v11285_v44 = vld [vmem:[#allocation111_spill] sm:$0xff]  ;;  %v11286_v9 = vld [vmem:[#allocation109_spill] sm:$0xff] }
 0xf15   :  { %v8734_v51 = vpop.permute.xlu1 %3597  ;;  %v595_v45 = vadd.f32 %v583_v2, %v546_v14  ;;  %11281 = vst [vmem:[#allocation174_spill] sm:$0xff] %v8822_v60  ;;  %v632_v31 = vsel %vm629_vm12, %v11283_v5, %v11279_v7  ;;  %v1004_v48 = vsel %vm1000_vm1, %v11286_v9, %v11285_v44  ;;  %v11289_v7 = vld [vmem:[#allocation68_spill] sm:$0xff] }
 0xf16   :  { %v8716_v53 = vpop.permute.xlu0 %2977  ;;  %v2914_v8 = vadd.f32 %v2903_v34, %v2874_v36  ;;  %v2957_v41 = vadd.f32 %v2945_v22, %v2915_v46  ;;  %v11287_v36 = vld [vmem:[#allocation82_spill] sm:$0xff]  ;;  %v1003_v15 = vsel %vm1000_vm1, %v11289_v7, %v11286_v9 }
 0xf17   :  { %v2985_v3 = vsel %vm580_vm11, %v8716_v53, %v8722_v20  ;;  %v644_v10 = vadd.f32 %v632_v31, %v595_v45 }
 0xf18   :  { %v2956_v24 = vadd.f32 %v8718_v61, %v2914_v8  ;;  %v2997_v50 = vadd.f32 %v2985_v3, %v2957_v41  ;;  %v11290_v3 = vld [vmem:[#allocation119_spill] sm:$0xff] }
 0xf19   :  { %v8743_v17 = vpop.permute.xlu1 %3595 }
 0xf1a   :  { %v2982_v11 = vpop.permute.xlu0 %2981  ;;  %v2996_v14 = vadd.f32 %v8716_v53, %v2956_v24  ;;  %v11292_v24 = vld [vmem:[#allocation84_spill] sm:$0xff] }
 0xf1b   :  { %v2986_v49 = vsel %vm580_vm11, %v8722_v20, %v2982_v11  ;;  %v545_v11 = vadd.f32 %v11274_v19, %v490_v30  ;;  %v662_v30 = vmul.f32 %v8822_v60, %v645_v62 }
 0xf1c   :  { %v2998_v27 = vadd.f32 %v2986_v49, %v2958_v13  ;;  %v11288_v49 = vld [vmem:[#allocation88_spill] sm:$0xff]  ;;  %v3036_v13 = vadd.f32 %v8726_v4, %v2996_v14 }
 0xf1d   :  { %v8759_v38 = vpop.permute.xlu1 %3875  ;;  %v594_v6 = vadd.f32 %v11277_v40, %v545_v11  ;;  %v1016_v1 = vadd.f32 %v11285_v44, %v662_v30  ;;  %v1358_v40 = vsel %vm1354_vm2, %v11288_v49, %v11287_v36 }
 0xf1e   :  { %v8720_v57 = vpop.permute.xlu0 %3019 }
 0xf1f   :  { %v3026_v47 = vsel %vm629_vm12, %v8720_v57, %v3022_v26  ;;  %v8827_v26 = vunpack.i.l.bf16 %v11280_v21  ;;  %v3025_v19 = vsel %vm629_vm12, %v8726_v4, %v8720_v57  ;;  %v643_v53 = vadd.f32 %v11283_v5, %v594_v6 }
 0xf20   :  { %v3038_v20 = vadd.f32 %v3026_v47, %v2998_v27  ;;  %v3037_v0 = vadd.f32 %v3025_v19, %v2997_v50  ;;  %v1370_v22 = vadd.f32 %v11287_v36, %v1016_v1  ;;  %v11291_v27 = vld [vmem:[#allocation120_spill] sm:$0xff]  ;;  %v3603_v1 = vsel %vm1354_vm2, %v8743_v17, %v8734_v51 }
 0xf21   :  { %v8782_v33 = vpop.permute.xlu1 %2047  ;;  %11282 = vst [vmem:[#allocation46_spill] sm:$0xff] %v8827_v26  ;;  %v8843_v57 = vsel %vm652_vm15, %v8827_v26, %v8822_v60  ;;  %v1701_v4 = vsel %vm1697_vm3, %v11291_v27, %v11290_v3  ;;  %v660_v5 = vmul.f32 %v8827_v26, %v643_v53  ;;  %v3042_v19 = vmul.f32 %v8827_v26, %v3036_v13 }
 0xf22   :  { %v8724_v52 = vpop.permute.xlu0 %3311  ;;  %11284 = vst [vmem:[#allocation85_spill] sm:$0xff] %v8843_v57  ;;  %v3044_v61 = vmul.f32 %v8822_v60, %v3038_v20  ;;  %v661_v59 = vmul.f32 %v8843_v57, %v644_v10  ;;  %v3043_v45 = vmul.f32 %v3037_v0, %v8843_v57  ;;  %v1713_v21 = vadd.f32 %v11290_v3, %v1370_v22  ;;  %v11293_v22 = vld [vmem:[#allocation117_spill] sm:$0xff] }
 0xf23   :  { %v3318_v8 = vsel %vm1000_vm1, %v8724_v52, %v8730_v56  ;;  %v1014_v30 = vadd.f32 %v1003_v15, %v660_v5  ;;  %v1700_v13 = vsel %vm1697_vm3, %v11293_v22, %v11291_v27  ;;  %vm4855_vm15 = vcmask 15360  }
 0xf24   :  { %v1015_v2 = vadd.f32 %v1004_v48, %v661_v59  ;;  %v3330_v47 = vadd.f32 %v8730_v56, %v3044_v61  ;;  %v3329_v31 = vadd.f32 %v3318_v8, %v3043_v45 }
 0xf26   :  { %v8728_v35 = vpop.permute.xlu0 %3309  ;;  %v1369_v11 = vadd.f32 %v1358_v40, %v1015_v2 }
 0xf27   :  { %v3317_v62 = vsel %vm1000_vm1, %v8728_v35, %v8724_v52  ;;  %v1357_v52 = vsel %vm1354_vm2, %v11292_v24, %v11288_v49  ;;  %v11295_v24 = vmov 33  }
 0xf28   :  { %v1712_v35 = vadd.f32 %v1701_v4, %v1369_v11  ;;  %v3328_v14 = vadd.f32 %v3317_v62, %v3042_v19  ;;  %v1368_v59 = vadd.f32 %v1357_v52, %v1014_v30  ;;  %v11296_v52 = vmov 26   ;;  %v11300_v30 = vld [vmem:[#allocation20_spill] sm:$0xff] }
 0xf2a   :  { %v8732_v23 = vpop.permute.xlu0 %3599  ;;  %v1711_v11 = vadd.f32 %v1700_v13, %v1368_v59  ;;  %v11305_v59 = vmov 47  }
 0xf2b   :  { %v3604_v56 = vsel %vm1354_vm2, %v8734_v51, %v8732_v23  ;;  %v3616_v41 = vadd.f32 %v8732_v23, %v3330_v47  ;;  %v3614_v51 = vadd.f32 %v3603_v1, %v3328_v14  ;;  %v8948_v1 = vld [vmem:[#allocation2 + $0x48] sm:$0xff] }
 0xf2c   :  { %v3615_v0 = vadd.f32 %v3604_v56, %v3329_v31  ;;  %v3052_v13 = vmul.f32 %v8948_v1, %v11300_v30 }
 0xf2d   :  { %v3892_v48 = vadd.f32 %v8759_v38, %v3616_v41 }
 0xf2e   :  { %v8736_v54 = vpop.permute.xlu0 %3873 }
 0xf2f   :  { %v3880_v23 = vsel %vm1697_vm3, %v8736_v54, %v8759_v38 }
 0xf30   :  { %v3891_v53 = vadd.f32 %v3880_v23, %v3615_v0  ;;  %v11298_v23 = vmov 20   ;;  %v11301_v0 = vmov 27  }
 0xf32   :  { %v8757_v29 = vpop.permute.xlu0 %3871 }
 0xf33   :  { %v3879_v49 = vsel %vm1697_vm3, %v8757_v29, %v8736_v54 }
 0xf36   :  { %v8773_v55 = vpop.permute.xlu0 %2049 }
 0xf37   :  { %v2055_v20 = vsel %vm2051_vm4, %v8782_v33, %v8773_v55  ;;  %v2067_v50 = vadd.f32 %v8773_v55, %v1713_v21 }
 0xf38   :  { %v2066_v9 = vadd.f32 %v2055_v20, %v1712_v35  ;;  %v11297_v35 = vmov 34  }
 0xf3e   :  { %v8795_v42 = vpop.permute.xlu0 %4161  ;;  %v8802_v32 = vpop.permute.xlu1 %4159 }
 0xf3f   :  { %v4166_v55 = vsel %vm2051_vm4, %v8802_v32, %v8795_v42  ;;  %v4178_v40 = vadd.f32 %v8795_v42, %v3892_v48  ;;  %v3890_v42 = vadd.f32 %v3879_v49, %v3614_v51  ;;  %v4841_v48 = vld [vmem:[%s10483_s6] sm:$0xf] }
 0xf40   :  { %v4177_v8 = vadd.f32 %v4166_v55, %v3891_v53  ;;  %v11306_v53 = vld [vmem:[#allocation79_spill] sm:$0xff] }
 0xf41   :  { %v3338_v55 = vmul.f32 %v8948_v1, %v11306_v53  ;;  %v8954_v49 = vld [vmem:[#allocation2] sm:$0xff] }
 0xf42   :  { %v8824_v37 = vpop.permute.xlu0 %4157  ;;  %v8835_v12 = vpop.permute.xlu1 %2045  ;;  %v11311_v51 = vld [vmem:[#allocation83_spill] sm:$0xff] }
 0xf43   :  { %v4165_v47 = vsel %vm2051_vm4, %v8824_v37, %v8802_v32  ;;  %v2054_v7 = vsel %vm2051_vm4, %v8835_v12, %v8782_v33 }
 0xf44   :  { %v4176_v32 = vadd.f32 %v4165_v47, %v3890_v42  ;;  %v2065_v62 = vadd.f32 %v2054_v7, %v1711_v11  ;;  %v11313_v11 = vld [vmem:[#allocation26_spill] sm:$0xff] }
 0xf65   :  { %v2404_v28 = vpop.permute.xlu0 %2403 }
 0xf66   :  { %v8849_v34 = vpop.permute.xlu1 %2401  ;;  %v2421_v61 = vadd.f32 %v2404_v28, %v2067_v50  ;;  %v11299_v50 = vmov 48  }
 0xf67   :  { %v2409_v44 = vsel %vm2405_vm9, %v8849_v34, %v2404_v28 }
 0xf68   :  { %v2420_v38 = vadd.f32 %v2409_v44, %v2066_v9  ;;  %v11302_v44 = vmov 6   ;;  %v11303_v9 = vmov 40  }
 0xf69   :  { %v4448_v46 = vpop.permute.xlu0 %4447 }
 0xf6a   :  { %v4446_v18 = vpop.permute.xlu1 %4445  ;;  %v4464_v54 = vadd.f32 %v4448_v46, %v4178_v40  ;;  %v11308_v40 = vld [vmem:[#allocation22_spill] sm:$0xff] }
 0xf6b   :  { %v4452_v17 = vsel %vm2405_vm9, %v4446_v18, %v4448_v46 }
 0xf6c   :  { %v4463_v3 = vadd.f32 %v4452_v17, %v4177_v8  ;;  %v3378_v17 = vmul.f32 %v8948_v1, %v11311_v51  ;;  %v11312_v8 = vld [vmem:[#allocation86_spill] sm:$0xff] }
 0xf6d   :  { %v4444_v10 = vpop.permute.xlu0 %4443  ;;  %v3624_v47 = vmul.f32 %v8948_v1, %v11312_v8  ;;  %v3623_v7 = vmul.f32 %v8954_v49, %v11312_v8 }
 0xf6e   :  { %v2400_v6 = vpop.permute.xlu1 %2399  ;;  %v4451_v27 = vsel %vm2405_vm9, %v4444_v10, %v4446_v18  ;;  %v11294_v10 = vmov 19  }
 0xf6f   :  { %v2408_v37 = vsel %vm2405_vm9, %v2400_v6, %v8849_v34  ;;  %v4462_v33 = vadd.f32 %v4451_v27, %v4176_v32  ;;  %v5607_v34 = vld [vmem:[%s10478_s3] sm:$0xff]  ;;  %v8935_v6 = vld [vmem:[#allocation2 + $0x50] sm:$0xff]  ;;  %v3337_v27 = vmul.f32 %v8954_v49, %v11306_v53 }
 0xf70   :  { %v2419_v41 = vadd.f32 %v2408_v37, %v2065_v62  ;;  %v3053_v14 = vmul.f32 %v8935_v6, %v11300_v30  ;;  %v3093_v42 = vmul.f32 %v8935_v6, %v11308_v40  ;;  %v11315_v37 = vld [vmem:[#allocation97_spill] sm:$0xff]  ;;  %v3379_v62 = vmul.f32 %v8935_v6, %v11311_v51 }
 0xf71   :  { %v2758_v36 = vpop.permute.xlu0 %2757 }
 0xf72   :  { %v2775_v28 = vadd.f32 %v2758_v36, %v2421_v61  ;;  %v2756_v2 = vpop.permute.xlu1 %2755  ;;  %v11304_v61 = vmov 0  }
 0xf73   :  { %v2763_v45 = vsel %vm2759_vm10, %v2756_v2, %v2758_v36  ;;  %v11307_v36 = vmov 41  }
 0xf74   :  { %v2774_v29 = vadd.f32 %v2763_v45, %v2420_v38  ;;  %4767 = vrot.lane.b32.xlu1 %v2775_v28, %s5687_s27  ;;  %v3091_v38 = vmul.f32 %v8954_v49, %v11308_v40  ;;  %v11309_v28 = vmov 5   ;;  %v3051_v45 = vmul.f32 %v8954_v49, %v11300_v30 }
 0xf75   :  { %v4734_v15 = vpop.permute.xlu0 %4733 }
 0xf76   :  { %v4750_v4 = vadd.f32 %v4734_v15, %v4464_v54  ;;  %4765 = vrot.lane.b32.xlu0 %v2774_v29, %s5687_s27  ;;  %v4732_v21 = vpop.permute.xlu1 %4731  ;;  %v3092_v54 = vmul.f32 %v8948_v1, %v11308_v40 }
 0xf77   :  { %v4738_v46 = vsel %vm2759_vm10, %v4732_v21, %v4734_v15  ;;  %v3339_v15 = vmul.f32 %v8935_v6, %v11306_v53 }
 0xf78   :  { %v4749_v56 = vadd.f32 %v4738_v46, %v4463_v3  ;;  %4794 = vrot.lane.b32.xlu1 %v4750_v4, %s5687_s27  ;;  %v3172_v3 = vmul.f32 %v8935_v6, %v11313_v11  ;;  %v11314_v4 = vld [vmem:[#allocation89_spill] sm:$0xff]  ;;  %v3664_v46 = vmul.f32 %v8948_v1, %v11315_v37 }
 0xf79   :  { %v4730_v12 = vpop.permute.xlu0 %4729 }
 0xf7a   :  { %v4737_v5 = vsel %vm2759_vm10, %v4730_v12, %v4732_v21  ;;  %4792 = vrot.lane.b32.xlu0 %v4749_v56, %s5687_s27  ;;  %v2754_v18 = vpop.permute.xlu1 %2753  ;;  %v3418_v21 = vmul.f32 %v8948_v1, %v11314_v4  ;;  %v11316_v56 = vld [vmem:[#allocation122_spill] sm:$0xff]  ;;  %v3625_v12 = vmul.f32 %v8935_v6, %v11312_v8 }
 0xf7b   :  { %v4748_v31 = vadd.f32 %v4737_v5, %v4462_v33  ;;  %v2762_v19 = vsel %vm2759_vm10, %v2754_v18, %v2756_v2  ;;  %v11310_v2 = vld [vmem:[#allocation25_spill] sm:$0xff]  ;;  %v3900_v33 = vmul.f32 %v8948_v1, %v11316_v56  ;;  %v3377_v5 = vmul.f32 %v8954_v49, %v11311_v51 }
 0xf7c   :  { %v2773_v20 = vadd.f32 %v2762_v19, %v2419_v41  ;;  %v3132_v22 = vmul.f32 %v8948_v1, %v11310_v2  ;;  %v3131_v29 = vmul.f32 %v8954_v49, %v11310_v2  ;;  %v3133_v32 = vmul.f32 %v8935_v6, %v11310_v2 }
 0xf7d   :  { %4790 = vrot.lane.b32.xlu1 %v4748_v31, %s5687_s27  ;;  %v3417_v41 = vmul.f32 %v8954_v49, %v11314_v4  ;;  %v3899_v18 = vmul.f32 %v8954_v49, %v11316_v56  ;;  %v3171_v31 = vmul.f32 %v8948_v1, %v11313_v11  ;;  %v3173_v19 = vmul.f32 %v8954_v49, %v11313_v11 }
 0xf7e   :  { %4763 = vrot.lane.b32.xlu0 %v2773_v20, %s5687_s27  ;;  %v3419_v20 = vmul.f32 %v8935_v6, %v11314_v4  ;;  %v9073_v4 = vld [vmem:[#allocation2 + $0x10] sm:$0xff] }
 0xf81   :  { %2083 = vperm.xlu1 %5563, %v5607_v34  }
 0xf82   :  { %2437 = vperm.xlu0 %5565, %v5607_v34  }
 0xf85   :  { %5564 = vset.pattern.permute.xlu1 %v11294_v10 }
 0xf86   :  { %2131 = vperm.xlu1 %5564, %v5607_v34   ;;  %5568 = vset.pattern.permute.xlu0 %v11295_v24  ;;  %v3901_v24 = vmul.f32 %v8935_v6, %v11316_v56 }
 0xf87   :  { %2227 = vperm.xlu0 %5568, %v5607_v34  }
 0xf8a   :  { %5566 = vset.pattern.permute.xlu1 %v11296_v52 }
 0xf8b   :  { %2179 = vperm.xlu1 %5566, %v5607_v34   ;;  %5571 = vset.pattern.permute.xlu0 %v11297_v35  ;;  %v4814_v10 = vpop.permute.xlu1 %4813  ;;  %v3663_v35 = vmul.f32 %v8954_v49, %v11315_v37 }
 0xf8c   :  { %2581 = vperm.xlu0 %5571, %v5607_v34  }
 0xf8f   :  { %5567 = vset.pattern.permute.xlu1 %v11298_v23 }
 0xf90   :  { %2485 = vperm.xlu1 %5567, %v5607_v34   ;;  %5574 = vset.pattern.permute.xlu0 %v11299_v50 }
 0xf91   :  { %2677 = vperm.xlu0 %5574, %v5607_v34  }
 0xf94   :  { %5569 = vset.pattern.permute.xlu1 %v11301_v0 }
 0xf95   :  { %2533 = vperm.xlu1 %5569, %v5607_v34   ;;  %3067 = vrot.lane.b32.xlu0 %v3053_v14, %s5634_s2 }
 0xf96   :  { %5576 = vset.pattern.permute.xlu0 %v11302_v44 }
 0xf99   :  { %5570 = vset.pattern.permute.xlu1 %v11303_v9  ;;  %2423 = vperm.xlu0 %5576, %v5607_v34  }
 0xf9a   :  { %2275 = vperm.xlu1 %5570, %v5607_v34  }
 0xf9d   :  { %5577 = vset.pattern.permute.xlu0 %v11304_v61 }
 0xf9e   :  { %5572 = vset.pattern.permute.xlu1 %v11305_v59  ;;  %4844 = vperm.xlu0 %5577, %v4841_v48  }
 0xf9f   :  { %2323 = vperm.xlu1 %5572, %v5607_v34  }
 0xfa2   :  { %3351 = vrot.lane.b32.xlu0 %v3338_v55, %s5634_s2 }
 0xfa3   :  { %5573 = vset.pattern.permute.xlu1 %v11307_v36 }
 0xfa4   :  { %2629 = vperm.xlu1 %5573, %v5607_v34  }
 0xfa6   :  { %3103 = vrot.lane.b32.xlu0 %v3091_v38, %s5635_s17 }
 0xfa8   :  { %5575 = vset.pattern.permute.xlu1 %v11309_v28 }
 0xfa9   :  { %2069 = vperm.xlu1 %5575, %v5607_v34   ;;  %v3665_v34 = vmul.f32 %v8935_v6, %v11315_v37 }
 0xfaa   :  { %3145 = vrot.lane.b32.xlu0 %v3132_v22, %s5636_s18 }
 0xfad   :  { %3065 = vrot.lane.b32.xlu1 %v3052_v13, %s5634_s2  ;;  %v11318_v13 = vld [vmem:[#allocation33_spill] sm:$0xff] }
 0xfae   :  { %3391 = vrot.lane.b32.xlu0 %v3378_v17, %s5635_s17  ;;  %5578 = vset.pattern.permute.xlu1 %v11304_v61  ;;  %v11317_v61 = vld [vmem:[#allocation32_spill] sm:$0xff] }
 0xfb1   :  { %3063 = vrot.lane.b32.xlu1 %v3051_v45, %s5634_s2 }
 0xfb2   :  { %3637 = vrot.lane.b32.xlu0 %v3624_v47, %s5634_s2  ;;  %v11319_v47 = vld [vmem:[#allocation31_spill] sm:$0xff] }
 0xfb5   :  { %3105 = vrot.lane.b32.xlu1 %v3092_v54, %s5635_s17 }
 0xfb6   :  { %3143 = vrot.lane.b32.xlu0 %v3131_v29, %s5636_s18  ;;  %v11320_v29 = vld [vmem:[#allocation30_spill] sm:$0xff] }
 0xfb9   :  { %3107 = vrot.lane.b32.xlu1 %v3093_v42, %s5635_s17 }
 0xfba   :  { %3635 = vrot.lane.b32.xlu0 %v3623_v7, %s5634_s2 }
 0xfbd   :  { %3353 = vrot.lane.b32.xlu1 %v3339_v15, %s5634_s2  ;;  %v4840_v15 = vld [vmem:[%s10484_s5] sm:$0xf] }
 0xfbe   :  { %3185 = vrot.lane.b32.xlu0 %v3172_v3, %s5637_s19 }
 0xfc1   :  { %3349 = vrot.lane.b32.xlu1 %v3337_v27, %s5634_s2 }
 0xfc2   :  { %3431 = vrot.lane.b32.xlu0 %v3418_v21, %s5636_s18 }
 0xfc5   :  { %3147 = vrot.lane.b32.xlu1 %v3133_v32, %s5636_s18  ;;  %v9076_v32 = vld [vmem:[#allocation2 + $0x8] sm:$0xff] }
 0xfc6   :  { %3677 = vrot.lane.b32.xlu0 %v3664_v46, %s5635_s17 }
 0xfc9   :  { %3393 = vrot.lane.b32.xlu1 %v3379_v62, %s5635_s17  ;;  %v11321_v62 = vld [vmem:[#allocation28_spill] sm:$0xff] }
 0xfca   :  { %3913 = vrot.lane.b32.xlu0 %v3900_v33, %s5634_s2  ;;  %v3212_v56 = vmul.f32 %v8935_v6, %v11321_v62  ;;  %v3211_v33 = vmul.f32 %v8948_v1, %v11321_v62 }
 0xfcd   :  { %3639 = vrot.lane.b32.xlu1 %v3625_v12, %s5634_s2 }
 0xfce   :  { %3429 = vrot.lane.b32.xlu0 %v3417_v41, %s5636_s18  ;;  %v11322_v41 = vld [vmem:[#allocation96_spill] sm:$0xff] }
 0xfd1   :  { %3389 = vrot.lane.b32.xlu1 %v3377_v5, %s5635_s17  ;;  %v3457_v5 = vmul.f32 %v8948_v1, %v11322_v41 }
 0xfd2   :  { %3911 = vrot.lane.b32.xlu0 %v3899_v18, %s5634_s2  ;;  %v3213_v18 = vmul.f32 %v8954_v49, %v11321_v62 }
 0xfd5   :  { %3183 = vrot.lane.b32.xlu1 %v3171_v31, %s5637_s19 }
 0xfd9   :  { %3187 = vrot.lane.b32.xlu1 %v3173_v19, %s5637_s19 }
 0xfdd   :  { %3433 = vrot.lane.b32.xlu1 %v3419_v20, %s5636_s18  ;;  %v3459_v20 = vmul.f32 %v8954_v49, %v11322_v41 }
 0xfe1   :  { %3679 = vrot.lane.b32.xlu1 %v3665_v34, %s5635_s17  ;;  %v3458_v34 = vmul.f32 %v8935_v6, %v11322_v41 }
 0xfe5   :  { %3915 = vrot.lane.b32.xlu1 %v3901_v24, %s5634_s2 }
 0xfe6   :  { %v4768_v52 = vpop.permute.xlu1 %4767 }
 0xfe8   :  { %v4766_v23 = vpop.permute.xlu0 %4765 }
 0xfe9   :  { %v4773_v50 = vsel %vm4769_vm13, %v4766_v23, %v4768_v52  ;;  %3675 = vrot.lane.b32.xlu1 %v3663_v35, %s5635_s17  ;;  %v11323_v52 = vld [vmem:[#allocation94_spill] sm:$0xff] }
 0xfea   :  { %v9043_v30 = vadd.f32 %v4814_v10, %v4773_v50  ;;  %v4795_v14 = vpop.permute.xlu1 %4794  ;;  %v3704_v35 = vmul.f32 %v8935_v6, %v11323_v52 }
 0xfec   :  { %v4829_v0 = vrot.slane %v9043_v30, 6  ;;  %v4793_v44 = vpop.permute.xlu0 %4792 }
 0xfed   :  { %v4799_v9 = vsel %vm4769_vm13, %v4793_v44, %v4795_v14  ;;  %v11324_v14 = vld [vmem:[#allocation126_spill] sm:$0xff] }
 0xfee   :  { %v9047_v48 = vadd.f32 %v4814_v10, %v4799_v9  ;;  %v4837_v59 = vmul.f32 %v4829_v0, %v11317_v61  ;;  %v3941_v0 = vmul.f32 %v8935_v6, %v11324_v14 }
 0xfef   :  { %v4791_v53 = vpop.permute.xlu1 %4790 }
 0xff0   :  { %v4831_v55 = vrot.slane %v9047_v48, 6  ;;  %v4798_v36 = vsel %vm4769_vm13, %v4791_v53, %v4793_v44  ;;  %v4764_v40 = vpop.permute.xlu0 %4763  ;;  %v4852_v38 = vrot.slane %v4837_v59, 6  ;;  %v3940_v44 = vmul.f32 %v8948_v1, %v11324_v14 }
 0xff1   :  { %v9052_v28 = vadd.f32 %v4814_v10, %v4798_v36  ;;  %v4772_v2 = vsel %vm4769_vm13, %v4764_v40, %v4766_v23  ;;  %v3703_v23 = vmul.f32 %v8948_v1, %v11323_v52  ;;  %v3939_v36 = vmul.f32 %v8954_v49, %v11324_v14 }
 0xff2   :  { %v9055_v22 = vadd.f32 %v4814_v10, %v4772_v2  ;;  %5360 = vmatprep.subr.msk.mxu0 %vm4859_vm14, %v4852_v38  ;;  %v4839_v51 = vmul.f32 %v4831_v55, %v11318_v13 }
 0xff3   :  { %v4830_v17 = vrot.slane %v9052_v28, 6 }
 0xff4   :  { %v4828_v45 = vrot.slane %v9055_v22, 6  ;;  %v4854_v8 = vrot.slane %v4839_v51, 6 }
 0xff5   :  { %v4838_v54 = vmul.f32 %v4830_v17, %v11319_v47 }
 0xff6   :  { %v4836_v42 = vmul.f32 %v4828_v45, %v11320_v29  ;;  %5363 = vmatprep.subr.msk.mxu1 %vm4859_vm14, %v4854_v8 }
 0xff7   :  { %v4853_v7 = vrot.slane %v4838_v54, 6  ;;  %v11327_v54 = vld [vmem:[#allocation47_spill] sm:$0xff] }
 0xff8   :  { %v4851_v11 = vrot.slane %v4836_v42, 6  ;;  %v3251_v29 = vmul.f32 %v8948_v1, %v11327_v54 }
 0xff9   :  { %5364 = vmatpush1.msk.msra.mxu1 %vm4859_vm14, %v4853_v7 }
 0xffa   :  { %5361 = vmatpush1.msk.msra.mxu0 %vm4859_vm14, %v4851_v11  ;;  %5365 = vmatmul.mubr.msk.f32.vlgmr.msra.gmra.mrb[4].mxu1 %vm4855_vm15, %v4840_v15  ;;  %v3252_v11 = vmul.f32 %v8935_v6, %v11327_v54  ;;  %vm5025_vm14 = vcmask 1043456  }
 0xffb   :  { %5362 = vmatmul.mubr.msk.f32.vlgmr.msra.gmra.mrb[4].mxu0 %vm4855_vm15, %v4840_v15  ;;  %5173 = vmatprep.mubr.f32.mxu1 %v8954_v49  ;;  %v3253_v15 = vmul.f32 %v8954_v49, %v11327_v54  ;;  %vm5021_vm15 = vcmask 31744  }
 0xffc   :  { %5102 = vmatprep.mubr.f32.mxu0 %v8954_v49 }
0x1000   :  { %v2084_v3 = vpop.permute.xlu1 %2083 }
0x1001   :  { %v9071_v27 = vpop.permute.xlu0 %2437  ;;  %v2092_v21 = vmul.f32 %v9073_v4, %v2084_v3  ;;  %v2091_v37 = vmul.f32 %v9076_v32, %v2084_v3  ;;  %v4187_v59 = vmul.f32 %v8935_v6, %v2084_v3  ;;  %v4186_v53 = vmul.f32 %v8948_v1, %v2084_v3 }
0x1002   :  { %v2090_v40 = vmul.f32 %v8954_v49, %v2084_v3  ;;  %v2445_v17 = vmul.f32 %v9076_v32, %v9071_v27  ;;  %v2446_v42 = vmul.f32 %v9073_v4, %v9071_v27 }
0x1003   :  { %2106 = vrot.lane.b32.xlu0 %v2092_v21, %s5634_s2  ;;  %2104 = vrot.lane.b32.xlu1 %v2091_v37, %s5634_s2  ;;  %v11328_v37 = vld [vmem:[#allocation105_spill] sm:$0xff] }
0x1004   :  { %v3498_v62 = vmul.f32 %v8935_v6, %v11328_v37 }
0x1005   :  { %v9081_v46 = vpop.permute.xlu1 %2131 }
0x1006   :  { %v9087_v12 = vpop.permute.xlu0 %2227  ;;  %v2139_v2 = vmul.f32 %v9076_v32, %v9081_v46  ;;  %v2140_v45 = vmul.f32 %v9073_v4, %v9081_v46  ;;  %v4227_v54 = vmul.f32 %v8935_v6, %v9081_v46 }
0x1007   :  { %3225 = vrot.lane.b32.xlu0 %v3212_v56, %s5638_s20  ;;  %3223 = vrot.lane.b32.xlu1 %v3211_v33, %s5638_s20  ;;  %v3497_v56 = vmul.f32 %v8948_v1, %v11328_v37  ;;  %v2236_v39 = vmul.f32 %v8954_v49, %v9087_v12 }
0x100a   :  { %v9095_v31 = vpop.permute.xlu1 %2179 }
0x100b   :  { %v9097_v19 = vpop.permute.xlu0 %2581  ;;  %3469 = vrot.lane.b32.xlu0 %v3457_v5, %s5637_s19  ;;  %3227 = vrot.lane.b32.xlu1 %v3213_v18, %s5638_s20  ;;  %v11329_v5 = vld [vmem:[#allocation110_spill] sm:$0xff]  ;;  %v4266_v60 = vmul.f32 %v8935_v6, %v9095_v31 }
0x100c   :  { %v3733_v18 = vmul.f32 %v8948_v1, %v11329_v5  ;;  %v3735_v52 = vmul.f32 %v8954_v49, %v11329_v5 }
0x100f   :  { %v9105_v10 = vpop.permute.xlu1 %2485  ;;  %3473 = vrot.lane.b32.xlu0 %v3459_v20, %s5637_s19  ;;  %3471 = vrot.lane.b32.xlu1 %v3458_v34, %s5637_s19  ;;  %v3499_v20 = vmul.f32 %v8954_v49, %v11328_v37 }
0x1010   :  { %v9109_v24 = vpop.permute.xlu0 %2677 }
0x1013   :  { %3713 = vrot.lane.b32.xlu0 %v3704_v35, %s5636_s18  ;;  %3711 = vrot.lane.b32.xlu1 %v3703_v23, %s5636_s18  ;;  %v3734_v35 = vmul.f32 %v8935_v6, %v11329_v5 }
0x1014   :  { %v9117_v50 = vpop.permute.xlu1 %2533  ;;  %v9123_v9 = vpop.permute.xlu0 %3067 }
0x1017   :  { %3955 = vrot.lane.b32.xlu0 %v3941_v0, %s5635_s17  ;;  %3953 = vrot.lane.b32.xlu1 %v3940_v44, %s5635_s17  ;;  %v11330_v0 = vld [vmem:[#allocation130_spill] sm:$0xff] }
0x1018   :  { %v9133_v55 = vpop.permute.xlu0 %2423  ;;  %v3980_v44 = vmul.f32 %v8935_v6, %v11330_v0 }
0x1019   :  { %v9127_v61 = vpop.permute.xlu1 %2275  ;;  %11325 = vst [vmem:[#allocation24_spill] sm:$0xff] %v9133_v55 }
0x101b   :  { %4201 = vrot.lane.b32.xlu0 %v4187_v59, %s5634_s2  ;;  %4199 = vrot.lane.b32.xlu1 %v4186_v53, %s5634_s2  ;;  %v3979_v59 = vmul.f32 %v8948_v1, %v11330_v0 }
0x101d   :  { %v9144_v13 = vpop.permute.xlu0 %4844 }
0x101e   :  { %v9138_v38 = vpop.permute.xlu1 %2323 }
0x101f   :  { %3951 = vrot.lane.b32.xlu0 %v3939_v36, %s5635_s17  ;;  %2102 = vrot.lane.b32.xlu1 %v2090_v40, %s5634_s2 }
0x1021   :  { %v9158_v47 = vpop.permute.xlu0 %3351 }
0x1023   :  { %v9146_v51 = vpop.permute.xlu1 %2629  ;;  %2152 = vrot.lane.b32.xlu0 %v2139_v2, %s5635_s17  ;;  %4197 = vrot.lane.b32.xlu1 %v2090_v40, %s5634_s2  ;;  %v4226_v40 = vmul.f32 %v8948_v1, %v9081_v46  ;;  %v3981_v2 = vmul.f32 %v8954_v49, %v11330_v0 }
0x1025   :  { %v9172_v3 = vpop.permute.xlu0 %3103 }
0x1027   :  { %2458 = vrot.lane.b32.xlu0 %v2445_v17, %s5634_s2  ;;  %2154 = vrot.lane.b32.xlu1 %v2140_v45, %s5635_s17  ;;  %v4472_v45 = vmul.f32 %v8948_v1, %v9071_v27 }
0x1028   :  { %v9156_v8 = vpop.permute.xlu1 %2069 }
0x1029   :  { %11326 = vst [vmem:[#allocation153_spill] sm:$0xff] %v9156_v8  ;;  %v9186_v41 = vpop.permute.xlu0 %3145 }
0x102b   :  { %3263 = vrot.lane.b32.xlu0 %v3251_v29, %s5639_s21  ;;  %2460 = vrot.lane.b32.xlu1 %v2446_v42, %s5634_s2 }
0x102c   :  { %v9166_v7 = vpop.permute.xlu1 %3065 }
0x102d   :  { %v9200_v23 = vpop.permute.xlu0 %3391 }
0x102f   :  { %3267 = vrot.lane.b32.xlu0 %v3253_v15, %s5639_s21  ;;  %3265 = vrot.lane.b32.xlu1 %v3252_v11, %s5639_s21  ;;  %v2138_v15 = vmul.f32 %v8954_v49, %v9081_v46  ;;  %v4473_v11 = vmul.f32 %v8935_v6, %v9071_v27  ;;  %v2186_v46 = vmul.f32 %v9076_v32, %v9095_v31 }
0x1030   :  { %v9176_v21 = vpop.permute.xlu1 %3063 }
0x1031   :  { %v9214_v36 = vpop.permute.xlu0 %3637 }
0x1033   :  { %3511 = vrot.lane.b32.xlu0 %v3498_v62, %s5638_s20  ;;  %3509 = vrot.lane.b32.xlu1 %v3497_v56, %s5638_s20  ;;  %v2444_v56 = vmul.f32 %v8954_v49, %v9071_v27  ;;  %v2188_v27 = vmul.f32 %v8954_v49, %v9095_v31 }
0x1034   :  { %v9184_v33 = vpop.permute.xlu1 %3105 }
0x1035   :  { %v9228_v29 = vpop.permute.xlu0 %3143 }
0x1037   :  { %3745 = vrot.lane.b32.xlu0 %v3733_v18, %s5637_s19  ;;  %3513 = vrot.lane.b32.xlu1 %v3499_v20, %s5638_s20 }
0x1038   :  { %v9194_v34 = vpop.permute.xlu1 %3107 }
0x1039   :  { %v9242_v62 = vpop.permute.xlu0 %3635 }
0x103b   :  { %3749 = vrot.lane.b32.xlu0 %v3735_v52, %s5637_s19  ;;  %3747 = vrot.lane.b32.xlu1 %v3734_v35, %s5637_s19  ;;  %v2187_v52 = vmul.f32 %v9073_v4, %v9095_v31 }
0x103c   :  { %v9204_v14 = vpop.permute.xlu1 %3353 }
0x103d   :  { %v9252_v18 = vpop.permute.xlu0 %3185 }
0x103f   :  { %3993 = vrot.lane.b32.xlu0 %v3980_v44, %s5636_s18  ;;  %3991 = vrot.lane.b32.xlu1 %v3979_v59, %s5636_s18  ;;  %v2494_v44 = vmul.f32 %v9073_v4, %v9105_v10  ;;  %v2493_v59 = vmul.f32 %v9076_v32, %v9105_v10 }
0x1040   :  { %v9212_v53 = vpop.permute.xlu1 %3349 }
0x1041   :  { %v9264_v35 = vpop.permute.xlu0 %3431 }
0x1043   :  { %4239 = vrot.lane.b32.xlu0 %v4226_v40, %s5635_s17  ;;  %3995 = vrot.lane.b32.xlu1 %v3981_v2, %s5636_s18  ;;  %v11331_v40 = vld [vmem:[#allocation112_spill] sm:$0xff] }
0x1044   :  { %v9222_v17 = vpop.permute.xlu1 %3147  ;;  %v3538_v2 = vmul.f32 %v8935_v6, %v11331_v40 }
0x1047   :  { %4485 = vrot.lane.b32.xlu0 %v4472_v45, %s5634_s2  ;;  %4241 = vrot.lane.b32.xlu1 %v4227_v54, %s5635_s17  ;;  %v3537_v45 = vmul.f32 %v8948_v1, %v11331_v40  ;;  %v9278_v54 = vpop.permute.xlu0 %3677 }
0x1048   :  { %v9232_v42 = vpop.permute.xlu1 %3393 }
0x104b   :  { %2150 = vrot.lane.b32.xlu0 %v2138_v15, %s5635_s17  ;;  %4487 = vrot.lane.b32.xlu1 %v4473_v11, %s5634_s2  ;;  %v11332_v11 = vld [vmem:[#allocation49_spill] sm:$0xff] }
0x104c   :  { %v9240_v37 = vpop.permute.xlu1 %3639 }
0x104f   :  { %4237 = vrot.lane.b32.xlu0 %v2138_v15, %s5635_s17  ;;  %2456 = vrot.lane.b32.xlu1 %v2444_v56, %s5634_s2 }
0x1050   :  { %v9248_v5 = vpop.permute.xlu1 %3389 }
0x1053   :  { %2198 = vrot.lane.b32.xlu0 %v2186_v46, %s5636_s18  ;;  %4483 = vrot.lane.b32.xlu1 %v2444_v56, %s5634_s2  ;;  %v3773_v56 = vmul.f32 %v8948_v1, %v11332_v11  ;;  %v3539_v46 = vmul.f32 %v8954_v49, %v11331_v40 }
0x1054   :  { %v9256_v20 = vpop.permute.xlu1 %3183 }
0x1057   :  { %2202 = vrot.lane.b32.xlu0 %v2188_v27, %s5636_s18  ;;  %2200 = vrot.lane.b32.xlu1 %v2187_v52, %s5636_s18  ;;  %v9290_v52 = vpop.permute.xlu0 %3913 }
0x1058   :  { %v9266_v0 = vpop.permute.xlu1 %3187  ;;  %11333 = vst [vmem:[#allocation191_spill] sm:$0xff] %v9290_v52  ;;  %v11345_v52 = vld [vmem:[#allocation142_spill] sm:$0xff] }
0x105b   :  { %2508 = vrot.lane.b32.xlu0 %v2494_v44, %s5635_s17  ;;  %2506 = vrot.lane.b32.xlu1 %v2493_v59, %s5635_s17  ;;  %v3775_v59 = vmul.f32 %v8954_v49, %v11332_v11 }
0x105c   :  { %v9280_v15 = vpop.permute.xlu1 %3433 }
0x105f   :  { %3551 = vrot.lane.b32.xlu0 %v3538_v2, %s5639_s21  ;;  %3549 = vrot.lane.b32.xlu1 %v3537_v45, %s5639_s21  ;;  %v3774_v2 = vmul.f32 %v8935_v6, %v11332_v11  ;;  %v11334_v45 = vld [vmem:[#allocation134_spill] sm:$0xff]  ;;  %v4265_v11 = vmul.f32 %v8948_v1, %v9095_v31 }
0x1060   :  { %v9292_v44 = vpop.permute.xlu1 %3679  ;;  %v4020_v40 = vmul.f32 %v8935_v6, %v11334_v45 }
0x1063   :  { %3785 = vrot.lane.b32.xlu0 %v3773_v56, %s5638_s20  ;;  %3553 = vrot.lane.b32.xlu1 %v3539_v46, %s5639_s21  ;;  %v4019_v56 = vmul.f32 %v8948_v1, %v11334_v45  ;;  %v9304_v46 = vpop.permute.xlu0 %3429 }
0x1064   :  { %v9306_v26 = vpop.permute.xlu1 %3915 }
0x1065   :  { %11335 = vst [vmem:[#allocation169_spill] sm:$0xff] %v9306_v26 }
0x1067   :  { %3789 = vrot.lane.b32.xlu0 %v3775_v59, %s5638_s20  ;;  %3787 = vrot.lane.b32.xlu1 %v3774_v2, %s5638_s20  ;;  %v4021_v59 = vmul.f32 %v8954_v49, %v11334_v45  ;;  %v9316_v2 = vpop.permute.xlu0 %3911  ;;  %v4513_v45 = vmul.f32 %v8935_v6, %v9105_v10 }
0x1068   :  { %11336 = vst [vmem:[#allocation172_spill] sm:$0xff] %v9316_v2  ;;  %v9318_v57 = vpop.permute.xlu1 %3675 }
0x106b   :  { %4033 = vrot.lane.b32.xlu0 %v4020_v40, %s5637_s19  ;;  %4031 = vrot.lane.b32.xlu1 %v4019_v56, %s5637_s19 }
0x106f   :  { %4277 = vrot.lane.b32.xlu0 %v4265_v11, %s5636_s18  ;;  %4035 = vrot.lane.b32.xlu1 %v4021_v59, %s5637_s19  ;;  %v4512_v11 = vmul.f32 %v8948_v1, %v9105_v10 }
0x1073   :  { %4281 = vrot.lane.b32.xlu0 %v2188_v27, %s5636_s18  ;;  %4279 = vrot.lane.b32.xlu1 %v4266_v60, %s5636_s18  ;;  %v4511_v60 = vmul.f32 %v8954_v49, %v9105_v10 }
0x1075   :  { %v9324_v40 = vpop.permute.xlu0 %2106  ;;  %v9326_v56 = vpop.permute.xlu1 %2104 }
0x1076   :  { %11337 = vst [vmem:[#allocation16_spill] sm:$0xff] %v9324_v40  ;;  %11338 = vst [vmem:[#allocation176_spill] sm:$0xff] %v9326_v56 }
0x1077   :  { %4527 = vrot.lane.b32.xlu0 %v4513_v45, %s5635_s17  ;;  %4525 = vrot.lane.b32.xlu1 %v4512_v11, %s5635_s17  ;;  %v2235_v45 = vmul.f32 %v9073_v4, %v9087_v12  ;;  %v2234_v11 = vmul.f32 %v9076_v32, %v9087_v12 }
0x1079   :  { %v9334_v59 = vpop.permute.xlu0 %3225  ;;  %v9336_v31 = vpop.permute.xlu1 %3223 }
0x107b   :  { %4523 = vrot.lane.b32.xlu0 %v4511_v60, %s5635_s17  ;;  %2504 = vrot.lane.b32.xlu1 %v4511_v60, %s5635_s17  ;;  %v2540_v60 = vmul.f32 %v9076_v32, %v9117_v50 }
0x107d   :  { %v9342_v27 = vpop.permute.xlu0 %3469  ;;  %v9344_v58 = vpop.permute.xlu1 %3227 }
0x107f   :  { %2248 = vrot.lane.b32.xlu0 %v2235_v45, %s5637_s19  ;;  %2246 = vrot.lane.b32.xlu1 %v2234_v11, %s5637_s19  ;;  %v2542_v45 = vmul.f32 %v8954_v49, %v9117_v50  ;;  %v2541_v11 = vmul.f32 %v9073_v4, %v9117_v50 }
0x1081   :  { %v9352_v25 = vpop.permute.xlu0 %3473  ;;  %v9354_v10 = vpop.permute.xlu1 %3471 }
0x1083   :  { %2552 = vrot.lane.b32.xlu0 %v2540_v60, %s5636_s18  ;;  %2250 = vrot.lane.b32.xlu1 %v2236_v39, %s5637_s19  ;;  %v11342_v60 = vld [vmem:[#allocation95_spill] sm:$0xff] }
0x1084   :  { %v3814_v8 = vmul.f32 %v8935_v6, %v11342_v60  ;;  %v3813_v56 = vmul.f32 %v8948_v1, %v11342_v60 }
0x1085   :  { %v9362_v16 = vpop.permute.xlu0 %3713  ;;  %v9364_v55 = vpop.permute.xlu1 %3711 }
0x1086   :  { %11339 = vst [vmem:[#allocation150_spill] sm:$0xff] %v9364_v55 }
0x1087   :  { %2556 = vrot.lane.b32.xlu0 %v2542_v45, %s5636_s18  ;;  %2554 = vrot.lane.b32.xlu1 %v2541_v11, %s5636_s18  ;;  %v4059_v11 = vmul.f32 %v8948_v1, %v11345_v52 }
0x1089   :  { %v9372_v63 = vpop.permute.xlu0 %3955  ;;  %v9374_v43 = vpop.permute.xlu1 %3953 }
0x108a   :  { %11340 = vst [vmem:[#allocation182_spill] sm:$0xff] %v9372_v63  ;;  %11341 = vst [vmem:[#allocation154_spill] sm:$0xff] %v9374_v43  ;;  %v3815_v43 = vmul.f32 %v8954_v49, %v11342_v60 }
0x108b   :  { %3827 = vrot.lane.b32.xlu0 %v3814_v8, %s5639_s21  ;;  %3825 = vrot.lane.b32.xlu1 %v3813_v56, %s5639_s21  ;;  %v4061_v8 = vmul.f32 %v8954_v49, %v11345_v52  ;;  %v4060_v56 = vmul.f32 %v8935_v6, %v11345_v52 }
0x108d   :  { %v9382_v40 = vpop.permute.xlu0 %4201  ;;  %v9384_v2 = vpop.permute.xlu1 %4199 }
0x108e   :  { %11343 = vst [vmem:[#allocation162_spill] sm:$0xff] %v9382_v40  ;;  %11344 = vst [vmem:[#allocation5_spill] sm:$0xff] %v9384_v2 }
0x108f   :  { %4071 = vrot.lane.b32.xlu0 %v4059_v11, %s5638_s20  ;;  %3829 = vrot.lane.b32.xlu1 %v3815_v43, %s5639_s21  ;;  %v4306_v43 = vmul.f32 %v8935_v6, %v9087_v12  ;;  %v4305_v11 = vmul.f32 %v8948_v1, %v9087_v12  ;;  %v4552_v12 = vmul.f32 %v8935_v6, %v9117_v50 }
0x1091   :  { %v9392_v63 = vpop.permute.xlu0 %3951  ;;  %v9394_v26 = vpop.permute.xlu1 %2102 }
0x1092   :  { %11346 = vst [vmem:[#allocation151_spill] sm:$0xff] %v9392_v63  ;;  %11347 = vst [vmem:[#allocation135_spill] sm:$0xff] %v9394_v26 }
0x1093   :  { %4075 = vrot.lane.b32.xlu0 %v4061_v8, %s5638_s20  ;;  %4073 = vrot.lane.b32.xlu1 %v4060_v56, %s5638_s20  ;;  %v4551_v8 = vmul.f32 %v8948_v1, %v9117_v50 }
0x1095   :  { %v9402_v2 = vpop.permute.xlu0 %2152  ;;  %v9404_v60 = vpop.permute.xlu1 %4197 }
0x1096   :  { %11348 = vst [vmem:[#allocation178_spill] sm:$0xff] %v9402_v2  ;;  %11349 = vst [vmem:[#allocation180_spill] sm:$0xff] %v9404_v60 }
0x1097   :  { %4319 = vrot.lane.b32.xlu0 %v4306_v43, %s5637_s19  ;;  %4317 = vrot.lane.b32.xlu1 %v4305_v11, %s5637_s19 }
0x1099   :  { %v9412_v26 = vpop.permute.xlu0 %2458  ;;  %v9414_v52 = vpop.permute.xlu1 %2154 }
0x109a   :  { %11350 = vst [vmem:[#allocation141_spill] sm:$0xff] %v9412_v26  ;;  %11351 = vst [vmem:[#allocation155_spill] sm:$0xff] %v9414_v52 }
0x109b   :  { %4563 = vrot.lane.b32.xlu0 %v4551_v8, %s5636_s18  ;;  %4321 = vrot.lane.b32.xlu1 %v2236_v39, %s5637_s19  ;;  %v2283_v8 = vmul.f32 %v9073_v4, %v9127_v61  ;;  %v2282_v39 = vmul.f32 %v9076_v32, %v9127_v61 }
0x109d   :  { %v9420_v56 = vpop.permute.xlu0 %3263  ;;  %v9422_v60 = vpop.permute.xlu1 %2460 }
0x109e   :  { %11352 = vst [vmem:[#allocation187_spill] sm:$0xff] %v9422_v60 }
0x109f   :  { %4567 = vrot.lane.b32.xlu0 %v2542_v45, %s5636_s18  ;;  %4565 = vrot.lane.b32.xlu1 %v4552_v12, %s5636_s18  ;;  %v2588_v45 = vmul.f32 %v9076_v32, %v9097_v19  ;;  %v2284_v12 = vmul.f32 %v8954_v49, %v9127_v61 }
0x10a1   :  { %v9428_v43 = vpop.permute.xlu0 %3267  ;;  %v9430_v11 = vpop.permute.xlu1 %3265 }
0x10a3   :  { %2296 = vrot.lane.b32.xlu0 %v2283_v8, %s5638_s20  ;;  %2294 = vrot.lane.b32.xlu1 %v2282_v39, %s5638_s20  ;;  %v2590_v8 = vmul.f32 %v8954_v49, %v9097_v19  ;;  %v2589_v39 = vmul.f32 %v9073_v4, %v9097_v19 }
0x10a5   :  { %v9438_v26 = vpop.permute.xlu0 %3511  ;;  %v9440_v50 = vpop.permute.xlu1 %3509 }
0x10a6   :  { %11353 = vst [vmem:[#allocation149_spill] sm:$0xff] %v9438_v26  ;;  %11354 = vst [vmem:[#allocation106_spill] sm:$0xff] %v9440_v50 }
0x10a7   :  { %2600 = vrot.lane.b32.xlu0 %v2588_v45, %s5637_s19  ;;  %2298 = vrot.lane.b32.xlu1 %v2284_v12, %s5638_s20  ;;  %v11359_v45 = vld [vmem:[#allocation148_spill] sm:$0xff] }
0x10a8   :  { %v4100_v63 = vmul.f32 %v8935_v6, %v11359_v45 }
0x10a9   :  { %v9448_v60 = vpop.permute.xlu0 %3745  ;;  %v9450_v40 = vpop.permute.xlu1 %3513 }
0x10aa   :  { %11355 = vst [vmem:[#allocation160_spill] sm:$0xff] %v9448_v60  ;;  %11356 = vst [vmem:[#allocation184_spill] sm:$0xff] %v9450_v40  ;;  %v4099_v60 = vmul.f32 %v8948_v1, %v11359_v45 }
0x10ab   :  { %2604 = vrot.lane.b32.xlu0 %v2590_v8, %s5637_s19  ;;  %2602 = vrot.lane.b32.xlu1 %v2589_v39, %s5637_s19  ;;  %v4345_v39 = vmul.f32 %v8948_v1, %v9127_v61 }
0x10ad   :  { %v9458_v2 = vpop.permute.xlu0 %3749  ;;  %v9460_v52 = vpop.permute.xlu1 %3747 }
0x10ae   :  { %11357 = vst [vmem:[#allocation125_spill] sm:$0xff] %v9458_v2  ;;  %11358 = vst [vmem:[#allocation164_spill] sm:$0xff] %v9460_v52  ;;  %v4101_v2 = vmul.f32 %v8954_v49, %v11359_v45  ;;  %v4592_v45 = vmul.f32 %v8935_v6, %v9097_v19 }
0x10af   :  { %4113 = vrot.lane.b32.xlu0 %v4100_v63, %s5639_s21  ;;  %4111 = vrot.lane.b32.xlu1 %v4099_v60, %s5639_s21  ;;  %v4346_v63 = vmul.f32 %v8935_v6, %v9127_v61 }
0x10b1   :  { %v9468_v40 = vpop.permute.xlu0 %3993  ;;  %v9470_v50 = vpop.permute.xlu1 %3991 }
0x10b2   :  { %11360 = vst [vmem:[#allocation167_spill] sm:$0xff] %v9468_v40  ;;  %11361 = vst [vmem:[#allocation129_spill] sm:$0xff] %v9470_v50 }
0x10b3   :  { %4357 = vrot.lane.b32.xlu0 %v4345_v39, %s5638_s20  ;;  %4115 = vrot.lane.b32.xlu1 %v4101_v2, %s5639_s21  ;;  %v4591_v2 = vmul.f32 %v8948_v1, %v9097_v19  ;;  %v2332_v19 = vmul.f32 %v8954_v49, %v9138_v38 }
0x10b5   :  { %v9478_v52 = vpop.permute.xlu0 %4239  ;;  %v9480_v26 = vpop.permute.xlu1 %3995 }
0x10b6   :  { %11362 = vst [vmem:[#allocation183_spill] sm:$0xff] %v9478_v52  ;;  %11363 = vst [vmem:[#allocation185_spill] sm:$0xff] %v9480_v26 }
0x10b7   :  { %4361 = vrot.lane.b32.xlu0 %v2284_v12, %s5638_s20  ;;  %4359 = vrot.lane.b32.xlu1 %v4346_v63, %s5638_s20  ;;  %v2330_v12 = vmul.f32 %v9076_v32, %v9138_v38 }
0x10b9   :  { %v9486_v60 = vpop.permute.xlu0 %4485  ;;  %v9488_v50 = vpop.permute.xlu1 %4241 }
0x10ba   :  { %11364 = vst [vmem:[#allocation139_spill] sm:$0xff] %v9486_v60  ;;  %11365 = vst [vmem:[#allocation147_spill] sm:$0xff] %v9488_v50 }
0x10bb   :  { %4605 = vrot.lane.b32.xlu0 %v4592_v45, %s5637_s19  ;;  %4603 = vrot.lane.b32.xlu1 %v4591_v2, %s5637_s19  ;;  %v2331_v45 = vmul.f32 %v9073_v4, %v9138_v38 }
0x10bd   :  { %v9496_v39 = vpop.permute.xlu0 %2150  ;;  %v9498_v61 = vpop.permute.xlu1 %4487 }
0x10be   :  { %11366 = vst [vmem:[#allocation29_spill] sm:$0xff] %v9496_v39  ;;  %11367 = vst [vmem:[#allocation152_spill] sm:$0xff] %v9498_v61 }
0x10bf   :  { %2342 = vrot.lane.b32.xlu0 %v2330_v12, %s5639_s21  ;;  %4607 = vrot.lane.b32.xlu1 %v2590_v8, %s5637_s19  ;;  %v2637_v8 = vmul.f32 %v9073_v4, %v9146_v51  ;;  %v2636_v12 = vmul.f32 %v9076_v32, %v9146_v51 }
0x10c1   :  { %v9504_v63 = vpop.permute.xlu0 %4237  ;;  %v9506_v60 = vpop.permute.xlu1 %2456 }
0x10c2   :  { %11368 = vst [vmem:[#allocation156_spill] sm:$0xff] %v9504_v63  ;;  %11369 = vst [vmem:[#allocation189_spill] sm:$0xff] %v9506_v60 }
0x10c3   :  { %2346 = vrot.lane.b32.xlu0 %v2332_v19, %s5639_s21  ;;  %2344 = vrot.lane.b32.xlu1 %v2331_v45, %s5639_s21  ;;  %v4385_v45 = vmul.f32 %v8948_v1, %v9138_v38 }
0x10c5   :  { %v9514_v2 = vpop.permute.xlu0 %2198  ;;  %v9516_v61 = vpop.permute.xlu1 %4483 }
0x10c6   :  { %11370 = vst [vmem:[#allocation198_spill] sm:$0xff] %v9514_v2  ;;  %11371 = vst [vmem:[#allocation103_spill] sm:$0xff] %v9516_v61  ;;  %v2638_v61 = vmul.f32 %v8954_v49, %v9146_v51 }
0x10c7   :  { %2650 = vrot.lane.b32.xlu0 %v2637_v8, %s5638_s20  ;;  %2648 = vrot.lane.b32.xlu1 %v2636_v12, %s5638_s20  ;;  %v4386_v8 = vmul.f32 %v8935_v6, %v9138_v38  ;;  %v4632_v38 = vmul.f32 %v8935_v6, %v9146_v51 }
0x10c9   :  { %v9524_v60 = vpop.permute.xlu0 %2202  ;;  %v9526_v63 = vpop.permute.xlu1 %2200 }
0x10ca   :  { %11372 = vst [vmem:[#allocation157_spill] sm:$0xff] %v9524_v60  ;;  %11373 = vst [vmem:[#allocation98_spill] sm:$0xff] %v9526_v63 }
0x10cb   :  { %4397 = vrot.lane.b32.xlu0 %v4385_v45, %s5639_s21  ;;  %2652 = vrot.lane.b32.xlu1 %v2638_v61, %s5638_s20 }
0x10cd   :  { %v5005_v39 = vpop.f32.mrb[4].mxu1  ;;  %v9534_v52 = vpop.permute.xlu0 %2508 }
0x10ce   :  { %11374 = vst [vmem:[#allocation181_spill] sm:$0xff] %v9534_v52  ;;  %v9538_v12 = vpop.permute.xlu1 %2506  ;;  %v4934_v50 = vpop.f32.mrb[4].mxu0  ;;  %v5006_v60 = vadd.f32 %v5005_v39, %v9144_v13  ;;  %v4631_v39 = vmul.f32 %v8948_v1, %v9146_v51 }
0x10cf   :  { %11375 = vst [vmem:[#allocation190_spill] sm:$0xff] %v9538_v12  ;;  %v4935_v2 = vadd.f32 %v4934_v50, %v9144_v13  ;;  %v5007_v63 = vpop.f32.mrb[5].mxu1  ;;  %v4936_v26 = vpop.f32.mrb[5].mxu0  ;;  %4401 = vrot.lane.b32.xlu0 %v2332_v19, %s5639_s21  ;;  %4399 = vrot.lane.b32.xlu1 %v4386_v8, %s5639_s21 }
0x10d0   :  { %v5008_v45 = vadd.f32 %v5007_v63, %v9144_v13  ;;  %v4937_v52 = vadd.f32 %v4936_v26, %v9144_v13  ;;  %v5012_v8 = vmul.f32 %v5006_v60, %v9052_v28  ;;  %v2685_v13 = vmul.f32 %v9073_v4, %v9109_v24 }
0x10d1   :  { %v9546_v40 = vpop.permute.xlu0 %3551  ;;  %v5010_v63 = vmul.f32 %v4935_v2, %v9055_v22  ;;  %v2686_v22 = vmul.f32 %v8954_v49, %v9109_v24  ;;  %v4672_v60 = vmul.f32 %v8935_v6, %v9109_v24 }
0x10d2   :  { %11376 = vst [vmem:[#allocation173_spill] sm:$0xff] %v9546_v40  ;;  %v5013_v50 = vmul.f32 %v5008_v45, %v9047_v48  ;;  %v5011_v12 = vmul.f32 %v4937_v52, %v9043_v30  ;;  %v9554_v19 = vpop.permute.xlu1 %3549  ;;  %v2684_v48 = vmul.f32 %v9076_v32, %v9109_v24  ;;  %v11385_v45 = vld [vmem:[#allocation6_spill] sm:$0xff] }
0x10d3   :  { %11377 = vst [vmem:[#allocation186_spill] sm:$0xff] %v9554_v19  ;;  %4645 = vrot.lane.b32.xlu0 %v4632_v38, %s5638_s20  ;;  %4643 = vrot.lane.b32.xlu1 %v4631_v39, %s5638_s20  ;;  %v2798_v38 = vmul.f32 %v8948_v1, %v11385_v45 }
0x10d4   :  { %5369 = vmatprep.subr.msk.mxu1 %vm5025_vm14, %v5013_v50  ;;  %5366 = vmatprep.subr.msk.mxu0 %vm5025_vm14, %v5011_v12 }
0x10d5   :  { %5370 = vmatpush1.msk.msra.mxu1 %vm5025_vm14, %v5012_v8  ;;  %5367 = vmatpush1.msk.msra.mxu0 %vm5025_vm14, %v5010_v63  ;;  %v9560_v26 = vpop.permute.xlu0 %3785  ;;  %v2799_v8 = vmul.f32 %v8935_v6, %v11385_v45 }
0x10d6   :  { %11378 = vst [vmem:[#allocation76_spill] sm:$0xff] %v9560_v26  ;;  %v9564_v30 = vpop.permute.xlu1 %3553 }
0x10d7   :  { %11379 = vst [vmem:[#allocation159_spill] sm:$0xff] %v9564_v30  ;;  %2696 = vrot.lane.b32.xlu0 %v2684_v48, %s5639_s21  ;;  %4647 = vrot.lane.b32.xlu1 %v2638_v61, %s5638_s20  ;;  %v4671_v61 = vmul.f32 %v8948_v1, %v9109_v24  ;;  %v2797_v24 = vmul.f32 %v8954_v49, %v11385_v45 }
0x10d9   :  { %v9568_v28 = vpop.permute.xlu0 %3789 }
0x10da   :  { %11380 = vst [vmem:[#allocation171_spill] sm:$0xff] %v9568_v28  ;;  %v9574_v51 = vpop.permute.xlu1 %3787 }
0x10db   :  { %11381 = vst [vmem:[#allocation158_spill] sm:$0xff] %v9574_v51  ;;  %2700 = vrot.lane.b32.xlu0 %v2686_v22, %s5639_s21  ;;  %2698 = vrot.lane.b32.xlu1 %v2685_v13, %s5639_s21  ;;  %v11390_v13 = vld [vmem:[#allocation7_spill] sm:$0xff] }
0x10dd   :  { %v9578_v52 = vpop.permute.xlu0 %4033 }
0x10de   :  { %11382 = vst [vmem:[#allocation196_spill] sm:$0xff] %v9578_v52  ;;  %v9584_v2 = vpop.permute.xlu1 %4031 }
0x10df   :  { %11383 = vst [vmem:[#allocation199_spill] sm:$0xff] %v9584_v2  ;;  %4685 = vrot.lane.b32.xlu0 %v4672_v60, %s5639_s21  ;;  %4683 = vrot.lane.b32.xlu1 %v4671_v61, %s5639_s21  ;;  %v2838_v60 = vmul.f32 %v8948_v1, %v11390_v13  ;;  %v5014_v61 = vld [vmem:[%s10485_s7] sm:$0xff] }
0x10e0   :  { %5368 = vmatmul.mubr.msk.f32.vlgmr.msra.gmra.mrb[6].mxu0 %vm5021_vm15, %v5014_v61  ;;  %5371 = vmatmul.mubr.msk.f32.vlgmr.msra.gmra.mrb[6].mxu1 %vm5021_vm15, %v5014_v61 }
0x10e1   :  { %v9588_v12 = vpop.permute.xlu0 %4277  ;;  %5258 = vmatprep.mubr.f32.mxu0 %v8954_v49  ;;  %5329 = vmatprep.mubr.f32.mxu1 %v8954_v49 }
0x10e2   :  { %11384 = vst [vmem:[#allocation179_spill] sm:$0xff] %v9588_v12  ;;  %v9592_v39 = vpop.permute.xlu1 %4035 }
0x10e3   :  { %11386 = vst [vmem:[#allocation192_spill] sm:$0xff] %v9592_v39  ;;  %2811 = vrot.lane.b32.xlu0 %v2798_v38, %s5634_s2  ;;  %4687 = vrot.lane.b32.xlu1 %v2686_v22, %s5639_s21  ;;  %v2839_v22 = vmul.f32 %v8935_v6, %v11390_v13  ;;  %v11398_v39 = vld [vmem:[#allocation15_spill] sm:$0xff] }
0x10e5   :  { %v9596_v50 = vpop.permute.xlu0 %4281 }
0x10e6   :  { %11387 = vst [vmem:[#allocation168_spill] sm:$0xff] %v9596_v50  ;;  %v9602_v63 = vpop.permute.xlu1 %4279 }
0x10e7   :  { %11388 = vst [vmem:[#allocation197_spill] sm:$0xff] %v9602_v63  ;;  %2809 = vrot.lane.b32.xlu0 %v2797_v24, %s5634_s2  ;;  %2813 = vrot.lane.b32.xlu1 %v2799_v8, %s5634_s2  ;;  %v11393_v24 = vld [vmem:[#allocation10_spill] sm:$0xff] }
0x10e8   :  { %v2878_v8 = vmul.f32 %v8948_v1, %v11393_v24  ;;  %v2877_v61 = vmul.f32 %v8954_v49, %v11393_v24  ;;  %v2879_v52 = vmul.f32 %v8935_v6, %v11393_v24  ;;  %v11403_v24 = vld [vmem:[#allocation77_spill] sm:$0xff] }
0x10e9   :  { %v9606_v48 = vpop.permute.xlu0 %4527  ;;  %v3332_v30 = vmul.f32 %v8948_v1, %v11403_v24  ;;  %v3331_v40 = vmul.f32 %v8954_v49, %v11403_v24 }
0x10ea   :  { %11389 = vst [vmem:[#allocation175_spill] sm:$0xff] %v9606_v48  ;;  %v9615_v45 = vpop.permute.xlu1 %4525  ;;  %v2837_v48 = vmul.f32 %v8954_v49, %v11390_v13  ;;  %v11397_v13 = vld [vmem:[#allocation17_spill] sm:$0xff] }
0x10eb   :  { %11391 = vst [vmem:[#allocation193_spill] sm:$0xff] %v9615_v45  ;;  %2853 = vrot.lane.b32.xlu0 %v2839_v22, %s5635_s17  ;;  %2851 = vrot.lane.b32.xlu1 %v2838_v60, %s5635_s17  ;;  %v3075_v22 = vsel %vm378_vm5, %v9176_v21, %v9166_v7  ;;  %v11395_v60 = vld [vmem:[#allocation11_spill] sm:$0xff]  ;;  %v11396_v45 = vld [vmem:[#allocation14_spill] sm:$0xff]  ;;  %v3046_v63 = vmul.f32 %v8948_v1, %v11397_v13 }
0x10ec   :  { %v9640_v12 = vmul.f32 %v8954_v49, %v11396_v45  ;;  %v3045_v21 = vmul.f32 %v8954_v49, %v11397_v13  ;;  %v2920_v28 = vmul.f32 %v8935_v6, %v11395_v60  ;;  %v2919_v26 = vmul.f32 %v8948_v1, %v11395_v60 }
0x10ed   :  { %v9621_v38 = vpop.permute.xlu0 %4523 }
0x10ee   :  { %11392 = vst [vmem:[#allocation177_spill] sm:$0xff] %v9621_v38  ;;  %v9627_v50 = vpop.permute.xlu1 %2504  ;;  %v2921_v38 = vmul.f32 %v8954_v49, %v11395_v60  ;;  %v3333_v60 = vmul.f32 %v8935_v6, %v11403_v24 }
0x10ef   :  { %11394 = vst [vmem:[#allocation201_spill] sm:$0xff] %v9627_v50  ;;  %2891 = vrot.lane.b32.xlu0 %v2878_v8, %s5636_s18  ;;  %2849 = vrot.lane.b32.xlu1 %v2837_v48, %s5635_s17  ;;  %v3047_v50 = vmul.f32 %v8935_v6, %v11397_v13  ;;  %v9650_v8 = vmul.f32 %v8954_v49, %v11398_v39 }
0x10f0   :  { %v3115_v48 = vsel %vm427_vm6, %v9172_v3, %v9184_v33  ;;  %v3085_v13 = vadd.f32 %v3075_v22, %v3045_v21  ;;  %v9669_v3 = vmul.f32 %v8935_v6, %v11396_v45  ;;  %v9683_v22 = vmul.f32 %v8948_v1, %v11398_v39 }
0x10f1   :  { %11399 = vst [vmem:[#allocation202_spill] sm:$0xff] %v9650_v8  ;;  %v9655_v2 = vpop.permute.xlu0 %2248  ;;  %v2959_v8 = vmul.f32 %v8948_v1, %v11396_v45  ;;  %v11405_v45 = vld [vmem:[#allocation121_spill] sm:$0xff] }
0x10f2   :  { %11400 = vst [vmem:[#allocation188_spill] sm:$0xff] %v9655_v2  ;;  %v9663_v51 = vpop.permute.xlu1 %2246  ;;  %v9673_v2 = vmul.f32 %v8935_v6, %v11398_v39  ;;  %11404 = vst [vmem:[#allocation208_spill] sm:$0xff] %v9683_v22  ;;  %v1724_v21 = vmul.f32 %v9073_v4, %v11405_v45  ;;  %v3125_v19 = vadd.f32 %v3115_v48, %v3085_v13  ;;  %v11406_v6 = vld [vmem:[#allocation123_spill] sm:$0xff]  ;;  %v11408_v39 = vld [vmem:[#allocation101_spill] sm:$0xff] }
0x10f3   :  { %11401 = vst [vmem:[#allocation207_spill] sm:$0xff] %v9663_v51  ;;  %2889 = vrot.lane.b32.xlu0 %v2877_v61, %s5636_s18  ;;  %2893 = vrot.lane.b32.xlu1 %v2879_v52, %s5636_s18  ;;  %v3076_v51 = vsel %vm378_vm5, %v9166_v7, %v9123_v9  ;;  %v3155_v52 = vsel %vm476_vm7, %v9228_v29, %v9186_v41  ;;  %v9712_v13 = vld [vmem:[#allocation2 + $0x50] sm:$0xff] }
0x10f4   :  { %11402 = vst [vmem:[#allocation205_spill] sm:$0xff] %v9673_v2  ;;  %v11407_v2 = vld [vmem:[#allocation124_spill] sm:$0xff]  ;;  %v3617_v22 = vmul.f32 %v8954_v49, %v11408_v39  ;;  %v3618_v4 = vmul.f32 %v8948_v1, %v11408_v39  ;;  %v9705_v7 = vadd.f32 %v11406_v6, %v1724_v21  ;;  %v1723_v48 = vmul.f32 %v9076_v32, %v11405_v45 }
0x10f5   :  { %v1761_v61 = vsel %vm378_vm5, %v11407_v2, %v11406_v6  ;;  %v9702_v55 = vpop.permute.xlu0 %2552  ;;  %v3116_v2 = vsel %vm427_vm6, %v9184_v33, %v9194_v34  ;;  %v3619_v49 = vmul.f32 %v9712_v13, %v11408_v39  ;;  %v3087_v1 = vadd.f32 %v9123_v9, %v3047_v50 }
0x10f6   :  { %v9716_v29 = vpop.permute.xlu1 %2250  ;;  %v3086_v24 = vadd.f32 %v3076_v51, %v3046_v63  ;;  %v3361_v21 = vsel %vm378_vm5, %v9212_v53, %v9158_v47  ;;  %v9724_v32 = vadd.f32 %v1761_v61, %v1723_v48  ;;  %v3165_v33 = vadd.f32 %v3155_v52, %v3125_v19 }
0x10f7   :  { %2933 = vrot.lane.b32.xlu0 %v2920_v28, %s5637_s19  ;;  %2931 = vrot.lane.b32.xlu1 %v2919_v26, %s5637_s19  ;;  %v3362_v6 = vsel %vm378_vm5, %v9158_v47, %v9204_v14  ;;  %v3156_v9 = vsel %vm476_vm7, %v9186_v41, %v9222_v17  ;;  %v3127_v50 = vadd.f32 %v9194_v34, %v3087_v1 }
0x10f8   :  { %v3126_v51 = vadd.f32 %v3116_v2, %v3086_v24  ;;  %v3647_v53 = vsel %vm378_vm5, %v9242_v62, %v9214_v36  ;;  %v3401_v26 = vsel %vm427_vm6, %v9248_v5, %v9200_v23  ;;  %v3373_v28 = vadd.f32 %v9204_v14, %v3333_v60 }
0x10f9   :  { %v9739_v19 = vpop.permute.xlu0 %2556  ;;  %v3371_v47 = vadd.f32 %v3361_v21, %v3331_v40  ;;  %v3402_v41 = vsel %vm427_vm6, %v9200_v23, %v9232_v42  ;;  %v3195_v34 = vsel %vm531_vm8, %v9256_v20, %v9252_v18  ;;  %v3372_v62 = vadd.f32 %v3362_v6, %v3332_v30 }
0x10fa   :  { %v9748_v63 = vpop.permute.xlu1 %2554  ;;  %v3166_v61 = vadd.f32 %v3156_v9, %v3126_v51  ;;  %v3648_v5 = vsel %vm378_vm5, %v9214_v36, %v9240_v37  ;;  %v3657_v14 = vadd.f32 %v3647_v53, %v3617_v22  ;;  %v3167_v40 = vadd.f32 %v9222_v17, %v3127_v50  ;;  %v11411_v9 = vld [vmem:[#allocation208_spill] sm:$0xff]  ;;  %v11413_v50 = vld [vmem:[#allocation106_spill] sm:$0xff] }
0x10fb   :  { %2971 = vrot.lane.b32.xlu0 %v2959_v8, %s5638_s20  ;;  %2935 = vrot.lane.b32.xlu1 %v2921_v38, %s5637_s19  ;;  %v3411_v23 = vadd.f32 %v3401_v26, %v3371_v47  ;;  %v3235_v60 = vsel %vm580_vm11, %v9336_v31, %v9334_v59  ;;  %v3412_v52 = vadd.f32 %v3402_v41, %v3372_v62  ;;  %v11410_v6 = vld [vmem:[#allocation205_spill] sm:$0xff]  ;;  %v11414_v53 = vld [vmem:[#allocation184_spill] sm:$0xff]  ;;  %v11415_v47 = vld [vmem:[#allocation115_spill] sm:$0xff] }
0x10fc   :  { %v3413_v30 = vadd.f32 %v9232_v42, %v3373_v28  ;;  %v3206_v39 = vadd.f32 %v3195_v34, %v3166_v61  ;;  %v3196_v36 = vsel %vm531_vm8, %v9252_v18, %v9266_v0  ;;  %v3658_v8 = vadd.f32 %v3648_v5, %v3618_v4  ;;  %v11416_v61 = vld [vmem:[#allocation164_spill] sm:$0xff] }
0x10fd   :  { %v9763_v48 = vpop.permute.xlu0 %3827  ;;  %v3659_v38 = vadd.f32 %v9240_v37, %v3619_v49  ;;  %v3442_v17 = vsel %vm476_vm7, %v9264_v35, %v9280_v15  ;;  %v3275_v22 = vsel %vm629_vm12, %v9420_v56, %v9430_v11  ;;  %v3441_v42 = vsel %vm476_vm7, %v9304_v46, %v9264_v35  ;;  %v11417_v5 = vld [vmem:[#allocation160_spill] sm:$0xff] }
0x10fe   :  { %v9772_v2 = vpop.permute.xlu1 %3825  ;;  %v3246_v18 = vadd.f32 %v3235_v60, %v3206_v39  ;;  %v3236_v0 = vsel %vm580_vm11, %v9334_v59, %v9344_v58  ;;  %v3451_v37 = vadd.f32 %v3441_v42, %v3411_v23  ;;  %v3205_v4 = vadd.f32 %v9256_v20, %v3165_v33  ;;  %v11419_v23 = vld [vmem:[#allocation186_spill] sm:$0xff] }
0x10ff   :  { %2975 = vrot.lane.b32.xlu0 %v9640_v12, %s5638_s20  ;;  %2973 = vrot.lane.b32.xlu1 %v9669_v3, %s5638_s20  ;;  %v3207_v49 = vadd.f32 %v3196_v36, %v3167_v40  ;;  %v3453_v1 = vadd.f32 %v9280_v15, %v3413_v30  ;;  %v3452_v24 = vadd.f32 %v3442_v17, %v3412_v52  ;;  %v11418_v40 = vld [vmem:[#allocation173_spill] sm:$0xff]  ;;  %v11420_v52 = vld [vmem:[#allocation159_spill] sm:$0xff] }
0x1100   :  { %v3688_v35 = vsel %vm427_vm6, %v9278_v54, %v9292_v44  ;;  %v3276_v58 = vsel %vm629_vm12, %v9430_v11, %v9428_v43  ;;  %v3286_v46 = vadd.f32 %v3275_v22, %v3246_v18  ;;  %v3245_v12 = vadd.f32 %v9336_v31, %v3205_v4  ;;  %v11409_v11 = vld [vmem:[#allocation150_spill] sm:$0xff]  ;;  %v11423_v18 = vld [vmem:[#allocation113_spill] sm:$0xff] }
0x1101   :  { %v9792_v59 = vpop.permute.xlu0 %4071  ;;  %v3247_v3 = vadd.f32 %v3236_v0, %v3207_v49  ;;  %v3481_v20 = vsel %vm531_vm8, %v9342_v27, %v9354_v10  ;;  %v3482_v15 = vsel %vm531_vm8, %v9354_v10, %v9352_v25  ;;  %v3699_v33 = vadd.f32 %v9292_v44, %v3659_v38  ;;  %v11412_v10 = vld [vmem:[#allocation149_spill] sm:$0xff]  ;;  %v11422_v22 = vld [vmem:[#allocation114_spill] sm:$0xff]  ;;  %v11425_v49 = vld [vmem:[#allocation76_spill] sm:$0xff] }
0x1102   :  { %v3830_v21 = vpop.permute.xlu1 %3829  ;;  %v3687_v43 = vsel %vm427_vm6, %v9318_v57, %v9278_v54  ;;  %v3719_v31 = vsel %vm476_vm7, %v11409_v11, %v9362_v16  ;;  %v3285_v51 = vadd.f32 %v9420_v56, %v3245_v12  ;;  %v3521_v44 = vsel %vm580_vm11, %v11413_v50, %v11412_v10  ;;  %v11424_v4 = vld [vmem:[#allocation158_spill] sm:$0xff] }
0x1103   :  { %3013 = vrot.lane.b32.xlu0 %v11410_v6, %s5639_s21  ;;  %3011 = vrot.lane.b32.xlu1 %v11411_v9, %s5639_s21  ;;  %v3287_v25 = vadd.f32 %v3276_v58, %v3247_v3  ;;  %v3522_v57 = vsel %vm580_vm11, %v11412_v10, %v11414_v53  ;;  %v3698_v54 = vadd.f32 %v3688_v35, %v3658_v8  ;;  %v11429_v9 = vld [vmem:[#allocation133_spill] sm:$0xff] }
0x1104   :  { %v3492_v26 = vadd.f32 %v3481_v20, %v3452_v24  ;;  %v3493_v28 = vadd.f32 %v3482_v15, %v3453_v1  ;;  %v3292_v41 = vmul.f32 %v3286_v46, %v11415_v47  ;;  %v3697_v62 = vadd.f32 %v3687_v43, %v3657_v14  ;;  %v11421_v14 = vld [vmem:[#allocation202_spill] sm:$0xff]  ;;  %v11426_v24 = vld [vmem:[#allocation125_spill] sm:$0xff]  ;;  %v11427_v20 = vld [vmem:[#allocation128_spill] sm:$0xff] }
0x1105   :  { %v9820_v34 = vpop.permute.xlu0 %4075  ;;  %v3757_v56 = vsel %vm531_vm8, %v11417_v5, %v11416_v61  ;;  %v3561_v60 = vsel %vm629_vm12, %v11419_v23, %v11418_v40  ;;  %v3562_v30 = vsel %vm629_vm12, %v11418_v40, %v11420_v52  ;;  %v3728_v36 = vadd.f32 %v3719_v31, %v3698_v54  ;;  %v11428_v15 = vld [vmem:[#allocation127_spill] sm:$0xff]  ;;  %v11434_v47 = vld [vmem:[#allocation93_spill] sm:$0xff] }
0x1106   :  { %v9831_v39 = vpop.permute.xlu1 %4073  ;;  %v3532_v8 = vadd.f32 %v3521_v44, %v3492_v26  ;;  %v3533_v38 = vadd.f32 %v3522_v57, %v3493_v28  ;;  %v3491_v17 = vadd.f32 %v9342_v27, %v3451_v37  ;;  %v3291_v42 = vmul.f32 %v11422_v22, %v3285_v51  ;;  %v11430_v51 = vld [vmem:[#allocation131_spill] sm:$0xff]  ;;  %v11433_v28 = vld [vmem:[#allocation92_spill] sm:$0xff] }
0x1107   :  { %3305 = vrot.lane.b32.xlu0 %v3292_v41, %s5649_s28  ;;  %3015 = vrot.lane.b32.xlu1 %v11421_v14, %s5639_s21  ;;  %v3293_v0 = vmul.f32 %v11423_v18, %v3287_v25  ;;  %v3797_v1 = vsel %vm580_vm11, %v11425_v49, %v11424_v4  ;;  %v3758_v35 = vsel %vm531_vm8, %v11416_v61, %v11426_v24  ;;  %v11432_v57 = vld [vmem:[#allocation171_spill] sm:$0xff]  ;;  %v11437_v14 = vld [vmem:[#allocation138_spill] sm:$0xff]  ;;  %v11442_v24 = vld [vmem:[#allocation144_spill] sm:$0xff] }
0x1108   :  { %v3768_v58 = vadd.f32 %v3757_v56, %v3728_v36  ;;  %v3572_v46 = vadd.f32 %v3561_v60, %v3532_v8  ;;  %v3573_v12 = vadd.f32 %v3562_v30, %v3533_v38  ;;  %v1809_v27 = vsel %vm427_vm6, %v11428_v15, %v11427_v20  ;;  %v11435_v8 = vld [vmem:[#allocation137_spill] sm:$0xff]  ;;  %v11436_v38 = vld [vmem:[#allocation136_spill] sm:$0xff]  ;;  %v11439_v22 = vld [vmem:[#allocation107_spill] sm:$0xff] }
0x1109   :  { %v9845_v3 = vpop.permute.xlu0 %4319  ;;  %v3729_v37 = vadd.f32 %v9362_v16, %v3699_v33  ;;  %v3727_v43 = vadd.f32 %v11409_v11, %v3697_v62  ;;  %v3837_v31 = vsel %vm629_vm12, %v9772_v2, %v9763_v48  ;;  %v1856_v25 = vsel %vm476_vm7, %v11430_v51, %v11429_v9  ;;  %v11431_v16 = vld [vmem:[#allocation132_spill] sm:$0xff] }
0x110a   :  { %v9855_v6 = vpop.permute.xlu1 %4317  ;;  %v3531_v10 = vadd.f32 %v11413_v50, %v3491_v17  ;;  %v3808_v44 = vadd.f32 %v3797_v1, %v3768_v58  ;;  %v1857_v33 = vsel %vm476_vm7, %v11429_v9, %v11431_v16  ;;  %v3798_v54 = vsel %vm580_vm11, %v11424_v4, %v11432_v57  ;;  %v11440_v4 = vld [vmem:[#allocation145_spill] sm:$0xff]  ;;  %v11446_v9 = vld [vmem:[#allocation104_spill] sm:$0xff]  ;;  %v11449_v57 = vld [vmem:[#allocation191_spill] sm:$0xff] }
0x110b   :  { %3303 = vrot.lane.b32.xlu0 %v3291_v42, %s5649_s28  ;;  %3307 = vrot.lane.b32.xlu1 %v3293_v0, %s5649_s28  ;;  %v3767_v11 = vadd.f32 %v11417_v5, %v3727_v43  ;;  %v3769_v53 = vadd.f32 %v3758_v35, %v3729_v37  ;;  %v3578_v50 = vmul.f32 %v3572_v46, %v11433_v28 }
0x110c   :  { %v3571_v26 = vadd.f32 %v11419_v23, %v3531_v10  ;;  %v3579_v41 = vmul.f32 %v11434_v47, %v3573_v12  ;;  %v3848_v62 = vadd.f32 %v3837_v31, %v3808_v44  ;;  %v1819_v56 = vadd.f32 %v1809_v27, %v9724_v32  ;;  %v11445_v27 = vld [vmem:[#allocation23_spill] sm:$0xff] }
0x110d   :  { %v9873_v61 = vpop.permute.xlu0 %4563  ;;  %v1820_v40 = vadd.f32 %v11427_v20, %v9705_v7  ;;  %v3838_v5 = vsel %vm629_vm12, %v9763_v48, %v3830_v21  ;;  %v3807_v52 = vadd.f32 %v11425_v49, %v3767_v11  ;;  %v3809_v23 = vadd.f32 %v3798_v54, %v3769_v53  ;;  %v11438_v48 = vld [vmem:[#allocation91_spill] sm:$0xff]  ;;  %v11444_v20 = vld [vmem:[#allocation21_spill] sm:$0xff] }
0x110e   :  { %v9880_v60 = vpop.permute.xlu1 %4321  ;;  %v1867_v30 = vadd.f32 %v1856_v25, %v1819_v56  ;;  %v1904_v32 = vsel %vm531_vm8, %v11436_v38, %v11435_v8  ;;  %v1905_v7 = vsel %vm531_vm8, %v11435_v8, %v11437_v14  ;;  %v3577_v21 = vmul.f32 %v11438_v48, %v3571_v26  ;;  %v11441_v49 = vld [vmem:[#allocation143_spill] sm:$0xff]  ;;  %v11447_v25 = vld [vmem:[#allocation102_spill] sm:$0xff]  ;;  %v11448_v53 = vld [vmem:[#allocation169_spill] sm:$0xff] }
0x110f   :  { %3591 = vrot.lane.b32.xlu1 %v3578_v50, %s5651_s29  ;;  %3593 = vrot.lane.b32.xlu0 %v3579_v41, %s5651_s29  ;;  %v1868_v36 = vadd.f32 %v1857_v33, %v1820_v40  ;;  %v3847_v17 = vadd.f32 %v9772_v2, %v3807_v52  ;;  %v3854_v42 = vmul.f32 %v3848_v62, %v11439_v22  ;;  %v11443_v2 = vld [vmem:[#allocation80_spill] sm:$0xff]  ;;  %v11451_v41 = vld [vmem:[#allocation182_spill] sm:$0xff]  ;;  %v11455_v14 = vld [vmem:[#allocation151_spill] sm:$0xff] }
0x1110   :  { %v3849_v18 = vadd.f32 %v3838_v5, %v3809_v23  ;;  %v1952_v1 = vsel %vm580_vm11, %v11441_v49, %v11440_v4  ;;  %v1953_v35 = vsel %vm580_vm11, %v11440_v4, %v11442_v24  ;;  %v1915_v46 = vadd.f32 %v1904_v32, %v1867_v30  ;;  %v9923_v26 = vld [vmem:[#allocation2 + $0x48] sm:$0xff]  ;;  %v11452_v62 = vld [vmem:[#allocation154_spill] sm:$0xff]  ;;  %v11453_v5 = vld [vmem:[#allocation163_spill] sm:$0xff] }
0x1111   :  { %v9894_v0 = vpop.permute.xlu0 %4567  ;;  %v1916_v12 = vadd.f32 %v1905_v7, %v1868_v36  ;;  %v2000_v15 = vsel %vm629_vm12, %v11444_v20, %v11443_v2  ;;  %v2001_v37 = vsel %vm629_vm12, %v11443_v2, %v11445_v27  ;;  %v3853_v51 = vmul.f32 %v11446_v9, %v3847_v17  ;;  %v11450_v50 = vld [vmem:[#allocation172_spill] sm:$0xff]  ;;  %v11454_v23 = vld [vmem:[#allocation165_spill] sm:$0xff]  ;;  %v9937_v36 = vld [vmem:[#allocation2] sm:$0xff] }
0x1112   :  { %v9902_v58 = vpop.permute.xlu1 %4565  ;;  %v1963_v43 = vadd.f32 %v1952_v1, %v1915_v46  ;;  %v3855_v10 = vmul.f32 %v11447_v25, %v3849_v18  ;;  %v3924_v54 = vsel %vm378_vm5, %v11449_v57, %v11448_v53  ;;  %v3894_v28 = vmul.f32 %v9923_v26, %v11405_v45  ;;  %v11456_v48 = vld [vmem:[#allocation167_spill] sm:$0xff]  ;;  %v11458_v4 = vld [vmem:[#allocation196_spill] sm:$0xff]  ;;  %v11460_v20 = vld [vmem:[#allocation185_spill] sm:$0xff] }
0x1113   :  { %3589 = vrot.lane.b32.xlu1 %v3577_v21, %s5651_s29  ;;  %3867 = vrot.lane.b32.xlu0 %v3854_v42, %s5660_s30  ;;  %v1964_v31 = vadd.f32 %v1953_v35, %v1916_v12  ;;  %v3923_v47 = vsel %vm378_vm5, %v11450_v50, %v11449_v57  ;;  %v3964_v56 = vsel %vm427_vm6, %v11452_v62, %v11451_v41  ;;  %v11457_v21 = vld [vmem:[#allocation129_spill] sm:$0xff]  ;;  %v11459_v49 = vld [vmem:[#allocation199_spill] sm:$0xff] }
0x1114   :  { %v2011_v33 = vadd.f32 %v2000_v15, %v1963_v43  ;;  %v3893_v8 = vmul.f32 %v9937_v36, %v11405_v45  ;;  %v3934_v38 = vadd.f32 %v3924_v54, %v3894_v28  ;;  %v3963_v7 = vsel %vm427_vm6, %v11455_v14, %v11452_v62 }
0x1115   :  { %v9914_v44 = vpop.permute.xlu0 %2296  ;;  %v2012_v11 = vadd.f32 %v2001_v37, %v1964_v31  ;;  %v4003_v17 = vsel %vm476_vm7, %v11457_v21, %v11456_v48  ;;  %v3895_v42 = vmul.f32 %v9712_v13, %v11405_v45  ;;  %v4043_v1 = vsel %vm531_vm8, %v11459_v49, %v11458_v4  ;;  %v11461_v31 = vld [vmem:[#allocation192_spill] sm:$0xff] }
0x1116   :  { %v9916_v16 = vpop.permute.xlu1 %2294  ;;  %v2028_v30 = vmul.f32 %v11454_v23, %v2011_v33  ;;  %v3933_v22 = vadd.f32 %v3923_v47, %v3893_v8  ;;  %v3974_v18 = vadd.f32 %v3964_v56, %v3934_v38  ;;  %v4004_v15 = vsel %vm476_vm7, %v11456_v48, %v11460_v20  ;;  %v11464_v48 = vld [vmem:[#allocation176_spill] sm:$0xff]  ;;  %v11468_v20 = vld [vmem:[#allocation98_spill] sm:$0xff] }
0x1117   :  { %3865 = vrot.lane.b32.xlu0 %v3853_v51, %s5660_s30  ;;  %3869 = vrot.lane.b32.xlu1 %v3855_v10, %s5660_s30  ;;  %v2029_v52 = vmul.f32 %v11453_v5, %v2012_v11  ;;  %v3935_v35 = vadd.f32 %v11448_v53, %v3895_v42  ;;  %v4083_v45 = vsel %vm580_vm11, %v9792_v59, %v9831_v39  ;;  %v9996_v42 = vld [vmem:[#allocation2 + $0x8] sm:$0xff] }
0x1118   :  { %v3973_v46 = vadd.f32 %v3963_v7, %v3933_v22  ;;  %v4014_v12 = vadd.f32 %v4003_v17, %v3974_v18  ;;  %v4044_v9 = vsel %vm531_vm8, %v11458_v4, %v11461_v31  ;;  %v4084_v53 = vsel %vm580_vm11, %v9831_v39, %v9820_v34  ;;  %v11462_v34 = vld [vmem:[#allocation90_spill] sm:$0xff]  ;;  %v11463_v7 = vld [vmem:[#allocation16_spill] sm:$0xff]  ;;  %v9992_v17 = vld [vmem:[#allocation2 + $0x10] sm:$0xff] }
0x1119   :  { %v9933_v40 = vpop.permute.xlu0 %2600  ;;  %v3975_v27 = vadd.f32 %v11451_v41, %v3935_v35  ;;  %v11467_v4 = vld [vmem:[#allocation178_spill] sm:$0xff] }
0x111a   :  { %v9941_v32 = vpop.permute.xlu1 %2298  ;;  %v4013_v37 = vadd.f32 %v11457_v21, %v3973_v46  ;;  %v4054_v43 = vadd.f32 %v4043_v1, %v4014_v12  ;;  %v2115_v21 = vsel %vm378_vm5, %v11464_v48, %v11463_v7 }
0x111b   :  { %2043 = vrot.lane.b32.xlu0 %v2029_v52, %s5682_s16  ;;  %2041 = vrot.lane.b32.xlu1 %v2028_v30, %s5682_s16  ;;  %v4015_v25 = vadd.f32 %v4004_v15, %v3975_v27  ;;  %v11469_v15 = vld [vmem:[#allocation198_spill] sm:$0xff]  ;;  %v11470_v27 = vld [vmem:[#allocation157_spill] sm:$0xff] }
0x111c   :  { %v4053_v10 = vadd.f32 %v11459_v49, %v4013_v37  ;;  %v4094_v33 = vadd.f32 %v4083_v45, %v4054_v43  ;;  %v2210_v45 = vsel %vm476_vm7, %v11469_v15, %v11468_v20  ;;  %v2211_v37 = vsel %vm476_vm7, %v11468_v20, %v11470_v27  ;;  %v11478_v20 = vld [vmem:[#allocation183_spill] sm:$0xff] }
0x111d   :  { %v9956_v24 = vpop.permute.xlu0 %2604  ;;  %v4055_v54 = vadd.f32 %v4044_v9, %v4015_v25  ;;  %v11471_v9 = vld [vmem:[#allocation188_spill] sm:$0xff] }
0x111e   :  { %v9959_v2 = vpop.permute.xlu1 %2602  ;;  %v4093_v28 = vadd.f32 %v9792_v59, %v4053_v10  ;;  %v2259_v10 = vsel %vm531_vm8, %v11471_v9, %v9716_v29 }
0x111f   :  { %v4095_v41 = vadd.f32 %v4084_v53, %v4055_v54  ;;  %v2306_v54 = vsel %vm580_vm11, %v9916_v16, %v9914_v44 }
0x1121   :  { %v4114_v51 = vpop.permute.xlu0 %4113 }
0x1122   :  { %v4112_v11 = vpop.permute.xlu1 %4111 }
0x1123   :  { %v4123_v57 = vsel %vm629_vm12, %v4112_v11, %v4114_v51  ;;  %v4133_v62 = vadd.f32 %v4112_v11, %v4093_v28  ;;  %v2307_v28 = vsel %vm580_vm11, %v9914_v44, %v9941_v32 }
0x1124   :  { %v4134_v50 = vadd.f32 %v4123_v57, %v4094_v33 }
0x1125   :  { %v9978_v47 = vpop.permute.xlu0 %4357  ;;  %v4139_v39 = vmul.f32 %v11462_v34, %v4133_v62  ;;  %v11474_v34 = vld [vmem:[#allocation5_spill] sm:$0xff] }
0x1126   :  { %v4140_v56 = vmul.f32 %v4134_v50, %v11454_v23  ;;  %v4116_v52 = vpop.permute.xlu1 %4115  ;;  %v11465_v23 = vld [vmem:[#allocation153_spill] sm:$0xff] }
0x1127   :  { %v4124_v30 = vsel %vm629_vm12, %v4114_v51, %v4116_v52  ;;  %v2078_v22 = vmul.f32 %v9992_v17, %v11465_v23  ;;  %v2077_v18 = vmul.f32 %v9996_v42, %v11465_v23  ;;  %v11472_v51 = vld [vmem:[#allocation207_spill] sm:$0xff]  ;;  %v4181_v29 = vmul.f32 %v9712_v13, %v11465_v23 }
0x1128   :  { %v4135_v8 = vadd.f32 %v4124_v30, %v4095_v41  ;;  %4153 = vrot.lane.b32.xlu1 %v4140_v56, %s5682_s16  ;;  %v2258_v25 = vsel %vm531_vm8, %v11472_v51, %v11471_v9 }
0x1129   :  { %v9983_v38 = vpop.permute.xlu0 %4361  ;;  %v2126_v35 = vadd.f32 %v11463_v7, %v2078_v22  ;;  %v2125_v46 = vadd.f32 %v2115_v21, %v2077_v18  ;;  %v4180_v21 = vmul.f32 %v9923_v26, %v11465_v23  ;;  %v2076_v22 = vmul.f32 %v9937_v36, %v11465_v23 }
0x112a   :  { %v4141_v14 = vmul.f32 %v11453_v5, %v4135_v8  ;;  %v9987_v59 = vpop.permute.xlu1 %4359  ;;  %v11466_v5 = vld [vmem:[#allocation155_spill] sm:$0xff]  ;;  %v11473_v8 = vld [vmem:[#allocation162_spill] sm:$0xff] }
0x112b   :  { %v2163_v49 = vsel %vm427_vm6, %v11467_v4, %v11466_v5  ;;  %v2174_v31 = vadd.f32 %v11466_v5, %v2126_v35  ;;  %v11476_v35 = vld [vmem:[#allocation180_spill] sm:$0xff] }
0x112c   :  { %4151 = vrot.lane.b32.xlu1 %v4139_v39, %s5682_s16  ;;  %4155 = vrot.lane.b32.xlu0 %v4141_v14, %s5682_s16  ;;  %v2173_v43 = vadd.f32 %v2163_v49, %v2125_v46  ;;  %v4210_v39 = vsel %vm378_vm5, %v11474_v34, %v11473_v8  ;;  %v11475_v14 = vld [vmem:[#allocation135_spill] sm:$0xff]  ;;  %v4221_v49 = vadd.f32 %v11473_v8, %v4181_v29  ;;  %v11485_v29 = vld [vmem:[#allocation168_spill] sm:$0xff] }
0x112d   :  { %v10005_v1 = vpop.permute.xlu0 %4605  ;;  %v2222_v53 = vadd.f32 %v2211_v37, %v2174_v31  ;;  %v2114_v7 = vsel %vm378_vm5, %v11475_v14, %v11464_v48  ;;  %v4209_v46 = vsel %vm378_vm5, %v11476_v35, %v11474_v34  ;;  %v11477_v48 = vld [vmem:[#allocation147_spill] sm:$0xff]  ;;  %v4220_v37 = vadd.f32 %v4210_v39, %v4180_v21 }
0x112e   :  { %v10008_v12 = vpop.permute.xlu1 %4603  ;;  %v2221_v11 = vadd.f32 %v2210_v45, %v2173_v43  ;;  %v4250_v45 = vsel %vm427_vm6, %v11478_v20, %v11477_v48  ;;  %v2124_v43 = vadd.f32 %v2114_v7, %v2076_v22  ;;  %v11479_v31 = vld [vmem:[#allocation27_spill] sm:$0xff]  ;;  %v4261_v8 = vadd.f32 %v11477_v48, %v4221_v49 }
0x112f   :  { %v2270_v41 = vadd.f32 %v2259_v10, %v2222_v53  ;;  %v4330_v34 = vsel %vm531_vm8, %v9845_v3, %v9880_v60  ;;  %v4369_v49 = vsel %vm580_vm11, %v9978_v47, %v9987_v59 }
0x1130   :  { %v2269_v50 = vadd.f32 %v2258_v25, %v2221_v11  ;;  %v11480_v25 = vld [vmem:[#allocation13_spill] sm:$0xff] }
0x1131   :  { %v10023_v33 = vpop.permute.xlu0 %2342  ;;  %v2318_v52 = vadd.f32 %v2307_v28, %v2270_v41  ;;  %v11481_v11 = vld [vmem:[#allocation29_spill] sm:$0xff]  ;;  %v11484_v41 = vld [vmem:[#allocation179_spill] sm:$0xff] }
0x1132   :  { %v10025_v57 = vpop.permute.xlu1 %4607  ;;  %v2317_v56 = vadd.f32 %v2306_v54, %v2269_v50  ;;  %v2162_v53 = vsel %vm427_vm6, %v11481_v11, %v11467_v4  ;;  %v11482_v54 = vld [vmem:[#allocation156_spill] sm:$0xff]  ;;  %v11483_v50 = vld [vmem:[#allocation197_spill] sm:$0xff]  ;;  %v4329_v4 = vsel %vm531_vm8, %v9855_v6, %v9845_v3  ;;  %v4370_v3 = vsel %vm580_vm11, %v9987_v59, %v9983_v38 }
0x1133   :  { %v4249_v28 = vsel %vm427_vm6, %v11482_v54, %v11478_v20  ;;  %v2172_v14 = vadd.f32 %v2162_v53, %v2124_v43  ;;  %v11487_v20 = vld [vmem:[#allocation187_spill] sm:$0xff] }
0x1135   :  { %v2347_v62 = vpop.permute.xlu0 %2346  ;;  %v2220_v60 = vadd.f32 %v11469_v15, %v2172_v14  ;;  %v11492_v14 = vld [vmem:[#allocation190_spill] sm:$0xff] }
0x1136   :  { %v2345_v30 = vpop.permute.xlu1 %2344 }
0x1137   :  { %v2354_v44 = vsel %vm629_vm12, %v10023_v33, %v2345_v30  ;;  %v2355_v32 = vsel %vm629_vm12, %v2345_v30, %v2347_v62  ;;  %v4289_v62 = vsel %vm476_vm7, %v11484_v41, %v11483_v50  ;;  %v4260_v30 = vadd.f32 %v4250_v45, %v4220_v37  ;;  %v11488_v45 = vld [vmem:[#allocation141_spill] sm:$0xff] }
0x1138   :  { %v2365_v18 = vadd.f32 %v2354_v44, %v2317_v56  ;;  %v2366_v5 = vadd.f32 %v2355_v32, %v2318_v52  ;;  %v4290_v56 = vsel %vm476_vm7, %v11483_v50, %v11485_v29  ;;  %v4219_v52 = vadd.f32 %v4209_v46, %v2076_v22  ;;  %v11486_v22 = vld [vmem:[#allocation24_spill] sm:$0xff]  ;;  %v11490_v50 = vld [vmem:[#allocation139_spill] sm:$0xff] }
0x1139   :  { %v10055_v27 = vpop.permute.xlu0 %2650  ;;  %v4300_v44 = vadd.f32 %v4289_v62, %v4260_v30  ;;  %v4301_v32 = vadd.f32 %v4290_v56, %v4261_v8  ;;  %v2469_v37 = vsel %vm378_vm5, %v11488_v45, %v11487_v20  ;;  %v4466_v43 = vmul.f32 %v9923_v26, %v11486_v22 }
0x113a   :  { %v2382_v9 = vmul.f32 %v11479_v31, %v2365_v18  ;;  %v2383_v23 = vmul.f32 %v11480_v25, %v2366_v5  ;;  %v10059_v10 = vpop.permute.xlu1 %2648  ;;  %v4259_v7 = vadd.f32 %v4249_v28, %v4219_v52  ;;  %v2431_v18 = vmul.f32 %v9996_v42, %v11486_v22  ;;  %v11489_v28 = vld [vmem:[#allocation152_spill] sm:$0xff] }
0x113b   :  { %v2432_v5 = vmul.f32 %v9992_v17, %v11486_v22  ;;  %v4340_v46 = vadd.f32 %v4329_v4, %v4300_v44  ;;  %v4341_v48 = vadd.f32 %v4330_v34, %v4301_v32  ;;  %v2268_v59 = vadd.f32 %v11472_v51, %v2220_v60  ;;  %v11491_v34 = vld [vmem:[#allocation181_spill] sm:$0xff] }
0x113c   :  { %2397 = vrot.lane.b32.xlu1 %v2383_v23, %s5685_s23  ;;  %2395 = vrot.lane.b32.xlu0 %v2382_v9, %s5685_s23  ;;  %v4299_v35 = vadd.f32 %v11484_v41, %v4259_v7  ;;  %v4467_v9 = vmul.f32 %v9712_v13, %v11486_v22  ;;  %v2430_v23 = vmul.f32 %v9937_v36, %v11486_v22 }
0x113d   :  { %v4398_v39 = vpop.permute.xlu0 %4397  ;;  %v4380_v11 = vadd.f32 %v4369_v49, %v4340_v46  ;;  %v4381_v53 = vadd.f32 %v4370_v3, %v4341_v48  ;;  %v4496_v41 = vsel %vm378_vm5, %v11490_v50, %v11489_v28  ;;  %v2316_v56 = vadd.f32 %v9916_v16, %v2268_v59  ;;  %v11495_v46 = vld [vmem:[#allocation175_spill] sm:$0xff]  ;;  %v11496_v48 = vld [vmem:[#allocation193_spill] sm:$0xff]  ;;  %v11498_v59 = vld [vmem:[#allocation146_spill] sm:$0xff] }
0x113e   :  { %v2653_v21 = vpop.permute.xlu1 %2652  ;;  %v4339_v15 = vadd.f32 %v9855_v6, %v4299_v35  ;;  %v2479_v51 = vadd.f32 %v2469_v37, %v2431_v18  ;;  %v2480_v6 = vadd.f32 %v11487_v20, %v2432_v5  ;;  %v4507_v4 = vadd.f32 %v11489_v28, %v4467_v9  ;;  %v11493_v5 = vld [vmem:[#allocation189_spill] sm:$0xff] }
0x113f   :  { %v2517_v7 = vsel %vm427_vm6, %v11492_v14, %v11491_v34  ;;  %v2364_v32 = vadd.f32 %v10023_v33, %v2316_v56  ;;  %v4506_v18 = vadd.f32 %v4496_v41, %v4466_v43  ;;  %v2468_v3 = vsel %vm378_vm5, %v11493_v5, %v11488_v45  ;;  %v11497_v45 = vld [vmem:[#allocation201_spill] sm:$0xff] }
0x1140   :  { %v4379_v52 = vadd.f32 %v9978_v47, %v4339_v15  ;;  %v2564_v60 = vsel %vm476_vm7, %v9702_v55, %v9748_v63  ;;  %v2565_v33 = vsel %vm476_vm7, %v9748_v63, %v9739_v19  ;;  %v2527_v35 = vadd.f32 %v2517_v7, %v2479_v51  ;;  %v11499_v56 = vld [vmem:[#allocation177_spill] sm:$0xff] }
0x1141   :  { %v4402_v38 = vpop.permute.xlu0 %4401  ;;  %v4536_v20 = vsel %vm427_vm6, %v11496_v48, %v11495_v46  ;;  %v2516_v37 = vsel %vm427_vm6, %v11497_v45, %v11492_v14  ;;  %v2612_v19 = vsel %vm531_vm8, %v9933_v40, %v9959_v2  ;;  %v2613_v63 = vsel %vm531_vm8, %v9959_v2, %v9956_v24 }
0x1142   :  { %v4400_v54 = vpop.permute.xlu1 %4399  ;;  %v4419_v22 = vadd.f32 %v4398_v39, %v4379_v52  ;;  %v2575_v9 = vadd.f32 %v2564_v60, %v2527_v35  ;;  %v2381_v15 = vmul.f32 %v11498_v59, %v2364_v32  ;;  %v4575_v28 = vsel %vm476_vm7, %v9873_v61, %v9902_v58 }
0x1143   :  { %v4409_v62 = vsel %vm629_vm12, %v4398_v39, %v4400_v54  ;;  %v4410_v29 = vsel %vm629_vm12, %v4400_v54, %v4402_v38  ;;  %v11494_v39 = vld [vmem:[#allocation103_spill] sm:$0xff]  ;;  %v2478_v54 = vadd.f32 %v2468_v3, %v2430_v23  ;;  %v2661_v24 = vsel %vm580_vm11, %v10055_v27, %v2653_v21 }
0x1144   :  { %v4420_v30 = vadd.f32 %v4409_v62, %v4380_v11  ;;  %v4421_v8 = vadd.f32 %v4410_v29, %v4381_v53  ;;  %v4425_v11 = vmul.f32 %v11498_v59, %v4419_v22  ;;  %v4546_v2 = vadd.f32 %v4536_v20, %v4506_v18 }
0x1145   :  { %v10117_v44 = vpop.permute.xlu0 %4645  ;;  %v2623_v41 = vadd.f32 %v2612_v19, %v2575_v9  ;;  %v4535_v52 = vsel %vm427_vm6, %v11499_v56, %v11496_v48  ;;  %v4616_v3 = vsel %vm531_vm8, %v10005_v1, %v10025_v57 }
0x1146   :  { %v4426_v16 = vmul.f32 %v4420_v30, %v11479_v31  ;;  %v4427_v47 = vmul.f32 %v11480_v25, %v4421_v8  ;;  %v10122_v49 = vpop.permute.xlu1 %4643  ;;  %v4495_v31 = vsel %vm378_vm5, %v11494_v39, %v11490_v50  ;;  %v2528_v25 = vadd.f32 %v11491_v34, %v2480_v6  ;;  %v11500_v39 = vld [vmem:[#allocation170_spill] sm:$0xff] }
0x1147   :  { %v2660_v50 = vsel %vm580_vm11, %v10059_v10, %v10055_v27  ;;  %v4505_v29 = vadd.f32 %v4495_v31, %v2430_v23  ;;  %v2526_v30 = vadd.f32 %v2516_v37, %v2478_v54  ;;  %v4615_v8 = vsel %vm531_vm8, %v10008_v12, %v10005_v1  ;;  %v5015_v54 = vld [vmem:[%s10486_s8] sm:$0xff] }
0x1148   :  { %4441 = vrot.lane.b32.xlu1 %v4427_v47, %s5685_s23  ;;  %4439 = vrot.lane.b32.xlu0 %v4426_v16, %s5685_s23  ;;  %v2576_v38 = vadd.f32 %v2565_v33, %v2528_v25  ;;  %v4576_v27 = vsel %vm476_vm7, %v9902_v58, %v9894_v0  ;;  %v4586_v21 = vadd.f32 %v4575_v28, %v4546_v2  ;;  %v11501_v25 = vld [vmem:[#allocation8_spill] sm:$0xff] }
0x1149   :  { %v2697_v43 = vpop.permute.xlu0 %2696  ;;  %v2671_v6 = vadd.f32 %v2660_v50, %v2623_v41  ;;  %v4547_v23 = vadd.f32 %v11495_v46, %v4507_v4  ;;  %v4655_v7 = vsel %vm580_vm11, %v10122_v49, %v10117_v44  ;;  %v2574_v16 = vadd.f32 %v9702_v55, %v2526_v30 }
0x114a   :  { %v4648_v53 = vpop.permute.xlu1 %4647  ;;  %v2624_v62 = vadd.f32 %v2613_v63, %v2576_v38  ;;  %v4626_v47 = vadd.f32 %v4615_v8, %v4586_v21  ;;  %v4545_v0 = vadd.f32 %v4535_v52, %v4505_v29 }
0x114b   :  { %v4587_v58 = vadd.f32 %v4576_v27, %v4547_v23  ;;  %v2622_v60 = vadd.f32 %v9933_v40, %v2574_v16  ;;  %v4656_v48 = vsel %vm580_vm11, %v10117_v44, %v4648_v53 }
0x114c   :  { %4437 = vrot.lane.b32.xlu1 %v4425_v11, %s5685_s23  ;;  %2393 = vrot.lane.b32.xlu0 %v2381_v15, %s5685_s23  ;;  %v2672_v34 = vadd.f32 %v2661_v24, %v2624_v62  ;;  %v4666_v33 = vadd.f32 %v4655_v7, %v4626_v47  ;;  %v4585_v55 = vadd.f32 %v9873_v61, %v4545_v0  ;;  %v11503_v47 = vld [vmem:[#allocation3_spill] sm:$0xff]  ;;  %v11505_v0 = vld [vmem:[#allocation50_spill] sm:$0xff] }
0x114d   :  { %v2701_v51 = vpop.permute.xlu0 %2700  ;;  %v4627_v45 = vadd.f32 %v4616_v3, %v4587_v58  ;;  %v2670_v37 = vadd.f32 %v10059_v10, %v2622_v60  ;;  %v11502_v10 = vld [vmem:[#allocation166_spill] sm:$0xff]  ;;  %v341_v3 = vmul.f32 %v9996_v42, %v11503_v47  ;;  %v11509_v42 = vld [vmem:[#allocation52_spill] sm:$0xff] }
0x114e   :  { %v2699_v14 = vpop.permute.xlu1 %2698  ;;  %v4625_v40 = vadd.f32 %v10008_v12, %v4585_v55 }
0x114f   :  { %v2708_v32 = vsel %vm629_vm12, %v2697_v43, %v2699_v14  ;;  %v2709_v22 = vsel %vm629_vm12, %v2699_v14, %v2701_v51  ;;  %v2718_v57 = vadd.f32 %v2697_v43, %v2670_v37  ;;  %v4667_v19 = vadd.f32 %v4656_v48, %v4627_v45  ;;  %v11510_v37 = vld [vmem:[#allocation42_spill] sm:$0xff] }
0x1150   :  { %v2719_v18 = vadd.f32 %v2708_v32, %v2671_v6  ;;  %v2720_v5 = vadd.f32 %v2709_v22, %v2672_v34  ;;  %v4665_v44 = vadd.f32 %v10122_v49, %v4625_v40  ;;  %v4804_v49 = vld [vmem:[%s10482_s4] sm:$0xff] }
0x1151   :  { %v4686_v4 = vpop.permute.xlu0 %4685  ;;  %v2735_v59 = vmul.f32 %v11502_v10, %v2718_v57 }
0x1152   :  { %v2736_v31 = vmul.f32 %v11500_v39, %v2719_v18  ;;  %v2737_v35 = vmul.f32 %v11501_v25, %v2720_v5  ;;  %v4684_v46 = vpop.permute.xlu1 %4683  ;;  %v342_v18 = vmul.f32 %v9992_v17, %v11503_v47  ;;  %v11504_v5 = vld [vmem:[#allocation58_spill] sm:$0xff] }
0x1153   :  { %v4695_v20 = vsel %vm629_vm12, %v4684_v46, %v4686_v4  ;;  %v4705_v15 = vadd.f32 %v4684_v46, %v4665_v44  ;;  %v380_v58 = vsel %vm378_vm5, %v11505_v0, %v11504_v5 }
0x1154   :  { %v4706_v1 = vadd.f32 %v4695_v20, %v4666_v33  ;;  %2751 = vrot.lane.b32.xlu1 %v2737_v35, %s5686_s24  ;;  %2749 = vrot.lane.b32.xlu0 %v2736_v31, %s5686_s24  ;;  %v391_v33 = vadd.f32 %v11504_v5, %v342_v18  ;;  %v11506_v31 = vld [vmem:[#allocation56_spill] sm:$0xff]  ;;  %v11508_v20 = vld [vmem:[#allocation59_spill] sm:$0xff]  ;;  %v11515_v5 = vld [vmem:[#allocation41_spill] sm:$0xff] }
0x1155   :  { %v10199_v53 = vpop.permute.xlu0 %2811  ;;  %v4711_v43 = vmul.f32 %v11502_v10, %v4705_v15  ;;  %v478_v45 = vsel %vm476_vm7, %v11509_v42, %v11508_v20  ;;  %v11513_v15 = vld [vmem:[#allocation34_spill] sm:$0xff] }
0x1156   :  { %v4712_v63 = vmul.f32 %v4706_v1, %v11500_v39  ;;  %v4688_v61 = vpop.permute.xlu1 %4687  ;;  %v390_v39 = vadd.f32 %v380_v58, %v341_v3  ;;  %v440_v17 = vadd.f32 %v11506_v31, %v391_v33  ;;  %v11511_v1 = vld [vmem:[#allocation60_spill] sm:$0xff]  ;;  %v11516_v58 = vld [vmem:[#allocation57_spill] sm:$0xff]  ;;  %v2792_v3 = vmul.f32 %v9923_v26, %v11503_v47  ;;  %v11517_v33 = vld [vmem:[#allocation54_spill] sm:$0xff] }
0x1157   :  { %v4696_v9 = vsel %vm629_vm12, %v4686_v4, %v4688_v61  ;;  %v533_v40 = vsel %vm531_vm8, %v11511_v1, %v11510_v37  ;;  %v11520_v37 = vld [vmem:[#allocation55_spill] sm:$0xff] }
0x1158   :  { %v4707_v38 = vadd.f32 %v4696_v9, %v4667_v19  ;;  %4725 = vrot.lane.b32.xlu0 %v4712_v63, %s5686_s24  ;;  %v489_v57 = vadd.f32 %v11508_v20, %v440_v17  ;;  %v11512_v19 = vld [vmem:[#allocation53_spill] sm:$0xff] }
0x1159   :  { %v10213_v28 = vpop.permute.xlu0 %2809  ;;  %v532_v63 = vsel %vm531_vm8, %v11512_v19, %v11511_v1 }
0x115a   :  { %v4713_v11 = vmul.f32 %v11501_v25, %v4707_v38  ;;  %v10201_v12 = vpop.permute.xlu1 %2813  ;;  %v11507_v25 = vld [vmem:[#allocation51_spill] sm:$0xff]  ;;  %v544_v44 = vadd.f32 %v533_v40, %v489_v57  ;;  %v2793_v38 = vmul.f32 %v9712_v13, %v11503_v47  ;;  %v582_v13 = vsel %vm580_vm11, %v11516_v58, %v11515_v5 }
0x115b   :  { %v429_v35 = vsel %vm427_vm6, %v11507_v25, %v11506_v31 }
0x115c   :  { %2747 = vrot.lane.b32.xlu0 %v2735_v59, %s5686_s24  ;;  %4727 = vrot.lane.b32.xlu1 %v4713_v11, %s5686_s24  ;;  %v439_v46 = vadd.f32 %v429_v35, %v390_v39  ;;  %v379_v11 = vsel %vm378_vm5, %v11513_v15, %v11505_v0  ;;  %v581_v0 = vsel %vm580_vm11, %v11517_v33, %v11516_v58 }
0x115d   :  { %v2854_v24 = vpop.permute.xlu0 %2853  ;;  %v593_v39 = vadd.f32 %v582_v13, %v544_v44 }
0x115e   :  { %v10215_v50 = vpop.permute.xlu1 %2851  ;;  %v488_v61 = vadd.f32 %v478_v45, %v439_v46  ;;  %v11519_v46 = vld [vmem:[#allocation61_spill] sm:$0xff] }
0x115f   :  { %v630_v1 = vsel %vm629_vm12, %v11520_v37, %v11519_v46  ;;  %v2862_v40 = vsel %vm427_vm6, %v10215_v50, %v2854_v24 }
0x1160   :  { %4808 = vperm.xlu0 %5577, %v4804_v49   ;;  %4723 = vrot.lane.b32.xlu1 %v4711_v43, %s5686_s24  ;;  %v543_v10 = vadd.f32 %v532_v63, %v488_v61  ;;  %v2833_v49 = vadd.f32 %v10201_v12, %v2793_v38  ;;  %v340_v43 = vmul.f32 %v9937_v36, %v11503_v47 }
0x1161   :  { %v10219_v41 = vpop.permute.xlu0 %2891  ;;  %v2822_v36 = vsel %vm378_vm5, %v10199_v53, %v10201_v12  ;;  %v2821_v12 = vsel %vm378_vm5, %v10213_v28, %v10199_v53 }
0x1162   :  { %v10217_v2 = vpop.permute.xlu1 %2849  ;;  %v2873_v31 = vadd.f32 %v2854_v24, %v2833_v49  ;;  %v389_v35 = vadd.f32 %v379_v11, %v340_v43  ;;  %v592_v17 = vadd.f32 %v581_v0, %v543_v10  ;;  %v2832_v61 = vadd.f32 %v2822_v36, %v2792_v3  ;;  %v11523_v3 = vld [vmem:[#allocation99_spill] sm:$0xff]  ;;  %v11524_v0 = vld [vmem:[#allocation48_spill] sm:$0xff] }
0x1163   :  { %v2861_v38 = vsel %vm427_vm6, %v10217_v2, %v10215_v50  ;;  %v2831_v15 = vadd.f32 %v2821_v12, %v340_v43 }
0x1164   :  { %5018 = vperm.xlu1 %5578, %v5015_v54   ;;  %v11514_v54 = vld [vmem:[#allocation35_spill] sm:$0xff]  ;;  %v641_v28 = vadd.f32 %v630_v1, %v592_v17  ;;  %v2872_v24 = vadd.f32 %v2862_v40, %v2832_v61 }
0x1165   :  { %v10223_v29 = vpop.permute.xlu0 %2889  ;;  %v428_v18 = vsel %vm427_vm6, %v11514_v54, %v11507_v25  ;;  %v11518_v25 = vld [vmem:[#allocation45_spill] sm:$0xff]  ;;  %v2871_v5 = vadd.f32 %v2861_v38, %v2831_v15 }
0x1166   :  { %v10221_v62 = vpop.permute.xlu1 %2893  ;;  %v631_v20 = vsel %vm629_vm12, %v11519_v46, %v11518_v25  ;;  %v438_v63 = vadd.f32 %v428_v18, %v389_v35  ;;  %v2901_v50 = vsel %vm476_vm7, %v10223_v29, %v10219_v41  ;;  %v11526_v46 = vld [vmem:[#allocation81_spill] sm:$0xff] }
0x1167   :  { %v2913_v57 = vadd.f32 %v10221_v62, %v2873_v31  ;;  %v642_v44 = vadd.f32 %v631_v20, %v593_v39  ;;  %v2902_v10 = vsel %vm476_vm7, %v10219_v41, %v10221_v62  ;;  %v1002_v39 = vsel %vm1000_vm1, %v11524_v0, %v11523_v3  ;;  %v11525_v41 = vld [vmem:[#allocation85_spill] sm:$0xff]  ;;  %v11527_v20 = vld [vmem:[#allocation100_spill] sm:$0xff] }
0x1168   :  { %v2912_v58 = vadd.f32 %v2902_v10, %v2872_v24  ;;  %v658_v29 = vmul.f32 %v11525_v41, %v641_v28  ;;  %v2911_v31 = vadd.f32 %v2901_v50, %v2871_v5 }
0x1169   :  { %v10227_v52 = vpop.permute.xlu0 %2933 }
0x116a   :  { %v10225_v56 = vpop.permute.xlu1 %2931 }
0x116b   :  { %v2943_v2 = vsel %vm531_vm8, %v10225_v56, %v10227_v52  ;;  %v2953_v15 = vadd.f32 %v10225_v56, %v2911_v31 }
0x116c   :  { %v2954_v35 = vadd.f32 %v2943_v2, %v2912_v58 }
0x116d   :  { %v10229_v8 = vpop.permute.xlu0 %2971 }
0x116e   :  { %v2936_v30 = vpop.permute.xlu1 %2935  ;;  %v2993_v50 = vadd.f32 %v10229_v8, %v2953_v15 }
0x116f   :  { %v2944_v45 = vsel %vm531_vm8, %v10227_v52, %v2936_v30 }
0x1170   :  { %v2955_v53 = vadd.f32 %v2944_v45, %v2913_v57  ;;  %v1356_v45 = vsel %vm1354_vm2, %v11527_v20, %v11526_v46  ;;  %v1012_v57 = vadd.f32 %v1002_v39, %v658_v29 }
0x1171   :  { %v2976_v27 = vpop.permute.xlu0 %2975 }
0x1172   :  { %v10231_v51 = vpop.permute.xlu1 %2973 }
0x1173   :  { %v2984_v30 = vsel %vm580_vm11, %v10231_v51, %v2976_v27  ;;  %v11521_v27 = vld [vmem:[#allocation37_spill] sm:$0xff] }
0x1174   :  { %v477_v18 = vsel %vm476_vm7, %v11521_v27, %v11509_v42  ;;  %v2995_v62 = vadd.f32 %v2984_v30, %v2955_v53  ;;  %v2983_v42 = vsel %vm580_vm11, %v10229_v8, %v10231_v51  ;;  %v11528_v30 = vld [vmem:[#allocation118_spill] sm:$0xff] }
0x1175   :  { %v10235_v6 = vpop.permute.xlu0 %3013  ;;  %v487_v43 = vadd.f32 %v477_v18, %v438_v63  ;;  %v2994_v63 = vadd.f32 %v2983_v42, %v2954_v35  ;;  %v11530_v42 = vld [vmem:[#allocation75_spill] sm:$0xff] }
0x1176   :  { %v10233_v21 = vpop.permute.xlu1 %3011 }
0x1177   :  { %v3023_v1 = vsel %vm629_vm12, %v10233_v21, %v10235_v6  ;;  %v542_v40 = vadd.f32 %v11512_v19, %v487_v43 }
0x1178   :  { %v3034_v24 = vadd.f32 %v3023_v1, %v2994_v63 }
0x1179   :  { %v10237_v14 = vpop.permute.xlu0 %3305  ;;  %v591_v27 = vadd.f32 %v11517_v33, %v542_v40  ;;  %v3033_v33 = vadd.f32 %v10233_v21, %v2993_v50 }
0x117a   :  { %v3016_v34 = vpop.permute.xlu1 %3015 }
0x117b   :  { %v3024_v11 = vsel %vm629_vm12, %v10235_v6, %v3016_v34  ;;  %v11522_v34 = vld [vmem:[#allocation174_spill] sm:$0xff]  ;;  %v1366_v6 = vadd.f32 %v1356_v45, %v1012_v57 }
0x117c   :  { %v659_v13 = vmul.f32 %v11522_v34, %v642_v44  ;;  %v3035_v36 = vadd.f32 %v3024_v11, %v2995_v62  ;;  %v11529_v44 = vld [vmem:[#allocation108_spill] sm:$0xff] }
0x117d   :  { %v10241_v7 = vpop.permute.xlu0 %3303  ;;  %v1699_v38 = vsel %vm1697_vm3, %v11529_v44, %v11528_v30 }
0x117e   :  { %v10239_v23 = vpop.permute.xlu1 %3307  ;;  %v1013_v25 = vadd.f32 %v11523_v3, %v659_v13  ;;  %v3041_v10 = vmul.f32 %v11522_v34, %v3035_v36  ;;  %v1709_v18 = vadd.f32 %v1699_v38, %v1366_v6  ;;  %v640_v34 = vadd.f32 %v11520_v37, %v591_v27 }
0x117f   :  { %v3316_v43 = vsel %vm1000_vm1, %v10237_v14, %v10239_v23  ;;  %v3040_v13 = vmul.f32 %v3034_v24, %v11525_v41 }
0x1180   :  { %v1367_v61 = vadd.f32 %v11526_v46, %v1013_v25  ;;  %v3327_v56 = vadd.f32 %v10239_v23, %v3041_v10  ;;  %v1001_v23 = vsel %vm1000_vm1, %v11530_v42, %v11524_v0  ;;  %v11531_v25 = vld [vmem:[#allocation46_spill] sm:$0xff] }
0x1181   :  { %v10245_v22 = vpop.permute.xlu0 %3593  ;;  %v3326_v36 = vadd.f32 %v3316_v43, %v3040_v13  ;;  %v657_v46 = vmul.f32 %v11531_v25, %v640_v34  ;;  %v3039_v0 = vmul.f32 %v11531_v25, %v3033_v33 }
0x1182   :  { %v10243_v32 = vpop.permute.xlu1 %3591  ;;  %v1710_v19 = vadd.f32 %v11528_v30, %v1367_v61  ;;  %v3613_v41 = vadd.f32 %v10245_v22, %v3327_v56 }
0x1183   :  { %v3602_v3 = vsel %vm1354_vm2, %v10243_v32, %v10245_v22  ;;  %v1011_v63 = vadd.f32 %v1001_v23, %v657_v46 }
0x1184   :  { %v3612_v45 = vadd.f32 %v3602_v3, %v3326_v36 }
0x1185   :  { %v10256_v4 = vpop.permute.xlu0 %3867 }
0x1186   :  { %v10247_v16 = vpop.permute.xlu1 %3589 }
0x1187   :  { %v3601_v22 = vsel %vm1354_vm2, %v10247_v16, %v10243_v32 }
0x1189   :  { %v10265_v55 = vpop.permute.xlu0 %3865 }
0x118a   :  { %v10258_v60 = vpop.permute.xlu1 %3869  ;;  %v3877_v32 = vsel %vm1697_vm3, %v10265_v55, %v10256_v4 }
0x118b   :  { %v3878_v31 = vsel %vm1697_vm3, %v10256_v4, %v10258_v60  ;;  %v3889_v40 = vadd.f32 %v10258_v60, %v3613_v41 }
0x118c   :  { %v3888_v30 = vadd.f32 %v3878_v31, %v3612_v45 }
0x118d   :  { %v10283_v59 = vpop.permute.xlu0 %2043 }
0x118e   :  { %v10267_v48 = vpop.permute.xlu1 %2041  ;;  %v2064_v5 = vadd.f32 %v10283_v59, %v1710_v19  ;;  %v11534_v19 = vld [vmem:[#allocation161_spill] sm:$0xff] }
0x118f   :  { %v2053_v11 = vsel %vm2051_vm4, %v10267_v48, %v10283_v59  ;;  %v3315_v59 = vsel %vm1000_vm1, %v10241_v7, %v10237_v14  ;;  %v11532_v14 = vld [vmem:[#allocation78_spill] sm:$0xff] }
0x1190   :  { %v2063_v8 = vadd.f32 %v2053_v11, %v1709_v18  ;;  %v1355_v7 = vsel %vm1354_vm2, %v11532_v14, %v11527_v20  ;;  %v3325_v61 = vadd.f32 %v3315_v59, %v3039_v0  ;;  %v11533_v20 = vld [vmem:[#allocation116_spill] sm:$0xff]  ;;  %v2052_v11 = vsel %vm2051_vm4, %v11534_v19, %v10267_v48 }
0x1191   :  { %v1698_v10 = vsel %vm1697_vm3, %v11533_v20, %v11529_v44  ;;  %v1365_v6 = vadd.f32 %v1355_v7, %v1011_v63 }
0x1192   :  { %v3611_v15 = vadd.f32 %v3601_v22, %v3325_v61 }
0x1193   :  { %v1708_v4 = vadd.f32 %v1698_v10, %v1365_v6 }
0x1194   :  { %v3887_v55 = vadd.f32 %v3877_v32, %v3611_v15 }
0x119a   :  { %v10279_v9 = vpop.permute.xlu1 %4153 }
0x119e   :  { %v10310_v26 = vpop.permute.xlu0 %4155  ;;  %v10312_v47 = vpop.permute.xlu1 %4151 }
0x119f   :  { %v4164_v57 = vsel %vm2051_vm4, %v10279_v9, %v10310_v26  ;;  %v4175_v16 = vadd.f32 %v10310_v26, %v3889_v40  ;;  %v4163_v44 = vsel %vm2051_vm4, %v10312_v47, %v10279_v9 }
0x11a0   :  { %v4174_v24 = vadd.f32 %v4164_v57, %v3888_v30  ;;  %v4173_v34 = vadd.f32 %v4163_v44, %v3887_v55 }
0x11ae   :  { %v10333_v49 = vpop.permute.xlu0 %2395  ;;  %v2398_v54 = vpop.permute.xlu1 %2397 }
0x11af   :  { %v2407_v58 = vsel %vm2405_vm9, %v10333_v49, %v2398_v54  ;;  %v2418_v39 = vadd.f32 %v2398_v54, %v2064_v5 }
0x11b0   :  { %v2417_v37 = vadd.f32 %v2407_v58, %v2063_v8  ;;  %v2062_v58 = vadd.f32 %v2052_v11, %v1708_v4 }
0x11b3   :  { %v10363_v51 = vpop.f32.mrb[6].mxu0  ;;  %v10365_v12 = vpop.f32.mrb[6].mxu1 }
0x11b4   :  { %v10373_v53 = vpop.f32.mrb[7].mxu0  ;;  %v10375_v28 = vpop.f32.mrb[7].mxu1 }
0x11ba   :  { %v10352_v52 = vpop.permute.xlu0 %4439  ;;  %v10354_v17 = vpop.permute.xlu1 %4441 }
0x11bb   :  { %v4450_v60 = vsel %vm2405_vm9, %v10352_v52, %v10354_v17  ;;  %v4461_v27 = vadd.f32 %v10354_v17, %v4175_v16 }
0x11bc   :  { %v4460_v26 = vadd.f32 %v4450_v60, %v4174_v24 }
0x11be   :  { %v2394_v2 = vpop.permute.xlu0 %2393  ;;  %v4438_v62 = vpop.permute.xlu1 %4437 }
0x11bf   :  { %v2406_v43 = vsel %vm2405_vm9, %v2394_v2, %v10333_v49  ;;  %v4449_v56 = vsel %vm2405_vm9, %v4438_v62, %v10352_v52  ;;  %v5185_v52 = vld [vmem:[%s10487_s10] sm:$0xff] }
0x11c0   :  { %v2416_v47 = vadd.f32 %v2406_v43, %v2062_v58  ;;  %v4459_v17 = vadd.f32 %v4449_v56, %v4173_v34 }
0x11c6   :  { %v2750_v29 = vpop.permute.xlu0 %2749  ;;  %v2752_v21 = vpop.permute.xlu1 %2751 }
0x11c7   :  { %v2761_v54 = vsel %vm2759_vm10, %v2750_v29, %v2752_v21  ;;  %v2772_v35 = vadd.f32 %v2752_v21, %v2418_v39 }
0x11c8   :  { %v2771_v1 = vadd.f32 %v2761_v54, %v2417_v37 }
0x11c9   :  { %4761 = vrot.lane.b32.xlu0 %v2772_v35, %s5687_s27 }
0x11ca   :  { %v4726_v38 = vpop.permute.xlu0 %4725  ;;  %4759 = vrot.lane.b32.xlu1 %v2771_v1, %s5687_s27 }
0x11ce   :  { %v2748_v18 = vpop.permute.xlu0 %2747  ;;  %v4728_v50 = vpop.permute.xlu1 %4727 }
0x11cf   :  { %v4736_v5 = vsel %vm2759_vm10, %v4726_v38, %v4728_v50  ;;  %v4747_v48 = vadd.f32 %v4728_v50, %v4461_v27  ;;  %v2760_v9 = vsel %vm2759_vm10, %v2748_v18, %v2750_v29 }
0x11d0   :  { %v4746_v33 = vadd.f32 %v4736_v5, %v4460_v26  ;;  %v2770_v2 = vadd.f32 %v2760_v9, %v2416_v47 }
0x11d1   :  { %4788 = vrot.lane.b32.xlu0 %v4747_v48, %s5687_s27 }
0x11d2   :  { %v4724_v13 = vpop.permute.xlu1 %4723  ;;  %4786 = vrot.lane.b32.xlu1 %v4746_v33, %s5687_s27 }
0x11d3   :  { %v4735_v49 = vsel %vm2759_vm10, %v4724_v13, %v4726_v38 }
0x11d4   :  { %v4745_v8 = vadd.f32 %v4735_v49, %v4459_v17 }
0x11d6   :  { %4784 = vrot.lane.b32.xlu0 %v4745_v8, %s5687_s27  ;;  %4757 = vrot.lane.b32.xlu1 %v2770_v2, %s5687_s27 }
0x11da   :  { %5188 = vperm.xlu1 %5578, %v5185_v52  }
0x11df   :  { %v4809_v3 = vpop.permute.xlu0 %4808 }
0x11e3   :  { %v5019_v62 = vpop.permute.xlu1 %5018 }
0x11e4   :  { %v5107_v42 = vadd.f32 %v10373_v53, %v5019_v62  ;;  %v5178_v31 = vadd.f32 %v10375_v28, %v5019_v62  ;;  %v5105_v45 = vadd.f32 %v10363_v51, %v5019_v62  ;;  %v5176_v1 = vadd.f32 %v10365_v12, %v5019_v62  ;;  %v5184_v28 = vld [vmem:[%s10488_s9] sm:$0xff] }
0x123b   :  { %v4762_v39 = vpop.permute.xlu0 %4761 }
0x123c   :  { %v4760_v23 = vpop.permute.xlu1 %4759 }
0x123d   :  { %v4771_v59 = vsel %vm4769_vm13, %v4760_v23, %v4762_v39 }
0x123e   :  { %v4817_v36 = vadd.f32 %v4809_v3, %v4771_v59 }
0x1240   :  { %v5181_v37 = vmul.f32 %v5107_v42, %v4817_v36 }
0x1242   :  { %5194 = vmatprep.subr.mxu0 %v5181_v37 }
0x1243   :  { %v4789_v29 = vpop.permute.xlu0 %4788 }
0x1244   :  { %v4787_v21 = vpop.permute.xlu1 %4786 }
0x1245   :  { %v4797_v41 = vsel %vm4769_vm13, %v4787_v21, %v4789_v29 }
0x1246   :  { %v4819_v54 = vadd.f32 %v4809_v3, %v4797_v41 }
0x1248   :  { %v4785_v35 = vpop.permute.xlu0 %4784  ;;  %v4758_v25 = vpop.permute.xlu1 %4757  ;;  %v5183_v46 = vmul.f32 %v5178_v31, %v4819_v54 }
0x1249   :  { %v4796_v0 = vsel %vm4769_vm13, %v4785_v35, %v4787_v21  ;;  %v4770_v53 = vsel %vm4769_vm13, %v4758_v25, %v4760_v23 }
0x124a   :  { %v4818_v14 = vadd.f32 %v4809_v3, %v4796_v0  ;;  %v4816_v7 = vadd.f32 %v4809_v3, %v4770_v53  ;;  %5265 = vmatprep.subr.mxu1 %v5183_v46 }
0x124c   :  { %v5182_v22 = vmul.f32 %v5176_v1, %v4818_v14  ;;  %v5180_v40 = vmul.f32 %v5105_v45, %v4816_v7 }
0x124e   :  { %5195 = vmatpush1.msra.mxu0 %v5180_v40  ;;  %5266 = vmatpush1.msra.mxu1 %v5182_v22 }
0x124f   :  { %5372 = vmatmul.mubr.msk.f32.vlgmr.msra.gmra.mrb[8].mxu0 %vm56_vm0, %v5184_v28  ;;  %5373 = vmatmul.mubr.msk.f32.vlgmr.msra.gmra.mrb[8].mxu1 %vm56_vm0, %v5184_v28 }
0x1259   :  { %v5189_v57 = vpop.permute.xlu1 %5188 }
0x1322   :  { %v5260_v63 = vpop.f32.mrb[8].mxu0  ;;  %v5331_v51 = vpop.f32.mrb[8].mxu1 }
0x1323   :  { %v5261_v61 = vadd.f32 %v5260_v63, %v5189_v57  ;;  %v5332_v12 = vadd.f32 %v5331_v51, %v5189_v57  ;;  %v5262_v30 = vpop.f32.mrb[9].mxu0  ;;  %v5333_v38 = vpop.f32.mrb[9].mxu1 }
0x1324   :  { %v5263_v20 = vadd.f32 %v5262_v30, %v5189_v57  ;;  %v5334_v10 = vadd.f32 %v5333_v38, %v5189_v57 }
0x1325   :  { %5336 = vst [vmem:[%s10489_s11] sm:$0xff] %v5261_v61  ;;  %5338 = vst [vmem:[%s10489_s11 + $0x10] sm:$0xff] %v5332_v12 }
0x1326   :  { %5337 = vst [vmem:[%s10489_s11 + $0x8] sm:$0xff] %v5263_v20  ;;  %5339 = vst [vmem:[%s10489_s11 + $0x18] sm:$0xff] %v5334_v10 }

</bundles_post_ra>
